<compile_context>
chip_gen: v7x
topology: tpu7x:2x2x1
jax: 0.10.0
libtpu: 0.0.40
codegen_flags: <defaults>
</compile_context>

<pallas_src>
import functools

import jax
import jax.numpy as jnp
from jax.experimental import pallas as pl
from jax.experimental.pallas import tpu as pltpu


def linear_relu_kernel(x_ref, w_ref, b_ref, o_ref):
    """One (N-tile, K-tile) grid step of out = relu(x @ W + b).

    The output block is resident across the K grid axis (its index_map ignores
    k), so o_ref itself is the f32 accumulator — no scratch buffer needed.
    """
    k = pl.program_id(1)

    @pl.when(k == 0)
    def _():
        o_ref[...] = jnp.zeros_like(o_ref)

    o_ref[...] += jnp.dot(
        x_ref[...], w_ref[...], preferred_element_type=jnp.float32
    )

    @pl.when(k == pl.num_programs(1) - 1)
    def _():
        # Bias broadcast over batch, then ReLU, in place.
        # TODO(synk): nn.Dropout() is identity in eval mode; training-mode
        # stochastic masking is intentionally not applied here.
        o_ref[...] = jnp.maximum(o_ref[...] + b_ref[...], 0.0)


@functools.partial(jax.jit, static_argnames=("tn", "tk"))
def alexnet_classifier1(x, w, b, *, tn=1024, tk=2304):
    """x: (B, 9216) f32, w: (9216, 4096) f32, b: (4096,) f32 -> (B, 4096) f32."""
    B, K = x.shape
    Kw, N = w.shape
    assert Kw == K, (Kw, K)
    # Guard against silent truncation of the reduction / output if tiles are
    # ever retuned to non-dividing sizes.
    assert K % tk == 0, f"K={K} must be divisible by tk={tk}"
    assert N % tn == 0, f"N={N} must be divisible by tn={tn}"
    assert tk % 128 == 0 and tn % 128 == 0, "tiles must be lane-aligned"
    # Keep >=2 N blocks so the 'parallel' axis can shard across v7x's 2 TCs.
    assert N // tn >= 2, "need >=2 N blocks for megacore sharding"

    b2d = b.reshape(1, N)
    grid = (N // tn, K // tk)  # (4, 4) at default tiles: 16 steps total.

    # Weight-streaming roofline hint: ~151 MB moved, ~151 MFLOP of matmul.
    cost = pl.CostEstimate(
        flops=2 * B * K * N,
        transcendentals=0,
        bytes_accessed=(K * N + B * K + N + B * N) * 4,
    )

    return pl.pallas_call(
        linear_relu_kernel,
        out_shape=jax.ShapeDtypeStruct((B, N), x.dtype),
        grid_spec=pltpu.PrefetchScalarGridSpec(
            num_scalar_prefetch=0,
            grid=grid,
            in_specs=[
                pl.BlockSpec((B, tk), lambda j, k: (0, k)),   # x tile (tiny)
                pl.BlockSpec((tk, tn), lambda j, k: (k, j)),  # W tile (9 MiB)
                pl.BlockSpec((1, tn), lambda j, k: (0, j)),   # bias tile
            ],
            out_specs=pl.BlockSpec((B, tn), lambda j, k: (0, j)),
        ),
        compiler_params=pltpu.CompilerParams(
            dimension_semantics=("parallel", "arbitrary"),
            # ~18 MiB double-buffered W + small x/bias/out blocks; give
            # explicit headroom while staying well under v7x's 64 MiB VMEM.
            vmem_limit_bytes=48 * 1024 * 1024,
        ),
        cost_estimate=cost,
    )(x, w, b2d)


if __name__ == "__main__":
    IN_FEATURES = 256 * 6 * 6   # 9216
    OUT_FEATURES = 4096
    BATCH = 2

    key = jax.random.PRNGKey(0)
    kx, kw, kb = jax.random.split(key, 3)

    # Deterministic parameter init (PyTorch-default-like uniform ±1/sqrt(fan_in)).
    bound = 1.0 / jnp.sqrt(jnp.float32(IN_FEATURES))
    w = jax.random.uniform(
        kw, (IN_FEATURES, OUT_FEATURES), jnp.float32, minval=-bound, maxval=bound
    )
    b = jax.random.uniform(
        kb, (OUT_FEATURES,), jnp.float32, minval=-bound, maxval=bound
    )
    x = jax.random.normal(kx, (BATCH, IN_FEATURES), jnp.float32)

    out = alexnet_classifier1(x, w, b)
    out = jax.block_until_ready(out)

    # Cross-check against plain-JAX reference.
    ref = jnp.maximum(x @ w + b[None, :], 0.0)
    assert out.shape == (BATCH, OUT_FEATURES), out.shape
    assert jnp.allclose(out, ref, atol=1e-3, rtol=1e-3), "mismatch vs reference"

    print("KERNEL_OK")
</pallas_src>

<mosaic_0001>
module attributes {stable_mosaic.version = 11 : i64} {
  func.func @linear_relu_kernel(%arg0: i32, %arg1: i32, %arg2: memref<2x2304xf32, #tpu.memory_space<vmem>>, %arg3: memref<2304x1024xf32, #tpu.memory_space<vmem>>, %arg4: memref<1x1024xf32, #tpu.memory_space<vmem>>, %arg5: memref<2x1024xf32, #tpu.memory_space<vmem>>) attributes {dimension_semantics = [#tpu.dimension_semantics<parallel>, #tpu.dimension_semantics<arbitrary>], iteration_bounds = array<i64: 4, 4>, scalar_prefetch = 0 : i64, scratch_operands = 0 : i64, tpu.core_type = #tpu.core_type<tc>, window_params = [{transform_indices = @transform_0, window_bounds = array<i64: 2, 2304>}, {transform_indices = @transform_1, window_bounds = array<i64: 2304, 1024>}, {transform_indices = @transform_2, window_bounds = array<i64: 1, 1024>}, {transform_indices = @transform_3, window_bounds = array<i64: 2, 1024>}]} {
    %c0_i32 = arith.constant 0 : i32
    %0 = arith.cmpi eq, %arg1, %c0_i32 : i32
    %1 = arith.extui %0 : i1 to i32
    %c0_i32_0 = arith.constant 0 : i32
    %2 = arith.cmpi ne, %1, %c0_i32_0 : i32
    scf.if %2 {
      %cst_9 = arith.constant 0.000000e+00 : f32
      %12 = vector.broadcast %cst_9 : f32 to vector<2x1024xf32>
      %c0_10 = arith.constant 0 : index
      %c0_11 = arith.constant 0 : index
      %13 = vector.load %arg5[%c0_10, %c0_11] : memref<2x1024xf32, #tpu.memory_space<vmem>>, vector<2x1024xf32>
      tpu.vector_store %arg5[%c0_10, %c0_11], %12 {strides = array<i32>} : memref<2x1024xf32, #tpu.memory_space<vmem>>, vector<2x1024xf32>,
    } else {
    }
    %c0 = arith.constant 0 : index
    %c0_1 = arith.constant 0 : index
    %3 = vector.load %arg5[%c0, %c0_1] : memref<2x1024xf32, #tpu.memory_space<vmem>>, vector<2x1024xf32>
    %c0_2 = arith.constant 0 : index
    %c0_3 = arith.constant 0 : index
    %4 = vector.load %arg2[%c0_2, %c0_3] : memref<2x2304xf32, #tpu.memory_space<vmem>>, vector<2x2304xf32>
    %c0_4 = arith.constant 0 : index
    %c0_5 = arith.constant 0 : index
    %5 = vector.load %arg3[%c0_4, %c0_5] : memref<2304x1024xf32, #tpu.memory_space<vmem>>, vector<2304x1024xf32>
    %cst = arith.constant dense<0.000000e+00> : vector<2x1024xf32>
    %6 = tpu.matmul %4, %5, %cst {dimension_numbers = #tpu.dot_dimension_numbers<[1], [0], [0], [1], [0, 0, 1, 1], [], []>} : vector<2x2304xf32>, vector<2304x1024xf32>, vector<2x1024xf32> -> vector<2x1024xf32>
    %7 = arith.addf %3, %6 : vector<2x1024xf32>
    %c0_6 = arith.constant 0 : index
    %c0_7 = arith.constant 0 : index
    %8 = vector.load %arg5[%c0_6, %c0_7] : memref<2x1024xf32, #tpu.memory_space<vmem>>, vector<2x1024xf32>
    tpu.vector_store %arg5[%c0_6, %c0_7], %7 {strides = array<i32>} : memref<2x1024xf32, #tpu.memory_space<vmem>>, vector<2x1024xf32>,
    %c3_i32 = arith.constant 3 : i32
    %9 = arith.cmpi eq, %arg1, %c3_i32 : i32
    %10 = arith.extui %9 : i1 to i32
    %c0_i32_8 = arith.constant 0 : i32
    %11 = arith.cmpi ne, %10, %c0_i32_8 : i32
    scf.if %11 {
      %c0_9 = arith.constant 0 : index
      %c0_10 = arith.constant 0 : index
      %12 = vector.load %arg5[%c0_9, %c0_10] : memref<2x1024xf32, #tpu.memory_space<vmem>>, vector<2x1024xf32>
      %c0_11 = arith.constant 0 : index
      %c0_12 = arith.constant 0 : index
      %13 = vector.load %arg4[%c0_11, %c0_12] : memref<1x1024xf32, #tpu.memory_space<vmem>>, vector<1x1024xf32>
      %14 = vector.broadcast %13 : vector<1x1024xf32> to vector<2x1024xf32>
      %15 = arith.addf %12, %14 : vector<2x1024xf32>
      %cst_13 = arith.constant 0.000000e+00 : f32
      %16 = vector.broadcast %cst_13 : f32 to vector<2x1024xf32>
      %17 = arith.maximumf %15, %16 : vector<2x1024xf32>
      %c0_14 = arith.constant 0 : index
      %c0_15 = arith.constant 0 : index
      %18 = vector.load %arg5[%c0_14, %c0_15] : memref<2x1024xf32, #tpu.memory_space<vmem>>, vector<2x1024xf32>
      tpu.vector_store %arg5[%c0_14, %c0_15], %17 {strides = array<i32>} : memref<2x1024xf32, #tpu.memory_space<vmem>>, vector<2x1024xf32>,
    } else {
    }
    return
  }
  func.func @transform_0(%arg0: i32, %arg1: i32) -> (i32, i32) {
    %c0_i32 = arith.constant 0 : i32
    %c0_i32_0 = arith.constant 0 : i32
    return %c0_i32, %arg1 : i32, i32
  }
  func.func @transform_1(%arg0: i32, %arg1: i32) -> (i32, i32) {
    %c0_i32 = arith.constant 0 : i32
    return %arg1, %arg0 : i32, i32
  }
  func.func @transform_2(%arg0: i32, %arg1: i32) -> (i32, i32) {
    %c0_i32 = arith.constant 0 : i32
    %c0_i32_0 = arith.constant 0 : i32
    return %c0_i32, %arg0 : i32, i32
  }
  func.func @transform_3(%arg0: i32, %arg1: i32) -> (i32, i32) {
    %c0_i32 = arith.constant 0 : i32
    %c0_i32_0 = arith.constant 0 : i32
    return %c0_i32, %arg0 : i32, i32
  }
}

</mosaic_0001>

<bundles_post_ra>
// kernel: alexnet_classifier1.1
= control target key start
LH: loop header
LB: loop body
LE: loop exit
PB: predicated region body
PF: predicated region fallthrough
CT: control target
= control target key end

     0   :  { %s11246_s0 = inlined_call_operand.hbm [shape: f32[2,9216], index: 0, kind: input, shape index: {}]   ;;  %s11247_s1 = inlined_call_operand.hbm [shape: f32[9216,4096], index: 1, kind: input, shape index: {}]   ;;  %s11248_s2 = inlined_call_operand.hbm [shape: f32[1,4096], index: 2, kind: input, shape index: {}]   ;;  %s11249_s3 = inlined_call_operand.hbm [shape: f32[2,4096], index: 3, kind: output, shape index: {}]  }
   0x1   :  { %11262 = sst [smem:[#allocation19_spill]] %s11246_s0 }
   0x2   :  { %11263 = sst [smem:[#allocation20_spill]] %s11247_s1 }
   0x3   :  { %11264 = sst [smem:[#allocation21_spill]] %s11249_s3 }
   0x4   :  { %8 = vsyncpa [#allocation3], 0 }
   0x5   :  { %10 = vsyncpa [#allocation3 + $0x1], 0 }
   0x6   :  { %11 = vsyncpa [#allocation6], 0 }
   0x7   :  { %13 = vsyncpa [#allocation6 + $0x1], 0 }
   0x8   :  { %14 = vsyncpa [#allocation4], 0 }
   0x9   :  { %16 = vsyncpa [#allocation4 + $0x1], 0  ;;  %s8347_s12 = smov 0   ;;  %s8349_s13 = smov 0  }
   0xa   :  { %s8351_s14 = smov 0   ;;  %s8353_s15 = smov 0  }
   0xb   :  { %s8355_s16 = smov 0   ;;  %s8357_s17 = smov 0  }
   0xc   :  { %s8359_s18 = smov 0   ;;  %s8361_s19 = smov 0  }
   0xd   :  { %s8363_s20 = smov 0   ;;  %s8365_s21 = smov 0  }
   0xe   :  { %s8367_s22 = smov 0   ;;  %s8369_s23 = smov 0  }
   0xf   :  { %s8371_s24 = smov 0   ;;  %s8373_s25 = smov 0  }
  0x10 LB: > { %11265 = sst [smem:[#allocation13_spill]] %s8296_s20  ;;  %p11252_p0 = scmp.eq.s32.totalorder %s8316_s25, 0  ;;  %s8316_s25 = sphi %s8373_s25, %s22_s25   ;;  %s8312_s24 = sphi %s8371_s24, %s11317_s24   ;;  %s8308_s23 = sphi %s8369_s23, %s11316_s23   ;;  %s8304_s22 = sphi %s8367_s22, %s11304_s22   ;;  %s8300_s21 = sphi %s8365_s21, %s11315_s21   ;;  %s8296_s20 = sphi %s8363_s20, %s11303_s20   ;;  %s8292_s19 = sphi %s8361_s19, %s11314_s19   ;;  %s8288_s18 = sphi %s8359_s18, %s11313_s18   ;;  %s8284_s17 = sphi %s8357_s17, %s11312_s17   ;;  %s8280_s16 = sphi %s8355_s16, %s11311_s16   ;;  %s8276_s15 = sphi %s8353_s15, %s11310_s15   ;;  %s8272_s14 = sphi %s8351_s14, %s11309_s14   ;;  %s8268_s13 = sphi %s8349_s13, %s11308_s13   ;;  %s8264_s12 = sphi %s8347_s12, %s11307_s12  }
  0x11   : > { %11266 = sst [smem:[#allocation14_spill]] %s8304_s22  ;;  %p76_p1 = scmp.ne.s32.totalorder %s8284_s17, %s8280_s16 }
  0x12   : > { %11267 = sst [smem:[#allocation15_spill]] %s8312_s24  ;;  %p11251_p4 = scmp.lt.s32.totalorder %s8316_s25, 16 }
  0x13   : > { %p78_p3 = por %p76_p1, %p11252_p0  ;;  %s177_s28 = sand.u32 1, %s8316_s25  }
  0x14   : > { %s179_s29 = sand.u32 1, %s8284_s17   ;;  %s5533_s4 = sshll.u32 %s8312_s24, 3 }
  0x15   : > { %s7923_s30 = smul.u32 18432, %s179_s29  ;;  %p8433_p5 = pnand %p11251_p4, %p78_p3 }
  0x16   : > { %s5551_s5 = smul.u32 9216, %s8308_s23  ;;  %s11269_s1 = sld [smem:[#allocation20_spill]] }
  0x17   : > { %s181_s8 = scalar_lea.vmem [#allocation5], %s7923_s30  ;;  %p5539_p6 = scmp.ge.s32.totalorder %s8316_s25, 1 }
  0x18   : > { %s188_s7 = sadd.s32 %s5551_s5, %s5533_s4  ;;  %s191_s9 = sshll.u32 %s181_s8, 4  ;;  %s8437_s9 = int_to_ptr.vmem [resolvable:$true] %s191_s9 }
  0x19   : > { %s5535_s10 = sshll.u32 %s188_s7, 7  ;;  %s8445_s29 = scalar_lea.sflag [#allocation6], %s177_s28 }
  0x1a   : > { %p8074_p8 = pneg %p8433_p5 }
  0x1c   : > { %s8442_s26 = scalar_lea.hbm %s11269_s1, %s5535_s10  ;;  %s8077_s27 = scalar_lea.hbm %s11269_s1, 4718592 }
  0x1d   : > { %s8072_s3 = scalar_lea.hbm %s8442_s26, 294912  ;;  %p8078_p11 = scmp.lt.u32.totalorder %s8442_s26, %s11269_s1 }
  0x1e   : > { %p8073_p7 = scmp.ne.s32.totalorder %s8442_s26, %s8072_s3  ;;  %p8079_p12 = scmp.lt.u32.totalorder %s8077_s27, %s8072_s3 }
  0x1f   : > { %p8081_p1 = scmp.lt.u32.totalorder %s8072_s3, %s8442_s26 }
  0x20   : > { %p8075_p9 = pnand %p8074_p8, %p8073_p7  ;;  %p8080_p13 = por %p8079_p12, %p8078_p11 }
  0x22   : > { %p8076_p10 = pneg %p8075_p9  ;;  %p8082_p3 = por %p8081_p1, %p8080_p13 }
  0x24   : > { %p8083_p4 = pnand %p8082_p3, %p8076_p10 }
  0x26   : > { %8086 = shalt.err (!%p8083_p4)
}
  0x27   : > { %s8087_s28 = scalar_lea.vmem %s8437_s9, 294912  ;;  %s8318_s8 = smov [#allocation5]  }
  0x28   : > { %p8088_p7 = scmp.ne.s32.totalorder %s8437_s9, %s8087_s28  ;;  %s8092_s10 = sshll.u32 %s8318_s8, 4  ;;  %s8093_s10 = int_to_ptr.vmem [resolvable:$false] %s8092_s10 }
  0x29   : > { %s8094_s11 = scalar_lea.vmem %s8093_s10, 589824  ;;  %p8095_p0 = scmp.lt.s32.totalorder %s8437_s9, %s8093_s10 }
  0x2a   : > { %p8090_p9 = pnand %p8088_p7, %p8074_p8  ;;  %p8096_p11 = scmp.lt.s32.totalorder %s8094_s11, %s8087_s28 }
  0x2c   : > { %p8091_p2 = pneg %p8090_p9  ;;  %p8097_p12 = por %p8096_p11, %p8095_p0 }
  0x2e   : > { %p8098_p13 = pnand %p8097_p12, %p8091_p2 }
  0x30   : > { %8101 = shalt.err (!%p8098_p13)
}
  0x31   : > { %s8319_s3 = smov 4096   ;;  %s8320_s30 = smov 1024  }
  0x32   : > { %s8321_s4 = smov 64   ;;  %p218_p0 = scmp.lt.s32.totalorder %s8316_s25, 17 }
  0x33   : > { %7940 = dma.hbm_to_vmem [thread:$0]  (!%p8433_p5), %s8442_s26, 294912, %s8437_s9, %s8445_s29, %s8319_s3, %s8320_s30, %s8321_s4  }
  0x34   : > { %p8476_p2 = pnand %p5539_p6, %p218_p0  ;;  %s8481_s5 = sadd.s32 4294967295, %s8316_s25  }
  0x35   : > { %s31_s7 = sadd.s32 1, %s8308_s23  ;;  %s41_s28 = sadd.s32 1, %s8296_s20 }
  0x36   : > { %s11270_s27 = scalar_select %p8476_p2, 1, 0 }
  0x37   : > { %p32_p4 = scmp.ge.s32.totalorder %s31_s7, 4  ;;  %p48_p5 = scmp.ne.s32.totalorder %s8296_s20, %s8292_s19 }
  0x38   : > { %p54_p8 = scmp.ne.s32.totalorder %s8292_s19, %s8288_s18  ;;  %s11272_s26 = sadd.s32 1, %s8312_s24 }
  0x39   : > { %s11319_s7 = smov (%p32_p4, %s31_s7), 0  ;;  %s11321_s26 = smov (!%p32_p4, %s11272_s26), %s8312_s24 }
  0x3a   : > { %11271 = sst [smem:[#allocation16_spill]] %s11319_s7  ;;  %s38_s6 = ssub.s32 %s8308_s23, %s11319_s7 }
  0x3b   : > { %p11273_p6 = scmp.eq.s32.totalorder %s8316_s25, 0  ;;  %p36_p1 = scmp.ge.s32.totalorder %s11321_s26, 4 }
  0x3c   : > { %p39_p3 = scmp.eq.s32.totalorder %s38_s6, 0  ;;  %p11256_p7 = scmp.eq.s32.totalorder %s8481_s5, 0 }
  0x3d   : > { %p8498_p10 = por %p11273_p6, %p48_p5  ;;  %s158_s18 = sand.u32 1, %s8296_s20  }
  0x3e   : > { %s11323_s26 = smov (%p36_p1, %s11321_s26), 0  ;;  %p8511_p9 = por %p11256_p7, %p54_p8 }
  0x3f   : > { %11275 = sst [smem:[#allocation17_spill]] %s11323_s26  ;;  %s8517_s11 = ssub.s32 %s8312_s24, %s11323_s26 }
  0x40   : > { %s8507_s8 = scalar_select %p39_p3, %s8296_s20, %s41_s28  }
  0x41   : > { %s11277_s10 = scalar_select %p8511_p9, 1, 0 }
  0x42   : > { %11276 = sst [smem:[#allocation18_spill]] %s8507_s8  ;;  %s66_s3 = sor.u32 %s8517_s11, %s38_s6 }
  0x43   : > { %p11278_p11 = scmp.ne.s32.totalorder %s8280_s16, %s8276_s15  ;;  %p67_p13 = scmp.eq.s32.totalorder %s66_s3, 0 }
  0x44   : > { %s7922_s4 = smul.u32 36, %s158_s18  ;;  %p11280_p0 = scmp.lt.s32.totalorder %s8316_s25, 16 }
  0x45   : > { %p8525_p12 = por %p11278_p11, %p11256_p7  ;;  %s11282_s1 = sadd.s32 1, %s8284_s17 }
  0x46   : > { %p8533_p4 = pnand %p11280_p0, %p8498_p10  ;;  %s5550_s6 = smul.u32 576, %s8308_s23 }
  0x47   : > { %s11279_s30 = scalar_select %p8525_p12, 1, 0 }
  0x48   : > { %s8540_s26 = scalar_select %p67_p13, %s8284_s17, %s11282_s1  }
  0x49   : > { %s162_s7 = scalar_lea.vmem [#allocation2], %s7922_s4  ;;  %s11283_s0 = sld [smem:[#allocation19_spill]] }
  0x4a   : > { %s170_s15 = sshll.u32 %s162_s7, 4  ;;  %s159_s9 = scalar_lea.sflag [#allocation3], %s158_s18  ;;  %s8548_s15 = int_to_ptr.vmem [resolvable:$true] %s170_s15 }
  0x4b   : > { %p8104_p8 = pneg %p8533_p4 }
  0x4f   : > { %s8546_s22 = scalar_lea.hbm %s11283_s0, %s5550_s6  ;;  %s8107_s20 = scalar_lea.hbm %s11283_s0, 2304 }
  0x50   : > { %s8102_s3 = scalar_lea.hbm %s8546_s22, 576  ;;  %p8108_p1 = scmp.lt.u32.totalorder %s8546_s22, %s11283_s0 }
  0x51   : > { %p8103_p5 = scmp.ne.s32.totalorder %s8546_s22, %s8102_s3  ;;  %p8109_p3 = scmp.lt.u32.totalorder %s8107_s20, %s8102_s3 }
  0x52   : > { %p8111_p13 = scmp.lt.u32.totalorder %s8102_s3, %s8546_s22 }
  0x53   : > { %p8105_p6 = pnand %p8104_p8, %p8103_p5  ;;  %p8110_p11 = por %p8109_p3, %p8108_p1 }
  0x55   : > { %p8106_p10 = pneg %p8105_p6  ;;  %p8112_p0 = por %p8111_p13, %p8110_p11 }
  0x57   : > { %p8113_p7 = pnand %p8112_p0, %p8106_p10 }
  0x59   : > { %8116 = shalt.err (!%p8113_p7)
}
  0x5a   : > { %s8117_s18 = scalar_lea.vmem %s8548_s15, 576  ;;  %s8322_s6 = smov [#allocation2]  }
  0x5b   : > { %p8118_p5 = scmp.ne.s32.totalorder %s8548_s15, %s8117_s18  ;;  %s8122_s1 = sshll.u32 %s8322_s6, 4  ;;  %s8123_s1 = int_to_ptr.vmem [resolvable:$false] %s8122_s1 }
  0x5c   : > { %s8124_s7 = scalar_lea.vmem %s8123_s1, 1152  ;;  %p8125_p9 = scmp.lt.s32.totalorder %s8548_s15, %s8123_s1 }
  0x5d   : > { %p8120_p6 = pnand %p8118_p5, %p8104_p8  ;;  %p8126_p1 = scmp.lt.s32.totalorder %s8124_s7, %s8117_s18 }
  0x5f   : > { %p8121_p12 = pneg %p8120_p6  ;;  %p8127_p3 = por %p8126_p1, %p8125_p9 }
  0x61   : > { %p8128_p11 = pnand %p8127_p3, %p8121_p12 }
  0x63   : > { %8131 = shalt.err (!%p8128_p11)
}
  0x64   : > { %7937 = dma.hbm_to_vmem [thread:$0]  (!%p8533_p4), %s8546_s22, 576, %s8548_s15, %s159_s9  }
  0x65   : > { %s5529_s3 = sadd.s32 4294967294, %s8316_s25   ;;  %p93_p7 = scmp.eq.s32.totalorder %s8517_s11, 0 }
  0x66   : > { %s95_s20 = sadd.s32 1, %s8272_s14  ;;  %p102_p9 = scmp.ne.s32.totalorder %s8272_s14, %s8268_s13 }
  0x67   : > { %s8581_s28 = scalar_select %p93_p7, %s8272_s14, %s95_s20  }
  0x68   : > { %p11284_p12 = scmp.eq.s32.totalorder %s8316_s25, 0  ;;  %p108_p10 = scmp.ne.s32.totalorder %s8268_s13, %s8264_s12 }
  0x69   : > { %p132_p13 = scmp.eq.s32.totalorder %s8481_s5, 15  ;;  %p138_p0 = scmp.eq.s32.totalorder %s5529_s3, 15 }
  0x6a   : > { %p8585_p8 = por %p102_p9, %p11284_p12  ;;  %p11286_p5 = scmp.eq.s32.totalorder %s8481_s5, 0 }
  0x6b   : > { %s203_s22 = sand.u32 1, %s8272_s14   ;;  %p8599_p4 = por %p132_p13, %p102_p9 }
  0x6c   : > { %p8594_p6 = por %p108_p10, %p11286_p5  ;;  %p8603_p1 = por %p138_p0, %p108_p10 }
  0x6d   : > { %s11288_s11 = scalar_select %p8599_p4, 1, 0 }
  0x6e   : > { %s11287_s4 = scalar_select %p8594_p6, 1, 0 }
  0x6f   : > { %s11289_s15 = scalar_select %p8603_p1, 1, 0 }
  0x70   : > { %s5536_s9 = sshll.u32 %s203_s22, 3  ;;  %s5552_s18 = sshll.u32 %s8312_s24, 7 }
  0x71   : > { %s8611_s7 = scalar_lea.hbm %s11248_s2, %s5552_s18  ;;  %s205_s3 = scalar_lea.vmem [#allocation7], %s5536_s9 }
  0x72   : > { %s213_s20 = sshll.u32 %s205_s3, 4  ;;  %p11290_p3 = scmp.lt.s32.totalorder %s8316_s25, 16  ;;  %s214_s20 = int_to_ptr.vmem [resolvable:$true] %s213_s20 }
  0x73   : > { %s8132_s22 = scalar_lea.hbm %s8611_s7, 128  ;;  %s8137_s8 = scalar_lea.hbm %s11248_s2, 512 }
  0x74   : > { %p8617_p11 = pnand %p11290_p3, %p8585_p8  ;;  %p8133_p7 = scmp.ne.s32.totalorder %s8611_s7, %s8132_s22 }
  0x75   : > { %p8138_p8 = scmp.lt.u32.totalorder %s8611_s7, %s11248_s2  ;;  %p8139_p13 = scmp.lt.u32.totalorder %s8137_s8, %s8132_s22 }
  0x76   : > { %p8134_p9 = pneg %p8617_p11  ;;  %p8141_p5 = scmp.lt.u32.totalorder %s8132_s22, %s8611_s7 }
  0x77   : > { %p8140_p0 = por %p8139_p13, %p8138_p8 }
  0x78   : > { %p8135_p12 = pnand %p8134_p9, %p8133_p7 }
  0x79   : > { %p8142_p3 = por %p8141_p5, %p8140_p0 }
  0x7a   : > { %p8136_p10 = pneg %p8135_p12 }
  0x7c   : > { %p8143_p1 = pnand %p8142_p3, %p8136_p10 }
  0x7e   : > { %8146 = shalt.err (!%p8143_p1)
}
  0x7f   : > { %s8147_s3 = scalar_lea.vmem %s214_s20, 128  ;;  %s8323_s24 = smov [#allocation7]  }
  0x80   : > { %p8148_p4 = scmp.ne.s32.totalorder %s214_s20, %s8147_s3  ;;  %s8152_s18 = sshll.u32 %s8323_s24, 4  ;;  %s8153_s18 = int_to_ptr.vmem [resolvable:$false] %s8152_s18 }
  0x81   : > { %s8154_s9 = scalar_lea.vmem %s8153_s18, 256  ;;  %p8155_p6 = scmp.lt.s32.totalorder %s214_s20, %s8153_s18 }
  0x82   : > { %p8150_p7 = pnand %p8148_p4, %p8134_p9  ;;  %p8156_p2 = scmp.lt.s32.totalorder %s8154_s9, %s8147_s3 }
  0x84   : > { %p8151_p12 = pneg %p8150_p7  ;;  %p8157_p8 = por %p8156_p2, %p8155_p6 }
  0x86   : > { %p8158_p13 = pnand %p8157_p8, %p8151_p12 }
  0x88   : > { %8161 = shalt.err (!%p8158_p13)
}
  0x89   : > { %7943 = dma.hbm_to_vmem [thread:$0]  (!%p8617_p11), %s8611_s7, 128, %s214_s20, %s8445_s29  }
  0x8a   : > { %p11292_p1 = scmp.ne.s32.totalorder %s11270_s27, 0 }
  0x8b   : > { %s224_s22 = sand.u32 (!%p11292_p1), 1, %s8292_s19   ;;  %p11293_p4 = scmp.ne.s32.totalorder (!%p11292_p1), %s11277_s10, 0 }
  0x8c   : > { %222 = sbr.rel (%p11292_p1) target bundleno = 1584 (0x630), region = 32  ;;  %s225_s24 = scalar_lea.sflag (!%p11292_p1), [#allocation3], %s224_s22 }
  0x8d   : > { %s7924_s8 = smul.u32 (!%p11292_p1), 36, %s224_s22 }
  0x8f   : > { %s8646_s6 = scalar_lea.vmem (!%p11292_p1), [#allocation2], %s7924_s8 }
  0x93   : > { %8247 = dma.done.wait (%p11293_p4), %s225_s24, 576  }
  0x94   : > { %8249 = vsyncadd (%p11293_p4), %s225_s24, 4294966720  ;;  %s233_s0 = sand.u32 1, %s8481_s5   ;;  %s235_s29 = sand.u32 1, %s8280_s16  }
  0x95   : > { %s7925_s7 = smul.u32 18432, %s235_s29  ;;  %s234_s27 = scalar_lea.sflag [#allocation6], %s233_s0 }
  0x96   : > { %p11294_p2 = scmp.ne.s32.totalorder %s11279_s30, 0 }
  0x97   : > { %s8654_s20 = scalar_lea.vmem [#allocation5], %s7925_s7 }
  0x98   : > { %8251 = dma.done.wait (%p11294_p2), %s234_s27, 294912  }
  0x99   : > { %8253 = vsyncadd (%p11294_p2), %s234_s27, 4294672384  ;;  %s8661_s1 = sand.u32 1, %s8268_s13   ;;  %p11295_p6 = scmp.ne.s32.totalorder %s11287_s4, 0 }
  0x9a   : > { %s5540_s10 = sshll.u32 %s8661_s1, 3 }
  0x9b   : > { %s8664_s3 = scalar_lea.vmem [#allocation7], %s5540_s10 }
  0x9c   : > { %8255 = dma.done.wait (%p11295_p6), %s234_s27, 128  }
  0x9d   : > { %8257 = vsyncadd (%p11295_p6), %s234_s27, 4294967168  ;;  %s5541_s5 = sshll.u32 %s8661_s1, 4  ;;  %p5542_p11 = scmp.ne.s32.totalorder %s8300_s21, 0 }
  0x9e   : > { %s8671_s18 = scalar_lea.vmem [#allocation8], %s5541_s5  ;;  %v8324_v0 = vmov (!%p5542_p11), 0.0  }
  0x9f   : > { %287 = sbr.rel (%p5542_p11) target bundleno = 166 (0xa6), region = 48  ;;  %288 = vst [vmem:[%s8671_s18] sm:$0xff] (!%p5542_p11), %v8324_v0  ;;  %289 = vst [vmem:[%s8671_s18 + $0x8] sm:$0xff] (!%p5542_p11), %v8324_v0 }
  0xa6 PF: > { %v298_v1 = vld [vmem:[%s8654_s20 + $0x8] sm:$0xff]  ;;  %v300_v3 = vld [vmem:[%s8654_s20 + $0x18] sm:$0xff]  ;;  %v297_v6 = vld [vmem:[%s8654_s20] sm:$0xff]  ;;  %p5544_p9 = scmp.ne.s32.totalorder %s8300_s21, 3 }
  0xa7   : > { %v306_v2 = vld [vmem:[%s8654_s20 + $0x48] sm:$0xff]  ;;  %v308_v5 = vld [vmem:[%s8654_s20 + $0x58] sm:$0xff]  ;;  %v305_v7 = vld [vmem:[%s8654_s20 + $0x40] sm:$0xff] }
  0xa8   : > { %v5554_v4 = vpack.c.bf16 %v306_v2, %v298_v1  ;;  %v6130_v8 = vpack.c.bf16 %v308_v5, %v300_v3  ;;  %v5556_v9 = vpack.c.bf16 %v305_v7, %v297_v6  ;;  %v299_v10 = vld [vmem:[%s8654_s20 + $0x10] sm:$0xff]  ;;  %v314_v12 = vld [vmem:[%s8654_s20 + $0x88] sm:$0xff]  ;;  %v316_v15 = vld [vmem:[%s8654_s20 + $0x98] sm:$0xff] }
  0xa9   : > { %v307_v11 = vld [vmem:[%s8654_s20 + $0x50] sm:$0xff]  ;;  %v322_v14 = vld [vmem:[%s8654_s20 + $0xc8] sm:$0xff]  ;;  %v324_v16 = vld [vmem:[%s8654_s20 + $0xd8] sm:$0xff] }
  0xaa   : > { %5555 = vmatprep.subr.bf16.mxu0 %v5554_v4  ;;  %v6132_v13 = vpack.c.bf16 %v307_v11, %v299_v10  ;;  %6131 = vmatprep.subr.bf16.mxu1 %v6130_v8  ;;  %v5558_v17 = vpack.c.bf16 %v322_v14, %v314_v12  ;;  %v6134_v18 = vpack.c.bf16 %v324_v16, %v316_v15  ;;  %v313_v19 = vld [vmem:[%s8654_s20 + $0x80] sm:$0xff]  ;;  %v315_v21 = vld [vmem:[%s8654_s20 + $0x90] sm:$0xff]  ;;  %v330_v24 = vld [vmem:[%s8654_s20 + $0x108] sm:$0xff] }
  0xab   : > { %5557 = vmatpush1.bf16.msra.mxu0 %v5556_v9  ;;  %v321_v20 = vld [vmem:[%s8654_s20 + $0xc0] sm:$0xff]  ;;  %v323_v23 = vld [vmem:[%s8654_s20 + $0xd0] sm:$0xff]  ;;  %v338_v25 = vld [vmem:[%s8654_s20 + $0x148] sm:$0xff] }
  0xac   : > { %6133 = vmatpush1.bf16.msra.mxu1 %v6132_v13  ;;  %v5560_v22 = vpack.c.bf16 %v321_v20, %v313_v19  ;;  %5559 = vmatprep.subr.bf16.mxu0 %v5558_v17  ;;  %v6136_v26 = vpack.c.bf16 %v323_v23, %v315_v21  ;;  %v5562_v27 = vpack.c.bf16 %v338_v25, %v330_v24  ;;  %v332_v28 = vld [vmem:[%s8654_s20 + $0x118] sm:$0xff]  ;;  %v329_v30 = vld [vmem:[%s8654_s20 + $0x100] sm:$0xff]  ;;  %v331_v33 = vld [vmem:[%s8654_s20 + $0x110] sm:$0xff] }
  0xad   : > { %6135 = vmatprep.subr.bf16.mxu1 %v6134_v18  ;;  %v340_v29 = vld [vmem:[%s8654_s20 + $0x158] sm:$0xff]  ;;  %v337_v32 = vld [vmem:[%s8654_s20 + $0x140] sm:$0xff]  ;;  %v339_v34 = vld [vmem:[%s8654_s20 + $0x150] sm:$0xff] }
  0xae   : > { %v6138_v31 = vpack.c.bf16 %v340_v29, %v332_v28  ;;  %v5564_v35 = vpack.c.bf16 %v337_v32, %v329_v30  ;;  %v346_v36 = vld [vmem:[%s8654_s20 + $0x188] sm:$0xff]  ;;  %v348_v38 = vld [vmem:[%s8654_s20 + $0x198] sm:$0xff]  ;;  %v6140_v39 = vpack.c.bf16 %v339_v34, %v331_v33  ;;  %v345_v42 = vld [vmem:[%s8654_s20 + $0x180] sm:$0xff] }
  0xaf   : > { %5561 = vmatpush1.bf16.msra.mxu0 %v5560_v22  ;;  %v354_v37 = vld [vmem:[%s8654_s20 + $0x1c8] sm:$0xff]  ;;  %v356_v41 = vld [vmem:[%s8654_s20 + $0x1d8] sm:$0xff]  ;;  %v353_v43 = vld [vmem:[%s8654_s20 + $0x1c0] sm:$0xff] }
  0xb0   : > { %6137 = vmatpush1.bf16.msra.mxu1 %v6136_v26  ;;  %5563 = vmatprep.subr.bf16.mxu0 %v5562_v27  ;;  %v5566_v40 = vpack.c.bf16 %v354_v37, %v346_v36  ;;  %v6142_v44 = vpack.c.bf16 %v356_v41, %v348_v38  ;;  %v347_v45 = vld [vmem:[%s8654_s20 + $0x190] sm:$0xff]  ;;  %v362_v47 = vld [vmem:[%s8654_s20 + $0x208] sm:$0xff]  ;;  %v364_v49 = vld [vmem:[%s8654_s20 + $0x218] sm:$0xff]  ;;  %v5568_v51 = vpack.c.bf16 %v353_v43, %v345_v42 }
  0xb1   : > { %6139 = vmatprep.subr.bf16.mxu1 %v6138_v31  ;;  %v355_v46 = vld [vmem:[%s8654_s20 + $0x1d0] sm:$0xff]  ;;  %v370_v48 = vld [vmem:[%s8654_s20 + $0x248] sm:$0xff]  ;;  %v372_v50 = vld [vmem:[%s8654_s20 + $0x258] sm:$0xff] }
  0xb2   : > { %v6144_v52 = vpack.c.bf16 %v355_v46, %v347_v45  ;;  %v5570_v53 = vpack.c.bf16 %v370_v48, %v362_v47  ;;  %v361_v54 = vld [vmem:[%s8654_s20 + $0x200] sm:$0xff]  ;;  %v363_v56 = vld [vmem:[%s8654_s20 + $0x210] sm:$0xff]  ;;  %v6146_v57 = vpack.c.bf16 %v372_v50, %v364_v49  ;;  %v378_v59 = vld [vmem:[%s8654_s20 + $0x288] sm:$0xff]  ;;  %v8325_v47 = vmov 1983009808  }
  0xb3   : > { %5565 = vmatpush1.bf16.msra.mxu0 %v5564_v35  ;;  %v369_v55 = vld [vmem:[%s8654_s20 + $0x240] sm:$0xff]  ;;  %v371_v58 = vld [vmem:[%s8654_s20 + $0x250] sm:$0xff]  ;;  %v386_v60 = vld [vmem:[%s8654_s20 + $0x2c8] sm:$0xff]  ;;  %v2608_v48 = vunpack.c.l.s4 %v8325_v47  ;;  %v2610_v49 = vlaneseq }
  0xb4   : > { %6141 = vmatpush1.bf16.msra.mxu1 %v6140_v39  ;;  %5567 = vmatprep.subr.bf16.mxu0 %v5566_v40  ;;  %v380_v61 = vld [vmem:[%s8654_s20 + $0x298] sm:$0xff]  ;;  %v5572_v63 = vpack.c.bf16 %v369_v55, %v361_v54  ;;  %v6148_v0 = vpack.c.bf16 %v371_v58, %v363_v56  ;;  %v5574_v1 = vpack.c.bf16 %v386_v60, %v378_v59  ;;  %v377_v2 = vld [vmem:[%s8654_s20 + $0x280] sm:$0xff]  ;;  %v379_v4 = vld [vmem:[%s8654_s20 + $0x290] sm:$0xff] }
  0xb5   : > { %6143 = vmatprep.subr.bf16.mxu1 %v6142_v44  ;;  %v388_v62 = vld [vmem:[%s8654_s20 + $0x2d8] sm:$0xff]  ;;  %v385_v3 = vld [vmem:[%s8654_s20 + $0x2c0] sm:$0xff]  ;;  %v387_v6 = vld [vmem:[%s8654_s20 + $0x2d0] sm:$0xff] }
  0xb6   : > { %v6150_v5 = vpack.c.bf16 %v388_v62, %v380_v61  ;;  %v394_v7 = vld [vmem:[%s8654_s20 + $0x308] sm:$0xff]  ;;  %v396_v9 = vld [vmem:[%s8654_s20 + $0x318] sm:$0xff]  ;;  %v5576_v11 = vpack.c.bf16 %v385_v3, %v377_v2  ;;  %v6152_v12 = vpack.c.bf16 %v387_v6, %v379_v4  ;;  %v393_v14 = vld [vmem:[%s8654_s20 + $0x300] sm:$0xff]  ;;  %v2609_v62 = vunpack.c.0.s8 %v2608_v48 }
  0xb7   : > { %5569 = vmatpush1.bf16.msra.mxu0 %v5568_v51  ;;  %v402_v8 = vld [vmem:[%s8654_s20 + $0x348] sm:$0xff]  ;;  %v404_v10 = vld [vmem:[%s8654_s20 + $0x358] sm:$0xff]  ;;  %v401_v15 = vld [vmem:[%s8654_s20 + $0x340] sm:$0xff] }
  0xb8   : > { %6145 = vmatpush1.bf16.msra.mxu1 %v6144_v52  ;;  %5571 = vmatprep.subr.bf16.mxu0 %v5570_v53  ;;  %v5578_v13 = vpack.c.bf16 %v402_v8, %v394_v7  ;;  %v395_v16 = vld [vmem:[%s8654_s20 + $0x310] sm:$0xff]  ;;  %v6154_v17 = vpack.c.bf16 %v404_v10, %v396_v9  ;;  %v410_v19 = vld [vmem:[%s8654_s20 + $0x388] sm:$0xff]  ;;  %v412_v21 = vld [vmem:[%s8654_s20 + $0x398] sm:$0xff]  ;;  %v5580_v23 = vpack.c.bf16 %v401_v15, %v393_v14 }
  0xb9   : > { %6147 = vmatprep.subr.bf16.mxu1 %v6146_v57  ;;  %v403_v18 = vld [vmem:[%s8654_s20 + $0x350] sm:$0xff]  ;;  %v418_v20 = vld [vmem:[%s8654_s20 + $0x3c8] sm:$0xff]  ;;  %v420_v22 = vld [vmem:[%s8654_s20 + $0x3d8] sm:$0xff] }
  0xba   : > { %v6156_v24 = vpack.c.bf16 %v403_v18, %v395_v16  ;;  %v5582_v25 = vpack.c.bf16 %v418_v20, %v410_v19  ;;  %v409_v26 = vld [vmem:[%s8654_s20 + $0x380] sm:$0xff]  ;;  %v411_v28 = vld [vmem:[%s8654_s20 + $0x390] sm:$0xff]  ;;  %v6158_v29 = vpack.c.bf16 %v420_v22, %v412_v21  ;;  %v426_v31 = vld [vmem:[%s8654_s20 + $0x408] sm:$0xff] }
  0xbb   : > { %5573 = vmatpush1.bf16.msra.mxu0 %v5572_v63  ;;  %v417_v27 = vld [vmem:[%s8654_s20 + $0x3c0] sm:$0xff]  ;;  %v419_v30 = vld [vmem:[%s8654_s20 + $0x3d0] sm:$0xff]  ;;  %v434_v32 = vld [vmem:[%s8654_s20 + $0x448] sm:$0xff]  ;;  %v8760_v63 = vshrl.u32 %v2610_v49, 7 }
  0xbc   : > { %6149 = vmatpush1.bf16.msra.mxu1 %v6148_v0  ;;  %5575 = vmatprep.subr.bf16.mxu0 %v5574_v1  ;;  %v428_v33 = vld [vmem:[%s8654_s20 + $0x418] sm:$0xff]  ;;  %v5584_v35 = vpack.c.bf16 %v417_v27, %v409_v26  ;;  %v6160_v36 = vpack.c.bf16 %v419_v30, %v411_v28  ;;  %v5586_v37 = vpack.c.bf16 %v434_v32, %v426_v31  ;;  %v425_v38 = vld [vmem:[%s8654_s20 + $0x400] sm:$0xff]  ;;  %v427_v40 = vld [vmem:[%s8654_s20 + $0x410] sm:$0xff] }
  0xbd   : > { %6151 = vmatprep.subr.bf16.mxu1 %v6150_v5  ;;  %v436_v34 = vld [vmem:[%s8654_s20 + $0x458] sm:$0xff]  ;;  %v433_v39 = vld [vmem:[%s8654_s20 + $0x440] sm:$0xff]  ;;  %v435_v42 = vld [vmem:[%s8654_s20 + $0x450] sm:$0xff] }
  0xbe   : > { %v6162_v41 = vpack.c.bf16 %v436_v34, %v428_v33  ;;  %v442_v43 = vld [vmem:[%s8654_s20 + $0x488] sm:$0xff]  ;;  %v444_v45 = vld [vmem:[%s8654_s20 + $0x498] sm:$0xff]  ;;  %v5588_v50 = vpack.c.bf16 %v433_v39, %v425_v38  ;;  %v6164_v51 = vpack.c.bf16 %v435_v42, %v427_v40  ;;  %v441_v53 = vld [vmem:[%s8654_s20 + $0x480] sm:$0xff] }
  0xbf   : > { %5577 = vmatpush1.bf16.msra.mxu0 %v5576_v11  ;;  %v450_v44 = vld [vmem:[%s8654_s20 + $0x4c8] sm:$0xff]  ;;  %v452_v46 = vld [vmem:[%s8654_s20 + $0x4d8] sm:$0xff]  ;;  %v449_v54 = vld [vmem:[%s8654_s20 + $0x4c0] sm:$0xff] }
  0xc0   : > { %6153 = vmatpush1.bf16.msra.mxu1 %v6152_v12  ;;  %5579 = vmatprep.subr.bf16.mxu0 %v5578_v13  ;;  %v5590_v52 = vpack.c.bf16 %v450_v44, %v442_v43  ;;  %v443_v55 = vld [vmem:[%s8654_s20 + $0x490] sm:$0xff]  ;;  %v6166_v56 = vpack.c.bf16 %v452_v46, %v444_v45  ;;  %v458_v58 = vld [vmem:[%s8654_s20 + $0x508] sm:$0xff]  ;;  %v460_v60 = vld [vmem:[%s8654_s20 + $0x518] sm:$0xff]  ;;  %v5592_v0 = vpack.c.bf16 %v449_v54, %v441_v53 }
  0xc1   : > { %6155 = vmatprep.subr.bf16.mxu1 %v6154_v17  ;;  %v451_v57 = vld [vmem:[%s8654_s20 + $0x4d0] sm:$0xff]  ;;  %v466_v59 = vld [vmem:[%s8654_s20 + $0x548] sm:$0xff]  ;;  %v468_v61 = vld [vmem:[%s8654_s20 + $0x558] sm:$0xff]  ;;  %v8771_v12 = vsub.s32 %v2609_v62, %v8760_v63 }
  0xc2   : > { %v6168_v1 = vpack.c.bf16 %v451_v57, %v443_v55  ;;  %v5594_v2 = vpack.c.bf16 %v466_v59, %v458_v58  ;;  %v457_v3 = vld [vmem:[%s8654_s20 + $0x500] sm:$0xff]  ;;  %v459_v5 = vld [vmem:[%s8654_s20 + $0x510] sm:$0xff]  ;;  %v6170_v6 = vpack.c.bf16 %v468_v61, %v460_v60  ;;  %v474_v8 = vld [vmem:[%s8654_s20 + $0x588] sm:$0xff] }
  0xc3   : > { %5581 = vmatpush1.bf16.msra.mxu0 %v5580_v23  ;;  %v465_v4 = vld [vmem:[%s8654_s20 + $0x540] sm:$0xff]  ;;  %v467_v7 = vld [vmem:[%s8654_s20 + $0x550] sm:$0xff]  ;;  %v482_v9 = vld [vmem:[%s8654_s20 + $0x5c8] sm:$0xff] }
  0xc4   : > { %6157 = vmatpush1.bf16.msra.mxu1 %v6156_v24  ;;  %5583 = vmatprep.subr.bf16.mxu0 %v5582_v25  ;;  %v476_v10 = vld [vmem:[%s8654_s20 + $0x598] sm:$0xff]  ;;  %v5596_v13 = vpack.c.bf16 %v465_v4, %v457_v3  ;;  %v473_v14 = vld [vmem:[%s8654_s20 + $0x580] sm:$0xff]  ;;  %v6172_v15 = vpack.c.bf16 %v467_v7, %v459_v5  ;;  %v5598_v16 = vpack.c.bf16 %v482_v9, %v474_v8  ;;  %v475_v18 = vld [vmem:[%s8654_s20 + $0x590] sm:$0xff] }
  0xc5   : > { %6159 = vmatprep.subr.bf16.mxu1 %v6158_v29  ;;  %v484_v11 = vld [vmem:[%s8654_s20 + $0x5d8] sm:$0xff]  ;;  %v481_v17 = vld [vmem:[%s8654_s20 + $0x5c0] sm:$0xff]  ;;  %v483_v19 = vld [vmem:[%s8654_s20 + $0x5d0] sm:$0xff] }
  0xc6   : > { %v6174_v20 = vpack.c.bf16 %v484_v11, %v476_v10  ;;  %v490_v21 = vld [vmem:[%s8654_s20 + $0x608] sm:$0xff]  ;;  %v8780_v23 = vld [vmem:[%s8646_s6] sm:$0xff]  ;;  %v5600_v27 = vpack.c.bf16 %v481_v17, %v473_v14  ;;  %v6176_v28 = vpack.c.bf16 %v483_v19, %v475_v18  ;;  %v491_v32 = vld [vmem:[%s8654_s20 + $0x610] sm:$0xff] }
  0xc7   : > { %5585 = vmatpush1.bf16.msra.mxu0 %v5584_v35  ;;  %v498_v22 = vld [vmem:[%s8654_s20 + $0x648] sm:$0xff]  ;;  %v492_v24 = vld [vmem:[%s8654_s20 + $0x618] sm:$0xff]  ;;  %v8786_v26 = vrot.slane %v8780_v23, %v8771_v12  ;;  %v489_v30 = vld [vmem:[%s8654_s20 + $0x600] sm:$0xff]  ;;  %v2606_v11 = vcombine.high %v8780_v23, %v8780_v23 }
  0xc8   : > { %6161 = vmatpush1.bf16.msra.mxu1 %v6160_v36  ;;  %5587 = vmatprep.subr.bf16.mxu0 %v5586_v37  ;;  %v500_v25 = vld [vmem:[%s8654_s20 + $0x658] sm:$0xff]  ;;  %v5602_v29 = vpack.c.bf16 %v498_v22, %v490_v21  ;;  %v497_v31 = vld [vmem:[%s8654_s20 + $0x640] sm:$0xff]  ;;  %v499_v35 = vld [vmem:[%s8654_s20 + $0x650] sm:$0xff] }
  0xc9   : > { %6163 = vmatprep.subr.bf16.mxu1 %v6162_v41  ;;  %v8793_v33 = vcombine.high %v8786_v26, %v8786_v26  ;;  %v6178_v34 = vpack.c.bf16 %v500_v25, %v492_v24  ;;  %v506_v36 = vld [vmem:[%s8654_s20 + $0x688] sm:$0xff]  ;;  %v508_v38 = vld [vmem:[%s8654_s20 + $0x698] sm:$0xff]  ;;  %v5604_v40 = vpack.c.bf16 %v497_v31, %v489_v30  ;;  %v6180_v41 = vpack.c.bf16 %v499_v35, %v491_v32  ;;  %v505_v43 = vld [vmem:[%s8654_s20 + $0x680] sm:$0xff] }
  0xca   : > { %v514_v37 = vld [vmem:[%s8654_s20 + $0x6c8] sm:$0xff]  ;;  %v516_v39 = vld [vmem:[%s8654_s20 + $0x6d8] sm:$0xff]  ;;  %v513_v44 = vld [vmem:[%s8654_s20 + $0x6c0] sm:$0xff]  ;;  %v8835_v25 = vrot.slane %v2606_v11, %v8771_v12 }
  0xcb   : > { %5589 = vmatpush1.bf16.msra.mxu0 %v5588_v50  ;;  %2764 = vmatprep.mubr.f32.mxu0 %v8793_v33  ;;  %v5606_v42 = vpack.c.bf16 %v514_v37, %v506_v36  ;;  %v507_v45 = vld [vmem:[%s8654_s20 + $0x690] sm:$0xff]  ;;  %v6182_v46 = vpack.c.bf16 %v516_v39, %v508_v38  ;;  %v522_v48 = vld [vmem:[%s8654_s20 + $0x708] sm:$0xff]  ;;  %v524_v50 = vld [vmem:[%s8654_s20 + $0x718] sm:$0xff] }
  0xcc   : > { %6165 = vmatpush1.bf16.msra.mxu1 %v6164_v51  ;;  %5591 = vmatprep.subr.bf16.mxu0 %v5590_v52  ;;  %v515_v47 = vld [vmem:[%s8654_s20 + $0x6d0] sm:$0xff]  ;;  %v530_v49 = vld [vmem:[%s8654_s20 + $0x748] sm:$0xff]  ;;  %v532_v51 = vld [vmem:[%s8654_s20 + $0x758] sm:$0xff]  ;;  %v5608_v52 = vpack.c.bf16 %v513_v44, %v505_v43 }
  0xcd   : > { %6167 = vmatprep.subr.bf16.mxu1 %v6166_v56  ;;  %3403 = vmatprep.mubr.f32.mxu1 %v8793_v33  ;;  %v6184_v53 = vpack.c.bf16 %v515_v47, %v507_v45  ;;  %v5610_v54 = vpack.c.bf16 %v530_v49, %v522_v48  ;;  %v521_v55 = vld [vmem:[%s8654_s20 + $0x700] sm:$0xff]  ;;  %v523_v57 = vld [vmem:[%s8654_s20 + $0x710] sm:$0xff]  ;;  %v6186_v58 = vpack.c.bf16 %v532_v51, %v524_v50  ;;  %v538_v60 = vld [vmem:[%s8654_s20 + $0x788] sm:$0xff] }
  0xce   : > { %v529_v56 = vld [vmem:[%s8654_s20 + $0x740] sm:$0xff]  ;;  %v531_v59 = vld [vmem:[%s8654_s20 + $0x750] sm:$0xff]  ;;  %v546_v61 = vld [vmem:[%s8654_s20 + $0x7c8] sm:$0xff] }
  0xcf   : > { %5593 = vmatpush1.bf16.msra.mxu0 %v5592_v0  ;;  %v540_v62 = vld [vmem:[%s8654_s20 + $0x798] sm:$0xff]  ;;  %v5614_v3 = vpack.c.bf16 %v546_v61, %v538_v60  ;;  %v537_v4 = vld [vmem:[%s8654_s20 + $0x780] sm:$0xff]  ;;  %v547_v8 = vld [vmem:[%s8654_s20 + $0x7d0] sm:$0xff] }
  0xd0   : > { %6169 = vmatpush1.bf16.msra.mxu1 %v6168_v1  ;;  %5595 = vmatprep.subr.bf16.mxu0 %v5594_v2  ;;  %v548_v0 = vld [vmem:[%s8654_s20 + $0x7d8] sm:$0xff]  ;;  %v5612_v1 = vpack.c.bf16 %v529_v56, %v521_v55  ;;  %v6188_v2 = vpack.c.bf16 %v531_v59, %v523_v57  ;;  %v545_v5 = vld [vmem:[%s8654_s20 + $0x7c0] sm:$0xff]  ;;  %v554_v9 = vld [vmem:[%s8654_s20 + $0x808] sm:$0xff] }
  0xd1   : > { %6171 = vmatprep.subr.bf16.mxu1 %v6170_v6  ;;  %v539_v6 = vld [vmem:[%s8654_s20 + $0x790] sm:$0xff]  ;;  %v6190_v7 = vpack.c.bf16 %v548_v0, %v540_v62  ;;  %v562_v10 = vld [vmem:[%s8654_s20 + $0x848] sm:$0xff]  ;;  %v564_v14 = vld [vmem:[%s8654_s20 + $0x858] sm:$0xff] }
  0xd2   : > { %v5618_v17 = vpack.c.bf16 %v562_v10, %v554_v9  ;;  %v553_v18 = vld [vmem:[%s8654_s20 + $0x800] sm:$0xff]  ;;  %v563_v22 = vld [vmem:[%s8654_s20 + $0x850] sm:$0xff]  ;;  %v570_v23 = vld [vmem:[%s8654_s20 + $0x888] sm:$0xff] }
  0xd3   : > { %5597 = vmatpush1.bf16.msra.mxu0 %v5596_v13  ;;  %v556_v13 = vld [vmem:[%s8654_s20 + $0x818] sm:$0xff]  ;;  %v561_v19 = vld [vmem:[%s8654_s20 + $0x840] sm:$0xff]  ;;  %v578_v24 = vld [vmem:[%s8654_s20 + $0x8c8] sm:$0xff] }
  0xd4   : > { %6173 = vmatpush1.bf16.msra.mxu1 %v6172_v15  ;;  %5599 = vmatprep.subr.bf16.mxu0 %v5598_v16  ;;  %v5616_v15 = vpack.c.bf16 %v545_v5, %v537_v4  ;;  %v6192_v16 = vpack.c.bf16 %v547_v8, %v539_v6  ;;  %v6194_v21 = vpack.c.bf16 %v564_v14, %v556_v13  ;;  %v569_v32 = vld [vmem:[%s8654_s20 + $0x880] sm:$0xff]  ;;  %v571_v35 = vld [vmem:[%s8654_s20 + $0x890] sm:$0xff]  ;;  %v586_v38 = vld [vmem:[%s8654_s20 + $0x908] sm:$0xff] }
  0xd5   : > { %6175 = vmatprep.subr.bf16.mxu1 %v6174_v20  ;;  %v555_v20 = vld [vmem:[%s8654_s20 + $0x810] sm:$0xff]  ;;  %v5622_v31 = vpack.c.bf16 %v578_v24, %v570_v23  ;;  %v594_v39 = vld [vmem:[%s8654_s20 + $0x948] sm:$0xff]  ;;  %v593_v47 = vld [vmem:[%s8654_s20 + $0x940] sm:$0xff] }
  0xd6   : > { %v6196_v30 = vpack.c.bf16 %v563_v22, %v555_v20  ;;  %v579_v37 = vld [vmem:[%s8654_s20 + $0x8d0] sm:$0xff]  ;;  %v5626_v45 = vpack.c.bf16 %v594_v39, %v586_v38  ;;  %v602_v51 = vld [vmem:[%s8654_s20 + $0x988] sm:$0xff]  ;;  %v609_v59 = vld [vmem:[%s8654_s20 + $0x9c0] sm:$0xff] }
  0xd7   : > { %5601 = vmatpush1.bf16.msra.mxu0 %v5600_v27  ;;  %v572_v27 = vld [vmem:[%s8654_s20 + $0x898] sm:$0xff]  ;;  %v6200_v44 = vpack.c.bf16 %v579_v37, %v571_v35  ;;  %v587_v48 = vld [vmem:[%s8654_s20 + $0x910] sm:$0xff]  ;;  %v618_v0 = vld [vmem:[%s8654_s20 + $0xa08] sm:$0xff] }
  0xd8   : > { %6177 = vmatpush1.bf16.msra.mxu1 %v6176_v28  ;;  %5603 = vmatprep.subr.bf16.mxu0 %v5602_v29  ;;  %v580_v28 = vld [vmem:[%s8654_s20 + $0x8d8] sm:$0xff]  ;;  %v5620_v29 = vpack.c.bf16 %v561_v19, %v553_v18  ;;  %v595_v50 = vld [vmem:[%s8654_s20 + $0x950] sm:$0xff]  ;;  %v625_v8 = vld [vmem:[%s8654_s20 + $0xa40] sm:$0xff] }
  0xd9   : > { %6179 = vmatprep.subr.bf16.mxu1 %v6178_v34  ;;  %v577_v34 = vld [vmem:[%s8654_s20 + $0x8c0] sm:$0xff]  ;;  %v6198_v36 = vpack.c.bf16 %v580_v28, %v572_v27  ;;  %v6204_v56 = vpack.c.bf16 %v595_v50, %v587_v48  ;;  %v603_v60 = vld [vmem:[%s8654_s20 + $0x990] sm:$0xff]  ;;  %v634_v13 = vld [vmem:[%s8654_s20 + $0xa88] sm:$0xff] }
  0xda   : > { %v5624_v43 = vpack.c.bf16 %v577_v34, %v569_v32  ;;  %v611_v62 = vld [vmem:[%s8654_s20 + $0x9d0] sm:$0xff]  ;;  %v642_v14 = vld [vmem:[%s8654_s20 + $0xac8] sm:$0xff]  ;;  %v633_v20 = vld [vmem:[%s8654_s20 + $0xa80] sm:$0xff] }
  0xdb   : > { %5605 = vmatpush1.bf16.msra.mxu0 %v5604_v40  ;;  %v8847_v40 = vcombine.high %v8835_v25, %v8835_v25  ;;  %v6208_v5 = vpack.c.bf16 %v611_v62, %v603_v60  ;;  %v619_v9 = vld [vmem:[%s8654_s20 + $0xa10] sm:$0xff]  ;;  %v5638_v19 = vpack.c.bf16 %v642_v14, %v634_v13  ;;  %v650_v27 = vld [vmem:[%s8654_s20 + $0xb08] sm:$0xff]  ;;  %v649_v35 = vld [vmem:[%s8654_s20 + $0xb00] sm:$0xff] }
  0xdc   : > { %6181 = vmatpush1.bf16.msra.mxu1 %v6180_v41  ;;  %5607 = vmatprep.subr.bf16.mxu0 %v5606_v42  ;;  %v588_v41 = vld [vmem:[%s8654_s20 + $0x918] sm:$0xff]  ;;  %v627_v11 = vld [vmem:[%s8654_s20 + $0xa50] sm:$0xff]  ;;  %v658_v28 = vld [vmem:[%s8654_s20 + $0xb48] sm:$0xff] }
  0xdd   : > { %6183 = vmatprep.subr.bf16.mxu1 %v6182_v46  ;;  %v596_v42 = vld [vmem:[%s8654_s20 + $0x958] sm:$0xff]  ;;  %v585_v46 = vld [vmem:[%s8654_s20 + $0x900] sm:$0xff]  ;;  %v6212_v18 = vpack.c.bf16 %v627_v11, %v619_v9  ;;  %v635_v22 = vld [vmem:[%s8654_s20 + $0xa90] sm:$0xff]  ;;  %v5642_v34 = vpack.c.bf16 %v658_v28, %v650_v27 }
  0xde   : > { %v6202_v49 = vpack.c.bf16 %v596_v42, %v588_v41  ;;  %v5628_v55 = vpack.c.bf16 %v593_v47, %v585_v46  ;;  %v643_v24 = vld [vmem:[%s8654_s20 + $0xad0] sm:$0xff]  ;;  %v666_v41 = vld [vmem:[%s8654_s20 + $0xb88] sm:$0xff]  ;;  %v665_v48 = vld [vmem:[%s8654_s20 + $0xb80] sm:$0xff] }
  0xdf   : > { %5609 = vmatpush1.bf16.msra.mxu0 %v5608_v52  ;;  %v610_v52 = vld [vmem:[%s8654_s20 + $0x9c8] sm:$0xff]  ;;  %v6216_v32 = vpack.c.bf16 %v643_v24, %v635_v22  ;;  %v651_v37 = vld [vmem:[%s8654_s20 + $0xb10] sm:$0xff]  ;;  %v681_v60 = vld [vmem:[%s8654_s20 + $0xc00] sm:$0xff] }
  0xe0   : > { %6185 = vmatpush1.bf16.msra.mxu1 %v6184_v53  ;;  %5611 = vmatprep.subr.bf16.mxu0 %v5610_v54  ;;  %v604_v53 = vld [vmem:[%s8654_s20 + $0x998] sm:$0xff]  ;;  %v5630_v57 = vpack.c.bf16 %v610_v52, %v602_v51  ;;  %v659_v39 = vld [vmem:[%s8654_s20 + $0xb50] sm:$0xff]  ;;  %v674_v42 = vld [vmem:[%s8654_s20 + $0xbc8] sm:$0xff] }
  0xe1   : > { %6187 = vmatprep.subr.bf16.mxu1 %v6186_v58  ;;  %v612_v54 = vld [vmem:[%s8654_s20 + $0x9d8] sm:$0xff]  ;;  %v601_v58 = vld [vmem:[%s8654_s20 + $0x980] sm:$0xff]  ;;  %v6220_v46 = vpack.c.bf16 %v659_v39, %v651_v37  ;;  %v5646_v47 = vpack.c.bf16 %v674_v42, %v666_v41  ;;  %v667_v50 = vld [vmem:[%s8654_s20 + $0xb90] sm:$0xff] }
  0xe2   : > { %v6206_v61 = vpack.c.bf16 %v612_v54, %v604_v53  ;;  %v5632_v4 = vpack.c.bf16 %v609_v59, %v601_v58  ;;  %v675_v52 = vld [vmem:[%s8654_s20 + $0xbd0] sm:$0xff]  ;;  %v682_v53 = vld [vmem:[%s8654_s20 + $0xc08] sm:$0xff]  ;;  %v697_v9 = vld [vmem:[%s8654_s20 + $0xc80] sm:$0xff] }
  0xe3   : > { %5613 = vmatpush1.bf16.msra.mxu0 %v5612_v1  ;;  %v626_v1 = vld [vmem:[%s8654_s20 + $0xa48] sm:$0xff]  ;;  %v6224_v58 = vpack.c.bf16 %v675_v52, %v667_v50  ;;  %v683_v62 = vld [vmem:[%s8654_s20 + $0xc10] sm:$0xff]  ;;  %v713_v22 = vld [vmem:[%s8654_s20 + $0xd00] sm:$0xff] }
  0xe4   : > { %6189 = vmatpush1.bf16.msra.mxu1 %v6188_v2  ;;  %5615 = vmatprep.subr.bf16.mxu0 %v5614_v3  ;;  %v620_v2 = vld [vmem:[%s8654_s20 + $0xa18] sm:$0xff]  ;;  %v5634_v6 = vpack.c.bf16 %v626_v1, %v618_v0  ;;  %v690_v54 = vld [vmem:[%s8654_s20 + $0xc48] sm:$0xff]  ;;  %v691_v1 = vld [vmem:[%s8654_s20 + $0xc50] sm:$0xff] }
  0xe5   : > { %6191 = vmatprep.subr.bf16.mxu1 %v6190_v7  ;;  %v628_v3 = vld [vmem:[%s8654_s20 + $0xa58] sm:$0xff]  ;;  %v617_v7 = vld [vmem:[%s8654_s20 + $0xa00] sm:$0xff]  ;;  %v5650_v59 = vpack.c.bf16 %v690_v54, %v682_v53  ;;  %v699_v11 = vld [vmem:[%s8654_s20 + $0xc90] sm:$0xff] }
  0xe6   : > { %v6210_v10 = vpack.c.bf16 %v628_v3, %v620_v2  ;;  %v698_v2 = vld [vmem:[%s8654_s20 + $0xc88] sm:$0xff]  ;;  %v707_v14 = vld [vmem:[%s8654_s20 + $0xcd0] sm:$0xff]  ;;  %v729_v37 = vld [vmem:[%s8654_s20 + $0xd80] sm:$0xff] }
  0xe7   : > { %5617 = vmatpush1.bf16.msra.mxu0 %v5616_v15  ;;  %v636_v15 = vld [vmem:[%s8654_s20 + $0xa98] sm:$0xff]  ;;  %v706_v3 = vld [vmem:[%s8654_s20 + $0xcc8] sm:$0xff]  ;;  %v715_v24 = vld [vmem:[%s8654_s20 + $0xd10] sm:$0xff] }
  0xe8   : > { %6193 = vmatpush1.bf16.msra.mxu1 %v6192_v16  ;;  %5619 = vmatprep.subr.bf16.mxu0 %v5618_v17  ;;  %v644_v16 = vld [vmem:[%s8654_s20 + $0xad8] sm:$0xff]  ;;  %v5636_v17 = vpack.c.bf16 %v625_v8, %v617_v7  ;;  %v6228_v7 = vpack.c.bf16 %v691_v1, %v683_v62  ;;  %v5654_v8 = vpack.c.bf16 %v706_v3, %v698_v2  ;;  %v723_v28 = vld [vmem:[%s8654_s20 + $0xd50] sm:$0xff]  ;;  %v745_v50 = vld [vmem:[%s8654_s20 + $0xe00] sm:$0xff] }
  0xe9   : > { %6195 = vmatprep.subr.bf16.mxu1 %v6194_v21  ;;  %v641_v21 = vld [vmem:[%s8654_s20 + $0xac0] sm:$0xff]  ;;  %v6214_v23 = vpack.c.bf16 %v644_v16, %v636_v15  ;;  %v714_v15 = vld [vmem:[%s8654_s20 + $0xd08] sm:$0xff]  ;;  %v731_v39 = vld [vmem:[%s8654_s20 + $0xd90] sm:$0xff] }
  0xea   : > { %2765 = vmatmul.mubr.f32.vlgmr.msra.gmra.mrb[0].mxu0 %v8786_v26  ;;  %v722_v16 = vld [vmem:[%s8654_s20 + $0xd48] sm:$0xff]  ;;  %v739_v42 = vld [vmem:[%s8654_s20 + $0xdd0] sm:$0xff]  ;;  %v761_v62 = vld [vmem:[%s8654_s20 + $0xe80] sm:$0xff] }
  0xeb   : > { %5621 = vmatpush1.bf16.msra.mxu0 %v5620_v29  ;;  %3404 = vmatmul.mubr.f32.vlgmr.msra.gmra.mrb[0].mxu1 %v8786_v26  ;;  %v652_v29 = vld [vmem:[%s8654_s20 + $0xb18] sm:$0xff]  ;;  %v747_v52 = vld [vmem:[%s8654_s20 + $0xe10] sm:$0xff] }
  0xec   : > { %6197 = vmatpush1.bf16.msra.mxu1 %v6196_v30  ;;  %5623 = vmatprep.subr.bf16.mxu0 %v5622_v31  ;;  %v660_v30 = vld [vmem:[%s8654_s20 + $0xb58] sm:$0xff]  ;;  %v5640_v31 = vpack.c.bf16 %v641_v21, %v633_v20  ;;  %v6232_v20 = vpack.c.bf16 %v707_v14, %v699_v11  ;;  %v5658_v21 = vpack.c.bf16 %v722_v16, %v714_v15  ;;  %v755_v54 = vld [vmem:[%s8654_s20 + $0xe50] sm:$0xff]  ;;  %v777_v11 = vld [vmem:[%s8654_s20 + $0xf00] sm:$0xff] }
  0xed   : > { %6199 = vmatprep.subr.bf16.mxu1 %v6198_v36  ;;  %2835 = vmatprep.mubr.f32.mxu0 %v8847_v40  ;;  %v657_v36 = vld [vmem:[%s8654_s20 + $0xb40] sm:$0xff]  ;;  %v6218_v38 = vpack.c.bf16 %v660_v30, %v652_v29  ;;  %v730_v29 = vld [vmem:[%s8654_s20 + $0xd88] sm:$0xff]  ;;  %v763_v1 = vld [vmem:[%s8654_s20 + $0xe90] sm:$0xff] }
  0xee   : > { %3474 = vmatprep.mubr.f32.mxu1 %v8847_v40  ;;  %v738_v30 = vld [vmem:[%s8654_s20 + $0xdc8] sm:$0xff]  ;;  %v771_v3 = vld [vmem:[%s8654_s20 + $0xed0] sm:$0xff] }
  0xef   : > { %5625 = vmatpush1.bf16.msra.mxu0 %v5624_v43  ;;  %v668_v43 = vld [vmem:[%s8654_s20 + $0xb98] sm:$0xff]  ;;  %v779_v14 = vld [vmem:[%s8654_s20 + $0xf10] sm:$0xff] }
  0xf0   : > { %6201 = vmatpush1.bf16.msra.mxu1 %v6200_v44  ;;  %5627 = vmatprep.subr.bf16.mxu0 %v5626_v45  ;;  %v676_v44 = vld [vmem:[%s8654_s20 + $0xbd8] sm:$0xff]  ;;  %v5644_v45 = vpack.c.bf16 %v657_v36, %v649_v35  ;;  %v6236_v35 = vpack.c.bf16 %v723_v28, %v715_v24  ;;  %v5662_v36 = vpack.c.bf16 %v738_v30, %v730_v29  ;;  %v787_v16 = vld [vmem:[%s8654_s20 + $0xf50] sm:$0xff]  ;;  %v793_v24 = vld [vmem:[%s8654_s20 + $0xf80] sm:$0xff] }
  0xf1   : > { %6203 = vmatprep.subr.bf16.mxu1 %v6202_v49  ;;  %v673_v49 = vld [vmem:[%s8654_s20 + $0xbc0] sm:$0xff]  ;;  %v6222_v51 = vpack.c.bf16 %v676_v44, %v668_v43  ;;  %v746_v43 = vld [vmem:[%s8654_s20 + $0xe08] sm:$0xff]  ;;  %v795_v28 = vld [vmem:[%s8654_s20 + $0xf90] sm:$0xff] }
  0xf2   : > { %v754_v44 = vld [vmem:[%s8654_s20 + $0xe48] sm:$0xff]  ;;  %v803_v30 = vld [vmem:[%s8654_s20 + $0xfd0] sm:$0xff] }
  0xf3   : > { %5629 = vmatpush1.bf16.msra.mxu0 %v5628_v55  ;;  %v684_v55 = vld [vmem:[%s8654_s20 + $0xc18] sm:$0xff] }
  0xf4   : > { %6205 = vmatpush1.bf16.msra.mxu1 %v6204_v56  ;;  %5631 = vmatprep.subr.bf16.mxu0 %v5630_v57  ;;  %v692_v56 = vld [vmem:[%s8654_s20 + $0xc58] sm:$0xff]  ;;  %v5648_v57 = vpack.c.bf16 %v673_v49, %v665_v48  ;;  %v6240_v48 = vpack.c.bf16 %v739_v42, %v731_v39  ;;  %v5666_v49 = vpack.c.bf16 %v754_v44, %v746_v43  ;;  %v809_v39 = vld [vmem:[%s8654_s20 + $0x1000] sm:$0xff]  ;;  %v811_v42 = vld [vmem:[%s8654_s20 + $0x1010] sm:$0xff] }
  0xf5   : > { %6207 = vmatprep.subr.bf16.mxu1 %v6206_v61  ;;  %v689_v61 = vld [vmem:[%s8654_s20 + $0xc40] sm:$0xff]  ;;  %v6226_v0 = vpack.c.bf16 %v692_v56, %v684_v55  ;;  %v762_v55 = vld [vmem:[%s8654_s20 + $0xe88] sm:$0xff]  ;;  %v819_v44 = vld [vmem:[%s8654_s20 + $0x1050] sm:$0xff] }
  0xf6   : > { %v770_v56 = vld [vmem:[%s8654_s20 + $0xec8] sm:$0xff] }
  0xf7   : > { %5633 = vmatpush1.bf16.msra.mxu0 %v5632_v4  ;;  %v700_v4 = vld [vmem:[%s8654_s20 + $0xc98] sm:$0xff] }
  0xf8   : > { %6209 = vmatpush1.bf16.msra.mxu1 %v6208_v5  ;;  %5635 = vmatprep.subr.bf16.mxu0 %v5634_v6  ;;  %v708_v5 = vld [vmem:[%s8654_s20 + $0xcd8] sm:$0xff]  ;;  %v5652_v6 = vpack.c.bf16 %v689_v61, %v681_v60  ;;  %v6244_v60 = vpack.c.bf16 %v755_v54, %v747_v52  ;;  %v5670_v61 = vpack.c.bf16 %v770_v56, %v762_v55  ;;  %v833_v54 = vld [vmem:[%s8654_s20 + $0x10c0] sm:$0xff]  ;;  %v827_v55 = vld [vmem:[%s8654_s20 + $0x1090] sm:$0xff] }
  0xf9   : > { %6211 = vmatprep.subr.bf16.mxu1 %v6210_v10  ;;  %v705_v10 = vld [vmem:[%s8654_s20 + $0xcc0] sm:$0xff]  ;;  %v6230_v13 = vpack.c.bf16 %v708_v5, %v700_v4  ;;  %v778_v4 = vld [vmem:[%s8654_s20 + $0xf08] sm:$0xff] }
  0xfa   : > { %v786_v5 = vld [vmem:[%s8654_s20 + $0xf48] sm:$0xff] }
  0xfb   : > { %5637 = vmatpush1.bf16.msra.mxu0 %v5636_v17  ;;  %v716_v17 = vld [vmem:[%s8654_s20 + $0xd18] sm:$0xff] }
  0xfc   : > { %6213 = vmatpush1.bf16.msra.mxu1 %v6212_v18  ;;  %5639 = vmatprep.subr.bf16.mxu0 %v5638_v19  ;;  %v724_v18 = vld [vmem:[%s8654_s20 + $0xd58] sm:$0xff]  ;;  %v5656_v19 = vpack.c.bf16 %v705_v10, %v697_v9  ;;  %v6248_v9 = vpack.c.bf16 %v771_v3, %v763_v1  ;;  %v5674_v10 = vpack.c.bf16 %v786_v5, %v778_v4  ;;  %v841_v4 = vld [vmem:[%s8654_s20 + $0x1100] sm:$0xff] }
  0xfd   : > { %6215 = vmatprep.subr.bf16.mxu1 %v6214_v23  ;;  %v721_v23 = vld [vmem:[%s8654_s20 + $0xd40] sm:$0xff]  ;;  %v6234_v27 = vpack.c.bf16 %v724_v18, %v716_v17  ;;  %v794_v17 = vld [vmem:[%s8654_s20 + $0xf88] sm:$0xff] }
  0xfe   : > { %v802_v18 = vld [vmem:[%s8654_s20 + $0xfc8] sm:$0xff]  ;;  %v849_v5 = vld [vmem:[%s8654_s20 + $0x1140] sm:$0xff] }
  0xff   : > { %5641 = vmatpush1.bf16.msra.mxu0 %v5640_v31  ;;  %v732_v31 = vld [vmem:[%s8654_s20 + $0xd98] sm:$0xff] }
 0x100   : > { %6217 = vmatpush1.bf16.msra.mxu1 %v6216_v32  ;;  %5643 = vmatprep.subr.bf16.mxu0 %v5642_v34  ;;  %v740_v32 = vld [vmem:[%s8654_s20 + $0xdd8] sm:$0xff]  ;;  %v5660_v34 = vpack.c.bf16 %v721_v23, %v713_v22  ;;  %v6252_v22 = vpack.c.bf16 %v787_v16, %v779_v14  ;;  %v5678_v23 = vpack.c.bf16 %v802_v18, %v794_v17  ;;  %v857_v17 = vld [vmem:[%s8654_s20 + $0x1180] sm:$0xff] }
 0x101   : > { %6219 = vmatprep.subr.bf16.mxu1 %v6218_v38  ;;  %v737_v38 = vld [vmem:[%s8654_s20 + $0xdc0] sm:$0xff]  ;;  %v6238_v41 = vpack.c.bf16 %v740_v32, %v732_v31  ;;  %v810_v31 = vld [vmem:[%s8654_s20 + $0x1008] sm:$0xff]  ;;  %v5692_v14 = vpack.c.bf16 %v849_v5, %v841_v4  ;;  %v924_v4 = vld [vmem:[%s8654_s20 + $0x1398] sm:$0xff] }
 0x102   : > { %v818_v32 = vld [vmem:[%s8654_s20 + $0x1048] sm:$0xff]  ;;  %v865_v18 = vld [vmem:[%s8654_s20 + $0x11c0] sm:$0xff]  ;;  %v932_v5 = vld [vmem:[%s8654_s20 + $0x13d8] sm:$0xff] }
 0x103   : > { %5645 = vmatpush1.bf16.msra.mxu0 %v5644_v45  ;;  %v748_v45 = vld [vmem:[%s8654_s20 + $0xe18] sm:$0xff] }
 0x104   : > { %6221 = vmatpush1.bf16.msra.mxu1 %v6220_v46  ;;  %5647 = vmatprep.subr.bf16.mxu0 %v5646_v47  ;;  %v756_v46 = vld [vmem:[%s8654_s20 + $0xe58] sm:$0xff]  ;;  %v5664_v47 = vpack.c.bf16 %v737_v38, %v729_v37  ;;  %v6256_v37 = vpack.c.bf16 %v803_v30, %v795_v28  ;;  %v5682_v38 = vpack.c.bf16 %v818_v32, %v810_v31  ;;  %v873_v31 = vld [vmem:[%s8654_s20 + $0x1200] sm:$0xff] }
 0x105   : > { %6223 = vmatprep.subr.bf16.mxu1 %v6222_v51  ;;  %v753_v51 = vld [vmem:[%s8654_s20 + $0xe40] sm:$0xff]  ;;  %v6242_v53 = vpack.c.bf16 %v756_v46, %v748_v45  ;;  %v826_v45 = vld [vmem:[%s8654_s20 + $0x1088] sm:$0xff]  ;;  %v5696_v28 = vpack.c.bf16 %v865_v18, %v857_v17  ;;  %v940_v17 = vld [vmem:[%s8654_s20 + $0x1418] sm:$0xff] }
 0x106   : > { %v834_v46 = vld [vmem:[%s8654_s20 + $0x10c8] sm:$0xff]  ;;  %v881_v32 = vld [vmem:[%s8654_s20 + $0x1240] sm:$0xff]  ;;  %v948_v18 = vld [vmem:[%s8654_s20 + $0x1458] sm:$0xff] }
 0x107   : > { %5649 = vmatpush1.bf16.msra.mxu0 %v5648_v57  ;;  %v764_v57 = vld [vmem:[%s8654_s20 + $0xe98] sm:$0xff]  ;;  %v5686_v52 = vpack.c.bf16 %v834_v46, %v826_v45  ;;  %v889_v45 = vld [vmem:[%s8654_s20 + $0x1280] sm:$0xff] }
 0x108   : > { %6225 = vmatpush1.bf16.msra.mxu1 %v6224_v58  ;;  %5651 = vmatprep.subr.bf16.mxu0 %v5650_v59  ;;  %v772_v58 = vld [vmem:[%s8654_s20 + $0xed8] sm:$0xff]  ;;  %v5668_v59 = vpack.c.bf16 %v753_v51, %v745_v50  ;;  %v8976_v50 = vld [vmem:[%s8646_s6 + $0x8] sm:$0xff]  ;;  %v6260_v51 = vpack.c.bf16 %v819_v44, %v811_v42  ;;  %v5700_v42 = vpack.c.bf16 %v881_v32, %v873_v31 }
 0x109   : > { %6227 = vmatprep.subr.bf16.mxu1 %v6226_v0  ;;  %v769_v0 = vld [vmem:[%s8654_s20 + $0xec0] sm:$0xff]  ;;  %v6246_v2 = vpack.c.bf16 %v772_v58, %v764_v57  ;;  %v8983_v56 = vrot.slane %v8976_v50, %v8771_v12  ;;  %v835_v58 = vld [vmem:[%s8654_s20 + $0x10d0] sm:$0xff]  ;;  %v956_v31 = vld [vmem:[%s8654_s20 + $0x1498] sm:$0xff] }
 0x10a   : > { %v897_v46 = vld [vmem:[%s8654_s20 + $0x12c0] sm:$0xff]  ;;  %v964_v32 = vld [vmem:[%s8654_s20 + $0x14d8] sm:$0xff] }
 0x10b   : > { %5653 = vmatpush1.bf16.msra.mxu0 %v5652_v6  ;;  %v780_v6 = vld [vmem:[%s8654_s20 + $0xf18] sm:$0xff] }
 0x10c   : > { %6229 = vmatpush1.bf16.msra.mxu1 %v6228_v7  ;;  %5655 = vmatprep.subr.bf16.mxu0 %v5654_v8  ;;  %v788_v7 = vld [vmem:[%s8654_s20 + $0xf58] sm:$0xff]  ;;  %v5672_v8 = vpack.c.bf16 %v769_v0, %v761_v62  ;;  %v8993_v0 = vcombine.high %v8983_v56, %v8983_v56 }
 0x10d   : > { %6231 = vmatprep.subr.bf16.mxu1 %v6230_v13  ;;  %v785_v13 = vld [vmem:[%s8654_s20 + $0xf40] sm:$0xff]  ;;  %v6250_v15 = vpack.c.bf16 %v788_v7, %v780_v6  ;;  %v852_v62 = vld [vmem:[%s8654_s20 + $0x1158] sm:$0xff]  ;;  %v843_v6 = vld [vmem:[%s8654_s20 + $0x1110] sm:$0xff] }
 0x10f   : > { %5657 = vmatpush1.bf16.msra.mxu0 %v5656_v19  ;;  %v796_v19 = vld [vmem:[%s8654_s20 + $0xf98] sm:$0xff] }
 0x110   : > { %6233 = vmatpush1.bf16.msra.mxu1 %v6232_v20  ;;  %5659 = vmatprep.subr.bf16.mxu0 %v5658_v21  ;;  %v804_v20 = vld [vmem:[%s8654_s20 + $0xfd8] sm:$0xff]  ;;  %v5676_v21 = vpack.c.bf16 %v785_v13, %v777_v11 }
 0x111   : > { %6235 = vmatprep.subr.bf16.mxu1 %v6234_v27  ;;  %v801_v27 = vld [vmem:[%s8654_s20 + $0xfc0] sm:$0xff]  ;;  %v6254_v29 = vpack.c.bf16 %v804_v20, %v796_v19  ;;  %v860_v11 = vld [vmem:[%s8654_s20 + $0x1198] sm:$0xff]  ;;  %v859_v19 = vld [vmem:[%s8654_s20 + $0x1190] sm:$0xff] }
 0x112   : > { %v868_v13 = vld [vmem:[%s8654_s20 + $0x11d8] sm:$0xff] }
 0x113   : > { %5661 = vmatpush1.bf16.msra.mxu0 %v5660_v34  ;;  %v812_v34 = vld [vmem:[%s8654_s20 + $0x1018] sm:$0xff]  ;;  %v6270_v20 = vpack.c.bf16 %v868_v13, %v860_v11  ;;  %v923_v11 = vld [vmem:[%s8654_s20 + $0x1390] sm:$0xff]  ;;  %v6286_v13 = vpack.c.bf16 %v932_v5, %v924_v4 }
 0x114   : > { %6237 = vmatpush1.bf16.msra.mxu1 %v6236_v35  ;;  %5663 = vmatprep.subr.bf16.mxu0 %v5662_v36  ;;  %v820_v35 = vld [vmem:[%s8654_s20 + $0x1058] sm:$0xff]  ;;  %v5680_v36 = vpack.c.bf16 %v801_v27, %v793_v24  ;;  %v987_v4 = vld [vmem:[%s8654_s20 + $0x1590] sm:$0xff] }
 0x115   : > { %6239 = vmatprep.subr.bf16.mxu1 %v6238_v41  ;;  %v817_v41 = vld [vmem:[%s8654_s20 + $0x1040] sm:$0xff]  ;;  %v6258_v43 = vpack.c.bf16 %v820_v35, %v812_v34  ;;  %v876_v24 = vld [vmem:[%s8654_s20 + $0x1218] sm:$0xff]  ;;  %v875_v34 = vld [vmem:[%s8654_s20 + $0x1210] sm:$0xff] }
 0x116   : > { %v884_v27 = vld [vmem:[%s8654_s20 + $0x1258] sm:$0xff] }
 0x117   : > { %5665 = vmatpush1.bf16.msra.mxu0 %v5664_v47  ;;  %v828_v47 = vld [vmem:[%s8654_s20 + $0x1098] sm:$0xff]  ;;  %v6274_v35 = vpack.c.bf16 %v884_v27, %v876_v24  ;;  %v939_v24 = vld [vmem:[%s8654_s20 + $0x1410] sm:$0xff]  ;;  %v6290_v27 = vpack.c.bf16 %v948_v18, %v940_v17 }
 0x118   : > { %6241 = vmatpush1.bf16.msra.mxu1 %v6240_v48  ;;  %5667 = vmatprep.subr.bf16.mxu0 %v5666_v49  ;;  %v836_v48 = vld [vmem:[%s8654_s20 + $0x10d8] sm:$0xff]  ;;  %v5684_v49 = vpack.c.bf16 %v817_v41, %v809_v39  ;;  %v1003_v17 = vld [vmem:[%s8654_s20 + $0x1610] sm:$0xff] }
 0x119   : > { %6243 = vmatprep.subr.bf16.mxu1 %v6242_v53  ;;  %v825_v53 = vld [vmem:[%s8654_s20 + $0x1080] sm:$0xff]  ;;  %v6262_v57 = vpack.c.bf16 %v836_v48, %v828_v47  ;;  %v892_v39 = vld [vmem:[%s8654_s20 + $0x1298] sm:$0xff]  ;;  %v891_v47 = vld [vmem:[%s8654_s20 + $0x1290] sm:$0xff] }
 0x11a   : > { %v5688_v1 = vpack.c.bf16 %v833_v54, %v825_v53  ;;  %v900_v41 = vld [vmem:[%s8654_s20 + $0x12d8] sm:$0xff] }
 0x11b   : > { %5669 = vmatpush1.bf16.msra.mxu0 %v5668_v59  ;;  %v842_v59 = vld [vmem:[%s8654_s20 + $0x1108] sm:$0xff]  ;;  %v6278_v48 = vpack.c.bf16 %v900_v41, %v892_v39  ;;  %v908_v53 = vld [vmem:[%s8654_s20 + $0x1318] sm:$0xff]  ;;  %v955_v39 = vld [vmem:[%s8654_s20 + $0x1490] sm:$0xff]  ;;  %v6294_v41 = vpack.c.bf16 %v964_v32, %v956_v31 }
 0x11c   : > { %6245 = vmatpush1.bf16.msra.mxu1 %v6244_v60  ;;  %5671 = vmatprep.subr.bf16.mxu0 %v5670_v61  ;;  %v850_v60 = vld [vmem:[%s8654_s20 + $0x1148] sm:$0xff]  ;;  %v844_v61 = vld [vmem:[%s8654_s20 + $0x1118] sm:$0xff]  ;;  %v1019_v31 = vld [vmem:[%s8654_s20 + $0x1690] sm:$0xff] }
 0x11d   : > { %6247 = vmatprep.subr.bf16.mxu1 %v6246_v2  ;;  %v6264_v2 = vpack.c.bf16 %v835_v58, %v827_v55  ;;  %v5690_v3 = vpack.c.bf16 %v850_v60, %v842_v59  ;;  %v6266_v7 = vpack.c.bf16 %v852_v62, %v844_v61  ;;  %v916_v54 = vld [vmem:[%s8654_s20 + $0x1358] sm:$0xff]  ;;  %v5704_v55 = vpack.c.bf16 %v897_v46, %v889_v45  ;;  %v905_v59 = vld [vmem:[%s8654_s20 + $0x1300] sm:$0xff]  ;;  %v907_v61 = vld [vmem:[%s8654_s20 + $0x1310] sm:$0xff] }
 0x11e   : > { %v913_v60 = vld [vmem:[%s8654_s20 + $0x1340] sm:$0xff]  ;;  %v6282_v62 = vpack.c.bf16 %v916_v54, %v908_v53  ;;  %v972_v45 = vld [vmem:[%s8654_s20 + $0x1518] sm:$0xff]  ;;  %v971_v53 = vld [vmem:[%s8654_s20 + $0x1510] sm:$0xff] }
 0x11f   : > { %5673 = vmatpush1.bf16.msra.mxu0 %v5672_v8  ;;  %v851_v8 = vld [vmem:[%s8654_s20 + $0x1150] sm:$0xff]  ;;  %v980_v46 = vld [vmem:[%s8654_s20 + $0x1558] sm:$0xff] }
 0x120   : > { %6249 = vmatpush1.bf16.msra.mxu1 %v6248_v9  ;;  %5675 = vmatprep.subr.bf16.mxu0 %v5674_v10  ;;  %v858_v9 = vld [vmem:[%s8654_s20 + $0x1188] sm:$0xff]  ;;  %v6298_v54 = vpack.c.bf16 %v980_v46, %v972_v45  ;;  %v1035_v45 = vld [vmem:[%s8654_s20 + $0x1710] sm:$0xff] }
 0x121   : > { %6251 = vmatprep.subr.bf16.mxu1 %v6250_v15  ;;  %v866_v10 = vld [vmem:[%s8654_s20 + $0x11c8] sm:$0xff]  ;;  %v6268_v15 = vpack.c.bf16 %v851_v8, %v843_v6  ;;  %v5708_v6 = vpack.c.bf16 %v913_v60, %v905_v59  ;;  %v988_v59 = vld [vmem:[%s8654_s20 + $0x1598] sm:$0xff] }
 0x122   : > { %v5694_v16 = vpack.c.bf16 %v866_v10, %v858_v9  ;;  %v921_v9 = vld [vmem:[%s8654_s20 + $0x1380] sm:$0xff]  ;;  %v996_v60 = vld [vmem:[%s8654_s20 + $0x15d8] sm:$0xff] }
 0x123   : > { %5677 = vmatpush1.bf16.msra.mxu0 %v5676_v21  ;;  %v867_v21 = vld [vmem:[%s8654_s20 + $0x11d0] sm:$0xff]  ;;  %v929_v10 = vld [vmem:[%s8654_s20 + $0x13c0] sm:$0xff]  ;;  %v6302_v5 = vpack.c.bf16 %v996_v60, %v988_v59 }
 0x124   : > { %6253 = vmatpush1.bf16.msra.mxu1 %v6252_v22  ;;  %5679 = vmatprep.subr.bf16.mxu0 %v5678_v23  ;;  %v874_v22 = vld [vmem:[%s8654_s20 + $0x1208] sm:$0xff]  ;;  %v1051_v59 = vld [vmem:[%s8654_s20 + $0x1790] sm:$0xff] }
 0x125   : > { %6255 = vmatprep.subr.bf16.mxu1 %v6254_v29  ;;  %v882_v23 = vld [vmem:[%s8654_s20 + $0x1248] sm:$0xff]  ;;  %v6272_v29 = vpack.c.bf16 %v867_v21, %v859_v19  ;;  %v5712_v19 = vpack.c.bf16 %v929_v10, %v921_v9  ;;  %v1004_v9 = vld [vmem:[%s8654_s20 + $0x1618] sm:$0xff] }
 0x126   : > { %v5698_v30 = vpack.c.bf16 %v882_v23, %v874_v22  ;;  %v937_v22 = vld [vmem:[%s8654_s20 + $0x1400] sm:$0xff]  ;;  %v1012_v10 = vld [vmem:[%s8654_s20 + $0x1658] sm:$0xff] }
 0x127   : > { %5681 = vmatpush1.bf16.msra.mxu0 %v5680_v36  ;;  %v883_v36 = vld [vmem:[%s8654_s20 + $0x1250] sm:$0xff]  ;;  %v945_v23 = vld [vmem:[%s8654_s20 + $0x1440] sm:$0xff]  ;;  %v6306_v18 = vpack.c.bf16 %v1012_v10, %v1004_v9 }
 0x128   : > { %6257 = vmatpush1.bf16.msra.mxu1 %v6256_v37  ;;  %5683 = vmatprep.subr.bf16.mxu0 %v5682_v38  ;;  %v890_v37 = vld [vmem:[%s8654_s20 + $0x1288] sm:$0xff]  ;;  %v1073_v9 = vld [vmem:[%s8654_s20 + $0x1840] sm:$0xff]  ;;  %v1067_v10 = vld [vmem:[%s8654_s20 + $0x1810] sm:$0xff] }
 0x129   : > { %6259 = vmatprep.subr.bf16.mxu1 %v6258_v43  ;;  %v898_v38 = vld [vmem:[%s8654_s20 + $0x12c8] sm:$0xff]  ;;  %v6276_v43 = vpack.c.bf16 %v883_v36, %v875_v34  ;;  %v5716_v34 = vpack.c.bf16 %v945_v23, %v937_v22  ;;  %v1020_v22 = vld [vmem:[%s8654_s20 + $0x1698] sm:$0xff] }
 0x12a   : > { %2836 = vmatmul.mubr.f32.vlgmr.msra.gmra.mrb[0].mxu0 %v8835_v25  ;;  %v5702_v44 = vpack.c.bf16 %v898_v38, %v890_v37  ;;  %v953_v37 = vld [vmem:[%s8654_s20 + $0x1480] sm:$0xff]  ;;  %v1028_v23 = vld [vmem:[%s8654_s20 + $0x16d8] sm:$0xff] }
 0x12b   : > { %5685 = vmatpush1.bf16.msra.mxu0 %v5684_v49  ;;  %3475 = vmatmul.mubr.f32.vlgmr.msra.gmra.mrb[0].mxu1 %v8835_v25  ;;  %v899_v49 = vld [vmem:[%s8654_s20 + $0x12d0] sm:$0xff]  ;;  %v961_v38 = vld [vmem:[%s8654_s20 + $0x14c0] sm:$0xff]  ;;  %v6310_v32 = vpack.c.bf16 %v1028_v23, %v1020_v22 }
 0x12c   : > { %6261 = vmatpush1.bf16.msra.mxu1 %v6260_v51  ;;  %5687 = vmatprep.subr.bf16.mxu0 %v5686_v52  ;;  %v906_v51 = vld [vmem:[%s8654_s20 + $0x1308] sm:$0xff]  ;;  %v1089_v22 = vld [vmem:[%s8654_s20 + $0x18c0] sm:$0xff]  ;;  %v1083_v23 = vld [vmem:[%s8654_s20 + $0x1890] sm:$0xff] }
 0x12d   : > { %6263 = vmatprep.subr.bf16.mxu1 %v6262_v57  ;;  %2906 = vmatprep.mubr.f32.mxu0 %v8993_v0  ;;  %v914_v52 = vld [vmem:[%s8654_s20 + $0x1348] sm:$0xff]  ;;  %v6280_v57 = vpack.c.bf16 %v899_v49, %v891_v47  ;;  %v5720_v47 = vpack.c.bf16 %v961_v38, %v953_v37  ;;  %v1036_v37 = vld [vmem:[%s8654_s20 + $0x1718] sm:$0xff] }
 0x12e   : > { %3545 = vmatprep.mubr.f32.mxu1 %v8993_v0  ;;  %v5706_v58 = vpack.c.bf16 %v914_v52, %v906_v51  ;;  %v969_v51 = vld [vmem:[%s8654_s20 + $0x1500] sm:$0xff]  ;;  %v1044_v38 = vld [vmem:[%s8654_s20 + $0x1758] sm:$0xff] }
 0x12f   : > { %5689 = vmatpush1.bf16.msra.mxu0 %v5688_v1  ;;  %v915_v1 = vld [vmem:[%s8654_s20 + $0x1350] sm:$0xff]  ;;  %v977_v52 = vld [vmem:[%s8654_s20 + $0x1540] sm:$0xff]  ;;  %v6314_v46 = vpack.c.bf16 %v1044_v38, %v1036_v37 }
 0x130   : > { %6265 = vmatpush1.bf16.msra.mxu1 %v6264_v2  ;;  %5691 = vmatprep.subr.bf16.mxu0 %v5690_v3  ;;  %v922_v2 = vld [vmem:[%s8654_s20 + $0x1388] sm:$0xff]  ;;  %v1097_v37 = vld [vmem:[%s8654_s20 + $0x1900] sm:$0xff] }
 0x131   : > { %6267 = vmatprep.subr.bf16.mxu1 %v6266_v7  ;;  %v930_v3 = vld [vmem:[%s8654_s20 + $0x13c8] sm:$0xff]  ;;  %v6284_v7 = vpack.c.bf16 %v915_v1, %v907_v61  ;;  %v5724_v61 = vpack.c.bf16 %v977_v52, %v969_v51  ;;  %v1052_v51 = vld [vmem:[%s8654_s20 + $0x1798] sm:$0xff]  ;;  %v1105_v38 = vld [vmem:[%s8654_s20 + $0x1940] sm:$0xff] }
 0x132   : > { %v5710_v8 = vpack.c.bf16 %v930_v3, %v922_v2  ;;  %v985_v2 = vld [vmem:[%s8654_s20 + $0x1580] sm:$0xff]  ;;  %v1060_v52 = vld [vmem:[%s8654_s20 + $0x17d8] sm:$0xff] }
 0x133   : > { %5693 = vmatpush1.bf16.msra.mxu0 %v5692_v14  ;;  %v931_v14 = vld [vmem:[%s8654_s20 + $0x13d0] sm:$0xff]  ;;  %v993_v3 = vld [vmem:[%s8654_s20 + $0x15c0] sm:$0xff]  ;;  %v6318_v60 = vpack.c.bf16 %v1060_v52, %v1052_v51 }
 0x134   : > { %6269 = vmatpush1.bf16.msra.mxu1 %v6268_v15  ;;  %5695 = vmatprep.subr.bf16.mxu0 %v5694_v16  ;;  %v938_v15 = vld [vmem:[%s8654_s20 + $0x1408] sm:$0xff]  ;;  %v1113_v51 = vld [vmem:[%s8654_s20 + $0x1980] sm:$0xff] }
 0x135   : > { %6271 = vmatprep.subr.bf16.mxu1 %v6270_v20  ;;  %v946_v16 = vld [vmem:[%s8654_s20 + $0x1448] sm:$0xff]  ;;  %v6288_v20 = vpack.c.bf16 %v931_v14, %v923_v11  ;;  %v5728_v11 = vpack.c.bf16 %v993_v3, %v985_v2  ;;  %v2623_v2 = vcombine.high %v8976_v50, %v8976_v50  ;;  %v1068_v3 = vld [vmem:[%s8654_s20 + $0x1818] sm:$0xff]  ;;  %v1075_v50 = vld [vmem:[%s8654_s20 + $0x1850] sm:$0xff] }
 0x136   : > { %v5714_v21 = vpack.c.bf16 %v946_v16, %v938_v15  ;;  %v1001_v15 = vld [vmem:[%s8654_s20 + $0x1600] sm:$0xff] }
 0x137   : > { %5697 = vmatpush1.bf16.msra.mxu0 %v5696_v28  ;;  %v947_v28 = vld [vmem:[%s8654_s20 + $0x1450] sm:$0xff]  ;;  %v1009_v16 = vld [vmem:[%s8654_s20 + $0x1640] sm:$0xff] }
 0x138   : > { %6273 = vmatpush1.bf16.msra.mxu1 %v6272_v29  ;;  %5699 = vmatprep.subr.bf16.mxu0 %v5698_v30  ;;  %v954_v29 = vld [vmem:[%s8654_s20 + $0x1488] sm:$0xff]  ;;  %v1121_v52 = vld [vmem:[%s8654_s20 + $0x19c0] sm:$0xff] }
 0x139   : > { %6275 = vmatprep.subr.bf16.mxu1 %v6274_v35  ;;  %v962_v30 = vld [vmem:[%s8654_s20 + $0x14c8] sm:$0xff]  ;;  %v6292_v35 = vpack.c.bf16 %v947_v28, %v939_v24  ;;  %v5732_v24 = vpack.c.bf16 %v1009_v16, %v1001_v15  ;;  %v9119_v15 = vrot.slane %v2623_v2, %v8771_v12  ;;  %v1084_v16 = vld [vmem:[%s8654_s20 + $0x1898] sm:$0xff]  ;;  %v1129_v2 = vld [vmem:[%s8654_s20 + $0x1a00] sm:$0xff] }
 0x13a   : > { %v5718_v36 = vpack.c.bf16 %v962_v30, %v954_v29  ;;  %v1017_v29 = vld [vmem:[%s8654_s20 + $0x1680] sm:$0xff] }
 0x13b   : > { %5701 = vmatpush1.bf16.msra.mxu0 %v5700_v42  ;;  %v963_v42 = vld [vmem:[%s8654_s20 + $0x14d0] sm:$0xff]  ;;  %v1025_v30 = vld [vmem:[%s8654_s20 + $0x16c0] sm:$0xff] }
 0x13c   : > { %6277 = vmatpush1.bf16.msra.mxu1 %v6276_v43  ;;  %5703 = vmatprep.subr.bf16.mxu0 %v5702_v44  ;;  %v970_v43 = vld [vmem:[%s8654_s20 + $0x1508] sm:$0xff] }
 0x13d   : > { %6279 = vmatprep.subr.bf16.mxu1 %v6278_v48  ;;  %v978_v44 = vld [vmem:[%s8654_s20 + $0x1548] sm:$0xff]  ;;  %v6296_v48 = vpack.c.bf16 %v963_v42, %v955_v39  ;;  %v5736_v39 = vpack.c.bf16 %v1025_v30, %v1017_v29  ;;  %v9131_v30 = vcombine.high %v9119_v15, %v9119_v15 }
 0x13e   : > { %v5722_v49 = vpack.c.bf16 %v978_v44, %v970_v43  ;;  %v1033_v43 = vld [vmem:[%s8654_s20 + $0x1700] sm:$0xff]  ;;  %v1106_v29 = vld [vmem:[%s8654_s20 + $0x1948] sm:$0xff] }
 0x13f   : > { %5705 = vmatpush1.bf16.msra.mxu0 %v5704_v55  ;;  %v979_v55 = vld [vmem:[%s8654_s20 + $0x1550] sm:$0xff]  ;;  %v1041_v44 = vld [vmem:[%s8654_s20 + $0x1740] sm:$0xff] }
 0x140   : > { %6281 = vmatpush1.bf16.msra.mxu1 %v6280_v57  ;;  %5707 = vmatprep.subr.bf16.mxu0 %v5706_v58  ;;  %v986_v57 = vld [vmem:[%s8654_s20 + $0x1588] sm:$0xff] }
 0x141   : > { %6283 = vmatprep.subr.bf16.mxu1 %v6282_v62  ;;  %v994_v58 = vld [vmem:[%s8654_s20 + $0x15c8] sm:$0xff]  ;;  %v6300_v62 = vpack.c.bf16 %v979_v55, %v971_v53  ;;  %v5740_v53 = vpack.c.bf16 %v1041_v44, %v1033_v43 }
 0x142   : > { %v5726_v1 = vpack.c.bf16 %v994_v58, %v986_v57  ;;  %v1049_v57 = vld [vmem:[%s8654_s20 + $0x1780] sm:$0xff]  ;;  %v1114_v43 = vld [vmem:[%s8654_s20 + $0x1988] sm:$0xff] }
 0x143   : > { %5709 = vmatpush1.bf16.msra.mxu0 %v5708_v6  ;;  %v995_v6 = vld [vmem:[%s8654_s20 + $0x15d0] sm:$0xff]  ;;  %v1057_v58 = vld [vmem:[%s8654_s20 + $0x17c0] sm:$0xff]  ;;  %v1122_v44 = vld [vmem:[%s8654_s20 + $0x19c8] sm:$0xff] }
 0x144   : > { %6285 = vmatpush1.bf16.msra.mxu1 %v6284_v7  ;;  %5711 = vmatprep.subr.bf16.mxu0 %v5710_v8  ;;  %v1002_v7 = vld [vmem:[%s8654_s20 + $0x1608] sm:$0xff] }
 0x145   : > { %6287 = vmatprep.subr.bf16.mxu1 %v6286_v13  ;;  %v1010_v8 = vld [vmem:[%s8654_s20 + $0x1648] sm:$0xff]  ;;  %v6304_v13 = vpack.c.bf16 %v995_v6, %v987_v4  ;;  %v1076_v4 = vld [vmem:[%s8654_s20 + $0x1858] sm:$0xff] }
 0x146   : > { %v5730_v14 = vpack.c.bf16 %v1010_v8, %v1002_v7  ;;  %v1065_v8 = vld [vmem:[%s8654_s20 + $0x1800] sm:$0xff] }
 0x147   : > { %5713 = vmatpush1.bf16.msra.mxu0 %v5712_v19  ;;  %v1011_v19 = vld [vmem:[%s8654_s20 + $0x1650] sm:$0xff] }
 0x148   : > { %6289 = vmatpush1.bf16.msra.mxu1 %v6288_v20  ;;  %5715 = vmatprep.subr.bf16.mxu0 %v5714_v21  ;;  %v1018_v20 = vld [vmem:[%s8654_s20 + $0x1688] sm:$0xff] }
 0x149   : > { %6291 = vmatprep.subr.bf16.mxu1 %v6290_v27  ;;  %v1026_v21 = vld [vmem:[%s8654_s20 + $0x16c8] sm:$0xff]  ;;  %v6308_v27 = vpack.c.bf16 %v1011_v19, %v1003_v17  ;;  %v1092_v17 = vld [vmem:[%s8654_s20 + $0x18d8] sm:$0xff]  ;;  %v6324_v19 = vpack.c.bf16 %v1075_v50, %v1067_v10 }
 0x14a   : > { %v5734_v28 = vpack.c.bf16 %v1026_v21, %v1018_v20  ;;  %v1081_v21 = vld [vmem:[%s8654_s20 + $0x1880] sm:$0xff]  ;;  %v1156_v10 = vld [vmem:[%s8654_s20 + $0x1ad8] sm:$0xff] }
 0x14b   : > { %5717 = vmatpush1.bf16.msra.mxu0 %v5716_v34  ;;  %v1027_v34 = vld [vmem:[%s8654_s20 + $0x16d0] sm:$0xff] }
 0x14c   : > { %6293 = vmatpush1.bf16.msra.mxu1 %v6292_v35  ;;  %5719 = vmatprep.subr.bf16.mxu0 %v5718_v36  ;;  %v1034_v35 = vld [vmem:[%s8654_s20 + $0x1708] sm:$0xff] }
 0x14d   : > { %6295 = vmatprep.subr.bf16.mxu1 %v6294_v41  ;;  %v1042_v36 = vld [vmem:[%s8654_s20 + $0x1748] sm:$0xff]  ;;  %v6312_v41 = vpack.c.bf16 %v1027_v34, %v1019_v31  ;;  %v1100_v31 = vld [vmem:[%s8654_s20 + $0x1918] sm:$0xff]  ;;  %v5752_v34 = vpack.c.bf16 %v1089_v22, %v1081_v21 }
 0x14e   : > { %v5738_v42 = vpack.c.bf16 %v1042_v36, %v1034_v35  ;;  %v1170_v21 = vld [vmem:[%s8654_s20 + $0x1b48] sm:$0xff]  ;;  %v1164_v22 = vld [vmem:[%s8654_s20 + $0x1b18] sm:$0xff] }
 0x14f   : > { %5721 = vmatpush1.bf16.msra.mxu0 %v5720_v47  ;;  %v1043_v47 = vld [vmem:[%s8654_s20 + $0x1750] sm:$0xff] }
 0x150   : > { %6297 = vmatpush1.bf16.msra.mxu1 %v6296_v48  ;;  %5723 = vmatprep.subr.bf16.mxu0 %v5722_v49  ;;  %v1050_v48 = vld [vmem:[%s8654_s20 + $0x1788] sm:$0xff] }
 0x151   : > { %6299 = vmatprep.subr.bf16.mxu1 %v6298_v54  ;;  %v1058_v49 = vld [vmem:[%s8654_s20 + $0x17c8] sm:$0xff]  ;;  %v6316_v54 = vpack.c.bf16 %v1043_v47, %v1035_v45  ;;  %v1116_v45 = vld [vmem:[%s8654_s20 + $0x1998] sm:$0xff]  ;;  %v5756_v47 = vpack.c.bf16 %v1105_v38, %v1097_v37 }
 0x152   : > { %v5742_v55 = vpack.c.bf16 %v1058_v49, %v1050_v48  ;;  %v5758_v49 = vpack.c.bf16 %v1122_v44, %v1114_v43  ;;  %v1186_v37 = vld [vmem:[%s8654_s20 + $0x1bc8] sm:$0xff]  ;;  %v1180_v38 = vld [vmem:[%s8654_s20 + $0x1b98] sm:$0xff]  ;;  %v1177_v44 = vld [vmem:[%s8654_s20 + $0x1b80] sm:$0xff] }
 0x153   : > { %5725 = vmatpush1.bf16.msra.mxu0 %v5724_v61  ;;  %v1059_v61 = vld [vmem:[%s8654_s20 + $0x17d0] sm:$0xff] }
 0x154   : > { %6301 = vmatpush1.bf16.msra.mxu1 %v6300_v62  ;;  %5727 = vmatprep.subr.bf16.mxu0 %v5726_v1  ;;  %v1066_v62 = vld [vmem:[%s8654_s20 + $0x1808] sm:$0xff]  ;;  %v6320_v6 = vpack.c.bf16 %v1059_v61, %v1051_v59  ;;  %v1132_v59 = vld [vmem:[%s8654_s20 + $0x1a18] sm:$0xff]  ;;  %v5760_v61 = vpack.c.bf16 %v1121_v52, %v1113_v51 }
 0x155   : > { %6303 = vmatprep.subr.bf16.mxu1 %v6302_v5  ;;  %v1074_v1 = vld [vmem:[%s8654_s20 + $0x1848] sm:$0xff]  ;;  %v5744_v5 = vpack.c.bf16 %v1057_v58, %v1049_v57  ;;  %v1196_v52 = vld [vmem:[%s8654_s20 + $0x1c18] sm:$0xff] }
 0x156   : > { %v5746_v7 = vpack.c.bf16 %v1074_v1, %v1066_v62  ;;  %v1130_v57 = vld [vmem:[%s8654_s20 + $0x1a08] sm:$0xff] }
 0x157   : > { %5729 = vmatpush1.bf16.msra.mxu0 %v5728_v11  ;;  %v6322_v11 = vpack.c.bf16 %v1076_v4, %v1068_v3  ;;  %v1138_v58 = vld [vmem:[%s8654_s20 + $0x1a48] sm:$0xff]  ;;  %v1137_v3 = vld [vmem:[%s8654_s20 + $0x1a40] sm:$0xff]  ;;  %v1131_v4 = vld [vmem:[%s8654_s20 + $0x1a10] sm:$0xff] }
 0x158   : > { %6305 = vmatpush1.bf16.msra.mxu1 %v6304_v13  ;;  %5731 = vmatprep.subr.bf16.mxu0 %v5730_v14  ;;  %v1082_v13 = vld [vmem:[%s8654_s20 + $0x1888] sm:$0xff]  ;;  %v5762_v1 = vpack.c.bf16 %v1138_v58, %v1130_v57  ;;  %v1193_v58 = vld [vmem:[%s8654_s20 + $0x1c00] sm:$0xff] }
 0x159   : > { %6307 = vmatprep.subr.bf16.mxu1 %v6306_v18  ;;  %v1090_v14 = vld [vmem:[%s8654_s20 + $0x18c8] sm:$0xff]  ;;  %v5748_v18 = vpack.c.bf16 %v1073_v9, %v1065_v8  ;;  %v1148_v9 = vld [vmem:[%s8654_s20 + $0x1a98] sm:$0xff] }
 0x15a   : > { %v5750_v20 = vpack.c.bf16 %v1090_v14, %v1082_v13  ;;  %v1154_v8 = vld [vmem:[%s8654_s20 + $0x1ac8] sm:$0xff]  ;;  %v1145_v14 = vld [vmem:[%s8654_s20 + $0x1a80] sm:$0xff] }
 0x15b   : > { %5733 = vmatpush1.bf16.msra.mxu0 %v5732_v24  ;;  %v6326_v24 = vpack.c.bf16 %v1092_v17, %v1084_v16  ;;  %v1153_v16 = vld [vmem:[%s8654_s20 + $0x1ac0] sm:$0xff]  ;;  %v1147_v17 = vld [vmem:[%s8654_s20 + $0x1a90] sm:$0xff]  ;;  %v1202_v51 = vld [vmem:[%s8654_s20 + $0x1c48] sm:$0xff] }
 0x15c   : > { %6309 = vmatpush1.bf16.msra.mxu1 %v6308_v27  ;;  %5735 = vmatprep.subr.bf16.mxu0 %v5734_v28  ;;  %v1091_v27 = vld [vmem:[%s8654_s20 + $0x18d0] sm:$0xff]  ;;  %v1098_v28 = vld [vmem:[%s8654_s20 + $0x1908] sm:$0xff] }
 0x15d   : > { %6311 = vmatprep.subr.bf16.mxu1 %v6310_v32  ;;  %v1108_v32 = vld [vmem:[%s8654_s20 + $0x1958] sm:$0xff]  ;;  %v6328_v35 = vpack.c.bf16 %v1091_v27, %v1083_v23  ;;  %v5754_v36 = vpack.c.bf16 %v1106_v29, %v1098_v28  ;;  %v1161_v29 = vld [vmem:[%s8654_s20 + $0x1b00] sm:$0xff] }
 0x15e   : > { %v1172_v23 = vld [vmem:[%s8654_s20 + $0x1b58] sm:$0xff] }
 0x15f   : > { %5737 = vmatpush1.bf16.msra.mxu0 %v5736_v39  ;;  %v1099_v39 = vld [vmem:[%s8654_s20 + $0x1910] sm:$0xff] }
 0x160   : > { %6313 = vmatpush1.bf16.msra.mxu1 %v6312_v41  ;;  %5739 = vmatprep.subr.bf16.mxu0 %v5738_v42  ;;  %v6330_v41 = vpack.c.bf16 %v1108_v32, %v1100_v31  ;;  %v1107_v42 = vld [vmem:[%s8654_s20 + $0x1950] sm:$0xff]  ;;  %v1169_v31 = vld [vmem:[%s8654_s20 + $0x1b40] sm:$0xff] }
 0x161   : > { %6315 = vmatprep.subr.bf16.mxu1 %v6314_v46  ;;  %v1124_v46 = vld [vmem:[%s8654_s20 + $0x19d8] sm:$0xff]  ;;  %v6332_v48 = vpack.c.bf16 %v1107_v42, %v1099_v39  ;;  %v1163_v32 = vld [vmem:[%s8654_s20 + $0x1b10] sm:$0xff] }
 0x162   : > { %v1188_v39 = vld [vmem:[%s8654_s20 + $0x1bd8] sm:$0xff] }
 0x163   : > { %5741 = vmatpush1.bf16.msra.mxu0 %v5740_v53  ;;  %v1115_v53 = vld [vmem:[%s8654_s20 + $0x1990] sm:$0xff] }
 0x164   : > { %6317 = vmatpush1.bf16.msra.mxu1 %v6316_v54  ;;  %5743 = vmatprep.subr.bf16.mxu0 %v5742_v55  ;;  %v6334_v54 = vpack.c.bf16 %v1124_v46, %v1116_v45  ;;  %v1123_v55 = vld [vmem:[%s8654_s20 + $0x19d0] sm:$0xff]  ;;  %v1185_v45 = vld [vmem:[%s8654_s20 + $0x1bc0] sm:$0xff] }
 0x165   : > { %6319 = vmatprep.subr.bf16.mxu1 %v6318_v60  ;;  %v1140_v60 = vld [vmem:[%s8654_s20 + $0x1a58] sm:$0xff]  ;;  %v6336_v62 = vpack.c.bf16 %v1123_v55, %v1115_v53  ;;  %v1179_v46 = vld [vmem:[%s8654_s20 + $0x1b90] sm:$0xff] }
 0x166   : > { %v1204_v53 = vld [vmem:[%s8654_s20 + $0x1c58] sm:$0xff] }
 0x167   : > { %5745 = vmatpush1.bf16.msra.mxu0 %v5744_v5  ;;  %v6338_v5 = vpack.c.bf16 %v1140_v60, %v1132_v59  ;;  %v1201_v59 = vld [vmem:[%s8654_s20 + $0x1c40] sm:$0xff]  ;;  %v1195_v60 = vld [vmem:[%s8654_s20 + $0x1c10] sm:$0xff] }
 0x168   : > { %6321 = vmatpush1.bf16.msra.mxu1 %v6320_v6  ;;  %5747 = vmatprep.subr.bf16.mxu0 %v5746_v7  ;;  %v1139_v6 = vld [vmem:[%s8654_s20 + $0x1a50] sm:$0xff]  ;;  %v1146_v7 = vld [vmem:[%s8654_s20 + $0x1a88] sm:$0xff] }
 0x169   : > { %6323 = vmatprep.subr.bf16.mxu1 %v6322_v11  ;;  %v5764_v11 = vpack.c.bf16 %v1137_v3, %v1129_v2  ;;  %v6340_v50 = vpack.c.bf16 %v1139_v6, %v1131_v4  ;;  %v5766_v13 = vpack.c.bf16 %v1154_v8, %v1146_v7  ;;  %v1218_v2 = vld [vmem:[%s8654_s20 + $0x1cc8] sm:$0xff]  ;;  %v1212_v3 = vld [vmem:[%s8654_s20 + $0x1c98] sm:$0xff]  ;;  %v1209_v8 = vld [vmem:[%s8654_s20 + $0x1c80] sm:$0xff] }
 0x16a   : > { %2907 = vmatmul.mubr.f32.vlgmr.msra.gmra.mrb[0].mxu0 %v8983_v56  ;;  %v1220_v4 = vld [vmem:[%s8654_s20 + $0x1cd8] sm:$0xff] }
 0x16b   : > { %5749 = vmatpush1.bf16.msra.mxu0 %v5748_v18  ;;  %3546 = vmatmul.mubr.f32.vlgmr.msra.gmra.mrb[0].mxu1 %v8983_v56  ;;  %v6342_v18 = vpack.c.bf16 %v1156_v10, %v1148_v9  ;;  %v1217_v9 = vld [vmem:[%s8654_s20 + $0x1cc0] sm:$0xff]  ;;  %v1211_v10 = vld [vmem:[%s8654_s20 + $0x1c90] sm:$0xff] }
 0x16c   : > { %6325 = vmatpush1.bf16.msra.mxu1 %v6324_v19  ;;  %5751 = vmatprep.subr.bf16.mxu0 %v5750_v20  ;;  %v1155_v19 = vld [vmem:[%s8654_s20 + $0x1ad0] sm:$0xff]  ;;  %v1162_v20 = vld [vmem:[%s8654_s20 + $0x1b08] sm:$0xff] }
 0x16d   : > { %6327 = vmatprep.subr.bf16.mxu1 %v6326_v24  ;;  %2977 = vmatprep.mubr.f32.mxu0 %v9131_v30  ;;  %v5768_v24 = vpack.c.bf16 %v1153_v16, %v1145_v14  ;;  %v6344_v27 = vpack.c.bf16 %v1155_v19, %v1147_v17  ;;  %v5770_v28 = vpack.c.bf16 %v1170_v21, %v1162_v20  ;;  %v1234_v14 = vld [vmem:[%s8654_s20 + $0x1d48] sm:$0xff]  ;;  %v1228_v16 = vld [vmem:[%s8654_s20 + $0x1d18] sm:$0xff]  ;;  %v1225_v21 = vld [vmem:[%s8654_s20 + $0x1d00] sm:$0xff] }
 0x16e   : > { %3616 = vmatprep.mubr.f32.mxu1 %v9131_v30  ;;  %v1236_v17 = vld [vmem:[%s8654_s20 + $0x1d58] sm:$0xff] }
 0x16f   : > { %5753 = vmatpush1.bf16.msra.mxu0 %v5752_v34  ;;  %v6346_v34 = vpack.c.bf16 %v1172_v23, %v1164_v22  ;;  %v1233_v22 = vld [vmem:[%s8654_s20 + $0x1d40] sm:$0xff]  ;;  %v1227_v23 = vld [vmem:[%s8654_s20 + $0x1d10] sm:$0xff] }
 0x170   : > { %6329 = vmatpush1.bf16.msra.mxu1 %v6328_v35  ;;  %5755 = vmatprep.subr.bf16.mxu0 %v5754_v36  ;;  %v1171_v35 = vld [vmem:[%s8654_s20 + $0x1b50] sm:$0xff]  ;;  %v1178_v36 = vld [vmem:[%s8654_s20 + $0x1b88] sm:$0xff] }
 0x171   : > { %6331 = vmatprep.subr.bf16.mxu1 %v6330_v41  ;;  %v5772_v41 = vpack.c.bf16 %v1169_v31, %v1161_v29  ;;  %v6348_v42 = vpack.c.bf16 %v1171_v35, %v1163_v32  ;;  %v5774_v43 = vpack.c.bf16 %v1186_v37, %v1178_v36  ;;  %v1250_v29 = vld [vmem:[%s8654_s20 + $0x1dc8] sm:$0xff]  ;;  %v1244_v31 = vld [vmem:[%s8654_s20 + $0x1d98] sm:$0xff]  ;;  %v1241_v37 = vld [vmem:[%s8654_s20 + $0x1d80] sm:$0xff] }
 0x172   : > { %v1252_v32 = vld [vmem:[%s8654_s20 + $0x1dd8] sm:$0xff] }
 0x173   : > { %5757 = vmatpush1.bf16.msra.mxu0 %v5756_v47  ;;  %v6350_v47 = vpack.c.bf16 %v1188_v39, %v1180_v38  ;;  %v1249_v38 = vld [vmem:[%s8654_s20 + $0x1dc0] sm:$0xff]  ;;  %v1243_v39 = vld [vmem:[%s8654_s20 + $0x1d90] sm:$0xff] }
 0x174   : > { %6333 = vmatpush1.bf16.msra.mxu1 %v6332_v48  ;;  %5759 = vmatprep.subr.bf16.mxu0 %v5758_v49  ;;  %v1187_v48 = vld [vmem:[%s8654_s20 + $0x1bd0] sm:$0xff]  ;;  %v1194_v49 = vld [vmem:[%s8654_s20 + $0x1c08] sm:$0xff] }
 0x175   : > { %6335 = vmatprep.subr.bf16.mxu1 %v6334_v54  ;;  %v5776_v54 = vpack.c.bf16 %v1185_v45, %v1177_v44  ;;  %v6352_v55 = vpack.c.bf16 %v1187_v48, %v1179_v46  ;;  %v5778_v57 = vpack.c.bf16 %v1202_v51, %v1194_v49  ;;  %v1266_v44 = vld [vmem:[%s8654_s20 + $0x1e48] sm:$0xff]  ;;  %v1260_v45 = vld [vmem:[%s8654_s20 + $0x1e18] sm:$0xff]  ;;  %v1257_v51 = vld [vmem:[%s8654_s20 + $0x1e00] sm:$0xff] }
 0x176   : > { %v1268_v46 = vld [vmem:[%s8654_s20 + $0x1e58] sm:$0xff] }
 0x177   : > { %5761 = vmatpush1.bf16.msra.mxu0 %v5760_v61  ;;  %v6354_v61 = vpack.c.bf16 %v1204_v53, %v1196_v52  ;;  %v1265_v52 = vld [vmem:[%s8654_s20 + $0x1e40] sm:$0xff]  ;;  %v1259_v53 = vld [vmem:[%s8654_s20 + $0x1e10] sm:$0xff] }
 0x178   : > { %6337 = vmatpush1.bf16.msra.mxu1 %v6336_v62  ;;  %5763 = vmatprep.subr.bf16.mxu0 %v5762_v1  ;;  %v1203_v62 = vld [vmem:[%s8654_s20 + $0x1c50] sm:$0xff]  ;;  %v1210_v1 = vld [vmem:[%s8654_s20 + $0x1c88] sm:$0xff] }
 0x179   : > { %6339 = vmatprep.subr.bf16.mxu1 %v6338_v5  ;;  %v5780_v5 = vpack.c.bf16 %v1201_v59, %v1193_v58  ;;  %v6356_v6 = vpack.c.bf16 %v1203_v62, %v1195_v60  ;;  %v5782_v7 = vpack.c.bf16 %v1218_v2, %v1210_v1  ;;  %v1282_v58 = vld [vmem:[%s8654_s20 + $0x1ec8] sm:$0xff]  ;;  %v1276_v59 = vld [vmem:[%s8654_s20 + $0x1e98] sm:$0xff]  ;;  %v1273_v2 = vld [vmem:[%s8654_s20 + $0x1e80] sm:$0xff] }
 0x17a   : > { %v1284_v60 = vld [vmem:[%s8654_s20 + $0x1ed8] sm:$0xff] }
 0x17b   : > { %5765 = vmatpush1.bf16.msra.mxu0 %v5764_v11  ;;  %v6358_v11 = vpack.c.bf16 %v1220_v4, %v1212_v3  ;;  %v1281_v3 = vld [vmem:[%s8654_s20 + $0x1ec0] sm:$0xff]  ;;  %v1275_v4 = vld [vmem:[%s8654_s20 + $0x1e90] sm:$0xff] }
 0x17c   : > { %6341 = vmatpush1.bf16.msra.mxu1 %v6340_v50  ;;  %5767 = vmatprep.subr.bf16.mxu0 %v5766_v13  ;;  %v1219_v50 = vld [vmem:[%s8654_s20 + $0x1cd0] sm:$0xff]  ;;  %v1226_v13 = vld [vmem:[%s8654_s20 + $0x1d08] sm:$0xff] }
 0x17d   : > { %6343 = vmatprep.subr.bf16.mxu1 %v6342_v18  ;;  %v5784_v18 = vpack.c.bf16 %v1217_v9, %v1209_v8  ;;  %v6360_v19 = vpack.c.bf16 %v1219_v50, %v1211_v10  ;;  %v5786_v20 = vpack.c.bf16 %v1234_v14, %v1226_v13  ;;  %v1298_v8 = vld [vmem:[%s8654_s20 + $0x1f48] sm:$0xff]  ;;  %v1292_v9 = vld [vmem:[%s8654_s20 + $0x1f18] sm:$0xff]  ;;  %v1289_v14 = vld [vmem:[%s8654_s20 + $0x1f00] sm:$0xff] }
 0x17e   : > { %v1300_v10 = vld [vmem:[%s8654_s20 + $0x1f58] sm:$0xff] }
 0x17f   : > { %5769 = vmatpush1.bf16.msra.mxu0 %v5768_v24  ;;  %v6362_v24 = vpack.c.bf16 %v1236_v17, %v1228_v16  ;;  %v1297_v16 = vld [vmem:[%s8654_s20 + $0x1f40] sm:$0xff]  ;;  %v1291_v17 = vld [vmem:[%s8654_s20 + $0x1f10] sm:$0xff] }
 0x180   : > { %6345 = vmatpush1.bf16.msra.mxu1 %v6344_v27  ;;  %5771 = vmatprep.subr.bf16.mxu0 %v5770_v28  ;;  %v1235_v27 = vld [vmem:[%s8654_s20 + $0x1d50] sm:$0xff]  ;;  %v1242_v28 = vld [vmem:[%s8654_s20 + $0x1d88] sm:$0xff] }
 0x181   : > { %6347 = vmatprep.subr.bf16.mxu1 %v6346_v34  ;;  %v5788_v34 = vpack.c.bf16 %v1233_v22, %v1225_v21  ;;  %v6364_v35 = vpack.c.bf16 %v1235_v27, %v1227_v23  ;;  %v5790_v36 = vpack.c.bf16 %v1250_v29, %v1242_v28  ;;  %v1314_v21 = vld [vmem:[%s8654_s20 + $0x1fc8] sm:$0xff]  ;;  %v1308_v22 = vld [vmem:[%s8654_s20 + $0x1f98] sm:$0xff]  ;;  %v1305_v29 = vld [vmem:[%s8654_s20 + $0x1f80] sm:$0xff] }
 0x182   : > { %v1316_v23 = vld [vmem:[%s8654_s20 + $0x1fd8] sm:$0xff] }
 0x183   : > { %5773 = vmatpush1.bf16.msra.mxu0 %v5772_v41  ;;  %v6366_v41 = vpack.c.bf16 %v1252_v32, %v1244_v31  ;;  %v1313_v31 = vld [vmem:[%s8654_s20 + $0x1fc0] sm:$0xff]  ;;  %v1307_v32 = vld [vmem:[%s8654_s20 + $0x1f90] sm:$0xff] }
 0x184   : > { %6349 = vmatpush1.bf16.msra.mxu1 %v6348_v42  ;;  %5775 = vmatprep.subr.bf16.mxu0 %v5774_v43  ;;  %v1251_v42 = vld [vmem:[%s8654_s20 + $0x1dd0] sm:$0xff]  ;;  %v1258_v43 = vld [vmem:[%s8654_s20 + $0x1e08] sm:$0xff] }
 0x185   : > { %6351 = vmatprep.subr.bf16.mxu1 %v6350_v47  ;;  %v5792_v47 = vpack.c.bf16 %v1249_v38, %v1241_v37  ;;  %v6368_v48 = vpack.c.bf16 %v1251_v42, %v1243_v39  ;;  %v5794_v49 = vpack.c.bf16 %v1266_v44, %v1258_v43  ;;  %v1330_v37 = vld [vmem:[%s8654_s20 + $0x2048] sm:$0xff]  ;;  %v1324_v38 = vld [vmem:[%s8654_s20 + $0x2018] sm:$0xff]  ;;  %v5808_v42 = vpack.c.bf16 %v1313_v31, %v1305_v29  ;;  %v1379_v31 = vld [vmem:[%s8654_s20 + $0x21d0] sm:$0xff] }
 0x186   : > { %v1332_v39 = vld [vmem:[%s8654_s20 + $0x2058] sm:$0xff] }
 0x187   : > { %5777 = vmatpush1.bf16.msra.mxu0 %v5776_v54  ;;  %v6370_v54 = vpack.c.bf16 %v1268_v46, %v1260_v45  ;;  %v1321_v45 = vld [vmem:[%s8654_s20 + $0x2000] sm:$0xff] }
 0x188   : > { %6353 = vmatpush1.bf16.msra.mxu1 %v6352_v55  ;;  %5779 = vmatprep.subr.bf16.mxu0 %v5778_v57  ;;  %v1267_v55 = vld [vmem:[%s8654_s20 + $0x1e50] sm:$0xff]  ;;  %v1274_v57 = vld [vmem:[%s8654_s20 + $0x1e88] sm:$0xff]  ;;  %v1329_v46 = vld [vmem:[%s8654_s20 + $0x2040] sm:$0xff] }
 0x189   : > { %6355 = vmatprep.subr.bf16.mxu1 %v6354_v61  ;;  %v5796_v61 = vpack.c.bf16 %v1265_v52, %v1257_v51  ;;  %v6372_v62 = vpack.c.bf16 %v1267_v55, %v1259_v53  ;;  %v5798_v1 = vpack.c.bf16 %v1282_v58, %v1274_v57  ;;  %v1338_v51 = vld [vmem:[%s8654_s20 + $0x2088] sm:$0xff]  ;;  %v1348_v55 = vld [vmem:[%s8654_s20 + $0x20d8] sm:$0xff]  ;;  %v5812_v57 = vpack.c.bf16 %v1329_v46, %v1321_v45  ;;  %v1395_v46 = vld [vmem:[%s8654_s20 + $0x2250] sm:$0xff] }
 0x18a   : > { %v1346_v52 = vld [vmem:[%s8654_s20 + $0x20c8] sm:$0xff] }
 0x18b   : > { %5781 = vmatpush1.bf16.msra.mxu0 %v5780_v5  ;;  %v6374_v5 = vpack.c.bf16 %v1284_v60, %v1276_v59  ;;  %v5814_v59 = vpack.c.bf16 %v1346_v52, %v1338_v51  ;;  %v1337_v60 = vld [vmem:[%s8654_s20 + $0x2080] sm:$0xff]  ;;  %v1412_v51 = vld [vmem:[%s8654_s20 + $0x22d8] sm:$0xff] }
 0x18c   : > { %6357 = vmatpush1.bf16.msra.mxu1 %v6356_v6  ;;  %5783 = vmatprep.subr.bf16.mxu0 %v5782_v7  ;;  %v1283_v6 = vld [vmem:[%s8654_s20 + $0x1ed0] sm:$0xff]  ;;  %v1290_v7 = vld [vmem:[%s8654_s20 + $0x1f08] sm:$0xff] }
 0x18d   : > { %6359 = vmatprep.subr.bf16.mxu1 %v6358_v11  ;;  %v5800_v11 = vpack.c.bf16 %v1281_v3, %v1273_v2  ;;  %v6376_v50 = vpack.c.bf16 %v1283_v6, %v1275_v4  ;;  %v5802_v13 = vpack.c.bf16 %v1298_v8, %v1290_v7  ;;  %v1347_v2 = vld [vmem:[%s8654_s20 + $0x20d0] sm:$0xff]  ;;  %v1354_v3 = vld [vmem:[%s8654_s20 + $0x2108] sm:$0xff]  ;;  %v1356_v6 = vld [vmem:[%s8654_s20 + $0x2118] sm:$0xff] }
 0x18e   : > { %v1362_v4 = vld [vmem:[%s8654_s20 + $0x2148] sm:$0xff]  ;;  %v1364_v7 = vld [vmem:[%s8654_s20 + $0x2158] sm:$0xff] }
 0x18f   : > { %5785 = vmatpush1.bf16.msra.mxu0 %v5784_v18  ;;  %v6378_v18 = vpack.c.bf16 %v1300_v10, %v1292_v9  ;;  %v5818_v10 = vpack.c.bf16 %v1362_v4, %v1354_v3  ;;  %v1428_v3 = vld [vmem:[%s8654_s20 + $0x2358] sm:$0xff] }
 0x190   : > { %6361 = vmatpush1.bf16.msra.mxu1 %v6360_v19  ;;  %5787 = vmatprep.subr.bf16.mxu0 %v5786_v20  ;;  %v1299_v19 = vld [vmem:[%s8654_s20 + $0x1f50] sm:$0xff]  ;;  %v1306_v20 = vld [vmem:[%s8654_s20 + $0x1f88] sm:$0xff] }
 0x191   : > { %6363 = vmatprep.subr.bf16.mxu1 %v6362_v24  ;;  %v5804_v24 = vpack.c.bf16 %v1297_v16, %v1289_v14  ;;  %v6380_v27 = vpack.c.bf16 %v1299_v19, %v1291_v17  ;;  %v5806_v28 = vpack.c.bf16 %v1314_v21, %v1306_v20  ;;  %v6394_v14 = vpack.c.bf16 %v1364_v7, %v1356_v6  ;;  %v1363_v16 = vld [vmem:[%s8654_s20 + $0x2150] sm:$0xff]  ;;  %v1370_v17 = vld [vmem:[%s8654_s20 + $0x2188] sm:$0xff]  ;;  %v1372_v19 = vld [vmem:[%s8654_s20 + $0x2198] sm:$0xff] }
 0x192   : > { %v1380_v20 = vld [vmem:[%s8654_s20 + $0x21d8] sm:$0xff] }
 0x193   : > { %5789 = vmatpush1.bf16.msra.mxu0 %v5788_v34  ;;  %v6382_v34 = vpack.c.bf16 %v1316_v23, %v1308_v22  ;;  %v6398_v29 = vpack.c.bf16 %v1380_v20, %v1372_v19 }
 0x194   : > { %6365 = vmatpush1.bf16.msra.mxu1 %v6364_v35  ;;  %5791 = vmatprep.subr.bf16.mxu0 %v5790_v36  ;;  %v1315_v35 = vld [vmem:[%s8654_s20 + $0x1fd0] sm:$0xff]  ;;  %v1322_v36 = vld [vmem:[%s8654_s20 + $0x2008] sm:$0xff] }
 0x195   : > { %6367 = vmatprep.subr.bf16.mxu1 %v6366_v41  ;;  %v9252_v41 = vld [vmem:[%s8646_s6 + $0x10] sm:$0xff]  ;;  %v6384_v43 = vpack.c.bf16 %v1315_v35, %v1307_v32  ;;  %v5810_v44 = vpack.c.bf16 %v1330_v37, %v1322_v36  ;;  %v1388_v35 = vld [vmem:[%s8654_s20 + $0x2218] sm:$0xff] }
 0x196   : > { %v9262_v53 = vrot.slane %v9252_v41, %v8771_v12  ;;  %v1386_v32 = vld [vmem:[%s8654_s20 + $0x2208] sm:$0xff]  ;;  %v1396_v36 = vld [vmem:[%s8654_s20 + $0x2258] sm:$0xff] }
 0x197   : > { %5793 = vmatpush1.bf16.msra.mxu0 %v5792_v47  ;;  %v1323_v47 = vld [vmem:[%s8654_s20 + $0x2010] sm:$0xff]  ;;  %v6402_v45 = vpack.c.bf16 %v1396_v36, %v1388_v35 }
 0x198   : > { %6369 = vmatpush1.bf16.msra.mxu1 %v6368_v48  ;;  %5795 = vmatprep.subr.bf16.mxu0 %v5794_v49  ;;  %v6386_v48 = vpack.c.bf16 %v1332_v39, %v1324_v38  ;;  %v1331_v49 = vld [vmem:[%s8654_s20 + $0x2050] sm:$0xff] }
 0x199   : > { %6371 = vmatprep.subr.bf16.mxu1 %v6370_v54  ;;  %v1340_v54 = vld [vmem:[%s8654_s20 + $0x2098] sm:$0xff]  ;;  %v6388_v58 = vpack.c.bf16 %v1331_v49, %v1323_v47  ;;  %v1402_v47 = vld [vmem:[%s8654_s20 + $0x2288] sm:$0xff] }
 0x19a   : > { %v1404_v49 = vld [vmem:[%s8654_s20 + $0x2298] sm:$0xff] }
 0x19b   : > { %5797 = vmatpush1.bf16.msra.mxu0 %v5796_v61  ;;  %v1345_v61 = vld [vmem:[%s8654_s20 + $0x20c0] sm:$0xff] }
 0x19c   : > { %6373 = vmatpush1.bf16.msra.mxu1 %v6372_v62  ;;  %5799 = vmatprep.subr.bf16.mxu0 %v5798_v1  ;;  %v1339_v62 = vld [vmem:[%s8654_s20 + $0x2090] sm:$0xff]  ;;  %v6390_v1 = vpack.c.bf16 %v1348_v55, %v1340_v54  ;;  %v5816_v8 = vpack.c.bf16 %v1345_v61, %v1337_v60  ;;  %v6406_v60 = vpack.c.bf16 %v1412_v51, %v1404_v49 }
 0x19d   : > { %6375 = vmatprep.subr.bf16.mxu1 %v6374_v5  ;;  %v9274_v5 = vcombine.high %v9262_v53, %v9262_v53  ;;  %v6392_v9 = vpack.c.bf16 %v1347_v2, %v1339_v62  ;;  %v1411_v61 = vld [vmem:[%s8654_s20 + $0x22d0] sm:$0xff]  ;;  %v1418_v62 = vld [vmem:[%s8654_s20 + $0x2308] sm:$0xff]  ;;  %v1420_v2 = vld [vmem:[%s8654_s20 + $0x2318] sm:$0xff] }
 0x19f   : > { %5801 = vmatpush1.bf16.msra.mxu0 %v5800_v11  ;;  %v1353_v11 = vld [vmem:[%s8654_s20 + $0x2100] sm:$0xff] }
 0x1a0   : > { %6377 = vmatpush1.bf16.msra.mxu1 %v6376_v50  ;;  %5803 = vmatprep.subr.bf16.mxu0 %v5802_v13  ;;  %v1361_v50 = vld [vmem:[%s8654_s20 + $0x2140] sm:$0xff]  ;;  %v1355_v13 = vld [vmem:[%s8654_s20 + $0x2110] sm:$0xff] }
 0x1a1   : > { %6379 = vmatprep.subr.bf16.mxu1 %v6378_v18  ;;  %v1378_v18 = vld [vmem:[%s8654_s20 + $0x21c8] sm:$0xff]  ;;  %v5820_v21 = vpack.c.bf16 %v1361_v50, %v1353_v11  ;;  %v6396_v22 = vpack.c.bf16 %v1363_v16, %v1355_v13  ;;  %v6410_v11 = vpack.c.bf16 %v1428_v3, %v1420_v2  ;;  %v1427_v50 = vld [vmem:[%s8654_s20 + $0x2350] sm:$0xff]  ;;  %v1436_v16 = vld [vmem:[%s8654_s20 + $0x2398] sm:$0xff] }
 0x1a2   : > { %v5822_v23 = vpack.c.bf16 %v1378_v18, %v1370_v17  ;;  %v1434_v13 = vld [vmem:[%s8654_s20 + $0x2388] sm:$0xff]  ;;  %v1444_v17 = vld [vmem:[%s8654_s20 + $0x23d8] sm:$0xff] }
 0x1a3   : > { %5805 = vmatpush1.bf16.msra.mxu0 %v5804_v24  ;;  %v1369_v24 = vld [vmem:[%s8654_s20 + $0x2180] sm:$0xff] }
 0x1a4   : > { %6381 = vmatpush1.bf16.msra.mxu1 %v6380_v27  ;;  %5807 = vmatprep.subr.bf16.mxu0 %v5806_v28  ;;  %v1377_v27 = vld [vmem:[%s8654_s20 + $0x21c0] sm:$0xff]  ;;  %v1371_v28 = vld [vmem:[%s8654_s20 + $0x2190] sm:$0xff] }
 0x1a5   : > { %6383 = vmatprep.subr.bf16.mxu1 %v6382_v34  ;;  %v1394_v34 = vld [vmem:[%s8654_s20 + $0x2248] sm:$0xff]  ;;  %v5824_v37 = vpack.c.bf16 %v1377_v27, %v1369_v24  ;;  %v6400_v38 = vpack.c.bf16 %v1379_v31, %v1371_v28  ;;  %v6414_v24 = vpack.c.bf16 %v1444_v17, %v1436_v16  ;;  %v1443_v27 = vld [vmem:[%s8654_s20 + $0x23d0] sm:$0xff]  ;;  %v1452_v31 = vld [vmem:[%s8654_s20 + $0x2418] sm:$0xff] }
 0x1a6   : > { %v5826_v39 = vpack.c.bf16 %v1394_v34, %v1386_v32  ;;  %v1450_v28 = vld [vmem:[%s8654_s20 + $0x2408] sm:$0xff]  ;;  %v1460_v32 = vld [vmem:[%s8654_s20 + $0x2458] sm:$0xff] }
 0x1a7   : > { %5809 = vmatpush1.bf16.msra.mxu0 %v5808_v42  ;;  %v1385_v42 = vld [vmem:[%s8654_s20 + $0x2200] sm:$0xff] }
 0x1a8   : > { %6385 = vmatpush1.bf16.msra.mxu1 %v6384_v43  ;;  %5811 = vmatprep.subr.bf16.mxu0 %v5810_v44  ;;  %v1393_v43 = vld [vmem:[%s8654_s20 + $0x2240] sm:$0xff]  ;;  %v1387_v44 = vld [vmem:[%s8654_s20 + $0x2210] sm:$0xff] }
 0x1a9   : > { %6387 = vmatprep.subr.bf16.mxu1 %v6386_v48  ;;  %v1410_v48 = vld [vmem:[%s8654_s20 + $0x22c8] sm:$0xff]  ;;  %v5828_v52 = vpack.c.bf16 %v1393_v43, %v1385_v42  ;;  %v6404_v54 = vpack.c.bf16 %v1395_v46, %v1387_v44  ;;  %v6418_v42 = vpack.c.bf16 %v1460_v32, %v1452_v31  ;;  %v1459_v43 = vld [vmem:[%s8654_s20 + $0x2450] sm:$0xff]  ;;  %v1468_v46 = vld [vmem:[%s8654_s20 + $0x2498] sm:$0xff] }
 0x1aa   : > { %2978 = vmatmul.mubr.f32.vlgmr.msra.gmra.mrb[0].mxu0 %v9119_v15  ;;  %v5830_v55 = vpack.c.bf16 %v1410_v48, %v1402_v47  ;;  %v1466_v44 = vld [vmem:[%s8654_s20 + $0x2488] sm:$0xff]  ;;  %v1476_v47 = vld [vmem:[%s8654_s20 + $0x24d8] sm:$0xff] }
 0x1ab   : > { %5813 = vmatpush1.bf16.msra.mxu0 %v5812_v57  ;;  %3617 = vmatmul.mubr.f32.vlgmr.msra.gmra.mrb[0].mxu1 %v9119_v15  ;;  %v1401_v57 = vld [vmem:[%s8654_s20 + $0x2280] sm:$0xff] }
 0x1ac   : > { %6389 = vmatpush1.bf16.msra.mxu1 %v6388_v58  ;;  %5815 = vmatprep.subr.bf16.mxu0 %v5814_v59  ;;  %v1409_v58 = vld [vmem:[%s8654_s20 + $0x22c0] sm:$0xff]  ;;  %v1403_v59 = vld [vmem:[%s8654_s20 + $0x2290] sm:$0xff] }
 0x1ad   : > { %6391 = vmatprep.subr.bf16.mxu1 %v6390_v1  ;;  %3048 = vmatprep.mubr.f32.mxu0 %v9274_v5  ;;  %v1426_v1 = vld [vmem:[%s8654_s20 + $0x2348] sm:$0xff]  ;;  %v5832_v4 = vpack.c.bf16 %v1409_v58, %v1401_v57  ;;  %v6408_v6 = vpack.c.bf16 %v1411_v61, %v1403_v59  ;;  %v6422_v57 = vpack.c.bf16 %v1476_v47, %v1468_v46  ;;  %v1475_v58 = vld [vmem:[%s8654_s20 + $0x24d0] sm:$0xff]  ;;  %v1484_v61 = vld [vmem:[%s8654_s20 + $0x2518] sm:$0xff] }
 0x1ae   : > { %3687 = vmatprep.mubr.f32.mxu1 %v9274_v5  ;;  %v5834_v7 = vpack.c.bf16 %v1426_v1, %v1418_v62  ;;  %v1482_v59 = vld [vmem:[%s8654_s20 + $0x2508] sm:$0xff]  ;;  %v1492_v62 = vld [vmem:[%s8654_s20 + $0x2558] sm:$0xff] }
 0x1af   : > { %5817 = vmatpush1.bf16.msra.mxu0 %v5816_v8  ;;  %v1417_v8 = vld [vmem:[%s8654_s20 + $0x2300] sm:$0xff] }
 0x1b0   : > { %6393 = vmatpush1.bf16.msra.mxu1 %v6392_v9  ;;  %5819 = vmatprep.subr.bf16.mxu0 %v5818_v10  ;;  %v1425_v9 = vld [vmem:[%s8654_s20 + $0x2340] sm:$0xff]  ;;  %v1419_v10 = vld [vmem:[%s8654_s20 + $0x2310] sm:$0xff] }
 0x1b1   : > { %6395 = vmatprep.subr.bf16.mxu1 %v6394_v14  ;;  %v1442_v14 = vld [vmem:[%s8654_s20 + $0x23c8] sm:$0xff]  ;;  %v5836_v18 = vpack.c.bf16 %v1425_v9, %v1417_v8  ;;  %v6412_v19 = vpack.c.bf16 %v1427_v50, %v1419_v10  ;;  %v6426_v8 = vpack.c.bf16 %v1492_v62, %v1484_v61  ;;  %v1491_v9 = vld [vmem:[%s8654_s20 + $0x2550] sm:$0xff]  ;;  %v1500_v50 = vld [vmem:[%s8654_s20 + $0x2598] sm:$0xff] }
 0x1b2   : > { %v5838_v20 = vpack.c.bf16 %v1442_v14, %v1434_v13  ;;  %v1498_v10 = vld [vmem:[%s8654_s20 + $0x2588] sm:$0xff]  ;;  %v1508_v13 = vld [vmem:[%s8654_s20 + $0x25d8] sm:$0xff] }
 0x1b3   : > { %5821 = vmatpush1.bf16.msra.mxu0 %v5820_v21  ;;  %v1433_v21 = vld [vmem:[%s8654_s20 + $0x2380] sm:$0xff] }
 0x1b4   : > { %6397 = vmatpush1.bf16.msra.mxu1 %v6396_v22  ;;  %5823 = vmatprep.subr.bf16.mxu0 %v5822_v23  ;;  %v1441_v22 = vld [vmem:[%s8654_s20 + $0x23c0] sm:$0xff]  ;;  %v1435_v23 = vld [vmem:[%s8654_s20 + $0x2390] sm:$0xff] }
 0x1b5   : > { %6399 = vmatprep.subr.bf16.mxu1 %v6398_v29  ;;  %v1458_v29 = vld [vmem:[%s8654_s20 + $0x2448] sm:$0xff]  ;;  %v5840_v34 = vpack.c.bf16 %v1441_v22, %v1433_v21  ;;  %v6416_v35 = vpack.c.bf16 %v1443_v27, %v1435_v23  ;;  %v6430_v21 = vpack.c.bf16 %v1508_v13, %v1500_v50  ;;  %v1507_v22 = vld [vmem:[%s8654_s20 + $0x25d0] sm:$0xff]  ;;  %v1516_v27 = vld [vmem:[%s8654_s20 + $0x2618] sm:$0xff] }
 0x1b6   : > { %v5842_v36 = vpack.c.bf16 %v1458_v29, %v1450_v28  ;;  %v1514_v23 = vld [vmem:[%s8654_s20 + $0x2608] sm:$0xff]  ;;  %v1524_v28 = vld [vmem:[%s8654_s20 + $0x2658] sm:$0xff] }
 0x1b7   : > { %5825 = vmatpush1.bf16.msra.mxu0 %v5824_v37  ;;  %v1449_v37 = vld [vmem:[%s8654_s20 + $0x2400] sm:$0xff] }
 0x1b8   : > { %6401 = vmatpush1.bf16.msra.mxu1 %v6400_v38  ;;  %5827 = vmatprep.subr.bf16.mxu0 %v5826_v39  ;;  %v1457_v38 = vld [vmem:[%s8654_s20 + $0x2440] sm:$0xff]  ;;  %v1451_v39 = vld [vmem:[%s8654_s20 + $0x2410] sm:$0xff] }
 0x1b9   : > { %6403 = vmatprep.subr.bf16.mxu1 %v6402_v45  ;;  %v1474_v45 = vld [vmem:[%s8654_s20 + $0x24c8] sm:$0xff]  ;;  %v5844_v48 = vpack.c.bf16 %v1457_v38, %v1449_v37  ;;  %v6420_v49 = vpack.c.bf16 %v1459_v43, %v1451_v39  ;;  %v6434_v37 = vpack.c.bf16 %v1524_v28, %v1516_v27  ;;  %v1523_v38 = vld [vmem:[%s8654_s20 + $0x2650] sm:$0xff]  ;;  %v1532_v43 = vld [vmem:[%s8654_s20 + $0x2698] sm:$0xff] }
 0x1ba   : > { %v5846_v51 = vpack.c.bf16 %v1474_v45, %v1466_v44  ;;  %v1530_v39 = vld [vmem:[%s8654_s20 + $0x2688] sm:$0xff]  ;;  %v1540_v44 = vld [vmem:[%s8654_s20 + $0x26d8] sm:$0xff] }
 0x1bb   : > { %5829 = vmatpush1.bf16.msra.mxu0 %v5828_v52  ;;  %v1465_v52 = vld [vmem:[%s8654_s20 + $0x2480] sm:$0xff] }
 0x1bc   : > { %6405 = vmatpush1.bf16.msra.mxu1 %v6404_v54  ;;  %5831 = vmatprep.subr.bf16.mxu0 %v5830_v55  ;;  %v1473_v54 = vld [vmem:[%s8654_s20 + $0x24c0] sm:$0xff]  ;;  %v1467_v55 = vld [vmem:[%s8654_s20 + $0x2490] sm:$0xff] }
 0x1bd   : > { %6407 = vmatprep.subr.bf16.mxu1 %v6406_v60  ;;  %v1490_v60 = vld [vmem:[%s8654_s20 + $0x2548] sm:$0xff]  ;;  %v5848_v1 = vpack.c.bf16 %v1473_v54, %v1465_v52  ;;  %v6424_v2 = vpack.c.bf16 %v1475_v58, %v1467_v55  ;;  %v6438_v52 = vpack.c.bf16 %v1540_v44, %v1532_v43  ;;  %v1539_v54 = vld [vmem:[%s8654_s20 + $0x26d0] sm:$0xff]  ;;  %v1548_v58 = vld [vmem:[%s8654_s20 + $0x2718] sm:$0xff] }
 0x1be   : > { %v5850_v3 = vpack.c.bf16 %v1490_v60, %v1482_v59  ;;  %v1546_v55 = vld [vmem:[%s8654_s20 + $0x2708] sm:$0xff]  ;;  %v1556_v59 = vld [vmem:[%s8654_s20 + $0x2758] sm:$0xff] }
 0x1bf   : > { %5833 = vmatpush1.bf16.msra.mxu0 %v5832_v4  ;;  %v1481_v4 = vld [vmem:[%s8654_s20 + $0x2500] sm:$0xff] }
 0x1c0   : > { %6409 = vmatpush1.bf16.msra.mxu1 %v6408_v6  ;;  %5835 = vmatprep.subr.bf16.mxu0 %v5834_v7  ;;  %v1489_v6 = vld [vmem:[%s8654_s20 + $0x2540] sm:$0xff]  ;;  %v1483_v7 = vld [vmem:[%s8654_s20 + $0x2510] sm:$0xff] }
 0x1c1   : > { %6411 = vmatprep.subr.bf16.mxu1 %v6410_v11  ;;  %v1506_v11 = vld [vmem:[%s8654_s20 + $0x25c8] sm:$0xff]  ;;  %v5852_v14 = vpack.c.bf16 %v1489_v6, %v1481_v4  ;;  %v6428_v16 = vpack.c.bf16 %v1491_v9, %v1483_v7  ;;  %v6442_v4 = vpack.c.bf16 %v1556_v59, %v1548_v58  ;;  %v1555_v6 = vld [vmem:[%s8654_s20 + $0x2750] sm:$0xff]  ;;  %v1564_v9 = vld [vmem:[%s8654_s20 + $0x2798] sm:$0xff] }
 0x1c2   : > { %v5854_v17 = vpack.c.bf16 %v1506_v11, %v1498_v10  ;;  %v1562_v7 = vld [vmem:[%s8654_s20 + $0x2788] sm:$0xff]  ;;  %v1572_v10 = vld [vmem:[%s8654_s20 + $0x27d8] sm:$0xff] }
 0x1c3   : > { %5837 = vmatpush1.bf16.msra.mxu0 %v5836_v18  ;;  %v1497_v18 = vld [vmem:[%s8654_s20 + $0x2580] sm:$0xff]  ;;  %v1620_v58 = vld [vmem:[%s8654_s20 + $0x2958] sm:$0xff] }
 0x1c4   : > { %6413 = vmatpush1.bf16.msra.mxu1 %v6412_v19  ;;  %5839 = vmatprep.subr.bf16.mxu0 %v5838_v20  ;;  %v1505_v19 = vld [vmem:[%s8654_s20 + $0x25c0] sm:$0xff]  ;;  %v1499_v20 = vld [vmem:[%s8654_s20 + $0x2590] sm:$0xff] }
 0x1c5   : > { %6415 = vmatprep.subr.bf16.mxu1 %v6414_v24  ;;  %v1522_v24 = vld [vmem:[%s8654_s20 + $0x2648] sm:$0xff]  ;;  %v5856_v29 = vpack.c.bf16 %v1505_v19, %v1497_v18  ;;  %v6432_v31 = vpack.c.bf16 %v1507_v22, %v1499_v20  ;;  %v6446_v18 = vpack.c.bf16 %v1572_v10, %v1564_v9  ;;  %v1571_v19 = vld [vmem:[%s8654_s20 + $0x27d0] sm:$0xff]  ;;  %v2640_v22 = vcombine.high %v9252_v41, %v9252_v41  ;;  %v1636_v9 = vld [vmem:[%s8654_s20 + $0x29d8] sm:$0xff] }
 0x1c6   : > { %v5858_v32 = vpack.c.bf16 %v1522_v24, %v1514_v23  ;;  %v1578_v20 = vld [vmem:[%s8654_s20 + $0x2808] sm:$0xff]  ;;  %v1580_v23 = vld [vmem:[%s8654_s20 + $0x2818] sm:$0xff]  ;;  %v1587_v41 = vld [vmem:[%s8654_s20 + $0x2850] sm:$0xff] }
 0x1c7   : > { %5841 = vmatpush1.bf16.msra.mxu0 %v5840_v34  ;;  %v1513_v34 = vld [vmem:[%s8654_s20 + $0x2600] sm:$0xff]  ;;  %v1588_v24 = vld [vmem:[%s8654_s20 + $0x2858] sm:$0xff] }
 0x1c8   : > { %6417 = vmatpush1.bf16.msra.mxu1 %v6416_v35  ;;  %5843 = vmatprep.subr.bf16.mxu0 %v5842_v36  ;;  %v1521_v35 = vld [vmem:[%s8654_s20 + $0x2640] sm:$0xff]  ;;  %v1515_v36 = vld [vmem:[%s8654_s20 + $0x2610] sm:$0xff] }
 0x1c9   : > { %6419 = vmatprep.subr.bf16.mxu1 %v6418_v42  ;;  %v1538_v42 = vld [vmem:[%s8654_s20 + $0x26c8] sm:$0xff]  ;;  %v5860_v45 = vpack.c.bf16 %v1521_v35, %v1513_v34  ;;  %v6436_v46 = vpack.c.bf16 %v1523_v38, %v1515_v36  ;;  %v1579_v34 = vld [vmem:[%s8654_s20 + $0x2810] sm:$0xff]  ;;  %v6450_v35 = vpack.c.bf16 %v1588_v24, %v1580_v23  ;;  %v9403_v38 = vrot.slane %v2640_v22, %v8771_v12  ;;  %v1652_v22 = vld [vmem:[%s8654_s20 + $0x2a58] sm:$0xff] }
 0x1ca   : > { %v5862_v47 = vpack.c.bf16 %v1538_v42, %v1530_v39  ;;  %v1594_v36 = vld [vmem:[%s8654_s20 + $0x2888] sm:$0xff]  ;;  %v1596_v39 = vld [vmem:[%s8654_s20 + $0x2898] sm:$0xff]  ;;  %v6452_v44 = vpack.c.bf16 %v1587_v41, %v1579_v34  ;;  %v1651_v34 = vld [vmem:[%s8654_s20 + $0x2a50] sm:$0xff] }
 0x1cb   : > { %5845 = vmatpush1.bf16.msra.mxu0 %v5844_v48  ;;  %v1529_v48 = vld [vmem:[%s8654_s20 + $0x2680] sm:$0xff]  ;;  %v1604_v42 = vld [vmem:[%s8654_s20 + $0x28d8] sm:$0xff]  ;;  %v1666_v41 = vld [vmem:[%s8654_s20 + $0x2ac8] sm:$0xff] }
 0x1cc   : > { %6421 = vmatpush1.bf16.msra.mxu1 %v6420_v49  ;;  %5847 = vmatprep.subr.bf16.mxu0 %v5846_v51  ;;  %v1537_v49 = vld [vmem:[%s8654_s20 + $0x26c0] sm:$0xff]  ;;  %v1531_v51 = vld [vmem:[%s8654_s20 + $0x2690] sm:$0xff] }
 0x1cd   : > { %6423 = vmatprep.subr.bf16.mxu1 %v6422_v57  ;;  %v1554_v57 = vld [vmem:[%s8654_s20 + $0x2748] sm:$0xff]  ;;  %v5864_v60 = vpack.c.bf16 %v1537_v49, %v1529_v48  ;;  %v6440_v61 = vpack.c.bf16 %v1539_v54, %v1531_v51  ;;  %v1595_v48 = vld [vmem:[%s8654_s20 + $0x2890] sm:$0xff]  ;;  %v6454_v49 = vpack.c.bf16 %v1604_v42, %v1596_v39 }
 0x1ce   : > { %v5866_v62 = vpack.c.bf16 %v1554_v57, %v1546_v55  ;;  %v1603_v51 = vld [vmem:[%s8654_s20 + $0x28d0] sm:$0xff]  ;;  %v1618_v54 = vld [vmem:[%s8654_s20 + $0x2948] sm:$0xff]  ;;  %v9415_v55 = vcombine.high %v9403_v38, %v9403_v38  ;;  %v1612_v57 = vld [vmem:[%s8654_s20 + $0x2918] sm:$0xff] }
 0x1cf   : > { %5849 = vmatpush1.bf16.msra.mxu0 %v5848_v1  ;;  %v1545_v1 = vld [vmem:[%s8654_s20 + $0x2700] sm:$0xff] }
 0x1d0   : > { %6425 = vmatpush1.bf16.msra.mxu1 %v6424_v2  ;;  %5851 = vmatprep.subr.bf16.mxu0 %v5850_v3  ;;  %v1553_v2 = vld [vmem:[%s8654_s20 + $0x2740] sm:$0xff]  ;;  %v1547_v3 = vld [vmem:[%s8654_s20 + $0x2710] sm:$0xff] }
 0x1d1   : > { %6427 = vmatprep.subr.bf16.mxu1 %v6426_v8  ;;  %v1570_v8 = vld [vmem:[%s8654_s20 + $0x27c8] sm:$0xff]  ;;  %v5868_v11 = vpack.c.bf16 %v1553_v2, %v1545_v1  ;;  %v6444_v50 = vpack.c.bf16 %v1555_v6, %v1547_v3  ;;  %v1617_v1 = vld [vmem:[%s8654_s20 + $0x2940] sm:$0xff]  ;;  %v1611_v2 = vld [vmem:[%s8654_s20 + $0x2910] sm:$0xff]  ;;  %v6458_v3 = vpack.c.bf16 %v1620_v58, %v1612_v57 }
 0x1d2   : > { %v5870_v13 = vpack.c.bf16 %v1570_v8, %v1562_v7  ;;  %v1626_v6 = vld [vmem:[%s8654_s20 + $0x2988] sm:$0xff]  ;;  %v1628_v8 = vld [vmem:[%s8654_s20 + $0x2998] sm:$0xff] }
 0x1d3   : > { %5853 = vmatpush1.bf16.msra.mxu0 %v5852_v14  ;;  %v1561_v14 = vld [vmem:[%s8654_s20 + $0x2780] sm:$0xff]  ;;  %v1634_v7 = vld [vmem:[%s8654_s20 + $0x29c8] sm:$0xff] }
 0x1d4   : > { %6429 = vmatpush1.bf16.msra.mxu1 %v6428_v16  ;;  %5855 = vmatprep.subr.bf16.mxu0 %v5854_v17  ;;  %v1569_v16 = vld [vmem:[%s8654_s20 + $0x27c0] sm:$0xff]  ;;  %v1563_v17 = vld [vmem:[%s8654_s20 + $0x2790] sm:$0xff] }
 0x1d5   : > { %6431 = vmatprep.subr.bf16.mxu1 %v6430_v21  ;;  %v1586_v21 = vld [vmem:[%s8654_s20 + $0x2848] sm:$0xff]  ;;  %v5872_v27 = vpack.c.bf16 %v1569_v16, %v1561_v14  ;;  %v6448_v28 = vpack.c.bf16 %v1571_v19, %v1563_v17  ;;  %v1633_v14 = vld [vmem:[%s8654_s20 + $0x29c0] sm:$0xff]  ;;  %v1627_v16 = vld [vmem:[%s8654_s20 + $0x2990] sm:$0xff]  ;;  %v6462_v17 = vpack.c.bf16 %v1636_v9, %v1628_v8 }
 0x1d6   : > { %v1642_v19 = vld [vmem:[%s8654_s20 + $0x2a08] sm:$0xff] }
 0x1d7   : > { %5857 = vmatpush1.bf16.msra.mxu0 %v5856_v29  ;;  %v5874_v29 = vpack.c.bf16 %v1586_v21, %v1578_v20  ;;  %v1650_v20 = vld [vmem:[%s8654_s20 + $0x2a48] sm:$0xff]  ;;  %v1644_v21 = vld [vmem:[%s8654_s20 + $0x2a18] sm:$0xff] }
 0x1d8   : > { %6433 = vmatpush1.bf16.msra.mxu1 %v6432_v31  ;;  %5859 = vmatprep.subr.bf16.mxu0 %v5858_v32  ;;  %v1577_v31 = vld [vmem:[%s8654_s20 + $0x2800] sm:$0xff] }
 0x1d9   : > { %6435 = vmatprep.subr.bf16.mxu1 %v6434_v37  ;;  %v1585_v32 = vld [vmem:[%s8654_s20 + $0x2840] sm:$0xff]  ;;  %v1602_v37 = vld [vmem:[%s8654_s20 + $0x28c8] sm:$0xff] }
 0x1da   : > { %v5876_v43 = vpack.c.bf16 %v1585_v32, %v1577_v31  ;;  %v1643_v31 = vld [vmem:[%s8654_s20 + $0x2a10] sm:$0xff]  ;;  %v6466_v32 = vpack.c.bf16 %v1652_v22, %v1644_v21 }
 0x1db   : > { %5861 = vmatpush1.bf16.msra.mxu0 %v5860_v45  ;;  %v5878_v45 = vpack.c.bf16 %v1602_v37, %v1594_v36  ;;  %v1660_v36 = vld [vmem:[%s8654_s20 + $0x2a98] sm:$0xff]  ;;  %v6468_v42 = vpack.c.bf16 %v1651_v34, %v1643_v31  ;;  %v1715_v31 = vld [vmem:[%s8654_s20 + $0x2c50] sm:$0xff]  ;;  %v1730_v34 = vld [vmem:[%s8654_s20 + $0x2cc8] sm:$0xff] }
 0x1dc   : > { %6437 = vmatpush1.bf16.msra.mxu1 %v6436_v46  ;;  %5863 = vmatprep.subr.bf16.mxu0 %v5862_v47  ;;  %v1593_v46 = vld [vmem:[%s8654_s20 + $0x2880] sm:$0xff]  ;;  %v1668_v37 = vld [vmem:[%s8654_s20 + $0x2ad8] sm:$0xff] }
 0x1dd   : > { %6439 = vmatprep.subr.bf16.mxu1 %v6438_v52  ;;  %v1601_v47 = vld [vmem:[%s8654_s20 + $0x28c0] sm:$0xff]  ;;  %v1610_v52 = vld [vmem:[%s8654_s20 + $0x2908] sm:$0xff] }
 0x1de   : > { %v5880_v59 = vpack.c.bf16 %v1601_v47, %v1593_v46  ;;  %v1659_v46 = vld [vmem:[%s8654_s20 + $0x2a90] sm:$0xff]  ;;  %v6470_v47 = vpack.c.bf16 %v1668_v37, %v1660_v36 }
 0x1df   : > { %5865 = vmatpush1.bf16.msra.mxu0 %v5864_v60  ;;  %v6456_v60 = vpack.c.bf16 %v1603_v51, %v1595_v48  ;;  %v1667_v48 = vld [vmem:[%s8654_s20 + $0x2ad0] sm:$0xff]  ;;  %v1682_v51 = vld [vmem:[%s8654_s20 + $0x2b48] sm:$0xff] }
 0x1e0   : > { %6441 = vmatpush1.bf16.msra.mxu1 %v6440_v61  ;;  %5867 = vmatprep.subr.bf16.mxu0 %v5866_v62  ;;  %v5882_v61 = vpack.c.bf16 %v1618_v54, %v1610_v52  ;;  %v1609_v62 = vld [vmem:[%s8654_s20 + $0x2900] sm:$0xff]  ;;  %v1676_v52 = vld [vmem:[%s8654_s20 + $0x2b18] sm:$0xff]  ;;  %v6472_v58 = vpack.c.bf16 %v1667_v48, %v1659_v46  ;;  %v1731_v46 = vld [vmem:[%s8654_s20 + $0x2cd0] sm:$0xff] }
 0x1e1   : > { %6443 = vmatprep.subr.bf16.mxu1 %v6442_v4  ;;  %v1619_v4 = vld [vmem:[%s8654_s20 + $0x2950] sm:$0xff]  ;;  %v5884_v10 = vpack.c.bf16 %v1617_v1, %v1609_v62  ;;  %v1684_v54 = vld [vmem:[%s8654_s20 + $0x2b58] sm:$0xff]  ;;  %v1746_v48 = vld [vmem:[%s8654_s20 + $0x2d48] sm:$0xff] }
 0x1e2   : > { %v1675_v62 = vld [vmem:[%s8654_s20 + $0x2b10] sm:$0xff]  ;;  %v6474_v1 = vpack.c.bf16 %v1684_v54, %v1676_v52 }
 0x1e3   : > { %5869 = vmatpush1.bf16.msra.mxu0 %v5868_v11  ;;  %v6460_v11 = vpack.c.bf16 %v1619_v4, %v1611_v2  ;;  %v1683_v2 = vld [vmem:[%s8654_s20 + $0x2b50] sm:$0xff]  ;;  %v1698_v4 = vld [vmem:[%s8654_s20 + $0x2bc8] sm:$0xff] }
 0x1e4   : > { %6445 = vmatpush1.bf16.msra.mxu1 %v6444_v50  ;;  %5871 = vmatprep.subr.bf16.mxu0 %v5870_v13  ;;  %v5886_v50 = vpack.c.bf16 %v1634_v7, %v1626_v6  ;;  %v1625_v13 = vld [vmem:[%s8654_s20 + $0x2980] sm:$0xff]  ;;  %v1692_v6 = vld [vmem:[%s8654_s20 + $0x2b98] sm:$0xff]  ;;  %v6476_v9 = vpack.c.bf16 %v1683_v2, %v1675_v62  ;;  %v1747_v62 = vld [vmem:[%s8654_s20 + $0x2d50] sm:$0xff] }
 0x1e5   : > { %6447 = vmatprep.subr.bf16.mxu1 %v6446_v18  ;;  %v1635_v18 = vld [vmem:[%s8654_s20 + $0x29d0] sm:$0xff]  ;;  %v5888_v23 = vpack.c.bf16 %v1633_v14, %v1625_v13  ;;  %v1700_v7 = vld [vmem:[%s8654_s20 + $0x2bd8] sm:$0xff]  ;;  %v1762_v2 = vld [vmem:[%s8654_s20 + $0x2dc8] sm:$0xff] }
 0x1e6   : > { %v6464_v24 = vpack.c.bf16 %v1635_v18, %v1627_v16  ;;  %v1691_v13 = vld [vmem:[%s8654_s20 + $0x2b90] sm:$0xff]  ;;  %v6478_v14 = vpack.c.bf16 %v1700_v7, %v1692_v6  ;;  %v1714_v18 = vld [vmem:[%s8654_s20 + $0x2c48] sm:$0xff] }
 0x1e7   : > { %5873 = vmatpush1.bf16.msra.mxu0 %v5872_v27  ;;  %v5890_v27 = vpack.c.bf16 %v1650_v20, %v1642_v19  ;;  %v1699_v16 = vld [vmem:[%s8654_s20 + $0x2bd0] sm:$0xff]  ;;  %v1708_v19 = vld [vmem:[%s8654_s20 + $0x2c18] sm:$0xff] }
 0x1e8   : > { %6449 = vmatpush1.bf16.msra.mxu1 %v6448_v28  ;;  %5875 = vmatprep.subr.bf16.mxu0 %v5874_v29  ;;  %v1641_v28 = vld [vmem:[%s8654_s20 + $0x2a00] sm:$0xff]  ;;  %v1716_v20 = vld [vmem:[%s8654_s20 + $0x2c58] sm:$0xff]  ;;  %v6480_v22 = vpack.c.bf16 %v1699_v16, %v1691_v13  ;;  %v1763_v13 = vld [vmem:[%s8654_s20 + $0x2dd0] sm:$0xff] }
 0x1e9   : > { %6451 = vmatprep.subr.bf16.mxu1 %v6450_v35  ;;  %v1649_v29 = vld [vmem:[%s8654_s20 + $0x2a40] sm:$0xff]  ;;  %v1658_v35 = vld [vmem:[%s8654_s20 + $0x2a88] sm:$0xff] }
 0x1ea   : > { %3049 = vmatmul.mubr.f32.vlgmr.msra.gmra.mrb[0].mxu0 %v9262_v53  ;;  %v5892_v39 = vpack.c.bf16 %v1649_v29, %v1641_v28  ;;  %v1707_v28 = vld [vmem:[%s8654_s20 + $0x2c10] sm:$0xff]  ;;  %v6482_v29 = vpack.c.bf16 %v1716_v20, %v1708_v19  ;;  %v1778_v16 = vld [vmem:[%s8654_s20 + $0x2e48] sm:$0xff] }
 0x1eb   : > { %5877 = vmatpush1.bf16.msra.mxu0 %v5876_v43  ;;  %3688 = vmatmul.mubr.f32.vlgmr.msra.gmra.mrb[0].mxu1 %v9262_v53  ;;  %v5894_v43 = vpack.c.bf16 %v1666_v41, %v1658_v35  ;;  %v1724_v35 = vld [vmem:[%s8654_s20 + $0x2c98] sm:$0xff]  ;;  %v6484_v37 = vpack.c.bf16 %v1715_v31, %v1707_v28  ;;  %v1779_v28 = vld [vmem:[%s8654_s20 + $0x2e50] sm:$0xff]  ;;  %v1794_v31 = vld [vmem:[%s8654_s20 + $0x2ec8] sm:$0xff] }
 0x1ec   : > { %6453 = vmatpush1.bf16.msra.mxu1 %v6452_v44  ;;  %5879 = vmatprep.subr.bf16.mxu0 %v5878_v45  ;;  %v1657_v44 = vld [vmem:[%s8654_s20 + $0x2a80] sm:$0xff]  ;;  %v1732_v41 = vld [vmem:[%s8654_s20 + $0x2cd8] sm:$0xff] }
 0x1ed   : > { %6455 = vmatprep.subr.bf16.mxu1 %v6454_v49  ;;  %3119 = vmatprep.mubr.f32.mxu0 %v9415_v55  ;;  %v1665_v45 = vld [vmem:[%s8654_s20 + $0x2ac0] sm:$0xff]  ;;  %v1674_v49 = vld [vmem:[%s8654_s20 + $0x2b08] sm:$0xff] }
 0x1ee   : > { %3758 = vmatprep.mubr.f32.mxu1 %v9415_v55  ;;  %v5896_v57 = vpack.c.bf16 %v1665_v45, %v1657_v44  ;;  %v1723_v44 = vld [vmem:[%s8654_s20 + $0x2c90] sm:$0xff]  ;;  %v6486_v45 = vpack.c.bf16 %v1732_v41, %v1724_v35 }
 0x1ef   : > { %5881 = vmatpush1.bf16.msra.mxu0 %v5880_v59  ;;  %v5898_v59 = vpack.c.bf16 %v1682_v51, %v1674_v49  ;;  %v1740_v49 = vld [vmem:[%s8654_s20 + $0x2d18] sm:$0xff]  ;;  %v6488_v54 = vpack.c.bf16 %v1731_v46, %v1723_v44  ;;  %v1795_v44 = vld [vmem:[%s8654_s20 + $0x2ed0] sm:$0xff]  ;;  %v1810_v46 = vld [vmem:[%s8654_s20 + $0x2f48] sm:$0xff] }
 0x1f0   : > { %6457 = vmatpush1.bf16.msra.mxu1 %v6456_v60  ;;  %5883 = vmatprep.subr.bf16.mxu0 %v5882_v61  ;;  %v1673_v60 = vld [vmem:[%s8654_s20 + $0x2b00] sm:$0xff]  ;;  %v1748_v51 = vld [vmem:[%s8654_s20 + $0x2d58] sm:$0xff] }
 0x1f1   : > { %6459 = vmatprep.subr.bf16.mxu1 %v6458_v3  ;;  %v1681_v61 = vld [vmem:[%s8654_s20 + $0x2b40] sm:$0xff]  ;;  %v1690_v3 = vld [vmem:[%s8654_s20 + $0x2b88] sm:$0xff] }
 0x1f2   : > { %v5900_v8 = vpack.c.bf16 %v1681_v61, %v1673_v60  ;;  %v1739_v60 = vld [vmem:[%s8654_s20 + $0x2d10] sm:$0xff]  ;;  %v6490_v61 = vpack.c.bf16 %v1748_v51, %v1740_v49 }
 0x1f3   : > { %5885 = vmatpush1.bf16.msra.mxu0 %v5884_v10  ;;  %v5902_v10 = vpack.c.bf16 %v1698_v4, %v1690_v3  ;;  %v1756_v3 = vld [vmem:[%s8654_s20 + $0x2d98] sm:$0xff]  ;;  %v6492_v7 = vpack.c.bf16 %v1747_v62, %v1739_v60  ;;  %v1811_v60 = vld [vmem:[%s8654_s20 + $0x2f50] sm:$0xff]  ;;  %v1826_v62 = vld [vmem:[%s8654_s20 + $0x2fc8] sm:$0xff] }
 0x1f4   : > { %6461 = vmatpush1.bf16.msra.mxu1 %v6460_v11  ;;  %5887 = vmatprep.subr.bf16.mxu0 %v5886_v50  ;;  %v1689_v11 = vld [vmem:[%s8654_s20 + $0x2b80] sm:$0xff]  ;;  %v1764_v4 = vld [vmem:[%s8654_s20 + $0x2dd8] sm:$0xff] }
 0x1f5   : > { %6463 = vmatprep.subr.bf16.mxu1 %v6462_v17  ;;  %v1697_v50 = vld [vmem:[%s8654_s20 + $0x2bc0] sm:$0xff]  ;;  %v1706_v17 = vld [vmem:[%s8654_s20 + $0x2c08] sm:$0xff] }
 0x1f6   : > { %v5904_v21 = vpack.c.bf16 %v1697_v50, %v1689_v11  ;;  %v1755_v11 = vld [vmem:[%s8654_s20 + $0x2d90] sm:$0xff]  ;;  %v6494_v50 = vpack.c.bf16 %v1764_v4, %v1756_v3 }
 0x1f7   : > { %5889 = vmatpush1.bf16.msra.mxu0 %v5888_v23  ;;  %v5906_v23 = vpack.c.bf16 %v1714_v18, %v1706_v17  ;;  %v1772_v17 = vld [vmem:[%s8654_s20 + $0x2e18] sm:$0xff]  ;;  %v6496_v20 = vpack.c.bf16 %v1763_v13, %v1755_v11  ;;  %v1827_v11 = vld [vmem:[%s8654_s20 + $0x2fd0] sm:$0xff]  ;;  %v1842_v13 = vld [vmem:[%s8654_s20 + $0x3048] sm:$0xff] }
 0x1f8   : > { %6465 = vmatpush1.bf16.msra.mxu1 %v6464_v24  ;;  %5891 = vmatprep.subr.bf16.mxu0 %v5890_v27  ;;  %v1705_v24 = vld [vmem:[%s8654_s20 + $0x2c00] sm:$0xff]  ;;  %v1780_v18 = vld [vmem:[%s8654_s20 + $0x2e58] sm:$0xff] }
 0x1f9   : > { %6467 = vmatprep.subr.bf16.mxu1 %v6466_v32  ;;  %v1713_v27 = vld [vmem:[%s8654_s20 + $0x2c40] sm:$0xff]  ;;  %v1722_v32 = vld [vmem:[%s8654_s20 + $0x2c88] sm:$0xff] }
 0x1fa   : > { %v5908_v36 = vpack.c.bf16 %v1713_v27, %v1705_v24  ;;  %v1771_v24 = vld [vmem:[%s8654_s20 + $0x2e10] sm:$0xff]  ;;  %v6498_v27 = vpack.c.bf16 %v1780_v18, %v1772_v17 }
 0x1fb   : > { %5893 = vmatpush1.bf16.msra.mxu0 %v5892_v39  ;;  %v5910_v39 = vpack.c.bf16 %v1730_v34, %v1722_v32  ;;  %v1788_v32 = vld [vmem:[%s8654_s20 + $0x2e98] sm:$0xff]  ;;  %v6500_v41 = vpack.c.bf16 %v1779_v28, %v1771_v24  ;;  %v1850_v28 = vld [vmem:[%s8654_s20 + $0x3088] sm:$0xff] }
 0x1fc   : > { %6469 = vmatpush1.bf16.msra.mxu1 %v6468_v42  ;;  %5895 = vmatprep.subr.bf16.mxu0 %v5894_v43  ;;  %v1721_v42 = vld [vmem:[%s8654_s20 + $0x2c80] sm:$0xff]  ;;  %v1796_v34 = vld [vmem:[%s8654_s20 + $0x2ed8] sm:$0xff] }
 0x1fd   : > { %6471 = vmatprep.subr.bf16.mxu1 %v6470_v47  ;;  %v1729_v43 = vld [vmem:[%s8654_s20 + $0x2cc0] sm:$0xff]  ;;  %v1738_v47 = vld [vmem:[%s8654_s20 + $0x2d08] sm:$0xff]  ;;  %v9536_v17 = vld [vmem:[%s8646_s6 + $0x18] sm:$0xff] }
 0x1fe   : > { %v5912_v52 = vpack.c.bf16 %v1729_v43, %v1721_v42  ;;  %v1787_v42 = vld [vmem:[%s8654_s20 + $0x2e90] sm:$0xff]  ;;  %v6502_v43 = vpack.c.bf16 %v1796_v34, %v1788_v32  ;;  %v1852_v32 = vld [vmem:[%s8654_s20 + $0x3098] sm:$0xff] }
 0x1ff   : > { %5897 = vmatpush1.bf16.msra.mxu0 %v5896_v57  ;;  %v5914_v57 = vpack.c.bf16 %v1746_v48, %v1738_v47  ;;  %v1804_v47 = vld [vmem:[%s8654_s20 + $0x2f18] sm:$0xff]  ;;  %v6504_v51 = vpack.c.bf16 %v1795_v44, %v1787_v42  ;;  %v1851_v42 = vld [vmem:[%s8654_s20 + $0x3090] sm:$0xff] }
 0x200   : > { %6473 = vmatpush1.bf16.msra.mxu1 %v6472_v58  ;;  %5899 = vmatprep.subr.bf16.mxu0 %v5898_v59  ;;  %v1737_v58 = vld [vmem:[%s8654_s20 + $0x2d00] sm:$0xff]  ;;  %v1812_v48 = vld [vmem:[%s8654_s20 + $0x2f58] sm:$0xff]  ;;  %v1859_v44 = vld [vmem:[%s8654_s20 + $0x30d0] sm:$0xff] }
 0x201   : > { %6475 = vmatprep.subr.bf16.mxu1 %v6474_v1  ;;  %v1745_v59 = vld [vmem:[%s8654_s20 + $0x2d40] sm:$0xff]  ;;  %v1754_v1 = vld [vmem:[%s8654_s20 + $0x2d88] sm:$0xff]  ;;  %v1860_v34 = vld [vmem:[%s8654_s20 + $0x30d8] sm:$0xff] }
 0x202   : > { %v5916_v6 = vpack.c.bf16 %v1745_v59, %v1737_v58  ;;  %v1803_v58 = vld [vmem:[%s8654_s20 + $0x2f10] sm:$0xff]  ;;  %v6506_v59 = vpack.c.bf16 %v1812_v48, %v1804_v47  ;;  %v1868_v48 = vld [vmem:[%s8654_s20 + $0x3118] sm:$0xff] }
 0x203   : > { %5901 = vmatpush1.bf16.msra.mxu0 %v5900_v8  ;;  %v5918_v8 = vpack.c.bf16 %v1762_v2, %v1754_v1  ;;  %v1820_v1 = vld [vmem:[%s8654_s20 + $0x2f98] sm:$0xff]  ;;  %v6508_v4 = vpack.c.bf16 %v1811_v60, %v1803_v58  ;;  %v1873_v58 = vld [vmem:[%s8654_s20 + $0x3140] sm:$0xff] }
 0x204   : > { %6477 = vmatpush1.bf16.msra.mxu1 %v6476_v9  ;;  %5903 = vmatprep.subr.bf16.mxu0 %v5902_v10  ;;  %v1753_v9 = vld [vmem:[%s8654_s20 + $0x2d80] sm:$0xff]  ;;  %v1828_v2 = vld [vmem:[%s8654_s20 + $0x2fd8] sm:$0xff] }
 0x205   : > { %6479 = vmatprep.subr.bf16.mxu1 %v6478_v14  ;;  %v1761_v10 = vld [vmem:[%s8654_s20 + $0x2dc0] sm:$0xff]  ;;  %v1770_v14 = vld [vmem:[%s8654_s20 + $0x2e08] sm:$0xff] }
 0x206   : > { %v5920_v19 = vpack.c.bf16 %v1761_v10, %v1753_v9  ;;  %v1819_v9 = vld [vmem:[%s8654_s20 + $0x2f90] sm:$0xff]  ;;  %v6510_v10 = vpack.c.bf16 %v1828_v2, %v1820_v1  ;;  %v1890_v1 = vld [vmem:[%s8654_s20 + $0x31c8] sm:$0xff]  ;;  %v1884_v2 = vld [vmem:[%s8654_s20 + $0x3198] sm:$0xff] }
 0x207   : > { %5905 = vmatpush1.bf16.msra.mxu0 %v5904_v21  ;;  %v5922_v21 = vpack.c.bf16 %v1778_v16, %v1770_v14  ;;  %v1836_v14 = vld [vmem:[%s8654_s20 + $0x3018] sm:$0xff] }
 0x208   : > { %6481 = vmatpush1.bf16.msra.mxu1 %v6480_v22  ;;  %5907 = vmatprep.subr.bf16.mxu0 %v5906_v23  ;;  %v1769_v22 = vld [vmem:[%s8654_s20 + $0x2e00] sm:$0xff]  ;;  %v1844_v16 = vld [vmem:[%s8654_s20 + $0x3058] sm:$0xff] }
 0x209   : > { %6483 = vmatprep.subr.bf16.mxu1 %v6482_v29  ;;  %v1777_v23 = vld [vmem:[%s8654_s20 + $0x2e40] sm:$0xff]  ;;  %v1786_v29 = vld [vmem:[%s8654_s20 + $0x2e88] sm:$0xff]  ;;  %v6514_v24 = vpack.c.bf16 %v1844_v16, %v1836_v14  ;;  %v1900_v16 = vld [vmem:[%s8654_s20 + $0x3218] sm:$0xff] }
 0x20a   : > { %v5924_v35 = vpack.c.bf16 %v1777_v23, %v1769_v22  ;;  %v1841_v22 = vld [vmem:[%s8654_s20 + $0x3040] sm:$0xff]  ;;  %v1835_v23 = vld [vmem:[%s8654_s20 + $0x3010] sm:$0xff]  ;;  %v1906_v14 = vld [vmem:[%s8654_s20 + $0x3248] sm:$0xff] }
 0x20b   : > { %5909 = vmatpush1.bf16.msra.mxu0 %v5908_v36  ;;  %v5926_v36 = vpack.c.bf16 %v1794_v31, %v1786_v29  ;;  %v1858_v29 = vld [vmem:[%s8654_s20 + $0x30c8] sm:$0xff]  ;;  %v9546_v31 = vrot.slane %v9536_v17, %v8771_v12 }
 0x20c   : > { %6485 = vmatpush1.bf16.msra.mxu1 %v6484_v37  ;;  %5911 = vmatprep.subr.bf16.mxu0 %v5910_v39  ;;  %v1785_v37 = vld [vmem:[%s8654_s20 + $0x2e80] sm:$0xff] }
 0x20d   : > { %6487 = vmatprep.subr.bf16.mxu1 %v6486_v45  ;;  %v1793_v39 = vld [vmem:[%s8654_s20 + $0x2ec0] sm:$0xff]  ;;  %v1802_v45 = vld [vmem:[%s8654_s20 + $0x2f08] sm:$0xff]  ;;  %v9558_v47 = vcombine.high %v9546_v31, %v9546_v31 }
 0x20e   : > { %v5928_v49 = vpack.c.bf16 %v1793_v39, %v1785_v37  ;;  %v1849_v37 = vld [vmem:[%s8654_s20 + $0x3080] sm:$0xff] }
 0x20f   : > { %5913 = vmatpush1.bf16.msra.mxu0 %v5912_v52  ;;  %v5930_v52 = vpack.c.bf16 %v1810_v46, %v1802_v45  ;;  %v1857_v39 = vld [vmem:[%s8654_s20 + $0x30c0] sm:$0xff]  ;;  %v1866_v45 = vld [vmem:[%s8654_s20 + $0x3108] sm:$0xff] }
 0x210   : > { %6489 = vmatpush1.bf16.msra.mxu1 %v6488_v54  ;;  %5915 = vmatprep.subr.bf16.mxu0 %v5914_v57  ;;  %v1801_v54 = vld [vmem:[%s8654_s20 + $0x2f00] sm:$0xff]  ;;  %v1874_v46 = vld [vmem:[%s8654_s20 + $0x3148] sm:$0xff] }
 0x211   : > { %6491 = vmatprep.subr.bf16.mxu1 %v6490_v61  ;;  %v1809_v57 = vld [vmem:[%s8654_s20 + $0x2f40] sm:$0xff]  ;;  %v1818_v61 = vld [vmem:[%s8654_s20 + $0x2f88] sm:$0xff] }
 0x212   : > { %v5932_v3 = vpack.c.bf16 %v1809_v57, %v1801_v54  ;;  %v5946_v54 = vpack.c.bf16 %v1874_v46, %v1866_v45  ;;  %v1865_v57 = vld [vmem:[%s8654_s20 + $0x3100] sm:$0xff]  ;;  %v1923_v45 = vld [vmem:[%s8654_s20 + $0x32d0] sm:$0xff]  ;;  %v1930_v46 = vld [vmem:[%s8654_s20 + $0x3308] sm:$0xff] }
 0x213   : > { %5917 = vmatpush1.bf16.msra.mxu0 %v5916_v6  ;;  %v5934_v6 = vpack.c.bf16 %v1826_v62, %v1818_v61  ;;  %v1875_v61 = vld [vmem:[%s8654_s20 + $0x3150] sm:$0xff]  ;;  %v1882_v62 = vld [vmem:[%s8654_s20 + $0x3188] sm:$0xff] }
 0x214   : > { %6493 = vmatpush1.bf16.msra.mxu1 %v6492_v7  ;;  %5919 = vmatprep.subr.bf16.mxu0 %v5918_v8  ;;  %v1817_v7 = vld [vmem:[%s8654_s20 + $0x2f80] sm:$0xff] }
 0x215   : > { %6495 = vmatprep.subr.bf16.mxu1 %v6494_v50  ;;  %v1825_v8 = vld [vmem:[%s8654_s20 + $0x2fc0] sm:$0xff]  ;;  %v1834_v50 = vld [vmem:[%s8654_s20 + $0x3008] sm:$0xff] }
 0x216   : > { %v5936_v18 = vpack.c.bf16 %v1825_v8, %v1817_v7  ;;  %v5950_v7 = vpack.c.bf16 %v1890_v1, %v1882_v62  ;;  %v1881_v8 = vld [vmem:[%s8654_s20 + $0x3180] sm:$0xff]  ;;  %v1939_v62 = vld [vmem:[%s8654_s20 + $0x3350] sm:$0xff]  ;;  %v1946_v1 = vld [vmem:[%s8654_s20 + $0x3388] sm:$0xff] }
 0x217   : > { %5921 = vmatpush1.bf16.msra.mxu0 %v5920_v19  ;;  %v6512_v19 = vpack.c.bf16 %v1827_v11, %v1819_v9  ;;  %v1889_v9 = vld [vmem:[%s8654_s20 + $0x31c0] sm:$0xff] }
 0x218   : > { %6497 = vmatpush1.bf16.msra.mxu1 %v6496_v20  ;;  %5923 = vmatprep.subr.bf16.mxu0 %v5922_v21  ;;  %v5938_v20 = vpack.c.bf16 %v1842_v13, %v1834_v50  ;;  %v1833_v21 = vld [vmem:[%s8654_s20 + $0x3000] sm:$0xff]  ;;  %v1891_v50 = vld [vmem:[%s8654_s20 + $0x31d0] sm:$0xff]  ;;  %v1898_v13 = vld [vmem:[%s8654_s20 + $0x3208] sm:$0xff] }
 0x219   : > { %6499 = vmatprep.subr.bf16.mxu1 %v6498_v27  ;;  %v1843_v27 = vld [vmem:[%s8654_s20 + $0x3050] sm:$0xff] }
 0x21b   : > { %5925 = vmatpush1.bf16.msra.mxu0 %v5924_v35  ;;  %v5940_v35 = vpack.c.bf16 %v1841_v22, %v1833_v21  ;;  %v5954_v21 = vpack.c.bf16 %v1906_v14, %v1898_v13  ;;  %v1897_v22 = vld [vmem:[%s8654_s20 + $0x3200] sm:$0xff]  ;;  %v1955_v13 = vld [vmem:[%s8654_s20 + $0x33d0] sm:$0xff]  ;;  %v1962_v14 = vld [vmem:[%s8654_s20 + $0x3408] sm:$0xff] }
 0x21c   : > { %6501 = vmatpush1.bf16.msra.mxu1 %v6500_v41  ;;  %5927 = vmatprep.subr.bf16.mxu0 %v5926_v36  ;;  %v6516_v41 = vpack.c.bf16 %v1843_v27, %v1835_v23  ;;  %v5942_v36 = vpack.c.bf16 %v1858_v29, %v1850_v28  ;;  %v1905_v23 = vld [vmem:[%s8654_s20 + $0x3240] sm:$0xff]  ;;  %v1907_v28 = vld [vmem:[%s8654_s20 + $0x3250] sm:$0xff]  ;;  %v1914_v29 = vld [vmem:[%s8654_s20 + $0x3288] sm:$0xff] }
 0x21d   : > { %6503 = vmatprep.subr.bf16.mxu1 %v6502_v43  ;;  %v6518_v43 = vpack.c.bf16 %v1860_v34, %v1852_v32  ;;  %v1922_v32 = vld [vmem:[%s8654_s20 + $0x32c8] sm:$0xff]  ;;  %v1916_v34 = vld [vmem:[%s8654_s20 + $0x3298] sm:$0xff] }
 0x21f   : > { %5929 = vmatpush1.bf16.msra.mxu0 %v5928_v49  ;;  %v1876_v49 = vld [vmem:[%s8654_s20 + $0x3158] sm:$0xff] }
 0x220   : > { %6505 = vmatpush1.bf16.msra.mxu1 %v6504_v51  ;;  %5931 = vmatprep.subr.bf16.mxu0 %v5930_v52  ;;  %v5944_v51 = vpack.c.bf16 %v1857_v39, %v1849_v37  ;;  %v6520_v52 = vpack.c.bf16 %v1859_v44, %v1851_v42  ;;  %v6522_v60 = vpack.c.bf16 %v1876_v49, %v1868_v48  ;;  %v1913_v39 = vld [vmem:[%s8654_s20 + $0x3280] sm:$0xff]  ;;  %v1938_v48 = vld [vmem:[%s8654_s20 + $0x3348] sm:$0xff]  ;;  %v1932_v49 = vld [vmem:[%s8654_s20 + $0x3318] sm:$0xff] }
 0x221   : > { %6507 = vmatprep.subr.bf16.mxu1 %v6506_v59  ;;  %v1867_v59 = vld [vmem:[%s8654_s20 + $0x3110] sm:$0xff]  ;;  %v5958_v37 = vpack.c.bf16 %v1922_v32, %v1914_v29  ;;  %v1921_v42 = vld [vmem:[%s8654_s20 + $0x32c0] sm:$0xff]  ;;  %v1978_v32 = vld [vmem:[%s8654_s20 + $0x3488] sm:$0xff] }
 0x222   : > { %v1971_v29 = vld [vmem:[%s8654_s20 + $0x3450] sm:$0xff] }
 0x223   : > { %5933 = vmatpush1.bf16.msra.mxu0 %v5932_v3  ;;  %v1892_v3 = vld [vmem:[%s8654_s20 + $0x31d8] sm:$0xff] }
 0x224   : > { %6509 = vmatpush1.bf16.msra.mxu1 %v6508_v4  ;;  %5935 = vmatprep.subr.bf16.mxu0 %v5934_v6  ;;  %v5948_v4 = vpack.c.bf16 %v1873_v58, %v1865_v57  ;;  %v6524_v6 = vpack.c.bf16 %v1875_v61, %v1867_v59  ;;  %v6526_v11 = vpack.c.bf16 %v1892_v3, %v1884_v2  ;;  %v1929_v58 = vld [vmem:[%s8654_s20 + $0x3300] sm:$0xff]  ;;  %v1954_v2 = vld [vmem:[%s8654_s20 + $0x33c8] sm:$0xff]  ;;  %v1948_v3 = vld [vmem:[%s8654_s20 + $0x3398] sm:$0xff] }
 0x225   : > { %6511 = vmatprep.subr.bf16.mxu1 %v6510_v10  ;;  %v1883_v10 = vld [vmem:[%s8654_s20 + $0x3190] sm:$0xff]  ;;  %v5962_v57 = vpack.c.bf16 %v1938_v48, %v1930_v46  ;;  %v1937_v59 = vld [vmem:[%s8654_s20 + $0x3340] sm:$0xff]  ;;  %v1994_v48 = vld [vmem:[%s8654_s20 + $0x3508] sm:$0xff] }
 0x226   : > { %v1987_v46 = vld [vmem:[%s8654_s20 + $0x34d0] sm:$0xff] }
 0x227   : > { %5937 = vmatpush1.bf16.msra.mxu0 %v5936_v18  ;;  %v1908_v18 = vld [vmem:[%s8654_s20 + $0x3258] sm:$0xff] }
 0x228   : > { %6513 = vmatpush1.bf16.msra.mxu1 %v6512_v19  ;;  %5939 = vmatprep.subr.bf16.mxu0 %v5938_v20  ;;  %v5952_v19 = vpack.c.bf16 %v1889_v9, %v1881_v8  ;;  %v6528_v20 = vpack.c.bf16 %v1891_v50, %v1883_v10  ;;  %v6530_v27 = vpack.c.bf16 %v1908_v18, %v1900_v16  ;;  %v1945_v9 = vld [vmem:[%s8654_s20 + $0x3380] sm:$0xff]  ;;  %v1970_v16 = vld [vmem:[%s8654_s20 + $0x3448] sm:$0xff]  ;;  %v1964_v18 = vld [vmem:[%s8654_s20 + $0x3418] sm:$0xff] }
 0x229   : > { %6515 = vmatprep.subr.bf16.mxu1 %v6514_v24  ;;  %v1899_v24 = vld [vmem:[%s8654_s20 + $0x3210] sm:$0xff]  ;;  %v5966_v8 = vpack.c.bf16 %v1954_v2, %v1946_v1  ;;  %v1953_v10 = vld [vmem:[%s8654_s20 + $0x33c0] sm:$0xff]  ;;  %v2010_v2 = vld [vmem:[%s8654_s20 + $0x3588] sm:$0xff] }
 0x22a   : > { %3120 = vmatmul.mubr.f32.vlgmr.msra.gmra.mrb[0].mxu0 %v9403_v38  ;;  %v2003_v1 = vld [vmem:[%s8654_s20 + $0x3550] sm:$0xff] }
 0x22b   : > { %5941 = vmatpush1.bf16.msra.mxu0 %v5940_v35  ;;  %3759 = vmatmul.mubr.f32.vlgmr.msra.gmra.mrb[0].mxu1 %v9403_v38  ;;  %v1924_v35 = vld [vmem:[%s8654_s20 + $0x32d8] sm:$0xff] }
 0x22c   : > { %6517 = vmatpush1.bf16.msra.mxu1 %v6516_v41  ;;  %5943 = vmatprep.subr.bf16.mxu0 %v5942_v36  ;;  %v5956_v41 = vpack.c.bf16 %v1905_v23, %v1897_v22  ;;  %v6532_v36 = vpack.c.bf16 %v1907_v28, %v1899_v24  ;;  %v6534_v44 = vpack.c.bf16 %v1924_v35, %v1916_v34  ;;  %v1961_v23 = vld [vmem:[%s8654_s20 + $0x3400] sm:$0xff]  ;;  %v1986_v34 = vld [vmem:[%s8654_s20 + $0x34c8] sm:$0xff]  ;;  %v1980_v35 = vld [vmem:[%s8654_s20 + $0x3498] sm:$0xff] }
 0x22d   : > { %6519 = vmatprep.subr.bf16.mxu1 %v6518_v43  ;;  %3190 = vmatprep.mubr.f32.mxu0 %v9558_v47  ;;  %v1915_v43 = vld [vmem:[%s8654_s20 + $0x3290] sm:$0xff]  ;;  %v5970_v22 = vpack.c.bf16 %v1970_v16, %v1962_v14  ;;  %v1969_v24 = vld [vmem:[%s8654_s20 + $0x3440] sm:$0xff]  ;;  %v2026_v16 = vld [vmem:[%s8654_s20 + $0x3608] sm:$0xff] }
 0x22e   : > { %3829 = vmatprep.mubr.f32.mxu1 %v9558_v47  ;;  %v2019_v14 = vld [vmem:[%s8654_s20 + $0x35d0] sm:$0xff] }
 0x22f   : > { %5945 = vmatpush1.bf16.msra.mxu0 %v5944_v51  ;;  %v1940_v51 = vld [vmem:[%s8654_s20 + $0x3358] sm:$0xff] }
 0x230   : > { %6521 = vmatpush1.bf16.msra.mxu1 %v6520_v52  ;;  %5947 = vmatprep.subr.bf16.mxu0 %v5946_v54  ;;  %v5960_v52 = vpack.c.bf16 %v1921_v42, %v1913_v39  ;;  %v6536_v54 = vpack.c.bf16 %v1923_v45, %v1915_v43  ;;  %v6538_v61 = vpack.c.bf16 %v1940_v51, %v1932_v49  ;;  %v1977_v42 = vld [vmem:[%s8654_s20 + $0x3480] sm:$0xff]  ;;  %v2002_v49 = vld [vmem:[%s8654_s20 + $0x3548] sm:$0xff]  ;;  %v1996_v51 = vld [vmem:[%s8654_s20 + $0x3518] sm:$0xff] }
 0x231   : > { %6523 = vmatprep.subr.bf16.mxu1 %v6522_v60  ;;  %v1931_v60 = vld [vmem:[%s8654_s20 + $0x3310] sm:$0xff]  ;;  %v5974_v39 = vpack.c.bf16 %v1986_v34, %v1978_v32  ;;  %v1985_v43 = vld [vmem:[%s8654_s20 + $0x34c0] sm:$0xff]  ;;  %v2042_v34 = vld [vmem:[%s8654_s20 + $0x3688] sm:$0xff] }
 0x232   : > { %v2035_v32 = vld [vmem:[%s8654_s20 + $0x3650] sm:$0xff] }
 0x233   : > { %5949 = vmatpush1.bf16.msra.mxu0 %v5948_v4  ;;  %v1956_v4 = vld [vmem:[%s8654_s20 + $0x33d8] sm:$0xff] }
 0x234   : > { %6525 = vmatpush1.bf16.msra.mxu1 %v6524_v6  ;;  %5951 = vmatprep.subr.bf16.mxu0 %v5950_v7  ;;  %v5964_v6 = vpack.c.bf16 %v1937_v59, %v1929_v58  ;;  %v6540_v7 = vpack.c.bf16 %v1939_v62, %v1931_v60  ;;  %v6542_v50 = vpack.c.bf16 %v1956_v4, %v1948_v3  ;;  %v1993_v59 = vld [vmem:[%s8654_s20 + $0x3500] sm:$0xff]  ;;  %v2018_v3 = vld [vmem:[%s8654_s20 + $0x35c8] sm:$0xff]  ;;  %v2012_v4 = vld [vmem:[%s8654_s20 + $0x3598] sm:$0xff] }
 0x235   : > { %6527 = vmatprep.subr.bf16.mxu1 %v6526_v11  ;;  %v1947_v11 = vld [vmem:[%s8654_s20 + $0x3390] sm:$0xff]  ;;  %v5978_v58 = vpack.c.bf16 %v2002_v49, %v1994_v48  ;;  %v2001_v60 = vld [vmem:[%s8654_s20 + $0x3540] sm:$0xff]  ;;  %v2058_v49 = vld [vmem:[%s8654_s20 + $0x3708] sm:$0xff] }
 0x236   : > { %v2051_v48 = vld [vmem:[%s8654_s20 + $0x36d0] sm:$0xff] }
 0x237   : > { %5953 = vmatpush1.bf16.msra.mxu0 %v5952_v19  ;;  %v1972_v19 = vld [vmem:[%s8654_s20 + $0x3458] sm:$0xff] }
 0x238   : > { %6529 = vmatpush1.bf16.msra.mxu1 %v6528_v20  ;;  %5955 = vmatprep.subr.bf16.mxu0 %v5954_v21  ;;  %v5968_v20 = vpack.c.bf16 %v1953_v10, %v1945_v9  ;;  %v6544_v21 = vpack.c.bf16 %v1955_v13, %v1947_v11  ;;  %v6546_v28 = vpack.c.bf16 %v1972_v19, %v1964_v18  ;;  %v2009_v10 = vld [vmem:[%s8654_s20 + $0x3580] sm:$0xff]  ;;  %v2034_v18 = vld [vmem:[%s8654_s20 + $0x3648] sm:$0xff]  ;;  %v2028_v19 = vld [vmem:[%s8654_s20 + $0x3618] sm:$0xff] }
 0x239   : > { %6531 = vmatprep.subr.bf16.mxu1 %v6530_v27  ;;  %v1963_v27 = vld [vmem:[%s8654_s20 + $0x3410] sm:$0xff]  ;;  %v5982_v9 = vpack.c.bf16 %v2018_v3, %v2010_v2  ;;  %v2017_v11 = vld [vmem:[%s8654_s20 + $0x35c0] sm:$0xff]  ;;  %v2074_v3 = vld [vmem:[%s8654_s20 + $0x3788] sm:$0xff] }
 0x23a   : > { %v2067_v2 = vld [vmem:[%s8654_s20 + $0x3750] sm:$0xff] }
 0x23b   : > { %5957 = vmatpush1.bf16.msra.mxu0 %v5956_v41  ;;  %v1988_v41 = vld [vmem:[%s8654_s20 + $0x34d8] sm:$0xff] }
 0x23c   : > { %6533 = vmatpush1.bf16.msra.mxu1 %v6532_v36  ;;  %5959 = vmatprep.subr.bf16.mxu0 %v5958_v37  ;;  %v5972_v36 = vpack.c.bf16 %v1969_v24, %v1961_v23  ;;  %v6548_v37 = vpack.c.bf16 %v1971_v29, %v1963_v27  ;;  %v6550_v45 = vpack.c.bf16 %v1988_v41, %v1980_v35  ;;  %v2025_v24 = vld [vmem:[%s8654_s20 + $0x3600] sm:$0xff]  ;;  %v2050_v35 = vld [vmem:[%s8654_s20 + $0x36c8] sm:$0xff]  ;;  %v2044_v41 = vld [vmem:[%s8654_s20 + $0x3698] sm:$0xff] }
 0x23d   : > { %6535 = vmatprep.subr.bf16.mxu1 %v6534_v44  ;;  %v1979_v44 = vld [vmem:[%s8654_s20 + $0x3490] sm:$0xff]  ;;  %v5986_v23 = vpack.c.bf16 %v2034_v18, %v2026_v16  ;;  %v2033_v27 = vld [vmem:[%s8654_s20 + $0x3640] sm:$0xff]  ;;  %v2090_v18 = vld [vmem:[%s8654_s20 + $0x3808] sm:$0xff] }
 0x23e   : > { %v2083_v16 = vld [vmem:[%s8654_s20 + $0x37d0] sm:$0xff] }
 0x23f   : > { %5961 = vmatpush1.bf16.msra.mxu0 %v5960_v52  ;;  %v2004_v52 = vld [vmem:[%s8654_s20 + $0x3558] sm:$0xff] }
 0x240   : > { %6537 = vmatpush1.bf16.msra.mxu1 %v6536_v54  ;;  %5963 = vmatprep.subr.bf16.mxu0 %v5962_v57  ;;  %v5976_v54 = vpack.c.bf16 %v1985_v43, %v1977_v42  ;;  %v6552_v57 = vpack.c.bf16 %v1987_v46, %v1979_v44  ;;  %v6554_v62 = vpack.c.bf16 %v2004_v52, %v1996_v51  ;;  %v2041_v43 = vld [vmem:[%s8654_s20 + $0x3680] sm:$0xff]  ;;  %v2066_v51 = vld [vmem:[%s8654_s20 + $0x3748] sm:$0xff]  ;;  %v2060_v52 = vld [vmem:[%s8654_s20 + $0x3718] sm:$0xff] }
 0x241   : > { %6539 = vmatprep.subr.bf16.mxu1 %v6538_v61  ;;  %v1995_v61 = vld [vmem:[%s8654_s20 + $0x3510] sm:$0xff]  ;;  %v5990_v42 = vpack.c.bf16 %v2050_v35, %v2042_v34  ;;  %v2049_v44 = vld [vmem:[%s8654_s20 + $0x36c0] sm:$0xff]  ;;  %v2106_v35 = vld [vmem:[%s8654_s20 + $0x3888] sm:$0xff] }
 0x243   : > { %5965 = vmatpush1.bf16.msra.mxu0 %v5964_v6  ;;  %v2020_v6 = vld [vmem:[%s8654_s20 + $0x35d8] sm:$0xff] }
 0x244   : > { %6541 = vmatpush1.bf16.msra.mxu1 %v6540_v7  ;;  %5967 = vmatprep.subr.bf16.mxu0 %v5966_v8  ;;  %v5980_v7 = vpack.c.bf16 %v2001_v60, %v1993_v59  ;;  %v6556_v8 = vpack.c.bf16 %v2003_v1, %v1995_v61  ;;  %v6558_v13 = vpack.c.bf16 %v2020_v6, %v2012_v4  ;;  %v2057_v60 = vld [vmem:[%s8654_s20 + $0x3700] sm:$0xff]  ;;  %v2082_v4 = vld [vmem:[%s8654_s20 + $0x37c8] sm:$0xff]  ;;  %v2076_v6 = vld [vmem:[%s8654_s20 + $0x3798] sm:$0xff] }
 0x245   : > { %6543 = vmatprep.subr.bf16.mxu1 %v6542_v50  ;;  %v2011_v50 = vld [vmem:[%s8654_s20 + $0x3590] sm:$0xff]  ;;  %v5994_v59 = vpack.c.bf16 %v2066_v51, %v2058_v49  ;;  %v2065_v61 = vld [vmem:[%s8654_s20 + $0x3740] sm:$0xff] }
 0x246   : > { %v2115_v51 = vld [vmem:[%s8654_s20 + $0x38d0] sm:$0xff] }
 0x247   : > { %5969 = vmatpush1.bf16.msra.mxu0 %v5968_v20  ;;  %v2036_v20 = vld [vmem:[%s8654_s20 + $0x3658] sm:$0xff] }
 0x248   : > { %6545 = vmatpush1.bf16.msra.mxu1 %v6544_v21  ;;  %5971 = vmatprep.subr.bf16.mxu0 %v5970_v22  ;;  %v5984_v21 = vpack.c.bf16 %v2017_v11, %v2009_v10  ;;  %v6560_v22 = vpack.c.bf16 %v2019_v14, %v2011_v50  ;;  %v6562_v29 = vpack.c.bf16 %v2036_v20, %v2028_v19  ;;  %v2073_v11 = vld [vmem:[%s8654_s20 + $0x3780] sm:$0xff]  ;;  %v2098_v19 = vld [vmem:[%s8654_s20 + $0x3848] sm:$0xff] }
 0x249   : > { %6547 = vmatprep.subr.bf16.mxu1 %v6546_v28  ;;  %v2027_v28 = vld [vmem:[%s8654_s20 + $0x3610] sm:$0xff]  ;;  %v5998_v10 = vpack.c.bf16 %v2082_v4, %v2074_v3  ;;  %v2081_v50 = vld [vmem:[%s8654_s20 + $0x37c0] sm:$0xff]  ;;  %v2657_v20 = vcombine.high %v9536_v17, %v9536_v17 }
 0x24a   : > { %v2099_v17 = vld [vmem:[%s8654_s20 + $0x3850] sm:$0xff] }
 0x24b   : > { %5973 = vmatpush1.bf16.msra.mxu0 %v5972_v36  ;;  %v2052_v36 = vld [vmem:[%s8654_s20 + $0x36d8] sm:$0xff]  ;;  %v2123_v3 = vld [vmem:[%s8654_s20 + $0x3910] sm:$0xff] }
 0x24c   : > { %6549 = vmatpush1.bf16.msra.mxu1 %v6548_v37  ;;  %5975 = vmatprep.subr.bf16.mxu0 %v5974_v39  ;;  %v5988_v37 = vpack.c.bf16 %v2033_v27, %v2025_v24  ;;  %v6564_v39 = vpack.c.bf16 %v2035_v32, %v2027_v28  ;;  %v6566_v46 = vpack.c.bf16 %v2052_v36, %v2044_v41  ;;  %v2089_v28 = vld [vmem:[%s8654_s20 + $0x3800] sm:$0xff]  ;;  %v2091_v32 = vld [vmem:[%s8654_s20 + $0x3810] sm:$0xff]  ;;  %v2114_v41 = vld [vmem:[%s8654_s20 + $0x38c8] sm:$0xff] }
 0x24d   : > { %6551 = vmatprep.subr.bf16.mxu1 %v6550_v45  ;;  %v2043_v45 = vld [vmem:[%s8654_s20 + $0x3690] sm:$0xff]  ;;  %v6002_v27 = vpack.c.bf16 %v2098_v19, %v2090_v18  ;;  %v9687_v36 = vrot.slane %v2657_v20, %v8771_v12 }
 0x24e   : > { %v2139_v18 = vld [vmem:[%s8654_s20 + $0x3990] sm:$0xff] }
 0x24f   : > { %5977 = vmatpush1.bf16.msra.mxu0 %v5976_v54  ;;  %v2068_v54 = vld [vmem:[%s8654_s20 + $0x3758] sm:$0xff]  ;;  %v2147_v20 = vld [vmem:[%s8654_s20 + $0x39d0] sm:$0xff] }
 0x250   : > { %6553 = vmatpush1.bf16.msra.mxu1 %v6552_v57  ;;  %5979 = vmatprep.subr.bf16.mxu0 %v5978_v58  ;;  %v5992_v57 = vpack.c.bf16 %v2049_v44, %v2041_v43  ;;  %v6568_v58 = vpack.c.bf16 %v2051_v48, %v2043_v45  ;;  %v6570_v1 = vpack.c.bf16 %v2068_v54, %v2060_v52  ;;  %v2105_v45 = vld [vmem:[%s8654_s20 + $0x3880] sm:$0xff]  ;;  %v2107_v48 = vld [vmem:[%s8654_s20 + $0x3890] sm:$0xff]  ;;  %v2122_v52 = vld [vmem:[%s8654_s20 + $0x3908] sm:$0xff] }
 0x251   : > { %6555 = vmatprep.subr.bf16.mxu1 %v6554_v62  ;;  %v2059_v62 = vld [vmem:[%s8654_s20 + $0x3710] sm:$0xff]  ;;  %v6580_v43 = vpack.c.bf16 %v2099_v17, %v2091_v32  ;;  %v6006_v44 = vpack.c.bf16 %v2114_v41, %v2106_v35  ;;  %v2130_v54 = vld [vmem:[%s8654_s20 + $0x3948] sm:$0xff]  ;;  %v2153_v32 = vld [vmem:[%s8654_s20 + $0x3a00] sm:$0xff] }
 0x252   : > { %v2155_v17 = vld [vmem:[%s8654_s20 + $0x3a10] sm:$0xff] }
 0x253   : > { %5981 = vmatpush1.bf16.msra.mxu0 %v5980_v7  ;;  %v2084_v7 = vld [vmem:[%s8654_s20 + $0x37d8] sm:$0xff]  ;;  %v2163_v41 = vld [vmem:[%s8654_s20 + $0x3a50] sm:$0xff] }
 0x254   : > { %6557 = vmatpush1.bf16.msra.mxu1 %v6556_v8  ;;  %5983 = vmatprep.subr.bf16.mxu0 %v5982_v9  ;;  %v5996_v8 = vpack.c.bf16 %v2065_v61, %v2057_v60  ;;  %v6572_v9 = vpack.c.bf16 %v2067_v2, %v2059_v62  ;;  %v6574_v14 = vpack.c.bf16 %v2084_v7, %v2076_v6  ;;  %v2129_v2 = vld [vmem:[%s8654_s20 + $0x3940] sm:$0xff]  ;;  %v2131_v6 = vld [vmem:[%s8654_s20 + $0x3950] sm:$0xff]  ;;  %v2138_v7 = vld [vmem:[%s8654_s20 + $0x3988] sm:$0xff] }
 0x255   : > { %6559 = vmatprep.subr.bf16.mxu1 %v6558_v13  ;;  %v2075_v13 = vld [vmem:[%s8654_s20 + $0x3790] sm:$0xff]  ;;  %v6584_v61 = vpack.c.bf16 %v2115_v51, %v2107_v48  ;;  %v6010_v62 = vpack.c.bf16 %v2130_v54, %v2122_v52  ;;  %v2169_v48 = vld [vmem:[%s8654_s20 + $0x3a80] sm:$0xff] }
 0x256   : > { %v6576_v24 = vpack.c.bf16 %v2083_v16, %v2075_v13  ;;  %v2145_v16 = vld [vmem:[%s8654_s20 + $0x39c0] sm:$0xff]  ;;  %v2171_v51 = vld [vmem:[%s8654_s20 + $0x3a90] sm:$0xff] }
 0x257   : > { %5985 = vmatpush1.bf16.msra.mxu0 %v5984_v21  ;;  %v2092_v21 = vld [vmem:[%s8654_s20 + $0x3818] sm:$0xff]  ;;  %v2179_v54 = vld [vmem:[%s8654_s20 + $0x3ad0] sm:$0xff] }
 0x258   : > { %6561 = vmatpush1.bf16.msra.mxu1 %v6560_v22  ;;  %5987 = vmatprep.subr.bf16.mxu0 %v5986_v23  ;;  %v2100_v22 = vld [vmem:[%s8654_s20 + $0x3858] sm:$0xff]  ;;  %v6000_v23 = vpack.c.bf16 %v2081_v50, %v2073_v11  ;;  %v6588_v50 = vpack.c.bf16 %v2131_v6, %v2123_v3  ;;  %v2185_v3 = vld [vmem:[%s8654_s20 + $0x3b00] sm:$0xff]  ;;  %v2187_v6 = vld [vmem:[%s8654_s20 + $0x3b10] sm:$0xff] }
 0x259   : > { %6563 = vmatprep.subr.bf16.mxu1 %v6562_v29  ;;  %v2097_v29 = vld [vmem:[%s8654_s20 + $0x3840] sm:$0xff]  ;;  %v6578_v34 = vpack.c.bf16 %v2100_v22, %v2092_v21  ;;  %v2154_v21 = vld [vmem:[%s8654_s20 + $0x3a08] sm:$0xff] }
 0x25a   : > { %v2162_v22 = vld [vmem:[%s8654_s20 + $0x3a48] sm:$0xff] }
 0x25b   : > { %5989 = vmatpush1.bf16.msra.mxu0 %v5988_v37  ;;  %v2108_v37 = vld [vmem:[%s8654_s20 + $0x3898] sm:$0xff] }
 0x25c   : > { %6565 = vmatpush1.bf16.msra.mxu1 %v6564_v39  ;;  %5991 = vmatprep.subr.bf16.mxu0 %v5990_v42  ;;  %v2116_v39 = vld [vmem:[%s8654_s20 + $0x38d8] sm:$0xff]  ;;  %v6004_v42 = vpack.c.bf16 %v2097_v29, %v2089_v28  ;;  %v6592_v28 = vpack.c.bf16 %v2147_v20, %v2139_v18  ;;  %v6018_v29 = vpack.c.bf16 %v2162_v22, %v2154_v21  ;;  %v2201_v18 = vld [vmem:[%s8654_s20 + $0x3b80] sm:$0xff]  ;;  %v2203_v20 = vld [vmem:[%s8654_s20 + $0x3b90] sm:$0xff] }
 0x25d   : > { %6567 = vmatprep.subr.bf16.mxu1 %v6566_v46  ;;  %v2113_v46 = vld [vmem:[%s8654_s20 + $0x38c0] sm:$0xff]  ;;  %v6582_v49 = vpack.c.bf16 %v2116_v39, %v2108_v37  ;;  %v2170_v37 = vld [vmem:[%s8654_s20 + $0x3a88] sm:$0xff]  ;;  %v2211_v22 = vld [vmem:[%s8654_s20 + $0x3bd0] sm:$0xff] }
 0x25e   : > { %v6008_v60 = vpack.c.bf16 %v2113_v46, %v2105_v45  ;;  %v2178_v39 = vld [vmem:[%s8654_s20 + $0x3ac8] sm:$0xff]  ;;  %v6596_v45 = vpack.c.bf16 %v2163_v41, %v2155_v17  ;;  %v2217_v17 = vld [vmem:[%s8654_s20 + $0x3c00] sm:$0xff]  ;;  %v2219_v41 = vld [vmem:[%s8654_s20 + $0x3c10] sm:$0xff] }
 0x25f   : > { %5993 = vmatpush1.bf16.msra.mxu0 %v5992_v57  ;;  %v9699_v57 = vcombine.high %v9687_v36, %v9687_v36  ;;  %v6022_v46 = vpack.c.bf16 %v2178_v39, %v2170_v37  ;;  %v2227_v39 = vld [vmem:[%s8654_s20 + $0x3c50] sm:$0xff] }
 0x260   : > { %6569 = vmatpush1.bf16.msra.mxu1 %v6568_v58  ;;  %5995 = vmatprep.subr.bf16.mxu0 %v5994_v59  ;;  %v2124_v58 = vld [vmem:[%s8654_s20 + $0x3918] sm:$0xff] }
 0x261   : > { %6571 = vmatprep.subr.bf16.mxu1 %v6570_v1  ;;  %v2132_v59 = vld [vmem:[%s8654_s20 + $0x3958] sm:$0xff]  ;;  %v2121_v1 = vld [vmem:[%s8654_s20 + $0x3900] sm:$0xff] }
 0x262   : > { %v6586_v4 = vpack.c.bf16 %v2132_v59, %v2124_v58  ;;  %v6012_v11 = vpack.c.bf16 %v2129_v2, %v2121_v1  ;;  %v2186_v58 = vld [vmem:[%s8654_s20 + $0x3b08] sm:$0xff]  ;;  %v6600_v1 = vpack.c.bf16 %v2179_v54, %v2171_v51  ;;  %v2233_v51 = vld [vmem:[%s8654_s20 + $0x3c80] sm:$0xff]  ;;  %v2235_v54 = vld [vmem:[%s8654_s20 + $0x3c90] sm:$0xff] }
 0x263   : > { %5997 = vmatpush1.bf16.msra.mxu0 %v5996_v8  ;;  %v2146_v8 = vld [vmem:[%s8654_s20 + $0x39c8] sm:$0xff] }
 0x264   : > { %6573 = vmatpush1.bf16.msra.mxu1 %v6572_v9  ;;  %5999 = vmatprep.subr.bf16.mxu0 %v5998_v10  ;;  %v2140_v9 = vld [vmem:[%s8654_s20 + $0x3998] sm:$0xff]  ;;  %v6014_v13 = vpack.c.bf16 %v2146_v8, %v2138_v7  ;;  %v2194_v59 = vld [vmem:[%s8654_s20 + $0x3b48] sm:$0xff]  ;;  %v2195_v8 = vld [vmem:[%s8654_s20 + $0x3b50] sm:$0xff] }
 0x265   : > { %6575 = vmatprep.subr.bf16.mxu1 %v6574_v14  ;;  %v2148_v10 = vld [vmem:[%s8654_s20 + $0x39d8] sm:$0xff]  ;;  %v2137_v14 = vld [vmem:[%s8654_s20 + $0x3980] sm:$0xff]  ;;  %v6026_v2 = vpack.c.bf16 %v2194_v59, %v2186_v58  ;;  %v2243_v59 = vld [vmem:[%s8654_s20 + $0x3cd0] sm:$0xff] }
 0x266   : > { %v6590_v19 = vpack.c.bf16 %v2148_v10, %v2140_v9  ;;  %v2202_v9 = vld [vmem:[%s8654_s20 + $0x3b88] sm:$0xff] }
 0x267   : > { %6001 = vmatpush1.bf16.msra.mxu0 %v6000_v23  ;;  %v2156_v23 = vld [vmem:[%s8654_s20 + $0x3a18] sm:$0xff]  ;;  %v2210_v10 = vld [vmem:[%s8654_s20 + $0x3bc8] sm:$0xff] }
 0x268   : > { %6577 = vmatpush1.bf16.msra.mxu1 %v6576_v24  ;;  %6003 = vmatprep.subr.bf16.mxu0 %v6002_v27  ;;  %v2164_v24 = vld [vmem:[%s8654_s20 + $0x3a58] sm:$0xff]  ;;  %v6016_v27 = vpack.c.bf16 %v2145_v16, %v2137_v14  ;;  %v6604_v14 = vpack.c.bf16 %v2195_v8, %v2187_v6  ;;  %v6030_v16 = vpack.c.bf16 %v2210_v10, %v2202_v9  ;;  %v2249_v6 = vld [vmem:[%s8654_s20 + $0x3d00] sm:$0xff]  ;;  %v2251_v8 = vld [vmem:[%s8654_s20 + $0x3d10] sm:$0xff] }
 0x269   : > { %6579 = vmatprep.subr.bf16.mxu1 %v6578_v34  ;;  %v2161_v34 = vld [vmem:[%s8654_s20 + $0x3a40] sm:$0xff]  ;;  %v6594_v35 = vpack.c.bf16 %v2164_v24, %v2156_v23  ;;  %v2218_v23 = vld [vmem:[%s8654_s20 + $0x3c08] sm:$0xff]  ;;  %v2259_v10 = vld [vmem:[%s8654_s20 + $0x3d50] sm:$0xff] }
 0x26a   : > { %3191 = vmatmul.mubr.f32.vlgmr.msra.gmra.mrb[0].mxu0 %v9546_v31  ;;  %v2226_v24 = vld [vmem:[%s8654_s20 + $0x3c48] sm:$0xff] }
 0x26b   : > { %6005 = vmatpush1.bf16.msra.mxu0 %v6004_v42  ;;  %3830 = vmatmul.mubr.f32.vlgmr.msra.gmra.mrb[0].mxu1 %v9546_v31  ;;  %v2172_v42 = vld [vmem:[%s8654_s20 + $0x3a98] sm:$0xff] }
 0x26c   : > { %6581 = vmatpush1.bf16.msra.mxu1 %v6580_v43  ;;  %6007 = vmatprep.subr.bf16.mxu0 %v6006_v44  ;;  %v2180_v43 = vld [vmem:[%s8654_s20 + $0x3ad8] sm:$0xff]  ;;  %v6020_v44 = vpack.c.bf16 %v2161_v34, %v2153_v32  ;;  %v6608_v32 = vpack.c.bf16 %v2211_v22, %v2203_v20  ;;  %v6034_v34 = vpack.c.bf16 %v2226_v24, %v2218_v23  ;;  %v2265_v20 = vld [vmem:[%s8654_s20 + $0x3d80] sm:$0xff]  ;;  %v2267_v22 = vld [vmem:[%s8654_s20 + $0x3d90] sm:$0xff] }
 0x26d   : > { %6583 = vmatprep.subr.bf16.mxu1 %v6582_v49  ;;  %3261 = vmatprep.mubr.f32.mxu0 %v9699_v57  ;;  %v2177_v49 = vld [vmem:[%s8654_s20 + $0x3ac0] sm:$0xff]  ;;  %v6598_v52 = vpack.c.bf16 %v2180_v43, %v2172_v42  ;;  %v2234_v42 = vld [vmem:[%s8654_s20 + $0x3c88] sm:$0xff]  ;;  %v2275_v24 = vld [vmem:[%s8654_s20 + $0x3dd0] sm:$0xff] }
 0x26e   : > { %3900 = vmatprep.mubr.f32.mxu1 %v9699_v57  ;;  %v2242_v43 = vld [vmem:[%s8654_s20 + $0x3cc8] sm:$0xff] }
 0x26f   : > { %6009 = vmatpush1.bf16.msra.mxu0 %v6008_v60  ;;  %v2188_v60 = vld [vmem:[%s8654_s20 + $0x3b18] sm:$0xff] }
 0x270   : > { %6585 = vmatpush1.bf16.msra.mxu1 %v6584_v61  ;;  %6011 = vmatprep.subr.bf16.mxu0 %v6010_v62  ;;  %v2196_v61 = vld [vmem:[%s8654_s20 + $0x3b58] sm:$0xff]  ;;  %v6024_v62 = vpack.c.bf16 %v2177_v49, %v2169_v48  ;;  %v6612_v48 = vpack.c.bf16 %v2227_v39, %v2219_v41  ;;  %v6038_v49 = vpack.c.bf16 %v2242_v43, %v2234_v42  ;;  %v2281_v41 = vld [vmem:[%s8654_s20 + $0x3e00] sm:$0xff]  ;;  %v2283_v39 = vld [vmem:[%s8654_s20 + $0x3e10] sm:$0xff] }
 0x271   : > { %6587 = vmatprep.subr.bf16.mxu1 %v6586_v4  ;;  %v2193_v4 = vld [vmem:[%s8654_s20 + $0x3b40] sm:$0xff]  ;;  %v6602_v7 = vpack.c.bf16 %v2196_v61, %v2188_v60  ;;  %v2250_v60 = vld [vmem:[%s8654_s20 + $0x3d08] sm:$0xff]  ;;  %v2291_v43 = vld [vmem:[%s8654_s20 + $0x3e50] sm:$0xff] }
 0x272   : > { %v2258_v61 = vld [vmem:[%s8654_s20 + $0x3d48] sm:$0xff] }
 0x273   : > { %6013 = vmatpush1.bf16.msra.mxu0 %v6012_v11  ;;  %v2204_v11 = vld [vmem:[%s8654_s20 + $0x3b98] sm:$0xff] }
 0x274   : > { %6589 = vmatpush1.bf16.msra.mxu1 %v6588_v50  ;;  %6015 = vmatprep.subr.bf16.mxu0 %v6014_v13  ;;  %v2212_v50 = vld [vmem:[%s8654_s20 + $0x3bd8] sm:$0xff]  ;;  %v6028_v13 = vpack.c.bf16 %v2193_v4, %v2185_v3  ;;  %v6616_v3 = vpack.c.bf16 %v2243_v59, %v2235_v54  ;;  %v6042_v4 = vpack.c.bf16 %v2258_v61, %v2250_v60  ;;  %v2297_v54 = vld [vmem:[%s8654_s20 + $0x3e80] sm:$0xff]  ;;  %v2299_v59 = vld [vmem:[%s8654_s20 + $0x3e90] sm:$0xff] }
 0x275   : > { %6591 = vmatprep.subr.bf16.mxu1 %v6590_v19  ;;  %v2209_v19 = vld [vmem:[%s8654_s20 + $0x3bc0] sm:$0xff]  ;;  %v6606_v21 = vpack.c.bf16 %v2212_v50, %v2204_v11  ;;  %v2266_v11 = vld [vmem:[%s8654_s20 + $0x3d88] sm:$0xff]  ;;  %v2307_v61 = vld [vmem:[%s8654_s20 + $0x3ed0] sm:$0xff] }
 0x276   : > { %v2274_v50 = vld [vmem:[%s8654_s20 + $0x3dc8] sm:$0xff] }
 0x277   : > { %6017 = vmatpush1.bf16.msra.mxu0 %v6016_v27  ;;  %v2220_v27 = vld [vmem:[%s8654_s20 + $0x3c18] sm:$0xff] }
 0x278   : > { %6593 = vmatpush1.bf16.msra.mxu1 %v6592_v28  ;;  %6019 = vmatprep.subr.bf16.mxu0 %v6018_v29  ;;  %v2228_v28 = vld [vmem:[%s8654_s20 + $0x3c58] sm:$0xff]  ;;  %v6032_v29 = vpack.c.bf16 %v2209_v19, %v2201_v18  ;;  %v6620_v18 = vpack.c.bf16 %v2259_v10, %v2251_v8  ;;  %v6046_v19 = vpack.c.bf16 %v2274_v50, %v2266_v11  ;;  %v2313_v8 = vld [vmem:[%s8654_s20 + $0x3f00] sm:$0xff]  ;;  %v2315_v10 = vld [vmem:[%s8654_s20 + $0x3f10] sm:$0xff] }
 0x279   : > { %6595 = vmatprep.subr.bf16.mxu1 %v6594_v35  ;;  %v2225_v35 = vld [vmem:[%s8654_s20 + $0x3c40] sm:$0xff]  ;;  %v6610_v37 = vpack.c.bf16 %v2228_v28, %v2220_v27  ;;  %v2282_v27 = vld [vmem:[%s8654_s20 + $0x3e08] sm:$0xff]  ;;  %v2323_v50 = vld [vmem:[%s8654_s20 + $0x3f50] sm:$0xff] }
 0x27a   : > { %v2290_v28 = vld [vmem:[%s8654_s20 + $0x3e48] sm:$0xff] }
 0x27b   : > { %6021 = vmatpush1.bf16.msra.mxu0 %v6020_v44  ;;  %v2236_v44 = vld [vmem:[%s8654_s20 + $0x3c98] sm:$0xff] }
 0x27c   : > { %6597 = vmatpush1.bf16.msra.mxu1 %v6596_v45  ;;  %6023 = vmatprep.subr.bf16.mxu0 %v6022_v46  ;;  %v2244_v45 = vld [vmem:[%s8654_s20 + $0x3cd8] sm:$0xff]  ;;  %v6036_v46 = vpack.c.bf16 %v2225_v35, %v2217_v17  ;;  %v6624_v17 = vpack.c.bf16 %v2275_v24, %v2267_v22  ;;  %v6050_v35 = vpack.c.bf16 %v2290_v28, %v2282_v27  ;;  %v2329_v22 = vld [vmem:[%s8654_s20 + $0x3f80] sm:$0xff]  ;;  %v2331_v24 = vld [vmem:[%s8654_s20 + $0x3f90] sm:$0xff] }
 0x27d   : > { %6599 = vmatprep.subr.bf16.mxu1 %v6598_v52  ;;  %v2241_v52 = vld [vmem:[%s8654_s20 + $0x3cc0] sm:$0xff]  ;;  %v6614_v58 = vpack.c.bf16 %v2244_v45, %v2236_v44  ;;  %v2298_v44 = vld [vmem:[%s8654_s20 + $0x3e88] sm:$0xff]  ;;  %v2339_v28 = vld [vmem:[%s8654_s20 + $0x3fd0] sm:$0xff] }
 0x27e   : > { %v2306_v45 = vld [vmem:[%s8654_s20 + $0x3ec8] sm:$0xff] }
 0x27f   : > { %6025 = vmatpush1.bf16.msra.mxu0 %v6024_v62  ;;  %v2252_v62 = vld [vmem:[%s8654_s20 + $0x3d18] sm:$0xff] }
 0x280   : > { %6601 = vmatpush1.bf16.msra.mxu1 %v6600_v1  ;;  %6027 = vmatprep.subr.bf16.mxu0 %v6026_v2  ;;  %v2260_v1 = vld [vmem:[%s8654_s20 + $0x3d58] sm:$0xff]  ;;  %v6040_v2 = vpack.c.bf16 %v2241_v52, %v2233_v51  ;;  %v6628_v51 = vpack.c.bf16 %v2291_v43, %v2283_v39  ;;  %v6054_v52 = vpack.c.bf16 %v2306_v45, %v2298_v44  ;;  %v2345_v39 = vld [vmem:[%s8654_s20 + $0x4000] sm:$0xff]  ;;  %v2347_v43 = vld [vmem:[%s8654_s20 + $0x4010] sm:$0xff] }
 0x281   : > { %6603 = vmatprep.subr.bf16.mxu1 %v6602_v7  ;;  %v2257_v7 = vld [vmem:[%s8654_s20 + $0x3d40] sm:$0xff]  ;;  %v6618_v9 = vpack.c.bf16 %v2260_v1, %v2252_v62  ;;  %v2314_v62 = vld [vmem:[%s8654_s20 + $0x3f08] sm:$0xff]  ;;  %v2355_v45 = vld [vmem:[%s8654_s20 + $0x4050] sm:$0xff] }
 0x282   : > { %v2322_v1 = vld [vmem:[%s8654_s20 + $0x3f48] sm:$0xff] }
 0x283   : > { %6029 = vmatpush1.bf16.msra.mxu0 %v6028_v13  ;;  %v2268_v13 = vld [vmem:[%s8654_s20 + $0x3d98] sm:$0xff] }
 0x284   : > { %6605 = vmatpush1.bf16.msra.mxu1 %v6604_v14  ;;  %6031 = vmatprep.subr.bf16.mxu0 %v6030_v16  ;;  %v2276_v14 = vld [vmem:[%s8654_s20 + $0x3dd8] sm:$0xff]  ;;  %v6044_v16 = vpack.c.bf16 %v2257_v7, %v2249_v6  ;;  %v6632_v6 = vpack.c.bf16 %v2307_v61, %v2299_v59  ;;  %v6058_v7 = vpack.c.bf16 %v2322_v1, %v2314_v62  ;;  %v2369_v61 = vld [vmem:[%s8654_s20 + $0x40c0] sm:$0xff]  ;;  %v2363_v62 = vld [vmem:[%s8654_s20 + $0x4090] sm:$0xff] }
 0x285   : > { %6607 = vmatprep.subr.bf16.mxu1 %v6606_v21  ;;  %v2273_v21 = vld [vmem:[%s8654_s20 + $0x3dc0] sm:$0xff]  ;;  %v6622_v23 = vpack.c.bf16 %v2276_v14, %v2268_v13  ;;  %v2330_v13 = vld [vmem:[%s8654_s20 + $0x3f88] sm:$0xff] }
 0x286   : > { %v2338_v14 = vld [vmem:[%s8654_s20 + $0x3fc8] sm:$0xff] }
 0x287   : > { %6033 = vmatpush1.bf16.msra.mxu0 %v6032_v29  ;;  %v2284_v29 = vld [vmem:[%s8654_s20 + $0x3e18] sm:$0xff] }
 0x288   : > { %6609 = vmatpush1.bf16.msra.mxu1 %v6608_v32  ;;  %6035 = vmatprep.subr.bf16.mxu0 %v6034_v34  ;;  %v2292_v32 = vld [vmem:[%s8654_s20 + $0x3e58] sm:$0xff]  ;;  %v6048_v34 = vpack.c.bf16 %v2273_v21, %v2265_v20  ;;  %v6636_v20 = vpack.c.bf16 %v2323_v50, %v2315_v10  ;;  %v6062_v21 = vpack.c.bf16 %v2338_v14, %v2330_v13  ;;  %v2377_v50 = vld [vmem:[%s8654_s20 + $0x4100] sm:$0xff]  ;;  %v2379_v14 = vld [vmem:[%s8654_s20 + $0x4110] sm:$0xff] }
 0x289   : > { %6611 = vmatprep.subr.bf16.mxu1 %v6610_v37  ;;  %v2289_v37 = vld [vmem:[%s8654_s20 + $0x3e40] sm:$0xff]  ;;  %v6626_v42 = vpack.c.bf16 %v2292_v32, %v2284_v29  ;;  %v2346_v29 = vld [vmem:[%s8654_s20 + $0x4008] sm:$0xff] }
 0x28a   : > { %v2354_v32 = vld [vmem:[%s8654_s20 + $0x4048] sm:$0xff]  ;;  %v2385_v13 = vld [vmem:[%s8654_s20 + $0x4140] sm:$0xff] }
 0x28b   : > { %6037 = vmatpush1.bf16.msra.mxu0 %v6036_v46  ;;  %v2300_v46 = vld [vmem:[%s8654_s20 + $0x3e98] sm:$0xff] }
 0x28c   : > { %6613 = vmatpush1.bf16.msra.mxu1 %v6612_v48  ;;  %6039 = vmatprep.subr.bf16.mxu0 %v6038_v49  ;;  %v2308_v48 = vld [vmem:[%s8654_s20 + $0x3ed8] sm:$0xff]  ;;  %v6052_v49 = vpack.c.bf16 %v2289_v37, %v2281_v41  ;;  %v6640_v41 = vpack.c.bf16 %v2339_v28, %v2331_v24  ;;  %v6066_v37 = vpack.c.bf16 %v2354_v32, %v2346_v29  ;;  %v2393_v28 = vld [vmem:[%s8654_s20 + $0x4180] sm:$0xff]  ;;  %v2395_v32 = vld [vmem:[%s8654_s20 + $0x4190] sm:$0xff] }
 0x28d   : > { %6615 = vmatprep.subr.bf16.mxu1 %v6614_v58  ;;  %v2305_v58 = vld [vmem:[%s8654_s20 + $0x3ec0] sm:$0xff]  ;;  %v6630_v60 = vpack.c.bf16 %v2308_v48, %v2300_v46  ;;  %v2362_v46 = vld [vmem:[%s8654_s20 + $0x4088] sm:$0xff] }
 0x28e   : > { %v2370_v48 = vld [vmem:[%s8654_s20 + $0x40c8] sm:$0xff]  ;;  %v2401_v29 = vld [vmem:[%s8654_s20 + $0x41c0] sm:$0xff] }
 0x28f   : > { %6041 = vmatpush1.bf16.msra.mxu0 %v6040_v2  ;;  %v2316_v2 = vld [vmem:[%s8654_s20 + $0x3f18] sm:$0xff]  ;;  %v6070_v59 = vpack.c.bf16 %v2370_v48, %v2362_v46  ;;  %v2417_v46 = vld [vmem:[%s8654_s20 + $0x4240] sm:$0xff]  ;;  %v2411_v48 = vld [vmem:[%s8654_s20 + $0x4210] sm:$0xff] }
 0x290   : > { %6617 = vmatpush1.bf16.msra.mxu1 %v6616_v3  ;;  %6043 = vmatprep.subr.bf16.mxu0 %v6042_v4  ;;  %v2324_v3 = vld [vmem:[%s8654_s20 + $0x3f58] sm:$0xff]  ;;  %v6056_v4 = vpack.c.bf16 %v2305_v58, %v2297_v54  ;;  %v6644_v58 = vpack.c.bf16 %v2355_v45, %v2347_v43  ;;  %v2409_v45 = vld [vmem:[%s8654_s20 + $0x4200] sm:$0xff] }
 0x291   : > { %6619 = vmatprep.subr.bf16.mxu1 %v6618_v9  ;;  %v2321_v9 = vld [vmem:[%s8654_s20 + $0x3f40] sm:$0xff]  ;;  %v6634_v11 = vpack.c.bf16 %v2324_v3, %v2316_v2  ;;  %v2371_v2 = vld [vmem:[%s8654_s20 + $0x40d0] sm:$0xff]  ;;  %v2378_v3 = vld [vmem:[%s8654_s20 + $0x4108] sm:$0xff] }
 0x292   : > { %v6648_v10 = vpack.c.bf16 %v2371_v2, %v2363_v62  ;;  %v2425_v2 = vld [vmem:[%s8654_s20 + $0x4280] sm:$0xff] }
 0x293   : > { %6045 = vmatpush1.bf16.msra.mxu0 %v6044_v16  ;;  %v2332_v16 = vld [vmem:[%s8654_s20 + $0x3f98] sm:$0xff] }
 0x294   : > { %6621 = vmatpush1.bf16.msra.mxu1 %v6620_v18  ;;  %6047 = vmatprep.subr.bf16.mxu0 %v6046_v19  ;;  %v2340_v18 = vld [vmem:[%s8654_s20 + $0x3fd8] sm:$0xff]  ;;  %v6060_v19 = vpack.c.bf16 %v2321_v9, %v2313_v8 }
 0x295   : > { %6623 = vmatprep.subr.bf16.mxu1 %v6622_v23  ;;  %v2337_v23 = vld [vmem:[%s8654_s20 + $0x3fc0] sm:$0xff]  ;;  %v6638_v27 = vpack.c.bf16 %v2340_v18, %v2332_v16  ;;  %v2388_v8 = vld [vmem:[%s8654_s20 + $0x4158] sm:$0xff]  ;;  %v2387_v18 = vld [vmem:[%s8654_s20 + $0x4150] sm:$0xff] }
 0x296   : > { %v6652_v24 = vpack.c.bf16 %v2387_v18, %v2379_v14  ;;  %v2441_v18 = vld [vmem:[%s8654_s20 + $0x4300] sm:$0xff] }
 0x297   : > { %6049 = vmatpush1.bf16.msra.mxu0 %v6048_v34  ;;  %v2348_v34 = vld [vmem:[%s8654_s20 + $0x4018] sm:$0xff] }
 0x298   : > { %6625 = vmatpush1.bf16.msra.mxu1 %v6624_v17  ;;  %6051 = vmatprep.subr.bf16.mxu0 %v6050_v35  ;;  %v2356_v17 = vld [vmem:[%s8654_s20 + $0x4058] sm:$0xff]  ;;  %v6064_v35 = vpack.c.bf16 %v2337_v23, %v2329_v22  ;;  %v6076_v23 = vpack.c.bf16 %v2385_v13, %v2377_v50 }
 0x299   : > { %6627 = vmatprep.subr.bf16.mxu1 %v6626_v42  ;;  %v2353_v42 = vld [vmem:[%s8654_s20 + $0x4040] sm:$0xff]  ;;  %v6642_v44 = vpack.c.bf16 %v2356_v17, %v2348_v34  ;;  %v2404_v22 = vld [vmem:[%s8654_s20 + $0x41d8] sm:$0xff]  ;;  %v2403_v17 = vld [vmem:[%s8654_s20 + $0x41d0] sm:$0xff] }
 0x29a   : > { %v6068_v54 = vpack.c.bf16 %v2353_v42, %v2345_v39  ;;  %v2420_v39 = vld [vmem:[%s8654_s20 + $0x4258] sm:$0xff]  ;;  %v6080_v42 = vpack.c.bf16 %v2401_v29, %v2393_v28  ;;  %v6656_v43 = vpack.c.bf16 %v2403_v17, %v2395_v32  ;;  %v2457_v17 = vld [vmem:[%s8654_s20 + $0x4380] sm:$0xff] }
 0x29b   : > { %6053 = vmatpush1.bf16.msra.mxu0 %v6052_v49  ;;  %v2364_v49 = vld [vmem:[%s8654_s20 + $0x4098] sm:$0xff] }
 0x29c   : > { %6629 = vmatpush1.bf16.msra.mxu1 %v6628_v51  ;;  %6055 = vmatprep.subr.bf16.mxu0 %v6054_v52  ;;  %v2372_v51 = vld [vmem:[%s8654_s20 + $0x40d8] sm:$0xff] }
 0x29d   : > { %6631 = vmatprep.subr.bf16.mxu1 %v6630_v60  ;;  %v9828_v52 = vld.sshfl [vmem:[%s8646_s6 + $0x20] sm:$0x33 pattern:$0x76325410]  ;;  %v2361_v60 = vld [vmem:[%s8654_s20 + $0x4080] sm:$0xff]  ;;  %v6646_v1 = vpack.c.bf16 %v2372_v51, %v2364_v49  ;;  %v2419_v51 = vld [vmem:[%s8654_s20 + $0x4250] sm:$0xff] }
 0x29e   : > { %v6072_v9 = vpack.c.bf16 %v2369_v61, %v2361_v60  ;;  %v2436_v60 = vld [vmem:[%s8654_s20 + $0x42d8] sm:$0xff]  ;;  %v6084_v61 = vpack.c.bf16 %v2417_v46, %v2409_v45  ;;  %v6660_v62 = vpack.c.bf16 %v2419_v51, %v2411_v48  ;;  %v2473_v51 = vld [vmem:[%s8654_s20 + $0x4400] sm:$0xff] }
 0x29f   : > { %6057 = vmatpush1.bf16.msra.mxu0 %v6056_v4  ;;  %v2386_v4 = vld [vmem:[%s8654_s20 + $0x4148] sm:$0xff]  ;;  %v2452_v50 = vld [vmem:[%s8654_s20 + $0x4358] sm:$0xff] }
 0x2a0   : > { %6633 = vmatpush1.bf16.msra.mxu1 %v6632_v6  ;;  %6059 = vmatprep.subr.bf16.mxu0 %v6058_v7  ;;  %v9838_v6 = vcombine.high %v9828_v52, %v9828_v52  ;;  %v2380_v7 = vld [vmem:[%s8654_s20 + $0x4118] sm:$0xff] }
 0x2a1   : > { %6635 = vmatprep.subr.bf16.mxu1 %v6634_v11  ;;  %v6074_v11 = vpack.c.bf16 %v2386_v4, %v2378_v3  ;;  %v6650_v16 = vpack.c.bf16 %v2388_v8, %v2380_v7  ;;  %v2433_v3 = vld [vmem:[%s8654_s20 + $0x42c0] sm:$0xff]  ;;  %v2427_v4 = vld [vmem:[%s8654_s20 + $0x4290] sm:$0xff]  ;;  %v2468_v28 = vld [vmem:[%s8654_s20 + $0x43d8] sm:$0xff] }
 0x2a2   : > { %v2435_v8 = vld [vmem:[%s8654_s20 + $0x42d0] sm:$0xff]  ;;  %v6088_v13 = vpack.c.bf16 %v2433_v3, %v2425_v2  ;;  %v2484_v45 = vld [vmem:[%s8654_s20 + $0x4458] sm:$0xff] }
 0x2a3   : > { %6061 = vmatpush1.bf16.msra.mxu0 %v6060_v19  ;;  %v2394_v19 = vld [vmem:[%s8654_s20 + $0x4188] sm:$0xff]  ;;  %v6664_v14 = vpack.c.bf16 %v2435_v8, %v2427_v4  ;;  %v2500_v2 = vld [vmem:[%s8654_s20 + $0x44d8] sm:$0xff]  ;;  %v2489_v8 = vld [vmem:[%s8654_s20 + $0x4480] sm:$0xff] }
 0x2a4   : > { %6637 = vmatpush1.bf16.msra.mxu1 %v6636_v20  ;;  %6063 = vmatprep.subr.bf16.mxu0 %v6062_v21  ;;  %v2402_v20 = vld [vmem:[%s8654_s20 + $0x41c8] sm:$0xff]  ;;  %v2396_v21 = vld [vmem:[%s8654_s20 + $0x4198] sm:$0xff] }
 0x2a5   : > { %6639 = vmatprep.subr.bf16.mxu1 %v6638_v27  ;;  %v6078_v27 = vpack.c.bf16 %v2402_v20, %v2394_v19  ;;  %v6654_v34 = vpack.c.bf16 %v2404_v22, %v2396_v21  ;;  %v2449_v19 = vld [vmem:[%s8654_s20 + $0x4340] sm:$0xff]  ;;  %v2443_v20 = vld [vmem:[%s8654_s20 + $0x4310] sm:$0xff] }
 0x2a6   : > { %v2451_v22 = vld [vmem:[%s8654_s20 + $0x4350] sm:$0xff]  ;;  %v6092_v29 = vpack.c.bf16 %v2449_v19, %v2441_v18  ;;  %v2516_v18 = vld [vmem:[%s8654_s20 + $0x4558] sm:$0xff] }
 0x2a7   : > { %6065 = vmatpush1.bf16.msra.mxu0 %v6064_v35  ;;  %v2410_v35 = vld [vmem:[%s8654_s20 + $0x4208] sm:$0xff]  ;;  %v6668_v32 = vpack.c.bf16 %v2451_v22, %v2443_v20  ;;  %v2505_v22 = vld [vmem:[%s8654_s20 + $0x4500] sm:$0xff] }
 0x2a8   : > { %6641 = vmatpush1.bf16.msra.mxu1 %v6640_v41  ;;  %6067 = vmatprep.subr.bf16.mxu0 %v6066_v37  ;;  %v2418_v41 = vld [vmem:[%s8654_s20 + $0x4248] sm:$0xff]  ;;  %v2412_v37 = vld [vmem:[%s8654_s20 + $0x4218] sm:$0xff] }
 0x2a9   : > { %6643 = vmatprep.subr.bf16.mxu1 %v6642_v44  ;;  %v6082_v44 = vpack.c.bf16 %v2418_v41, %v2410_v35  ;;  %v6658_v49 = vpack.c.bf16 %v2420_v39, %v2412_v37  ;;  %v2465_v35 = vld [vmem:[%s8654_s20 + $0x43c0] sm:$0xff]  ;;  %v2459_v41 = vld [vmem:[%s8654_s20 + $0x4390] sm:$0xff] }
 0x2aa   : > { %3262 = vmatmul.mubr.f32.vlgmr.msra.gmra.mrb[0].mxu0 %v9687_v36  ;;  %v2467_v39 = vld [vmem:[%s8654_s20 + $0x43d0] sm:$0xff]  ;;  %v6096_v46 = vpack.c.bf16 %v2465_v35, %v2457_v17  ;;  %v2532_v17 = vld [vmem:[%s8654_s20 + $0x45d8] sm:$0xff] }
 0x2ab   : > { %6069 = vmatpush1.bf16.msra.mxu0 %v6068_v54  ;;  %3901 = vmatmul.mubr.f32.vlgmr.msra.gmra.mrb[0].mxu1 %v9687_v36  ;;  %v2426_v54 = vld [vmem:[%s8654_s20 + $0x4288] sm:$0xff]  ;;  %v6672_v48 = vpack.c.bf16 %v2467_v39, %v2459_v41  ;;  %v2521_v39 = vld [vmem:[%s8654_s20 + $0x4580] sm:$0xff] }
 0x2ac   : > { %6645 = vmatpush1.bf16.msra.mxu1 %v6644_v58  ;;  %6071 = vmatprep.subr.bf16.mxu0 %v6070_v59  ;;  %v2434_v58 = vld [vmem:[%s8654_s20 + $0x42c8] sm:$0xff]  ;;  %v2428_v59 = vld [vmem:[%s8654_s20 + $0x4298] sm:$0xff] }
 0x2ad   : > { %6647 = vmatprep.subr.bf16.mxu1 %v6646_v1  ;;  %3332 = vmatprep.mubr.f32.mxu0 %v9838_v6  ;;  %v6086_v1 = vpack.c.bf16 %v2434_v58, %v2426_v54  ;;  %v6662_v7 = vpack.c.bf16 %v2436_v60, %v2428_v59  ;;  %v2481_v54 = vld [vmem:[%s8654_s20 + $0x4440] sm:$0xff]  ;;  %v2475_v58 = vld [vmem:[%s8654_s20 + $0x4410] sm:$0xff] }
 0x2ae   : > { %3971 = vmatprep.mubr.f32.mxu1 %v9838_v6  ;;  %v2483_v60 = vld [vmem:[%s8654_s20 + $0x4450] sm:$0xff]  ;;  %v6100_v3 = vpack.c.bf16 %v2481_v54, %v2473_v51  ;;  %v2548_v51 = vld [vmem:[%s8654_s20 + $0x4658] sm:$0xff] }
 0x2af   : > { %6073 = vmatpush1.bf16.msra.mxu0 %v6072_v9  ;;  %v2442_v9 = vld [vmem:[%s8654_s20 + $0x4308] sm:$0xff]  ;;  %v6676_v4 = vpack.c.bf16 %v2483_v60, %v2475_v58  ;;  %v2537_v60 = vld [vmem:[%s8654_s20 + $0x4600] sm:$0xff] }
 0x2b0   : > { %6649 = vmatpush1.bf16.msra.mxu1 %v6648_v10  ;;  %6075 = vmatprep.subr.bf16.mxu0 %v6074_v11  ;;  %v2450_v10 = vld [vmem:[%s8654_s20 + $0x4348] sm:$0xff]  ;;  %v2444_v11 = vld [vmem:[%s8654_s20 + $0x4318] sm:$0xff] }
 0x2b1   : > { %6651 = vmatprep.subr.bf16.mxu1 %v6650_v16  ;;  %v6090_v16 = vpack.c.bf16 %v2450_v10, %v2442_v9  ;;  %v6666_v21 = vpack.c.bf16 %v2452_v50, %v2444_v11  ;;  %v2497_v9 = vld [vmem:[%s8654_s20 + $0x44c0] sm:$0xff]  ;;  %v2491_v10 = vld [vmem:[%s8654_s20 + $0x4490] sm:$0xff] }
 0x2b2   : > { %v2499_v50 = vld [vmem:[%s8654_s20 + $0x44d0] sm:$0xff]  ;;  %v6104_v19 = vpack.c.bf16 %v2497_v9, %v2489_v8  ;;  %v2564_v8 = vld [vmem:[%s8654_s20 + $0x46d8] sm:$0xff] }
 0x2b3   : > { %6077 = vmatpush1.bf16.msra.mxu0 %v6076_v23  ;;  %v2458_v23 = vld [vmem:[%s8654_s20 + $0x4388] sm:$0xff]  ;;  %v6680_v20 = vpack.c.bf16 %v2499_v50, %v2491_v10  ;;  %v2553_v50 = vld [vmem:[%s8654_s20 + $0x4680] sm:$0xff] }
 0x2b4   : > { %6653 = vmatpush1.bf16.msra.mxu1 %v6652_v24  ;;  %6079 = vmatprep.subr.bf16.mxu0 %v6078_v27  ;;  %v2466_v24 = vld [vmem:[%s8654_s20 + $0x43c8] sm:$0xff]  ;;  %v2460_v27 = vld [vmem:[%s8654_s20 + $0x4398] sm:$0xff] }
 0x2b5   : > { %6655 = vmatprep.subr.bf16.mxu1 %v6654_v34  ;;  %v6094_v34 = vpack.c.bf16 %v2466_v24, %v2458_v23  ;;  %v6670_v37 = vpack.c.bf16 %v2468_v28, %v2460_v27  ;;  %v2513_v23 = vld [vmem:[%s8654_s20 + $0x4540] sm:$0xff]  ;;  %v2507_v24 = vld [vmem:[%s8654_s20 + $0x4510] sm:$0xff] }
 0x2b6   : > { %v2515_v28 = vld [vmem:[%s8654_s20 + $0x4550] sm:$0xff]  ;;  %v6108_v35 = vpack.c.bf16 %v2513_v23, %v2505_v22  ;;  %v2580_v22 = vld [vmem:[%s8654_s20 + $0x4758] sm:$0xff] }
 0x2b7   : > { %6081 = vmatpush1.bf16.msra.mxu0 %v6080_v42  ;;  %v2474_v42 = vld [vmem:[%s8654_s20 + $0x4408] sm:$0xff]  ;;  %v6684_v41 = vpack.c.bf16 %v2515_v28, %v2507_v24  ;;  %v2569_v28 = vld [vmem:[%s8654_s20 + $0x4700] sm:$0xff] }
 0x2b8   : > { %6657 = vmatpush1.bf16.msra.mxu1 %v6656_v43  ;;  %6083 = vmatprep.subr.bf16.mxu0 %v6082_v44  ;;  %v2482_v43 = vld [vmem:[%s8654_s20 + $0x4448] sm:$0xff]  ;;  %v2476_v44 = vld [vmem:[%s8654_s20 + $0x4418] sm:$0xff] }
 0x2b9   : > { %6659 = vmatprep.subr.bf16.mxu1 %v6658_v49  ;;  %v6098_v49 = vpack.c.bf16 %v2482_v43, %v2474_v42  ;;  %v6674_v59 = vpack.c.bf16 %v2484_v45, %v2476_v44  ;;  %v2529_v42 = vld [vmem:[%s8654_s20 + $0x45c0] sm:$0xff]  ;;  %v2523_v43 = vld [vmem:[%s8654_s20 + $0x4590] sm:$0xff] }
 0x2ba   : > { %v2531_v45 = vld [vmem:[%s8654_s20 + $0x45d0] sm:$0xff]  ;;  %v6112_v54 = vpack.c.bf16 %v2529_v42, %v2521_v39  ;;  %v2596_v39 = vld [vmem:[%s8654_s20 + $0x47d8] sm:$0xff] }
 0x2bb   : > { %6085 = vmatpush1.bf16.msra.mxu0 %v6084_v61  ;;  %v2490_v61 = vld [vmem:[%s8654_s20 + $0x4488] sm:$0xff]  ;;  %v6688_v58 = vpack.c.bf16 %v2531_v45, %v2523_v43  ;;  %v2585_v45 = vld [vmem:[%s8654_s20 + $0x4780] sm:$0xff] }
 0x2bc   : > { %6661 = vmatpush1.bf16.msra.mxu1 %v6660_v62  ;;  %6087 = vmatprep.subr.bf16.mxu0 %v6086_v1  ;;  %v2498_v62 = vld [vmem:[%s8654_s20 + $0x44c8] sm:$0xff]  ;;  %v2492_v1 = vld [vmem:[%s8654_s20 + $0x4498] sm:$0xff] }
 0x2bd   : > { %6663 = vmatprep.subr.bf16.mxu1 %v6662_v7  ;;  %v6102_v7 = vpack.c.bf16 %v2498_v62, %v2490_v61  ;;  %v6678_v11 = vpack.c.bf16 %v2500_v2, %v2492_v1  ;;  %v2545_v61 = vld [vmem:[%s8654_s20 + $0x4640] sm:$0xff]  ;;  %v2539_v62 = vld [vmem:[%s8654_s20 + $0x4610] sm:$0xff] }
 0x2be   : > { %v2547_v2 = vld [vmem:[%s8654_s20 + $0x4650] sm:$0xff]  ;;  %v6116_v9 = vpack.c.bf16 %v2545_v61, %v2537_v60  ;;  %v312_v60 = vld [vmem:[%s8654_s20 + $0x78] sm:$0xff] }
 0x2bf   : > { %6089 = vmatpush1.bf16.msra.mxu0 %v6088_v13  ;;  %v2506_v13 = vld [vmem:[%s8654_s20 + $0x4508] sm:$0xff]  ;;  %v6692_v10 = vpack.c.bf16 %v2547_v2, %v2539_v62  ;;  %v301_v2 = vld [vmem:[%s8654_s20 + $0x20] sm:$0xff] }
 0x2c0   : > { %6665 = vmatpush1.bf16.msra.mxu1 %v6664_v14  ;;  %6091 = vmatprep.subr.bf16.mxu0 %v6090_v16  ;;  %v2514_v14 = vld [vmem:[%s8654_s20 + $0x4548] sm:$0xff]  ;;  %v2508_v16 = vld [vmem:[%s8654_s20 + $0x4518] sm:$0xff] }
 0x2c1   : > { %6667 = vmatprep.subr.bf16.mxu1 %v6666_v21  ;;  %v6106_v21 = vpack.c.bf16 %v2514_v14, %v2506_v13  ;;  %v6682_v27 = vpack.c.bf16 %v2516_v18, %v2508_v16  ;;  %v2561_v13 = vld [vmem:[%s8654_s20 + $0x46c0] sm:$0xff]  ;;  %v2555_v14 = vld [vmem:[%s8654_s20 + $0x4690] sm:$0xff] }
 0x2c2   : > { %v2563_v18 = vld [vmem:[%s8654_s20 + $0x46d0] sm:$0xff]  ;;  %v6120_v23 = vpack.c.bf16 %v2561_v13, %v2553_v50  ;;  %v328_v50 = vld [vmem:[%s8654_s20 + $0xf8] sm:$0xff] }
 0x2c3   : > { %6093 = vmatpush1.bf16.msra.mxu0 %v6092_v29  ;;  %v2522_v29 = vld [vmem:[%s8654_s20 + $0x4588] sm:$0xff]  ;;  %v6696_v24 = vpack.c.bf16 %v2563_v18, %v2555_v14  ;;  %v317_v18 = vld [vmem:[%s8654_s20 + $0xa0] sm:$0xff] }
 0x2c4   : > { %6669 = vmatpush1.bf16.msra.mxu1 %v6668_v32  ;;  %6095 = vmatprep.subr.bf16.mxu0 %v6094_v34  ;;  %v2530_v32 = vld [vmem:[%s8654_s20 + $0x45c8] sm:$0xff]  ;;  %v2524_v34 = vld [vmem:[%s8654_s20 + $0x4598] sm:$0xff] }
 0x2c5   : > { %6671 = vmatprep.subr.bf16.mxu1 %v6670_v37  ;;  %v6110_v37 = vpack.c.bf16 %v2530_v32, %v2522_v29  ;;  %v6686_v44 = vpack.c.bf16 %v2532_v17, %v2524_v34  ;;  %v2577_v29 = vld [vmem:[%s8654_s20 + $0x4740] sm:$0xff]  ;;  %v2571_v32 = vld [vmem:[%s8654_s20 + $0x4710] sm:$0xff] }
 0x2c6   : > { %v2579_v17 = vld [vmem:[%s8654_s20 + $0x4750] sm:$0xff]  ;;  %v6124_v42 = vpack.c.bf16 %v2577_v29, %v2569_v28  ;;  %v344_v28 = vld [vmem:[%s8654_s20 + $0x178] sm:$0xff] }
 0x2c7   : > { %6097 = vmatpush1.bf16.msra.mxu0 %v6096_v46  ;;  %v2538_v46 = vld [vmem:[%s8654_s20 + $0x4608] sm:$0xff]  ;;  %v6700_v43 = vpack.c.bf16 %v2579_v17, %v2571_v32  ;;  %v333_v17 = vld [vmem:[%s8654_s20 + $0x120] sm:$0xff] }
 0x2c8   : > { %6673 = vmatpush1.bf16.msra.mxu1 %v6672_v48  ;;  %6099 = vmatprep.subr.bf16.mxu0 %v6098_v49  ;;  %v2546_v48 = vld [vmem:[%s8654_s20 + $0x4648] sm:$0xff]  ;;  %v2540_v49 = vld [vmem:[%s8654_s20 + $0x4618] sm:$0xff] }
 0x2c9   : > { %6675 = vmatprep.subr.bf16.mxu1 %v6674_v59  ;;  %v6114_v59 = vpack.c.bf16 %v2546_v48, %v2538_v46  ;;  %v6690_v1 = vpack.c.bf16 %v2548_v51, %v2540_v49  ;;  %v2593_v46 = vld [vmem:[%s8654_s20 + $0x47c0] sm:$0xff]  ;;  %v2587_v48 = vld [vmem:[%s8654_s20 + $0x4790] sm:$0xff] }
 0x2ca   : > { %v2595_v51 = vld [vmem:[%s8654_s20 + $0x47d0] sm:$0xff]  ;;  %v6128_v61 = vpack.c.bf16 %v2593_v46, %v2585_v45 }
 0x2cb   : > { %6101 = vmatpush1.bf16.msra.mxu0 %v6100_v3  ;;  %v2554_v3 = vld [vmem:[%s8654_s20 + $0x4688] sm:$0xff]  ;;  %v6704_v62 = vpack.c.bf16 %v2595_v51, %v2587_v48  ;;  %v357_v51 = vld [vmem:[%s8654_s20 + $0x1e0] sm:$0xff] }
 0x2cc   : > { %6677 = vmatpush1.bf16.msra.mxu1 %v6676_v4  ;;  %6103 = vmatprep.subr.bf16.mxu0 %v6102_v7  ;;  %v2562_v4 = vld [vmem:[%s8654_s20 + $0x46c8] sm:$0xff]  ;;  %v2556_v7 = vld [vmem:[%s8654_s20 + $0x4698] sm:$0xff] }
 0x2cd   : > { %6679 = vmatprep.subr.bf16.mxu1 %v6678_v11  ;;  %v6118_v11 = vpack.c.bf16 %v2562_v4, %v2554_v3  ;;  %v6694_v16 = vpack.c.bf16 %v2564_v8, %v2556_v7  ;;  %v309_v3 = vld [vmem:[%s8654_s20 + $0x60] sm:$0xff]  ;;  %v303_v4 = vld [vmem:[%s8654_s20 + $0x30] sm:$0xff] }
 0x2ce   : > { %v311_v8 = vld [vmem:[%s8654_s20 + $0x70] sm:$0xff]  ;;  %v6708_v13 = vpack.c.bf16 %v309_v3, %v301_v2 }
 0x2cf   : > { %6105 = vmatpush1.bf16.msra.mxu0 %v6104_v19  ;;  %v2570_v19 = vld [vmem:[%s8654_s20 + $0x4708] sm:$0xff]  ;;  %v7284_v14 = vpack.c.bf16 %v311_v8, %v303_v4  ;;  %v365_v4 = vld [vmem:[%s8654_s20 + $0x220] sm:$0xff]  ;;  %v367_v8 = vld [vmem:[%s8654_s20 + $0x230] sm:$0xff] }
 0x2d0   : > { %6681 = vmatpush1.bf16.msra.mxu1 %v6680_v20  ;;  %6107 = vmatprep.subr.bf16.mxu0 %v6106_v21  ;;  %v2578_v20 = vld [vmem:[%s8654_s20 + $0x4748] sm:$0xff]  ;;  %v2572_v21 = vld [vmem:[%s8654_s20 + $0x4718] sm:$0xff] }
 0x2d1   : > { %6683 = vmatprep.subr.bf16.mxu1 %v6682_v27  ;;  %v6122_v27 = vpack.c.bf16 %v2578_v20, %v2570_v19  ;;  %v6698_v34 = vpack.c.bf16 %v2580_v22, %v2572_v21  ;;  %v325_v19 = vld [vmem:[%s8654_s20 + $0xe0] sm:$0xff]  ;;  %v319_v20 = vld [vmem:[%s8654_s20 + $0xb0] sm:$0xff] }
 0x2d2   : > { %v327_v22 = vld [vmem:[%s8654_s20 + $0xf0] sm:$0xff]  ;;  %v6712_v29 = vpack.c.bf16 %v325_v19, %v317_v18 }
 0x2d3   : > { %6109 = vmatpush1.bf16.msra.mxu0 %v6108_v35  ;;  %v2586_v35 = vld [vmem:[%s8654_s20 + $0x4788] sm:$0xff]  ;;  %v7288_v32 = vpack.c.bf16 %v327_v22, %v319_v20  ;;  %v381_v20 = vld [vmem:[%s8654_s20 + $0x2a0] sm:$0xff]  ;;  %v383_v22 = vld [vmem:[%s8654_s20 + $0x2b0] sm:$0xff] }
 0x2d4   : > { %6685 = vmatpush1.bf16.msra.mxu1 %v6684_v41  ;;  %6111 = vmatprep.subr.bf16.mxu0 %v6110_v37  ;;  %v2594_v41 = vld [vmem:[%s8654_s20 + $0x47c8] sm:$0xff]  ;;  %v2588_v37 = vld [vmem:[%s8654_s20 + $0x4798] sm:$0xff] }
 0x2d5   : > { %6687 = vmatprep.subr.bf16.mxu1 %v6686_v44  ;;  %v6126_v44 = vpack.c.bf16 %v2594_v41, %v2586_v35  ;;  %v6702_v49 = vpack.c.bf16 %v2596_v39, %v2588_v37  ;;  %v341_v35 = vld [vmem:[%s8654_s20 + $0x160] sm:$0xff]  ;;  %v335_v41 = vld [vmem:[%s8654_s20 + $0x130] sm:$0xff] }
 0x2d6   : > { %v343_v39 = vld [vmem:[%s8654_s20 + $0x170] sm:$0xff]  ;;  %v6716_v45 = vpack.c.bf16 %v341_v35, %v333_v17 }
 0x2d7   : > { %6113 = vmatpush1.bf16.msra.mxu0 %v6112_v54  ;;  %v302_v54 = vld [vmem:[%s8654_s20 + $0x28] sm:$0xff]  ;;  %v7292_v46 = vpack.c.bf16 %v343_v39, %v335_v41  ;;  %v397_v41 = vld [vmem:[%s8654_s20 + $0x320] sm:$0xff]  ;;  %v399_v39 = vld [vmem:[%s8654_s20 + $0x330] sm:$0xff] }
 0x2d8   : > { %6689 = vmatpush1.bf16.msra.mxu1 %v6688_v58  ;;  %6115 = vmatprep.subr.bf16.mxu0 %v6114_v59  ;;  %v310_v58 = vld [vmem:[%s8654_s20 + $0x68] sm:$0xff]  ;;  %v304_v59 = vld [vmem:[%s8654_s20 + $0x38] sm:$0xff] }
 0x2d9   : > { %6691 = vmatprep.subr.bf16.mxu1 %v6690_v1  ;;  %v6706_v1 = vpack.c.bf16 %v310_v58, %v302_v54  ;;  %v7282_v7 = vpack.c.bf16 %v312_v60, %v304_v59  ;;  %v351_v54 = vld [vmem:[%s8654_s20 + $0x1b0] sm:$0xff]  ;;  %v366_v60 = vld [vmem:[%s8654_s20 + $0x228] sm:$0xff] }
 0x2da   : > { %v359_v59 = vld [vmem:[%s8654_s20 + $0x1f0] sm:$0xff] }
 0x2db   : > { %6117 = vmatpush1.bf16.msra.mxu0 %v6116_v9  ;;  %v318_v9 = vld [vmem:[%s8654_s20 + $0xa8] sm:$0xff]  ;;  %v7296_v2 = vpack.c.bf16 %v359_v59, %v351_v54  ;;  %v413_v54 = vld [vmem:[%s8654_s20 + $0x3a0] sm:$0xff]  ;;  %v415_v59 = vld [vmem:[%s8654_s20 + $0x3b0] sm:$0xff] }
 0x2dc   : > { %6693 = vmatpush1.bf16.msra.mxu1 %v6692_v10  ;;  %6119 = vmatprep.subr.bf16.mxu0 %v6118_v11  ;;  %v326_v10 = vld [vmem:[%s8654_s20 + $0xe8] sm:$0xff]  ;;  %v320_v11 = vld [vmem:[%s8654_s20 + $0xb8] sm:$0xff] }
 0x2dd   : > { %6695 = vmatprep.subr.bf16.mxu1 %v6694_v16  ;;  %v6710_v16 = vpack.c.bf16 %v326_v10, %v318_v9  ;;  %v7286_v21 = vpack.c.bf16 %v328_v50, %v320_v11  ;;  %v375_v10 = vld [vmem:[%s8654_s20 + $0x270] sm:$0xff]  ;;  %v382_v11 = vld [vmem:[%s8654_s20 + $0x2a8] sm:$0xff] }
 0x2de   : > { %v390_v50 = vld [vmem:[%s8654_s20 + $0x2e8] sm:$0xff]  ;;  %v7300_v18 = vpack.c.bf16 %v375_v10, %v367_v8  ;;  %v429_v8 = vld [vmem:[%s8654_s20 + $0x420] sm:$0xff]  ;;  %v431_v10 = vld [vmem:[%s8654_s20 + $0x430] sm:$0xff] }
 0x2df   : > { %6121 = vmatpush1.bf16.msra.mxu0 %v6120_v23  ;;  %v334_v23 = vld [vmem:[%s8654_s20 + $0x128] sm:$0xff]  ;;  %v6726_v19 = vpack.c.bf16 %v390_v50, %v382_v11  ;;  %v439_v50 = vld [vmem:[%s8654_s20 + $0x470] sm:$0xff] }
 0x2e0   : > { %6697 = vmatpush1.bf16.msra.mxu1 %v6696_v24  ;;  %6123 = vmatprep.subr.bf16.mxu0 %v6122_v27  ;;  %v342_v24 = vld [vmem:[%s8654_s20 + $0x168] sm:$0xff]  ;;  %v336_v27 = vld [vmem:[%s8654_s20 + $0x138] sm:$0xff] }
 0x2e1   : > { %6699 = vmatprep.subr.bf16.mxu1 %v6698_v34  ;;  %v6714_v34 = vpack.c.bf16 %v342_v24, %v334_v23  ;;  %v7290_v37 = vpack.c.bf16 %v344_v28, %v336_v27  ;;  %v391_v24 = vld [vmem:[%s8654_s20 + $0x2f0] sm:$0xff]  ;;  %v398_v27 = vld [vmem:[%s8654_s20 + $0x328] sm:$0xff] }
 0x2e2   : > { %v406_v28 = vld [vmem:[%s8654_s20 + $0x368] sm:$0xff]  ;;  %v7304_v17 = vpack.c.bf16 %v391_v24, %v383_v22  ;;  %v445_v22 = vld [vmem:[%s8654_s20 + $0x4a0] sm:$0xff]  ;;  %v447_v24 = vld [vmem:[%s8654_s20 + $0x4b0] sm:$0xff] }
 0x2e3   : > { %6125 = vmatpush1.bf16.msra.mxu0 %v6124_v42  ;;  %v350_v42 = vld [vmem:[%s8654_s20 + $0x1a8] sm:$0xff]  ;;  %v6730_v35 = vpack.c.bf16 %v406_v28, %v398_v27  ;;  %v455_v28 = vld [vmem:[%s8654_s20 + $0x4f0] sm:$0xff] }
 0x2e4   : > { %6701 = vmatpush1.bf16.msra.mxu1 %v6700_v43  ;;  %6127 = vmatprep.subr.bf16.mxu0 %v6126_v44  ;;  %v358_v43 = vld [vmem:[%s8654_s20 + $0x1e8] sm:$0xff]  ;;  %v360_v44 = vld [vmem:[%s8654_s20 + $0x1f8] sm:$0xff] }
 0x2e5   : > { %6703 = vmatprep.subr.bf16.mxu1 %v6702_v49  ;;  %v6718_v48 = vpack.c.bf16 %v358_v43, %v350_v42  ;;  %v349_v49 = vld [vmem:[%s8654_s20 + $0x1a0] sm:$0xff]  ;;  %v407_v43 = vld [vmem:[%s8654_s20 + $0x370] sm:$0xff] }
 0x2e7   : > { %6129 = vmatpush1.bf16.msra.mxu0 %v6128_v61  ;;  %v368_v61 = vld [vmem:[%s8654_s20 + $0x238] sm:$0xff] }
 0x2e8   : > { %6705 = vmatpush1.bf16.msra.mxu1 %v6704_v62  ;;  %6707 = vmatprep.subr.bf16.mxu0 %v6706_v1  ;;  %v376_v62 = vld [vmem:[%s8654_s20 + $0x278] sm:$0xff]  ;;  %v6720_v1 = vpack.c.bf16 %v357_v51, %v349_v49  ;;  %v7308_v49 = vpack.c.bf16 %v407_v43, %v399_v39  ;;  %v461_v39 = vld [vmem:[%s8654_s20 + $0x520] sm:$0xff]  ;;  %v463_v43 = vld [vmem:[%s8654_s20 + $0x530] sm:$0xff] }
 0x2e9   : > { %7283 = vmatprep.subr.bf16.mxu1 %v7282_v7  ;;  %v373_v7 = vld [vmem:[%s8654_s20 + $0x260] sm:$0xff]  ;;  %v7298_v9 = vpack.c.bf16 %v376_v62, %v368_v61  ;;  %v430_v61 = vld [vmem:[%s8654_s20 + $0x428] sm:$0xff] }
 0x2ea   : > { %3333 = vmatmul.mubr.f32.vlgmr.msra.gmra.mrb[0].mxu0 %v9828_v52  ;;  %v438_v62 = vld [vmem:[%s8654_s20 + $0x468] sm:$0xff] }
 0x2eb   : > { %3972 = vmatmul.mubr.f32.vlgmr.msra.gmra.mrb[0].mxu1 %v9828_v52  ;;  %6709 = vmatpush1.bf16.msra.mxu0 %v6708_v13  ;;  %v352_v52 = vld [vmem:[%s8654_s20 + $0x1b8] sm:$0xff] }
 0x2ec   : > { %7285 = vmatpush1.bf16.msra.mxu1 %v7284_v14  ;;  %6711 = vmatprep.subr.bf16.mxu0 %v6710_v16  ;;  %v7294_v58 = vpack.c.bf16 %v360_v44, %v352_v52  ;;  %v384_v13 = vld [vmem:[%s8654_s20 + $0x2b8] sm:$0xff]  ;;  %v6724_v16 = vpack.c.bf16 %v373_v7, %v365_v4  ;;  %v414_v52 = vld [vmem:[%s8654_s20 + $0x3a8] sm:$0xff]  ;;  %v6738_v7 = vpack.c.bf16 %v438_v62, %v430_v61  ;;  %v487_v62 = vld [vmem:[%s8654_s20 + $0x5f0] sm:$0xff] }
 0x2ed   : > { %7287 = vmatprep.subr.bf16.mxu1 %v7286_v21  ;;  %4042 = vmatprep.mubr.f32.mxu0 %v8793_v33  ;;  %v392_v14 = vld [vmem:[%s8654_s20 + $0x2f8] sm:$0xff]  ;;  %v389_v21 = vld [vmem:[%s8654_s20 + $0x2e0] sm:$0xff]  ;;  %v422_v44 = vld [vmem:[%s8654_s20 + $0x3e8] sm:$0xff] }
 0x2ee   : > { %4681 = vmatprep.mubr.f32.mxu1 %v8793_v33  ;;  %v374_v33 = vld [vmem:[%s8654_s20 + $0x268] sm:$0xff]  ;;  %v7302_v23 = vpack.c.bf16 %v392_v14, %v384_v13  ;;  %v6734_v51 = vpack.c.bf16 %v422_v44, %v414_v52  ;;  %v471_v44 = vld [vmem:[%s8654_s20 + $0x570] sm:$0xff] }
 0x2ef   : > { %6713 = vmatpush1.bf16.msra.mxu0 %v6712_v29  ;;  %v6722_v3 = vpack.c.bf16 %v374_v33, %v366_v60  ;;  %v400_v29 = vld [vmem:[%s8654_s20 + $0x338] sm:$0xff]  ;;  %v423_v33 = vld [vmem:[%s8654_s20 + $0x3f0] sm:$0xff]  ;;  %v446_v13 = vld [vmem:[%s8654_s20 + $0x4a8] sm:$0xff] }
 0x2f0   : > { %7289 = vmatpush1.bf16.msra.mxu1 %v7288_v32  ;;  %6715 = vmatprep.subr.bf16.mxu0 %v6714_v34  ;;  %v408_v32 = vld [vmem:[%s8654_s20 + $0x378] sm:$0xff]  ;;  %v6728_v34 = vpack.c.bf16 %v389_v21, %v381_v20  ;;  %v7312_v4 = vpack.c.bf16 %v423_v33, %v415_v59  ;;  %v454_v14 = vld [vmem:[%s8654_s20 + $0x4e8] sm:$0xff]  ;;  %v7316_v20 = vpack.c.bf16 %v439_v50, %v431_v10  ;;  %v477_v59 = vld [vmem:[%s8654_s20 + $0x5a0] sm:$0xff] }
 0x2f1   : > { %7291 = vmatprep.subr.bf16.mxu1 %v7290_v37  ;;  %v405_v37 = vld [vmem:[%s8654_s20 + $0x360] sm:$0xff]  ;;  %v7306_v42 = vpack.c.bf16 %v408_v32, %v400_v29  ;;  %v6742_v21 = vpack.c.bf16 %v454_v14, %v446_v13  ;;  %v462_v29 = vld [vmem:[%s8654_s20 + $0x528] sm:$0xff]  ;;  %v479_v33 = vld [vmem:[%s8654_s20 + $0x5b0] sm:$0xff] }
 0x2f2   : > { %v470_v32 = vld [vmem:[%s8654_s20 + $0x568] sm:$0xff]  ;;  %v493_v10 = vld [vmem:[%s8654_s20 + $0x620] sm:$0xff]  ;;  %v495_v50 = vld [vmem:[%s8654_s20 + $0x630] sm:$0xff] }
 0x2f3   : > { %6717 = vmatpush1.bf16.msra.mxu0 %v6716_v45  ;;  %v416_v45 = vld [vmem:[%s8654_s20 + $0x3b8] sm:$0xff]  ;;  %v503_v14 = vld [vmem:[%s8654_s20 + $0x670] sm:$0xff] }
 0x2f4   : > { %7293 = vmatpush1.bf16.msra.mxu1 %v7292_v46  ;;  %6719 = vmatprep.subr.bf16.mxu0 %v6718_v48  ;;  %v424_v46 = vld [vmem:[%s8654_s20 + $0x3f8] sm:$0xff]  ;;  %v6732_v48 = vpack.c.bf16 %v405_v37, %v397_v41  ;;  %v7320_v41 = vpack.c.bf16 %v455_v28, %v447_v24  ;;  %v6746_v37 = vpack.c.bf16 %v470_v32, %v462_v29  ;;  %v509_v24 = vld [vmem:[%s8654_s20 + $0x6a0] sm:$0xff]  ;;  %v511_v28 = vld [vmem:[%s8654_s20 + $0x6b0] sm:$0xff] }
 0x2f5   : > { %7295 = vmatprep.subr.bf16.mxu1 %v7294_v58  ;;  %v421_v58 = vld [vmem:[%s8654_s20 + $0x3e0] sm:$0xff]  ;;  %v7310_v60 = vpack.c.bf16 %v424_v46, %v416_v45  ;;  %v478_v45 = vld [vmem:[%s8654_s20 + $0x5a8] sm:$0xff]  ;;  %v519_v32 = vld [vmem:[%s8654_s20 + $0x6f0] sm:$0xff] }
 0x2f6   : > { %v486_v46 = vld [vmem:[%s8654_s20 + $0x5e8] sm:$0xff] }
 0x2f7   : > { %6721 = vmatpush1.bf16.msra.mxu0 %v6720_v1  ;;  %v432_v1 = vld [vmem:[%s8654_s20 + $0x438] sm:$0xff] }
 0x2f8   : > { %7297 = vmatpush1.bf16.msra.mxu1 %v7296_v2  ;;  %6723 = vmatprep.subr.bf16.mxu0 %v6722_v3  ;;  %v440_v2 = vld [vmem:[%s8654_s20 + $0x478] sm:$0xff]  ;;  %v6736_v3 = vpack.c.bf16 %v421_v58, %v413_v54  ;;  %v7324_v54 = vpack.c.bf16 %v471_v44, %v463_v43  ;;  %v6750_v58 = vpack.c.bf16 %v486_v46, %v478_v45  ;;  %v525_v43 = vld [vmem:[%s8654_s20 + $0x720] sm:$0xff]  ;;  %v527_v44 = vld [vmem:[%s8654_s20 + $0x730] sm:$0xff] }
 0x2f9   : > { %7299 = vmatprep.subr.bf16.mxu1 %v7298_v9  ;;  %v437_v9 = vld [vmem:[%s8654_s20 + $0x460] sm:$0xff]  ;;  %v7314_v11 = vpack.c.bf16 %v440_v2, %v432_v1  ;;  %v494_v1 = vld [vmem:[%s8654_s20 + $0x628] sm:$0xff]  ;;  %v535_v46 = vld [vmem:[%s8654_s20 + $0x770] sm:$0xff] }
 0x2fa   : > { %v502_v2 = vld [vmem:[%s8654_s20 + $0x668] sm:$0xff] }
 0x2fb   : > { %6725 = vmatpush1.bf16.msra.mxu0 %v6724_v16  ;;  %v448_v16 = vld [vmem:[%s8654_s20 + $0x4b8] sm:$0xff] }
 0x2fc   : > { %7301 = vmatpush1.bf16.msra.mxu1 %v7300_v18  ;;  %6727 = vmatprep.subr.bf16.mxu0 %v6726_v19  ;;  %v456_v18 = vld [vmem:[%s8654_s20 + $0x4f8] sm:$0xff]  ;;  %v6740_v19 = vpack.c.bf16 %v437_v9, %v429_v8  ;;  %v7328_v8 = vpack.c.bf16 %v487_v62, %v479_v33  ;;  %v6754_v9 = vpack.c.bf16 %v502_v2, %v494_v1  ;;  %v541_v33 = vld [vmem:[%s8654_s20 + $0x7a0] sm:$0xff]  ;;  %v543_v62 = vld [vmem:[%s8654_s20 + $0x7b0] sm:$0xff] }
 0x2fd   : > { %7303 = vmatprep.subr.bf16.mxu1 %v7302_v23  ;;  %v453_v23 = vld [vmem:[%s8654_s20 + $0x4e0] sm:$0xff]  ;;  %v7318_v27 = vpack.c.bf16 %v456_v18, %v448_v16  ;;  %v510_v16 = vld [vmem:[%s8654_s20 + $0x6a8] sm:$0xff]  ;;  %v551_v2 = vld [vmem:[%s8654_s20 + $0x7f0] sm:$0xff] }
 0x2fe   : > { %v518_v18 = vld [vmem:[%s8654_s20 + $0x6e8] sm:$0xff] }
 0x2ff   : > { %6729 = vmatpush1.bf16.msra.mxu0 %v6728_v34  ;;  %v464_v34 = vld [vmem:[%s8654_s20 + $0x538] sm:$0xff] }
 0x300   : > { %7305 = vmatpush1.bf16.msra.mxu1 %v7304_v17  ;;  %6731 = vmatprep.subr.bf16.mxu0 %v6730_v35  ;;  %v472_v17 = vld [vmem:[%s8654_s20 + $0x578] sm:$0xff]  ;;  %v6744_v35 = vpack.c.bf16 %v453_v23, %v445_v22  ;;  %v7332_v22 = vpack.c.bf16 %v503_v14, %v495_v50  ;;  %v6758_v23 = vpack.c.bf16 %v518_v18, %v510_v16  ;;  %v557_v50 = vld [vmem:[%s8654_s20 + $0x820] sm:$0xff]  ;;  %v559_v14 = vld [vmem:[%s8654_s20 + $0x830] sm:$0xff] }
 0x301   : > { %7307 = vmatprep.subr.bf16.mxu1 %v7306_v42  ;;  %v469_v42 = vld [vmem:[%s8654_s20 + $0x560] sm:$0xff]  ;;  %v7322_v52 = vpack.c.bf16 %v472_v17, %v464_v34  ;;  %v526_v34 = vld [vmem:[%s8654_s20 + $0x728] sm:$0xff]  ;;  %v567_v18 = vld [vmem:[%s8654_s20 + $0x870] sm:$0xff] }
 0x302   : > { %v534_v17 = vld [vmem:[%s8654_s20 + $0x768] sm:$0xff] }
 0x303   : > { %6733 = vmatpush1.bf16.msra.mxu0 %v6732_v48  ;;  %v480_v48 = vld [vmem:[%s8654_s20 + $0x5b8] sm:$0xff] }
 0x304   : > { %7309 = vmatpush1.bf16.msra.mxu1 %v7308_v49  ;;  %6735 = vmatprep.subr.bf16.mxu0 %v6734_v51  ;;  %v488_v49 = vld [vmem:[%s8654_s20 + $0x5f8] sm:$0xff]  ;;  %v6748_v51 = vpack.c.bf16 %v469_v42, %v461_v39  ;;  %v7336_v39 = vpack.c.bf16 %v519_v32, %v511_v28  ;;  %v6762_v42 = vpack.c.bf16 %v534_v17, %v526_v34  ;;  %v573_v28 = vld [vmem:[%s8654_s20 + $0x8a0] sm:$0xff]  ;;  %v575_v32 = vld [vmem:[%s8654_s20 + $0x8b0] sm:$0xff] }
 0x305   : > { %7311 = vmatprep.subr.bf16.mxu1 %v7310_v60  ;;  %v485_v60 = vld [vmem:[%s8654_s20 + $0x5e0] sm:$0xff]  ;;  %v7326_v61 = vpack.c.bf16 %v488_v49, %v480_v48  ;;  %v542_v48 = vld [vmem:[%s8654_s20 + $0x7a8] sm:$0xff]  ;;  %v583_v17 = vld [vmem:[%s8654_s20 + $0x8f0] sm:$0xff] }
 0x306   : > { %v550_v49 = vld [vmem:[%s8654_s20 + $0x7e8] sm:$0xff] }
 0x307   : > { %6737 = vmatpush1.bf16.msra.mxu0 %v6736_v3  ;;  %v496_v3 = vld [vmem:[%s8654_s20 + $0x638] sm:$0xff] }
 0x308   : > { %7313 = vmatpush1.bf16.msra.mxu1 %v7312_v4  ;;  %6739 = vmatprep.subr.bf16.mxu0 %v6738_v7  ;;  %v504_v4 = vld [vmem:[%s8654_s20 + $0x678] sm:$0xff]  ;;  %v6752_v7 = vpack.c.bf16 %v485_v60, %v477_v59  ;;  %v7340_v59 = vpack.c.bf16 %v535_v46, %v527_v44  ;;  %v6766_v60 = vpack.c.bf16 %v550_v49, %v542_v48  ;;  %v589_v44 = vld [vmem:[%s8654_s20 + $0x920] sm:$0xff]  ;;  %v591_v46 = vld [vmem:[%s8654_s20 + $0x930] sm:$0xff] }
 0x309   : > { %7315 = vmatprep.subr.bf16.mxu1 %v7314_v11  ;;  %v501_v11 = vld [vmem:[%s8654_s20 + $0x660] sm:$0xff]  ;;  %v7330_v13 = vpack.c.bf16 %v504_v4, %v496_v3  ;;  %v558_v3 = vld [vmem:[%s8654_s20 + $0x828] sm:$0xff]  ;;  %v599_v49 = vld [vmem:[%s8654_s20 + $0x970] sm:$0xff] }
 0x30a   : > { %v566_v4 = vld [vmem:[%s8654_s20 + $0x868] sm:$0xff] }
 0x30b   : > { %6741 = vmatpush1.bf16.msra.mxu0 %v6740_v19  ;;  %v512_v19 = vld [vmem:[%s8654_s20 + $0x6b8] sm:$0xff] }
 0x30c   : > { %7317 = vmatpush1.bf16.msra.mxu1 %v7316_v20  ;;  %6743 = vmatprep.subr.bf16.mxu0 %v6742_v21  ;;  %v520_v20 = vld [vmem:[%s8654_s20 + $0x6f8] sm:$0xff]  ;;  %v6756_v21 = vpack.c.bf16 %v501_v11, %v493_v10  ;;  %v7344_v10 = vpack.c.bf16 %v551_v2, %v543_v62  ;;  %v6770_v11 = vpack.c.bf16 %v566_v4, %v558_v3  ;;  %v613_v62 = vld [vmem:[%s8654_s20 + $0x9e0] sm:$0xff]  ;;  %v615_v3 = vld [vmem:[%s8654_s20 + $0x9f0] sm:$0xff] }
 0x30d   : > { %7319 = vmatprep.subr.bf16.mxu1 %v7318_v27  ;;  %v517_v27 = vld [vmem:[%s8654_s20 + $0x6e0] sm:$0xff]  ;;  %v7334_v29 = vpack.c.bf16 %v520_v20, %v512_v19  ;;  %v574_v19 = vld [vmem:[%s8654_s20 + $0x8a8] sm:$0xff] }
 0x30e   : > { %v582_v20 = vld [vmem:[%s8654_s20 + $0x8e8] sm:$0xff] }
 0x30f   : > { %6745 = vmatpush1.bf16.msra.mxu0 %v6744_v35  ;;  %v528_v35 = vld [vmem:[%s8654_s20 + $0x738] sm:$0xff]  ;;  %v622_v4 = vld [vmem:[%s8654_s20 + $0xa28] sm:$0xff] }
 0x310   : > { %7321 = vmatpush1.bf16.msra.mxu1 %v7320_v41  ;;  %6747 = vmatprep.subr.bf16.mxu0 %v6746_v37  ;;  %v536_v41 = vld [vmem:[%s8654_s20 + $0x778] sm:$0xff]  ;;  %v6760_v37 = vpack.c.bf16 %v517_v27, %v509_v24  ;;  %v7348_v24 = vpack.c.bf16 %v567_v18, %v559_v14  ;;  %v6774_v27 = vpack.c.bf16 %v582_v20, %v574_v19  ;;  %v623_v14 = vld [vmem:[%s8654_s20 + $0xa30] sm:$0xff]  ;;  %v638_v19 = vld [vmem:[%s8654_s20 + $0xaa8] sm:$0xff] }
 0x311   : > { %7323 = vmatprep.subr.bf16.mxu1 %v7322_v52  ;;  %v533_v52 = vld [vmem:[%s8654_s20 + $0x760] sm:$0xff]  ;;  %v7338_v45 = vpack.c.bf16 %v536_v41, %v528_v35  ;;  %v590_v35 = vld [vmem:[%s8654_s20 + $0x928] sm:$0xff]  ;;  %v631_v18 = vld [vmem:[%s8654_s20 + $0xa70] sm:$0xff] }
 0x312   : > { %v598_v41 = vld [vmem:[%s8654_s20 + $0x968] sm:$0xff] }
 0x313   : > { %6749 = vmatpush1.bf16.msra.mxu0 %v6748_v51  ;;  %v544_v51 = vld [vmem:[%s8654_s20 + $0x7b8] sm:$0xff]  ;;  %v646_v20 = vld [vmem:[%s8654_s20 + $0xae8] sm:$0xff] }
 0x314   : > { %7325 = vmatpush1.bf16.msra.mxu1 %v7324_v54  ;;  %6751 = vmatprep.subr.bf16.mxu0 %v6750_v58  ;;  %v552_v54 = vld [vmem:[%s8654_s20 + $0x7f8] sm:$0xff]  ;;  %v6764_v58 = vpack.c.bf16 %v533_v52, %v525_v43  ;;  %v7352_v43 = vpack.c.bf16 %v583_v17, %v575_v32  ;;  %v6778_v52 = vpack.c.bf16 %v598_v41, %v590_v35  ;;  %v639_v32 = vld [vmem:[%s8654_s20 + $0xab0] sm:$0xff]  ;;  %v654_v35 = vld [vmem:[%s8654_s20 + $0xb28] sm:$0xff] }
 0x315   : > { %7327 = vmatprep.subr.bf16.mxu1 %v7326_v61  ;;  %v549_v61 = vld [vmem:[%s8654_s20 + $0x7e0] sm:$0xff]  ;;  %v7342_v1 = vpack.c.bf16 %v552_v54, %v544_v51  ;;  %v606_v51 = vld [vmem:[%s8654_s20 + $0x9a8] sm:$0xff]  ;;  %v647_v17 = vld [vmem:[%s8654_s20 + $0xaf0] sm:$0xff] }
 0x316   : > { %v614_v54 = vld [vmem:[%s8654_s20 + $0x9e8] sm:$0xff] }
 0x317   : > { %6753 = vmatpush1.bf16.msra.mxu0 %v6752_v7  ;;  %v560_v7 = vld [vmem:[%s8654_s20 + $0x838] sm:$0xff]  ;;  %v662_v41 = vld [vmem:[%s8654_s20 + $0xb68] sm:$0xff] }
 0x318   : > { %7329 = vmatpush1.bf16.msra.mxu1 %v7328_v8  ;;  %6755 = vmatprep.subr.bf16.mxu0 %v6754_v9  ;;  %v568_v8 = vld [vmem:[%s8654_s20 + $0x878] sm:$0xff]  ;;  %v6768_v9 = vpack.c.bf16 %v549_v61, %v541_v33  ;;  %v6782_v33 = vpack.c.bf16 %v614_v54, %v606_v51  ;;  %v605_v61 = vld [vmem:[%s8654_s20 + $0x9a0] sm:$0xff]  ;;  %v670_v51 = vld [vmem:[%s8654_s20 + $0xba8] sm:$0xff] }
 0x319   : > { %7331 = vmatprep.subr.bf16.mxu1 %v7330_v13  ;;  %v565_v13 = vld [vmem:[%s8654_s20 + $0x860] sm:$0xff]  ;;  %v7346_v16 = vpack.c.bf16 %v568_v8, %v560_v7  ;;  %v624_v7 = vld [vmem:[%s8654_s20 + $0xa38] sm:$0xff]  ;;  %v678_v54 = vld [vmem:[%s8654_s20 + $0xbe8] sm:$0xff] }
 0x31a   : > { %v632_v8 = vld [vmem:[%s8654_s20 + $0xa78] sm:$0xff] }
 0x31b   : > { %6757 = vmatpush1.bf16.msra.mxu0 %v6756_v21  ;;  %v576_v21 = vld [vmem:[%s8654_s20 + $0x8b8] sm:$0xff] }
 0x31c   : > { %7333 = vmatpush1.bf16.msra.mxu1 %v7332_v22  ;;  %6759 = vmatprep.subr.bf16.mxu0 %v6758_v23  ;;  %v584_v22 = vld [vmem:[%s8654_s20 + $0x8f8] sm:$0xff]  ;;  %v6772_v23 = vpack.c.bf16 %v565_v13, %v557_v50  ;;  %v621_v50 = vld [vmem:[%s8654_s20 + $0xa20] sm:$0xff] }
 0x31d   : > { %7335 = vmatprep.subr.bf16.mxu1 %v7334_v29  ;;  %v581_v29 = vld [vmem:[%s8654_s20 + $0x8e0] sm:$0xff]  ;;  %v7350_v34 = vpack.c.bf16 %v584_v22, %v576_v21  ;;  %v640_v21 = vld [vmem:[%s8654_s20 + $0xab8] sm:$0xff] }
 0x31e   : > { %v629_v13 = vld [vmem:[%s8654_s20 + $0xa60] sm:$0xff]  ;;  %v648_v22 = vld [vmem:[%s8654_s20 + $0xaf8] sm:$0xff] }
 0x31f   : > { %6761 = vmatpush1.bf16.msra.mxu0 %v6760_v37  ;;  %v592_v37 = vld [vmem:[%s8654_s20 + $0x938] sm:$0xff] }
 0x320   : > { %7337 = vmatpush1.bf16.msra.mxu1 %v7336_v39  ;;  %6763 = vmatprep.subr.bf16.mxu0 %v6762_v42  ;;  %v600_v39 = vld [vmem:[%s8654_s20 + $0x978] sm:$0xff]  ;;  %v6776_v42 = vpack.c.bf16 %v581_v29, %v573_v28  ;;  %v637_v28 = vld [vmem:[%s8654_s20 + $0xaa0] sm:$0xff] }
 0x321   : > { %7339 = vmatprep.subr.bf16.mxu1 %v7338_v45  ;;  %v597_v45 = vld [vmem:[%s8654_s20 + $0x960] sm:$0xff]  ;;  %v7354_v48 = vpack.c.bf16 %v600_v39, %v592_v37  ;;  %v656_v37 = vld [vmem:[%s8654_s20 + $0xb38] sm:$0xff] }
 0x322   : > { %v645_v29 = vld [vmem:[%s8654_s20 + $0xae0] sm:$0xff]  ;;  %v664_v39 = vld [vmem:[%s8654_s20 + $0xb78] sm:$0xff] }
 0x323   : > { %6765 = vmatpush1.bf16.msra.mxu0 %v6764_v58  ;;  %v616_v58 = vld [vmem:[%s8654_s20 + $0x9f8] sm:$0xff] }
 0x324   : > { %7341 = vmatpush1.bf16.msra.mxu1 %v7340_v59  ;;  %6767 = vmatprep.subr.bf16.mxu0 %v6766_v60  ;;  %v6780_v59 = vpack.c.bf16 %v597_v45, %v589_v44  ;;  %v7356_v60 = vpack.c.bf16 %v599_v49, %v591_v46  ;;  %v653_v44 = vld [vmem:[%s8654_s20 + $0xb20] sm:$0xff]  ;;  %v655_v46 = vld [vmem:[%s8654_s20 + $0xb30] sm:$0xff] }
 0x325   : > { %7343 = vmatprep.subr.bf16.mxu1 %v7342_v1  ;;  %v607_v1 = vld [vmem:[%s8654_s20 + $0x9b0] sm:$0xff]  ;;  %v661_v45 = vld [vmem:[%s8654_s20 + $0xb60] sm:$0xff] }
 0x326   : > { %v663_v49 = vld [vmem:[%s8654_s20 + $0xb70] sm:$0xff] }
 0x327   : > { %6769 = vmatpush1.bf16.msra.mxu0 %v6768_v9  ;;  %v6784_v9 = vpack.c.bf16 %v613_v62, %v605_v61  ;;  %v669_v61 = vld [vmem:[%s8654_s20 + $0xba0] sm:$0xff] }
 0x328   : > { %7345 = vmatpush1.bf16.msra.mxu1 %v7344_v10  ;;  %6771 = vmatprep.subr.bf16.mxu0 %v6770_v11  ;;  %v7360_v10 = vpack.c.bf16 %v615_v3, %v607_v1  ;;  %v677_v62 = vld [vmem:[%s8654_s20 + $0xbe0] sm:$0xff]  ;;  %v671_v1 = vld [vmem:[%s8654_s20 + $0xbb0] sm:$0xff] }
 0x329   : > { %7347 = vmatprep.subr.bf16.mxu1 %v7346_v16  ;;  %v7362_v16 = vpack.c.bf16 %v632_v8, %v624_v7  ;;  %v679_v3 = vld [vmem:[%s8654_s20 + $0xbf0] sm:$0xff]  ;;  %v688_v7 = vld [vmem:[%s8654_s20 + $0xc38] sm:$0xff] }
 0x32a   : > { %4043 = vmatmul.mubr.f32.vlgmr.msra.gmra.mrb[2].mxu0 %v8786_v26  ;;  %v696_v8 = vld [vmem:[%s8654_s20 + $0xc78] sm:$0xff] }
 0x32b   : > { %6773 = vmatpush1.bf16.msra.mxu0 %v6772_v23  ;;  %4682 = vmatmul.mubr.f32.vlgmr.msra.gmra.mrb[2].mxu1 %v8786_v26  ;;  %v608_v26 = vld [vmem:[%s8654_s20 + $0x9b8] sm:$0xff]  ;;  %v6788_v23 = vpack.c.bf16 %v629_v13, %v621_v50  ;;  %v685_v50 = vld [vmem:[%s8654_s20 + $0xc20] sm:$0xff] }
 0x32c   : > { %7349 = vmatpush1.bf16.msra.mxu1 %v7348_v24  ;;  %6775 = vmatprep.subr.bf16.mxu0 %v6774_v27  ;;  %v7358_v2 = vpack.c.bf16 %v616_v58, %v608_v26  ;;  %v7364_v24 = vpack.c.bf16 %v631_v18, %v623_v14  ;;  %v6790_v27 = vpack.c.bf16 %v646_v20, %v638_v19  ;;  %v672_v26 = vld [vmem:[%s8654_s20 + $0xbb8] sm:$0xff]  ;;  %v693_v13 = vld [vmem:[%s8654_s20 + $0xc60] sm:$0xff]  ;;  %v687_v14 = vld [vmem:[%s8654_s20 + $0xc30] sm:$0xff] }
 0x32d   : > { %7351 = vmatprep.subr.bf16.mxu1 %v7350_v34  ;;  %4113 = vmatprep.mubr.f32.mxu0 %v8847_v40  ;;  %v7366_v34 = vpack.c.bf16 %v648_v22, %v640_v21  ;;  %v680_v58 = vld [vmem:[%s8654_s20 + $0xbf8] sm:$0xff]  ;;  %v695_v18 = vld [vmem:[%s8654_s20 + $0xc70] sm:$0xff]  ;;  %v702_v19 = vld [vmem:[%s8654_s20 + $0xca8] sm:$0xff] }
 0x32e   : > { %4752 = vmatprep.mubr.f32.mxu1 %v8847_v40  ;;  %v630_v40 = vld [vmem:[%s8654_s20 + $0xa68] sm:$0xff]  ;;  %v704_v21 = vld [vmem:[%s8654_s20 + $0xcb8] sm:$0xff] }
 0x32f   : > { %6777 = vmatpush1.bf16.msra.mxu0 %v6776_v42  ;;  %v6786_v11 = vpack.c.bf16 %v630_v40, %v622_v4  ;;  %v6792_v42 = vpack.c.bf16 %v645_v29, %v637_v28  ;;  %v686_v4 = vld [vmem:[%s8654_s20 + $0xc28] sm:$0xff]  ;;  %v712_v22 = vld [vmem:[%s8654_s20 + $0xcf8] sm:$0xff]  ;;  %v701_v28 = vld [vmem:[%s8654_s20 + $0xca0] sm:$0xff] }
 0x330   : > { %7353 = vmatpush1.bf16.msra.mxu1 %v7352_v43  ;;  %6779 = vmatprep.subr.bf16.mxu0 %v6778_v52  ;;  %v7368_v43 = vpack.c.bf16 %v647_v17, %v639_v32  ;;  %v6794_v52 = vpack.c.bf16 %v662_v41, %v654_v35  ;;  %v694_v40 = vld [vmem:[%s8654_s20 + $0xc68] sm:$0xff]  ;;  %v709_v29 = vld [vmem:[%s8654_s20 + $0xce0] sm:$0xff]  ;;  %v703_v32 = vld [vmem:[%s8654_s20 + $0xcb0] sm:$0xff] }
 0x331   : > { %7355 = vmatprep.subr.bf16.mxu1 %v7354_v48  ;;  %v7370_v48 = vpack.c.bf16 %v664_v39, %v656_v37  ;;  %v710_v20 = vld [vmem:[%s8654_s20 + $0xce8] sm:$0xff]  ;;  %v711_v17 = vld [vmem:[%s8654_s20 + $0xcf0] sm:$0xff]  ;;  %v720_v37 = vld [vmem:[%s8654_s20 + $0xd38] sm:$0xff] }
 0x332   : > { %v718_v35 = vld [vmem:[%s8654_s20 + $0xd28] sm:$0xff]  ;;  %v728_v39 = vld [vmem:[%s8654_s20 + $0xd78] sm:$0xff] }
 0x333   : > { %6781 = vmatpush1.bf16.msra.mxu0 %v6780_v59  ;;  %v6796_v59 = vpack.c.bf16 %v661_v45, %v653_v44  ;;  %v726_v41 = vld [vmem:[%s8654_s20 + $0xd68] sm:$0xff]  ;;  %v717_v44 = vld [vmem:[%s8654_s20 + $0xd20] sm:$0xff] }
 0x334   : > { %7357 = vmatpush1.bf16.msra.mxu1 %v7356_v60  ;;  %6783 = vmatprep.subr.bf16.mxu0 %v6782_v33  ;;  %v7372_v60 = vpack.c.bf16 %v663_v49, %v655_v46  ;;  %v6798_v33 = vpack.c.bf16 %v678_v54, %v670_v51  ;;  %v725_v45 = vld [vmem:[%s8654_s20 + $0xd60] sm:$0xff]  ;;  %v719_v46 = vld [vmem:[%s8654_s20 + $0xd30] sm:$0xff]  ;;  %v734_v51 = vld [vmem:[%s8654_s20 + $0xda8] sm:$0xff] }
 0x335   : > { %7359 = vmatprep.subr.bf16.mxu1 %v7358_v2  ;;  %v7374_v2 = vpack.c.bf16 %v680_v58, %v672_v26  ;;  %v727_v49 = vld [vmem:[%s8654_s20 + $0xd70] sm:$0xff]  ;;  %v742_v54 = vld [vmem:[%s8654_s20 + $0xde8] sm:$0xff]  ;;  %v736_v26 = vld [vmem:[%s8654_s20 + $0xdb8] sm:$0xff] }
 0x336   : > { %v744_v58 = vld [vmem:[%s8654_s20 + $0xdf8] sm:$0xff] }
 0x337   : > { %6785 = vmatpush1.bf16.msra.mxu0 %v6784_v9  ;;  %v6800_v9 = vpack.c.bf16 %v677_v62, %v669_v61  ;;  %v733_v61 = vld [vmem:[%s8654_s20 + $0xda0] sm:$0xff] }
 0x338   : > { %7361 = vmatpush1.bf16.msra.mxu1 %v7360_v10  ;;  %6787 = vmatprep.subr.bf16.mxu0 %v6786_v11  ;;  %v7376_v10 = vpack.c.bf16 %v679_v3, %v671_v1  ;;  %v6802_v11 = vpack.c.bf16 %v694_v40, %v686_v4  ;;  %v741_v62 = vld [vmem:[%s8654_s20 + $0xde0] sm:$0xff]  ;;  %v735_v1 = vld [vmem:[%s8654_s20 + $0xdb0] sm:$0xff]  ;;  %v750_v4 = vld [vmem:[%s8654_s20 + $0xe28] sm:$0xff] }
 0x339   : > { %7363 = vmatprep.subr.bf16.mxu1 %v7362_v16  ;;  %v7378_v16 = vpack.c.bf16 %v696_v8, %v688_v7  ;;  %v743_v3 = vld [vmem:[%s8654_s20 + $0xdf0] sm:$0xff]  ;;  %v758_v40 = vld [vmem:[%s8654_s20 + $0xe68] sm:$0xff]  ;;  %v752_v7 = vld [vmem:[%s8654_s20 + $0xe38] sm:$0xff] }
 0x33a   : > { %v760_v8 = vld [vmem:[%s8654_s20 + $0xe78] sm:$0xff] }
 0x33b   : > { %6789 = vmatpush1.bf16.msra.mxu0 %v6788_v23  ;;  %v6804_v23 = vpack.c.bf16 %v693_v13, %v685_v50  ;;  %v749_v50 = vld [vmem:[%s8654_s20 + $0xe20] sm:$0xff] }
 0x33c   : > { %7365 = vmatpush1.bf16.msra.mxu1 %v7364_v24  ;;  %6791 = vmatprep.subr.bf16.mxu0 %v6790_v27  ;;  %v7380_v24 = vpack.c.bf16 %v695_v18, %v687_v14  ;;  %v6806_v27 = vpack.c.bf16 %v710_v20, %v702_v19  ;;  %v757_v13 = vld [vmem:[%s8654_s20 + $0xe60] sm:$0xff]  ;;  %v751_v14 = vld [vmem:[%s8654_s20 + $0xe30] sm:$0xff]  ;;  %v766_v19 = vld [vmem:[%s8654_s20 + $0xea8] sm:$0xff] }
 0x33d   : > { %7367 = vmatprep.subr.bf16.mxu1 %v7366_v34  ;;  %v7382_v34 = vpack.c.bf16 %v712_v22, %v704_v21  ;;  %v759_v18 = vld [vmem:[%s8654_s20 + $0xe70] sm:$0xff]  ;;  %v774_v20 = vld [vmem:[%s8654_s20 + $0xee8] sm:$0xff]  ;;  %v768_v21 = vld [vmem:[%s8654_s20 + $0xeb8] sm:$0xff] }
 0x33e   : > { %v776_v22 = vld [vmem:[%s8654_s20 + $0xef8] sm:$0xff] }
 0x33f   : > { %6793 = vmatpush1.bf16.msra.mxu0 %v6792_v42  ;;  %v6808_v42 = vpack.c.bf16 %v709_v29, %v701_v28  ;;  %v765_v28 = vld [vmem:[%s8654_s20 + $0xea0] sm:$0xff] }
 0x340   : > { %7369 = vmatpush1.bf16.msra.mxu1 %v7368_v43  ;;  %6795 = vmatprep.subr.bf16.mxu0 %v6794_v52  ;;  %v7384_v43 = vpack.c.bf16 %v711_v17, %v703_v32  ;;  %v6810_v52 = vpack.c.bf16 %v726_v41, %v718_v35  ;;  %v773_v29 = vld [vmem:[%s8654_s20 + $0xee0] sm:$0xff]  ;;  %v767_v32 = vld [vmem:[%s8654_s20 + $0xeb0] sm:$0xff]  ;;  %v782_v35 = vld [vmem:[%s8654_s20 + $0xf28] sm:$0xff] }
 0x341   : > { %7371 = vmatprep.subr.bf16.mxu1 %v7370_v48  ;;  %v7386_v48 = vpack.c.bf16 %v728_v39, %v720_v37  ;;  %v775_v17 = vld [vmem:[%s8654_s20 + $0xef0] sm:$0xff]  ;;  %v790_v41 = vld [vmem:[%s8654_s20 + $0xf68] sm:$0xff]  ;;  %v784_v37 = vld [vmem:[%s8654_s20 + $0xf38] sm:$0xff] }
 0x342   : > { %v792_v39 = vld [vmem:[%s8654_s20 + $0xf78] sm:$0xff] }
 0x343   : > { %6797 = vmatpush1.bf16.msra.mxu0 %v6796_v59  ;;  %v6812_v59 = vpack.c.bf16 %v725_v45, %v717_v44  ;;  %v781_v44 = vld [vmem:[%s8654_s20 + $0xf20] sm:$0xff] }
 0x344   : > { %7373 = vmatpush1.bf16.msra.mxu1 %v7372_v60  ;;  %6799 = vmatprep.subr.bf16.mxu0 %v6798_v33  ;;  %v7388_v60 = vpack.c.bf16 %v727_v49, %v719_v46  ;;  %v6814_v33 = vpack.c.bf16 %v742_v54, %v734_v51  ;;  %v789_v45 = vld [vmem:[%s8654_s20 + $0xf60] sm:$0xff]  ;;  %v783_v46 = vld [vmem:[%s8654_s20 + $0xf30] sm:$0xff]  ;;  %v798_v51 = vld [vmem:[%s8654_s20 + $0xfa8] sm:$0xff] }
 0x345   : > { %7375 = vmatprep.subr.bf16.mxu1 %v7374_v2  ;;  %v7390_v2 = vpack.c.bf16 %v744_v58, %v736_v26  ;;  %v791_v49 = vld [vmem:[%s8654_s20 + $0xf70] sm:$0xff]  ;;  %v806_v54 = vld [vmem:[%s8654_s20 + $0xfe8] sm:$0xff]  ;;  %v800_v26 = vld [vmem:[%s8654_s20 + $0xfb8] sm:$0xff] }
 0x346   : > { %v808_v58 = vld [vmem:[%s8654_s20 + $0xff8] sm:$0xff] }
 0x347   : > { %6801 = vmatpush1.bf16.msra.mxu0 %v6800_v9  ;;  %v6816_v9 = vpack.c.bf16 %v741_v62, %v733_v61  ;;  %v797_v61 = vld [vmem:[%s8654_s20 + $0xfa0] sm:$0xff] }
 0x348   : > { %7377 = vmatpush1.bf16.msra.mxu1 %v7376_v10  ;;  %6803 = vmatprep.subr.bf16.mxu0 %v6802_v11  ;;  %v7392_v10 = vpack.c.bf16 %v743_v3, %v735_v1  ;;  %v6818_v11 = vpack.c.bf16 %v758_v40, %v750_v4  ;;  %v805_v62 = vld [vmem:[%s8654_s20 + $0xfe0] sm:$0xff]  ;;  %v799_v1 = vld [vmem:[%s8654_s20 + $0xfb0] sm:$0xff]  ;;  %v814_v4 = vld [vmem:[%s8654_s20 + $0x1028] sm:$0xff] }
 0x349   : > { %7379 = vmatprep.subr.bf16.mxu1 %v7378_v16  ;;  %v7394_v16 = vpack.c.bf16 %v760_v8, %v752_v7  ;;  %v807_v3 = vld [vmem:[%s8654_s20 + $0xff0] sm:$0xff]  ;;  %v822_v40 = vld [vmem:[%s8654_s20 + $0x1068] sm:$0xff]  ;;  %v816_v7 = vld [vmem:[%s8654_s20 + $0x1038] sm:$0xff] }
 0x34a   : > { %v824_v8 = vld [vmem:[%s8654_s20 + $0x1078] sm:$0xff] }
 0x34b   : > { %6805 = vmatpush1.bf16.msra.mxu0 %v6804_v23  ;;  %v6820_v23 = vpack.c.bf16 %v757_v13, %v749_v50  ;;  %v813_v50 = vld [vmem:[%s8654_s20 + $0x1020] sm:$0xff] }
 0x34c   : > { %7381 = vmatpush1.bf16.msra.mxu1 %v7380_v24  ;;  %6807 = vmatprep.subr.bf16.mxu0 %v6806_v27  ;;  %v7396_v24 = vpack.c.bf16 %v759_v18, %v751_v14  ;;  %v6822_v27 = vpack.c.bf16 %v774_v20, %v766_v19  ;;  %v821_v13 = vld [vmem:[%s8654_s20 + $0x1060] sm:$0xff]  ;;  %v815_v14 = vld [vmem:[%s8654_s20 + $0x1030] sm:$0xff]  ;;  %v830_v19 = vld [vmem:[%s8654_s20 + $0x10a8] sm:$0xff] }
 0x34d   : > { %7383 = vmatprep.subr.bf16.mxu1 %v7382_v34  ;;  %v7398_v34 = vpack.c.bf16 %v776_v22, %v768_v21  ;;  %v823_v18 = vld [vmem:[%s8654_s20 + $0x1070] sm:$0xff]  ;;  %v838_v20 = vld [vmem:[%s8654_s20 + $0x10e8] sm:$0xff]  ;;  %v832_v21 = vld [vmem:[%s8654_s20 + $0x10b8] sm:$0xff] }
 0x34e   : > { %v840_v22 = vld [vmem:[%s8654_s20 + $0x10f8] sm:$0xff] }
 0x34f   : > { %6809 = vmatpush1.bf16.msra.mxu0 %v6808_v42  ;;  %v6824_v42 = vpack.c.bf16 %v773_v29, %v765_v28  ;;  %v829_v28 = vld [vmem:[%s8654_s20 + $0x10a0] sm:$0xff] }
 0x350   : > { %7385 = vmatpush1.bf16.msra.mxu1 %v7384_v43  ;;  %6811 = vmatprep.subr.bf16.mxu0 %v6810_v52  ;;  %v7400_v43 = vpack.c.bf16 %v775_v17, %v767_v32  ;;  %v6826_v52 = vpack.c.bf16 %v790_v41, %v782_v35  ;;  %v837_v29 = vld [vmem:[%s8654_s20 + $0x10e0] sm:$0xff]  ;;  %v831_v32 = vld [vmem:[%s8654_s20 + $0x10b0] sm:$0xff]  ;;  %v846_v35 = vld [vmem:[%s8654_s20 + $0x1128] sm:$0xff] }
 0x351   : > { %7387 = vmatprep.subr.bf16.mxu1 %v7386_v48  ;;  %v7402_v48 = vpack.c.bf16 %v792_v39, %v784_v37  ;;  %v839_v17 = vld [vmem:[%s8654_s20 + $0x10f0] sm:$0xff]  ;;  %v854_v41 = vld [vmem:[%s8654_s20 + $0x1168] sm:$0xff]  ;;  %v848_v37 = vld [vmem:[%s8654_s20 + $0x1138] sm:$0xff] }
 0x352   : > { %v856_v39 = vld [vmem:[%s8654_s20 + $0x1178] sm:$0xff] }
 0x353   : > { %6813 = vmatpush1.bf16.msra.mxu0 %v6812_v59  ;;  %v6828_v59 = vpack.c.bf16 %v789_v45, %v781_v44  ;;  %v845_v44 = vld [vmem:[%s8654_s20 + $0x1120] sm:$0xff] }
 0x354   : > { %7389 = vmatpush1.bf16.msra.mxu1 %v7388_v60  ;;  %6815 = vmatprep.subr.bf16.mxu0 %v6814_v33  ;;  %v7404_v60 = vpack.c.bf16 %v791_v49, %v783_v46  ;;  %v6830_v33 = vpack.c.bf16 %v806_v54, %v798_v51  ;;  %v853_v45 = vld [vmem:[%s8654_s20 + $0x1160] sm:$0xff]  ;;  %v847_v46 = vld [vmem:[%s8654_s20 + $0x1130] sm:$0xff]  ;;  %v862_v51 = vld [vmem:[%s8654_s20 + $0x11a8] sm:$0xff] }
 0x355   : > { %7391 = vmatprep.subr.bf16.mxu1 %v7390_v2  ;;  %v7406_v2 = vpack.c.bf16 %v808_v58, %v800_v26  ;;  %v855_v49 = vld [vmem:[%s8654_s20 + $0x1170] sm:$0xff]  ;;  %v870_v54 = vld [vmem:[%s8654_s20 + $0x11e8] sm:$0xff]  ;;  %v872_v26 = vld [vmem:[%s8654_s20 + $0x11f8] sm:$0xff]  ;;  %v6844_v58 = vpack.c.bf16 %v853_v45, %v845_v44 }
 0x356   : > { %v911_v44 = vld [vmem:[%s8654_s20 + $0x1330] sm:$0xff] }
 0x357   : > { %6817 = vmatpush1.bf16.msra.mxu0 %v6816_v9  ;;  %v6832_v9 = vpack.c.bf16 %v805_v62, %v797_v61  ;;  %v869_v61 = vld [vmem:[%s8654_s20 + $0x11e0] sm:$0xff]  ;;  %v863_v62 = vld [vmem:[%s8654_s20 + $0x11b0] sm:$0xff] }
 0x358   : > { %7393 = vmatpush1.bf16.msra.mxu1 %v7392_v10  ;;  %6819 = vmatprep.subr.bf16.mxu0 %v6818_v11  ;;  %v7408_v10 = vpack.c.bf16 %v807_v3, %v799_v1  ;;  %v6834_v11 = vpack.c.bf16 %v822_v40, %v814_v4  ;;  %v878_v3 = vld [vmem:[%s8654_s20 + $0x1228] sm:$0xff]  ;;  %v880_v4 = vld [vmem:[%s8654_s20 + $0x1238] sm:$0xff] }
 0x359   : > { %7395 = vmatprep.subr.bf16.mxu1 %v7394_v16  ;;  %v7410_v16 = vpack.c.bf16 %v824_v8, %v816_v7  ;;  %v888_v40 = vld [vmem:[%s8654_s20 + $0x1278] sm:$0xff] }
 0x35b   : > { %6821 = vmatpush1.bf16.msra.mxu0 %v6820_v23  ;;  %v6836_v23 = vpack.c.bf16 %v821_v13, %v813_v50  ;;  %v879_v50 = vld [vmem:[%s8654_s20 + $0x1230] sm:$0xff]  ;;  %v7426_v13 = vpack.c.bf16 %v888_v40, %v880_v4 }
 0x35c   : > { %7397 = vmatpush1.bf16.msra.mxu1 %v7396_v24  ;;  %6823 = vmatprep.subr.bf16.mxu0 %v6822_v27  ;;  %v7412_v24 = vpack.c.bf16 %v823_v18, %v815_v14  ;;  %v6838_v27 = vpack.c.bf16 %v838_v20, %v830_v19  ;;  %v887_v14 = vld [vmem:[%s8654_s20 + $0x1270] sm:$0xff]  ;;  %v902_v18 = vld [vmem:[%s8654_s20 + $0x12e8] sm:$0xff]  ;;  %v896_v19 = vld [vmem:[%s8654_s20 + $0x12b8] sm:$0xff] }
 0x35d   : > { %7399 = vmatprep.subr.bf16.mxu1 %v7398_v34  ;;  %v7414_v34 = vpack.c.bf16 %v840_v22, %v832_v21  ;;  %v904_v20 = vld [vmem:[%s8654_s20 + $0x12f8] sm:$0xff]  ;;  %v7428_v22 = vpack.c.bf16 %v887_v14, %v879_v50  ;;  %v951_v50 = vld [vmem:[%s8654_s20 + $0x1470] sm:$0xff]  ;;  %v966_v14 = vld [vmem:[%s8654_s20 + $0x14e8] sm:$0xff] }
 0x35f   : > { %6825 = vmatpush1.bf16.msra.mxu0 %v6824_v42  ;;  %v6840_v42 = vpack.c.bf16 %v837_v29, %v829_v28  ;;  %v895_v28 = vld [vmem:[%s8654_s20 + $0x12b0] sm:$0xff]  ;;  %v7430_v29 = vpack.c.bf16 %v904_v20, %v896_v19 }
 0x360   : > { %7401 = vmatpush1.bf16.msra.mxu1 %v7400_v43  ;;  %6827 = vmatprep.subr.bf16.mxu0 %v6826_v52  ;;  %v7416_v43 = vpack.c.bf16 %v839_v17, %v831_v32  ;;  %v6842_v52 = vpack.c.bf16 %v854_v41, %v846_v35  ;;  %v903_v32 = vld [vmem:[%s8654_s20 + $0x12f0] sm:$0xff]  ;;  %v918_v17 = vld [vmem:[%s8654_s20 + $0x1368] sm:$0xff]  ;;  %v912_v35 = vld [vmem:[%s8654_s20 + $0x1338] sm:$0xff] }
 0x361   : > { %7403 = vmatprep.subr.bf16.mxu1 %v7402_v48  ;;  %v7418_v48 = vpack.c.bf16 %v856_v39, %v848_v37  ;;  %v920_v41 = vld [vmem:[%s8654_s20 + $0x1378] sm:$0xff]  ;;  %v7432_v39 = vpack.c.bf16 %v903_v32, %v895_v28  ;;  %v967_v28 = vld [vmem:[%s8654_s20 + $0x14f0] sm:$0xff]  ;;  %v982_v32 = vld [vmem:[%s8654_s20 + $0x1568] sm:$0xff] }
 0x362   : > { %v7434_v45 = vpack.c.bf16 %v920_v41, %v912_v35 }
 0x363   : > { %6829 = vmatpush1.bf16.msra.mxu0 %v6828_v59  ;;  %v7420_v59 = vpack.c.bf16 %v855_v49, %v847_v46  ;;  %v919_v46 = vld [vmem:[%s8654_s20 + $0x1370] sm:$0xff]  ;;  %v934_v49 = vld [vmem:[%s8654_s20 + $0x13e8] sm:$0xff] }
 0x364   : > { %7405 = vmatpush1.bf16.msra.mxu1 %v7404_v60  ;;  %6831 = vmatprep.subr.bf16.mxu0 %v6830_v33  ;;  %v6846_v60 = vpack.c.bf16 %v870_v54, %v862_v51  ;;  %v861_v33 = vld [vmem:[%s8654_s20 + $0x11a0] sm:$0xff]  ;;  %v928_v51 = vld [vmem:[%s8654_s20 + $0x13b8] sm:$0xff] }
 0x365   : > { %7407 = vmatprep.subr.bf16.mxu1 %v7406_v2  ;;  %v871_v2 = vld [vmem:[%s8654_s20 + $0x11f0] sm:$0xff]  ;;  %v6848_v7 = vpack.c.bf16 %v869_v61, %v861_v33  ;;  %v936_v54 = vld [vmem:[%s8654_s20 + $0x13f8] sm:$0xff] }
 0x366   : > { %v7424_v8 = vpack.c.bf16 %v871_v2, %v863_v62  ;;  %v927_v33 = vld [vmem:[%s8654_s20 + $0x13b0] sm:$0xff]  ;;  %v7438_v61 = vpack.c.bf16 %v936_v54, %v928_v51  ;;  %v950_v2 = vld [vmem:[%s8654_s20 + $0x1468] sm:$0xff] }
 0x367   : > { %6833 = vmatpush1.bf16.msra.mxu0 %v6832_v9  ;;  %v935_v62 = vld [vmem:[%s8654_s20 + $0x13f0] sm:$0xff] }
 0x368   : > { %7409 = vmatpush1.bf16.msra.mxu1 %v7408_v10  ;;  %6835 = vmatprep.subr.bf16.mxu0 %v6834_v11  ;;  %v877_v10 = vld [vmem:[%s8654_s20 + $0x1220] sm:$0xff]  ;;  %v7440_v40 = vpack.c.bf16 %v935_v62, %v927_v33  ;;  %v999_v33 = vld [vmem:[%s8654_s20 + $0x15f0] sm:$0xff]  ;;  %v1014_v62 = vld [vmem:[%s8654_s20 + $0x1668] sm:$0xff] }
 0x369   : > { %7411 = vmatprep.subr.bf16.mxu1 %v7410_v16  ;;  %v885_v11 = vld [vmem:[%s8654_s20 + $0x1260] sm:$0xff]  ;;  %v894_v16 = vld [vmem:[%s8654_s20 + $0x12a8] sm:$0xff] }
 0x36a   : > { %4114 = vmatmul.mubr.f32.vlgmr.msra.gmra.mrb[2].mxu0 %v8835_v25  ;;  %v6852_v21 = vpack.c.bf16 %v885_v11, %v877_v10  ;;  %v943_v10 = vld [vmem:[%s8654_s20 + $0x1430] sm:$0xff] }
 0x36b   : > { %6837 = vmatpush1.bf16.msra.mxu0 %v6836_v23  ;;  %4753 = vmatmul.mubr.f32.vlgmr.msra.gmra.mrb[2].mxu1 %v8835_v25  ;;  %v864_v25 = vld [vmem:[%s8654_s20 + $0x11b8] sm:$0xff]  ;;  %v6854_v23 = vpack.c.bf16 %v902_v18, %v894_v16  ;;  %v7444_v20 = vpack.c.bf16 %v951_v50, %v943_v10  ;;  %v1015_v10 = vld [vmem:[%s8654_s20 + $0x1670] sm:$0xff]  ;;  %v1030_v50 = vld [vmem:[%s8654_s20 + $0x16e8] sm:$0xff] }
 0x36c   : > { %7413 = vmatpush1.bf16.msra.mxu1 %v7412_v24  ;;  %6839 = vmatprep.subr.bf16.mxu0 %v6838_v27  ;;  %v7422_v1 = vpack.c.bf16 %v872_v26, %v864_v25  ;;  %v893_v24 = vld [vmem:[%s8654_s20 + $0x12a0] sm:$0xff]  ;;  %v7436_v26 = vpack.c.bf16 %v919_v46, %v911_v44  ;;  %v960_v16 = vld [vmem:[%s8654_s20 + $0x14b8] sm:$0xff]  ;;  %v983_v44 = vld [vmem:[%s8654_s20 + $0x1570] sm:$0xff] }
 0x36d   : > { %7415 = vmatprep.subr.bf16.mxu1 %v7414_v34  ;;  %4184 = vmatprep.mubr.f32.mxu0 %v8993_v0  ;;  %v901_v27 = vld [vmem:[%s8654_s20 + $0x12e0] sm:$0xff]  ;;  %v910_v34 = vld [vmem:[%s8654_s20 + $0x1328] sm:$0xff]  ;;  %v968_v18 = vld [vmem:[%s8654_s20 + $0x14f8] sm:$0xff] }
 0x36e   : > { %4823 = vmatprep.mubr.f32.mxu1 %v8993_v0  ;;  %v886_v0 = vld [vmem:[%s8654_s20 + $0x1268] sm:$0xff]  ;;  %v6856_v37 = vpack.c.bf16 %v901_v27, %v893_v24  ;;  %v959_v24 = vld [vmem:[%s8654_s20 + $0x14b0] sm:$0xff]  ;;  %v7446_v27 = vpack.c.bf16 %v968_v18, %v960_v16 }
 0x36f   : > { %6841 = vmatpush1.bf16.msra.mxu0 %v6840_v42  ;;  %v6850_v9 = vpack.c.bf16 %v886_v0, %v878_v3  ;;  %v6858_v42 = vpack.c.bf16 %v918_v17, %v910_v34  ;;  %v944_v3 = vld [vmem:[%s8654_s20 + $0x1438] sm:$0xff]  ;;  %v7448_v41 = vpack.c.bf16 %v967_v28, %v959_v24  ;;  %v998_v46 = vld [vmem:[%s8654_s20 + $0x15e8] sm:$0xff]  ;;  %v1031_v24 = vld [vmem:[%s8654_s20 + $0x16f0] sm:$0xff] }
 0x370   : > { %7417 = vmatpush1.bf16.msra.mxu1 %v7416_v43  ;;  %6843 = vmatprep.subr.bf16.mxu0 %v6842_v52  ;;  %v909_v43 = vld [vmem:[%s8654_s20 + $0x1320] sm:$0xff]  ;;  %v952_v0 = vld [vmem:[%s8654_s20 + $0x1478] sm:$0xff]  ;;  %v1046_v28 = vld [vmem:[%s8654_s20 + $0x1768] sm:$0xff] }
 0x371   : > { %7419 = vmatprep.subr.bf16.mxu1 %v7418_v48  ;;  %v917_v52 = vld [vmem:[%s8654_s20 + $0x1360] sm:$0xff]  ;;  %v926_v48 = vld [vmem:[%s8654_s20 + $0x13a8] sm:$0xff]  ;;  %v7442_v11 = vpack.c.bf16 %v952_v0, %v944_v3  ;;  %v976_v34 = vld [vmem:[%s8654_s20 + $0x1538] sm:$0xff] }
 0x372   : > { %v6860_v25 = vpack.c.bf16 %v917_v52, %v909_v43  ;;  %v984_v17 = vld [vmem:[%s8654_s20 + $0x1578] sm:$0xff]  ;;  %v975_v43 = vld [vmem:[%s8654_s20 + $0x1530] sm:$0xff] }
 0x373   : > { %6845 = vmatpush1.bf16.msra.mxu0 %v6844_v58  ;;  %v6862_v58 = vpack.c.bf16 %v934_v49, %v926_v48  ;;  %v7450_v52 = vpack.c.bf16 %v984_v17, %v976_v34  ;;  %v992_v48 = vld [vmem:[%s8654_s20 + $0x15b8] sm:$0xff]  ;;  %v7452_v54 = vpack.c.bf16 %v983_v44, %v975_v43  ;;  %v1047_v43 = vld [vmem:[%s8654_s20 + $0x1770] sm:$0xff]  ;;  %v1062_v44 = vld [vmem:[%s8654_s20 + $0x17e8] sm:$0xff] }
 0x374   : > { %7421 = vmatpush1.bf16.msra.mxu1 %v7420_v59  ;;  %6847 = vmatprep.subr.bf16.mxu0 %v6846_v60  ;;  %v925_v59 = vld [vmem:[%s8654_s20 + $0x13a0] sm:$0xff]  ;;  %v1000_v49 = vld [vmem:[%s8654_s20 + $0x15f8] sm:$0xff] }
 0x375   : > { %7423 = vmatprep.subr.bf16.mxu1 %v7422_v1  ;;  %v933_v60 = vld [vmem:[%s8654_s20 + $0x13e0] sm:$0xff]  ;;  %v942_v1 = vld [vmem:[%s8654_s20 + $0x1428] sm:$0xff] }
 0x376   : > { %v6864_v4 = vpack.c.bf16 %v933_v60, %v925_v59  ;;  %v991_v59 = vld [vmem:[%s8654_s20 + $0x15b0] sm:$0xff]  ;;  %v7454_v60 = vpack.c.bf16 %v1000_v49, %v992_v48 }
 0x377   : > { %6849 = vmatpush1.bf16.msra.mxu0 %v6848_v7  ;;  %v6866_v7 = vpack.c.bf16 %v950_v2, %v942_v1  ;;  %v1008_v1 = vld [vmem:[%s8654_s20 + $0x1638] sm:$0xff]  ;;  %v7456_v0 = vpack.c.bf16 %v999_v33, %v991_v59  ;;  %v1063_v59 = vld [vmem:[%s8654_s20 + $0x17f0] sm:$0xff]  ;;  %v1078_v33 = vld [vmem:[%s8654_s20 + $0x1868] sm:$0xff] }
 0x378   : > { %7425 = vmatpush1.bf16.msra.mxu1 %v7424_v8  ;;  %6851 = vmatprep.subr.bf16.mxu0 %v6850_v9  ;;  %v941_v8 = vld [vmem:[%s8654_s20 + $0x1420] sm:$0xff]  ;;  %v1016_v2 = vld [vmem:[%s8654_s20 + $0x1678] sm:$0xff] }
 0x379   : > { %7427 = vmatprep.subr.bf16.mxu1 %v7426_v13  ;;  %v949_v9 = vld [vmem:[%s8654_s20 + $0x1460] sm:$0xff]  ;;  %v958_v13 = vld [vmem:[%s8654_s20 + $0x14a8] sm:$0xff] }
 0x37a   : > { %v6868_v19 = vpack.c.bf16 %v949_v9, %v941_v8  ;;  %v1007_v8 = vld [vmem:[%s8654_s20 + $0x1630] sm:$0xff]  ;;  %v7458_v9 = vpack.c.bf16 %v1016_v2, %v1008_v1 }
 0x37b   : > { %6853 = vmatpush1.bf16.msra.mxu0 %v6852_v21  ;;  %v6870_v21 = vpack.c.bf16 %v966_v14, %v958_v13  ;;  %v1024_v13 = vld [vmem:[%s8654_s20 + $0x16b8] sm:$0xff]  ;;  %v7460_v18 = vpack.c.bf16 %v1015_v10, %v1007_v8  ;;  %v1079_v8 = vld [vmem:[%s8654_s20 + $0x1870] sm:$0xff]  ;;  %v1094_v10 = vld [vmem:[%s8654_s20 + $0x18e8] sm:$0xff] }
 0x37c   : > { %7429 = vmatpush1.bf16.msra.mxu1 %v7428_v22  ;;  %6855 = vmatprep.subr.bf16.mxu0 %v6854_v23  ;;  %v957_v22 = vld [vmem:[%s8654_s20 + $0x14a0] sm:$0xff]  ;;  %v1032_v14 = vld [vmem:[%s8654_s20 + $0x16f8] sm:$0xff] }
 0x37d   : > { %7431 = vmatprep.subr.bf16.mxu1 %v7430_v29  ;;  %v965_v23 = vld [vmem:[%s8654_s20 + $0x14e0] sm:$0xff]  ;;  %v974_v29 = vld [vmem:[%s8654_s20 + $0x1528] sm:$0xff] }
 0x37e   : > { %v6872_v35 = vpack.c.bf16 %v965_v23, %v957_v22  ;;  %v1023_v22 = vld [vmem:[%s8654_s20 + $0x16b0] sm:$0xff]  ;;  %v7462_v23 = vpack.c.bf16 %v1032_v14, %v1024_v13 }
 0x37f   : > { %6857 = vmatpush1.bf16.msra.mxu0 %v6856_v37  ;;  %v6874_v37 = vpack.c.bf16 %v982_v32, %v974_v29  ;;  %v1040_v29 = vld [vmem:[%s8654_s20 + $0x1738] sm:$0xff]  ;;  %v7464_v17 = vpack.c.bf16 %v1031_v24, %v1023_v22  ;;  %v1095_v22 = vld [vmem:[%s8654_s20 + $0x18f0] sm:$0xff]  ;;  %v1110_v24 = vld [vmem:[%s8654_s20 + $0x1968] sm:$0xff] }
 0x380   : > { %7433 = vmatpush1.bf16.msra.mxu1 %v7432_v39  ;;  %6859 = vmatprep.subr.bf16.mxu0 %v6858_v42  ;;  %v973_v39 = vld [vmem:[%s8654_s20 + $0x1520] sm:$0xff]  ;;  %v1048_v32 = vld [vmem:[%s8654_s20 + $0x1778] sm:$0xff] }
 0x381   : > { %7435 = vmatprep.subr.bf16.mxu1 %v7434_v45  ;;  %v981_v42 = vld [vmem:[%s8654_s20 + $0x1560] sm:$0xff]  ;;  %v990_v45 = vld [vmem:[%s8654_s20 + $0x15a8] sm:$0xff] }
 0x382   : > { %v6876_v51 = vpack.c.bf16 %v981_v42, %v973_v39  ;;  %v1039_v39 = vld [vmem:[%s8654_s20 + $0x1730] sm:$0xff]  ;;  %v7466_v42 = vpack.c.bf16 %v1048_v32, %v1040_v29 }
 0x383   : > { %6861 = vmatpush1.bf16.msra.mxu0 %v6860_v25  ;;  %v6878_v25 = vpack.c.bf16 %v998_v46, %v990_v45  ;;  %v1056_v45 = vld [vmem:[%s8654_s20 + $0x17b8] sm:$0xff]  ;;  %v7468_v49 = vpack.c.bf16 %v1047_v43, %v1039_v39  ;;  %v1111_v39 = vld [vmem:[%s8654_s20 + $0x1970] sm:$0xff]  ;;  %v1126_v43 = vld [vmem:[%s8654_s20 + $0x19e8] sm:$0xff] }
 0x384   : > { %7437 = vmatpush1.bf16.msra.mxu1 %v7436_v26  ;;  %6863 = vmatprep.subr.bf16.mxu0 %v6862_v58  ;;  %v989_v26 = vld [vmem:[%s8654_s20 + $0x15a0] sm:$0xff]  ;;  %v1064_v46 = vld [vmem:[%s8654_s20 + $0x17f8] sm:$0xff] }
 0x385   : > { %7439 = vmatprep.subr.bf16.mxu1 %v7438_v61  ;;  %v997_v58 = vld [vmem:[%s8654_s20 + $0x15e0] sm:$0xff]  ;;  %v1006_v61 = vld [vmem:[%s8654_s20 + $0x1628] sm:$0xff] }
 0x386   : > { %v6880_v3 = vpack.c.bf16 %v997_v58, %v989_v26  ;;  %v1055_v26 = vld [vmem:[%s8654_s20 + $0x17b0] sm:$0xff]  ;;  %v7470_v58 = vpack.c.bf16 %v1064_v46, %v1056_v45 }
 0x387   : > { %6865 = vmatpush1.bf16.msra.mxu0 %v6864_v4  ;;  %v6882_v4 = vpack.c.bf16 %v1014_v62, %v1006_v61  ;;  %v1072_v61 = vld [vmem:[%s8654_s20 + $0x1838] sm:$0xff]  ;;  %v7472_v2 = vpack.c.bf16 %v1063_v59, %v1055_v26  ;;  %v1134_v26 = vld [vmem:[%s8654_s20 + $0x1a28] sm:$0xff] }
 0x388   : > { %7441 = vmatpush1.bf16.msra.mxu1 %v7440_v40  ;;  %6867 = vmatprep.subr.bf16.mxu0 %v6866_v7  ;;  %v1005_v40 = vld [vmem:[%s8654_s20 + $0x1620] sm:$0xff]  ;;  %v1080_v62 = vld [vmem:[%s8654_s20 + $0x1878] sm:$0xff] }
 0x389   : > { %7443 = vmatprep.subr.bf16.mxu1 %v7442_v11  ;;  %v1013_v7 = vld [vmem:[%s8654_s20 + $0x1660] sm:$0xff]  ;;  %v1022_v11 = vld [vmem:[%s8654_s20 + $0x16a8] sm:$0xff]  ;;  %v1144_v59 = vld [vmem:[%s8654_s20 + $0x1a78] sm:$0xff] }
 0x38a   : > { %v6884_v16 = vpack.c.bf16 %v1013_v7, %v1005_v40  ;;  %v1071_v40 = vld [vmem:[%s8654_s20 + $0x1830] sm:$0xff]  ;;  %v7474_v7 = vpack.c.bf16 %v1080_v62, %v1072_v61  ;;  %v1133_v62 = vld [vmem:[%s8654_s20 + $0x1a20] sm:$0xff] }
 0x38b   : > { %6869 = vmatpush1.bf16.msra.mxu0 %v6868_v19  ;;  %v6886_v19 = vpack.c.bf16 %v1030_v50, %v1022_v11  ;;  %v1088_v11 = vld [vmem:[%s8654_s20 + $0x18b8] sm:$0xff]  ;;  %v7476_v14 = vpack.c.bf16 %v1079_v8, %v1071_v40  ;;  %v1158_v40 = vld [vmem:[%s8654_s20 + $0x1ae8] sm:$0xff] }
 0x38c   : > { %7445 = vmatpush1.bf16.msra.mxu1 %v7444_v20  ;;  %6871 = vmatprep.subr.bf16.mxu0 %v6870_v21  ;;  %v1021_v20 = vld [vmem:[%s8654_s20 + $0x16a0] sm:$0xff]  ;;  %v1096_v50 = vld [vmem:[%s8654_s20 + $0x18f8] sm:$0xff] }
 0x38d   : > { %7447 = vmatprep.subr.bf16.mxu1 %v7446_v27  ;;  %v1029_v21 = vld [vmem:[%s8654_s20 + $0x16e0] sm:$0xff]  ;;  %v1038_v27 = vld [vmem:[%s8654_s20 + $0x1728] sm:$0xff]  ;;  %v1160_v8 = vld [vmem:[%s8654_s20 + $0x1af8] sm:$0xff] }
 0x38e   : > { %v6888_v34 = vpack.c.bf16 %v1029_v21, %v1021_v20  ;;  %v1087_v20 = vld [vmem:[%s8654_s20 + $0x18b0] sm:$0xff]  ;;  %v7478_v21 = vpack.c.bf16 %v1096_v50, %v1088_v11  ;;  %v1149_v50 = vld [vmem:[%s8654_s20 + $0x1aa0] sm:$0xff] }
 0x38f   : > { %6873 = vmatpush1.bf16.msra.mxu0 %v6872_v35  ;;  %v6890_v35 = vpack.c.bf16 %v1046_v28, %v1038_v27  ;;  %v1104_v27 = vld [vmem:[%s8654_s20 + $0x1938] sm:$0xff]  ;;  %v7480_v32 = vpack.c.bf16 %v1095_v22, %v1087_v20  ;;  %v1174_v20 = vld [vmem:[%s8654_s20 + $0x1b68] sm:$0xff] }
 0x390   : > { %7449 = vmatpush1.bf16.msra.mxu1 %v7448_v41  ;;  %6875 = vmatprep.subr.bf16.mxu0 %v6874_v37  ;;  %v1037_v41 = vld [vmem:[%s8654_s20 + $0x1720] sm:$0xff]  ;;  %v1112_v28 = vld [vmem:[%s8654_s20 + $0x1978] sm:$0xff] }
 0x391   : > { %7451 = vmatprep.subr.bf16.mxu1 %v7450_v52  ;;  %v1045_v37 = vld [vmem:[%s8654_s20 + $0x1760] sm:$0xff]  ;;  %v1054_v52 = vld [vmem:[%s8654_s20 + $0x17a8] sm:$0xff]  ;;  %v1176_v22 = vld [vmem:[%s8654_s20 + $0x1b78] sm:$0xff] }
 0x392   : > { %v6892_v48 = vpack.c.bf16 %v1045_v37, %v1037_v41  ;;  %v1103_v41 = vld [vmem:[%s8654_s20 + $0x1930] sm:$0xff]  ;;  %v7482_v37 = vpack.c.bf16 %v1112_v28, %v1104_v27  ;;  %v1165_v28 = vld [vmem:[%s8654_s20 + $0x1b20] sm:$0xff] }
 0x393   : > { %6877 = vmatpush1.bf16.msra.mxu0 %v6876_v51  ;;  %v6894_v51 = vpack.c.bf16 %v1062_v44, %v1054_v52  ;;  %v1128_v52 = vld [vmem:[%s8654_s20 + $0x19f8] sm:$0xff]  ;;  %v7484_v45 = vpack.c.bf16 %v1111_v39, %v1103_v41  ;;  %v1182_v41 = vld [vmem:[%s8654_s20 + $0x1ba8] sm:$0xff] }
 0x394   : > { %7453 = vmatpush1.bf16.msra.mxu1 %v7452_v54  ;;  %6879 = vmatprep.subr.bf16.mxu0 %v6878_v25  ;;  %v1053_v54 = vld [vmem:[%s8654_s20 + $0x17a0] sm:$0xff] }
 0x395   : > { %7455 = vmatprep.subr.bf16.mxu1 %v7454_v60  ;;  %v1061_v25 = vld [vmem:[%s8654_s20 + $0x17e0] sm:$0xff]  ;;  %v1070_v60 = vld [vmem:[%s8654_s20 + $0x1828] sm:$0xff] }
 0x396   : > { %v6896_v1 = vpack.c.bf16 %v1061_v25, %v1053_v54  ;;  %v1127_v25 = vld [vmem:[%s8654_s20 + $0x19f0] sm:$0xff] }
 0x397   : > { %6881 = vmatpush1.bf16.msra.mxu0 %v6880_v3  ;;  %v6898_v3 = vpack.c.bf16 %v1078_v33, %v1070_v60 }
 0x398   : > { %7457 = vmatpush1.bf16.msra.mxu1 %v7456_v0  ;;  %6883 = vmatprep.subr.bf16.mxu0 %v6882_v4  ;;  %v1069_v0 = vld [vmem:[%s8654_s20 + $0x1820] sm:$0xff] }
 0x399   : > { %7459 = vmatprep.subr.bf16.mxu1 %v7458_v9  ;;  %v1077_v4 = vld [vmem:[%s8654_s20 + $0x1860] sm:$0xff]  ;;  %v1086_v9 = vld [vmem:[%s8654_s20 + $0x18a8] sm:$0xff] }
 0x39a   : > { %v6900_v13 = vpack.c.bf16 %v1077_v4, %v1069_v0  ;;  %v1143_v0 = vld [vmem:[%s8654_s20 + $0x1a70] sm:$0xff]  ;;  %v1150_v4 = vld [vmem:[%s8654_s20 + $0x1aa8] sm:$0xff] }
 0x39b   : > { %6885 = vmatpush1.bf16.msra.mxu0 %v6884_v16  ;;  %v6902_v16 = vpack.c.bf16 %v1094_v10, %v1086_v9  ;;  %v6918_v11 = vpack.c.bf16 %v1158_v40, %v1150_v4  ;;  %v1197_v40 = vld [vmem:[%s8654_s20 + $0x1c20] sm:$0xff] }
 0x39c   : > { %7461 = vmatpush1.bf16.msra.mxu1 %v7460_v18  ;;  %6887 = vmatprep.subr.bf16.mxu0 %v6886_v19  ;;  %v1085_v18 = vld [vmem:[%s8654_s20 + $0x18a0] sm:$0xff] }
 0x39d   : > { %7463 = vmatprep.subr.bf16.mxu1 %v7462_v23  ;;  %v1093_v19 = vld [vmem:[%s8654_s20 + $0x18e0] sm:$0xff]  ;;  %v1102_v23 = vld [vmem:[%s8654_s20 + $0x1928] sm:$0xff] }
 0x39e   : > { %v6904_v29 = vpack.c.bf16 %v1093_v19, %v1085_v18  ;;  %v1159_v18 = vld [vmem:[%s8654_s20 + $0x1af0] sm:$0xff]  ;;  %v1166_v19 = vld [vmem:[%s8654_s20 + $0x1b28] sm:$0xff] }
 0x39f   : > { %6889 = vmatpush1.bf16.msra.mxu0 %v6888_v34  ;;  %v6906_v34 = vpack.c.bf16 %v1110_v24, %v1102_v23  ;;  %v6922_v27 = vpack.c.bf16 %v1174_v20, %v1166_v19 }
 0x3a0   : > { %7465 = vmatpush1.bf16.msra.mxu1 %v7464_v17  ;;  %6891 = vmatprep.subr.bf16.mxu0 %v6890_v35  ;;  %v1101_v17 = vld [vmem:[%s8654_s20 + $0x1920] sm:$0xff] }
 0x3a1   : > { %7467 = vmatprep.subr.bf16.mxu1 %v7466_v42  ;;  %v1109_v35 = vld [vmem:[%s8654_s20 + $0x1960] sm:$0xff]  ;;  %v1118_v42 = vld [vmem:[%s8654_s20 + $0x19a8] sm:$0xff] }
 0x3a2   : > { %v6908_v44 = vpack.c.bf16 %v1109_v35, %v1101_v17  ;;  %v6910_v46 = vpack.c.bf16 %v1126_v43, %v1118_v42  ;;  %v1175_v35 = vld [vmem:[%s8654_s20 + $0x1b70] sm:$0xff]  ;;  %v1184_v43 = vld [vmem:[%s8654_s20 + $0x1bb8] sm:$0xff] }
 0x3a3   : > { %6893 = vmatpush1.bf16.msra.mxu0 %v6892_v48  ;;  %v1117_v48 = vld [vmem:[%s8654_s20 + $0x19a0] sm:$0xff] }
 0x3a4   : > { %7469 = vmatpush1.bf16.msra.mxu1 %v7468_v49  ;;  %6895 = vmatprep.subr.bf16.mxu0 %v6894_v51  ;;  %v1125_v49 = vld [vmem:[%s8654_s20 + $0x19e0] sm:$0xff]  ;;  %v1119_v51 = vld [vmem:[%s8654_s20 + $0x19b0] sm:$0xff] }
 0x3a5   : > { %7471 = vmatprep.subr.bf16.mxu1 %v7470_v58  ;;  %v1136_v58 = vld [vmem:[%s8654_s20 + $0x1a38] sm:$0xff]  ;;  %v6912_v60 = vpack.c.bf16 %v1125_v49, %v1117_v48  ;;  %v7488_v33 = vpack.c.bf16 %v1127_v25, %v1119_v51  ;;  %v1181_v51 = vld [vmem:[%s8654_s20 + $0x1ba0] sm:$0xff]  ;;  %v1183_v25 = vld [vmem:[%s8654_s20 + $0x1bb0] sm:$0xff] }
 0x3a7   : > { %6897 = vmatpush1.bf16.msra.mxu0 %v6896_v1  ;;  %v1141_v1 = vld [vmem:[%s8654_s20 + $0x1a60] sm:$0xff] }
 0x3a8   : > { %7473 = vmatpush1.bf16.msra.mxu1 %v7472_v2  ;;  %6899 = vmatprep.subr.bf16.mxu0 %v6898_v3  ;;  %v1135_v2 = vld [vmem:[%s8654_s20 + $0x1a30] sm:$0xff]  ;;  %v7490_v3 = vpack.c.bf16 %v1144_v59, %v1136_v58  ;;  %v6916_v9 = vpack.c.bf16 %v1141_v1, %v1133_v62  ;;  %v1198_v59 = vld [vmem:[%s8654_s20 + $0x1c28] sm:$0xff]  ;;  %v1208_v62 = vld [vmem:[%s8654_s20 + $0x1c78] sm:$0xff] }
 0x3a9   : > { %7475 = vmatprep.subr.bf16.mxu1 %v7474_v7  ;;  %v1152_v7 = vld [vmem:[%s8654_s20 + $0x1ab8] sm:$0xff]  ;;  %v7492_v10 = vpack.c.bf16 %v1143_v0, %v1135_v2  ;;  %v1191_v58 = vld [vmem:[%s8654_s20 + $0x1bf0] sm:$0xff] }
 0x3aa   : > { %4185 = vmatmul.mubr.f32.vlgmr.msra.gmra.mrb[2].mxu0 %v8983_v56  ;;  %v290_v1 = vld [vmem:[%s8671_s18] sm:$0xff]  ;;  %v7504_v0 = vpack.c.bf16 %v1191_v58, %v1183_v25 }
 0x3ab   : > { %6901 = vmatpush1.bf16.msra.mxu0 %v6900_v13  ;;  %4824 = vmatmul.mubr.f32.vlgmr.msra.gmra.mrb[2].mxu1 %v8983_v56  ;;  %v1120_v56 = vld [vmem:[%s8654_s20 + $0x19b8] sm:$0xff]  ;;  %v1157_v13 = vld [vmem:[%s8654_s20 + $0x1ae0] sm:$0xff]  ;;  %v1255_v58 = vld [vmem:[%s8654_s20 + $0x1df0] sm:$0xff] }
 0x3ac   : > { %7477 = vmatpush1.bf16.msra.mxu1 %v7476_v14  ;;  %6903 = vmatprep.subr.bf16.mxu0 %v6902_v16  ;;  %v7486_v54 = vpack.c.bf16 %v1128_v52, %v1120_v56  ;;  %v1151_v14 = vld [vmem:[%s8654_s20 + $0x1ab0] sm:$0xff]  ;;  %v7494_v16 = vpack.c.bf16 %v1160_v8, %v1152_v7  ;;  %v6920_v23 = vpack.c.bf16 %v1157_v13, %v1149_v50  ;;  %v1192_v56 = vld [vmem:[%s8654_s20 + $0x1bf8] sm:$0xff]  ;;  %v1205_v7 = vld [vmem:[%s8654_s20 + $0x1c60] sm:$0xff] }
 0x3ad   : > { %7479 = vmatprep.subr.bf16.mxu1 %v7478_v21  ;;  %4255 = vmatprep.mubr.f32.mxu0 %v9131_v30  ;;  %v1168_v21 = vld [vmem:[%s8654_s20 + $0x1b38] sm:$0xff]  ;;  %v7496_v24 = vpack.c.bf16 %v1159_v18, %v1151_v14  ;;  %v1199_v8 = vld [vmem:[%s8654_s20 + $0x1c30] sm:$0xff]  ;;  %v1222_v50 = vld [vmem:[%s8654_s20 + $0x1ce8] sm:$0xff]  ;;  %v6932_v18 = vpack.c.bf16 %v1205_v7, %v1197_v40 }
 0x3ae   : > { %4894 = vmatprep.mubr.f32.mxu1 %v9131_v30  ;;  %v1142_v30 = vld [vmem:[%s8654_s20 + $0x1a68] sm:$0xff]  ;;  %v7498_v17 = vpack.c.bf16 %v1176_v22, %v1168_v21  ;;  %v1216_v14 = vld [vmem:[%s8654_s20 + $0x1cb8] sm:$0xff]  ;;  %v1213_v21 = vld [vmem:[%s8654_s20 + $0x1ca0] sm:$0xff] }
 0x3af   : > { %6905 = vmatpush1.bf16.msra.mxu0 %v6904_v29  ;;  %v6914_v61 = vpack.c.bf16 %v1142_v30, %v1134_v26  ;;  %v1173_v29 = vld [vmem:[%s8654_s20 + $0x1b60] sm:$0xff]  ;;  %v7502_v30 = vpack.c.bf16 %v1192_v56, %v1184_v43  ;;  %v1239_v56 = vld [vmem:[%s8654_s20 + $0x1d70] sm:$0xff] }
 0x3b0   : > { %7481 = vmatpush1.bf16.msra.mxu1 %v7480_v32  ;;  %6907 = vmatprep.subr.bf16.mxu0 %v6906_v34  ;;  %v1167_v32 = vld [vmem:[%s8654_s20 + $0x1b30] sm:$0xff]  ;;  %v1221_v22 = vld [vmem:[%s8654_s20 + $0x1ce0] sm:$0xff] }
 0x3b1   : > { %7483 = vmatprep.subr.bf16.mxu1 %v7482_v37  ;;  %v1190_v37 = vld [vmem:[%s8654_s20 + $0x1be8] sm:$0xff]  ;;  %v7500_v48 = vpack.c.bf16 %v1175_v35, %v1167_v32  ;;  %v1232_v32 = vld [vmem:[%s8654_s20 + $0x1d38] sm:$0xff]  ;;  %v1253_v25 = vld [vmem:[%s8654_s20 + $0x1de0] sm:$0xff] }
 0x3b2   : > { %v6926_v49 = vpack.c.bf16 %v1190_v37, %v1182_v41  ;;  %v1229_v37 = vld [vmem:[%s8654_s20 + $0x1d20] sm:$0xff]  ;;  %v1271_v7 = vld [vmem:[%s8654_s20 + $0x1e70] sm:$0xff] }
 0x3b3   : > { %6909 = vmatpush1.bf16.msra.mxu0 %v6908_v44 }
 0x3b4   : > { %7485 = vmatpush1.bf16.msra.mxu1 %v7484_v45  ;;  %6911 = vmatprep.subr.bf16.mxu0 %v6910_v46  ;;  %v6924_v45 = vpack.c.bf16 %v1173_v29, %v1165_v28  ;;  %v1230_v28 = vld [vmem:[%s8654_s20 + $0x1d28] sm:$0xff] }
 0x3b5   : > { %7487 = vmatprep.subr.bf16.mxu1 %v7486_v54  ;;  %v1189_v54 = vld [vmem:[%s8654_s20 + $0x1be0] sm:$0xff]  ;;  %v1238_v29 = vld [vmem:[%s8654_s20 + $0x1d68] sm:$0xff] }
 0x3b6   : > { %v6928_v2 = vpack.c.bf16 %v1189_v54, %v1181_v51  ;;  %v6938_v41 = vpack.c.bf16 %v1238_v29, %v1230_v28  ;;  %v1245_v54 = vld [vmem:[%s8654_s20 + $0x1da0] sm:$0xff] }
 0x3b7   : > { %6913 = vmatpush1.bf16.msra.mxu0 %v6912_v60  ;;  %v1206_v60 = vld [vmem:[%s8654_s20 + $0x1c68] sm:$0xff] }
 0x3b8   : > { %7489 = vmatpush1.bf16.msra.mxu1 %v7488_v33  ;;  %6915 = vmatprep.subr.bf16.mxu0 %v6914_v61  ;;  %v1200_v61 = vld [vmem:[%s8654_s20 + $0x1c38] sm:$0xff]  ;;  %v6930_v4 = vpack.c.bf16 %v1206_v60, %v1198_v59  ;;  %v1262_v59 = vld [vmem:[%s8654_s20 + $0x1e28] sm:$0xff] }
 0x3b9   : > { %7491 = vmatprep.subr.bf16.mxu1 %v7490_v3  ;;  %v1270_v60 = vld [vmem:[%s8654_s20 + $0x1e68] sm:$0xff] }
 0x3bb   : > { %6917 = vmatpush1.bf16.msra.mxu0 %v6916_v9  ;;  %v7506_v9 = vpack.c.bf16 %v1208_v62, %v1200_v61  ;;  %v1272_v61 = vld [vmem:[%s8654_s20 + $0x1e78] sm:$0xff]  ;;  %v6944_v62 = vpack.c.bf16 %v1253_v25, %v1245_v54  ;;  %v1319_v54 = vld [vmem:[%s8654_s20 + $0x1ff0] sm:$0xff]  ;;  %v1326_v25 = vld [vmem:[%s8654_s20 + $0x2028] sm:$0xff] }
 0x3bc   : > { %7493 = vmatpush1.bf16.msra.mxu1 %v7492_v10  ;;  %6919 = vmatprep.subr.bf16.mxu0 %v6918_v11  ;;  %v1207_v10 = vld [vmem:[%s8654_s20 + $0x1c70] sm:$0xff]  ;;  %v1214_v11 = vld [vmem:[%s8654_s20 + $0x1ca8] sm:$0xff] }
 0x3bd   : > { %v3334_v34 = vpop.f32.mrb[0].mxu0  ;;  %7495 = vmatprep.subr.bf16.mxu1 %v7494_v16  ;;  %v1224_v16 = vld [vmem:[%s8654_s20 + $0x1cf8] sm:$0xff]  ;;  %v7508_v19 = vpack.c.bf16 %v1207_v10, %v1199_v8  ;;  %v6934_v20 = vpack.c.bf16 %v1222_v50, %v1214_v11  ;;  %v1278_v8 = vld [vmem:[%s8654_s20 + $0x1ea8] sm:$0xff] }
 0x3be   : > { %v3973_v39 = vpop.f32.mrb[0].mxu1  ;;  %v3336_v42 = vpop.f32.mrb[1].mxu0  ;;  %v1280_v10 = vld [vmem:[%s8654_s20 + $0x1eb8] sm:$0xff] }
 0x3bf   : > { %v5264_v52 = vcombine.low %v3334_v34, %v3336_v42  ;;  %v3975_v44 = vpop.f32.mrb[1].mxu1  ;;  %6921 = vmatpush1.bf16.msra.mxu0 %v6920_v23  ;;  %v1215_v23 = vld [vmem:[%s8654_s20 + $0x1cb0] sm:$0xff]  ;;  %v1240_v34 = vld [vmem:[%s8654_s20 + $0x1d78] sm:$0xff] }
 0x3c0   : > { %v5265_v46 = vcombine.low %v3973_v39, %v3975_v44  ;;  %7497 = vmatpush1.bf16.msra.mxu1 %v7496_v24  ;;  %6923 = vmatprep.subr.bf16.mxu0 %v6922_v27  ;;  %v7510_v24 = vpack.c.bf16 %v1224_v16, %v1216_v14  ;;  %v1223_v27 = vld [vmem:[%s8654_s20 + $0x1cf0] sm:$0xff]  ;;  %v1237_v39 = vld [vmem:[%s8654_s20 + $0x1d60] sm:$0xff]  ;;  %v7514_v43 = vpack.c.bf16 %v1240_v34, %v1232_v32  ;;  %v1254_v44 = vld [vmem:[%s8654_s20 + $0x1de8] sm:$0xff] }
 0x3c1   : > { %v5272_v26 = vrot.slane %v5264_v52, %v8771_v12  ;;  %7499 = vmatprep.subr.bf16.mxu1 %v7498_v17  ;;  %v6936_v17 = vpack.c.bf16 %v1221_v22, %v1213_v21  ;;  %v7512_v35 = vpack.c.bf16 %v1223_v27, %v1215_v23  ;;  %v1231_v42 = vld [vmem:[%s8654_s20 + $0x1d30] sm:$0xff]  ;;  %v1246_v52 = vld [vmem:[%s8654_s20 + $0x1da8] sm:$0xff]  ;;  %v1288_v11 = vld [vmem:[%s8654_s20 + $0x1ef8] sm:$0xff] }
 0x3c2   : > { %v5279_v33 = vrot.slane %v5265_v46, %v8771_v12  ;;  %v1256_v46 = vld [vmem:[%s8654_s20 + $0x1df8] sm:$0xff]  ;;  %v6942_v51 = vpack.c.bf16 %v1254_v44, %v1246_v52  ;;  %v1277_v16 = vld [vmem:[%s8654_s20 + $0x1ea0] sm:$0xff]  ;;  %v1287_v21 = vld [vmem:[%s8654_s20 + $0x1ef0] sm:$0xff] }
 0x3c3   : > { %6925 = vmatpush1.bf16.msra.mxu0 %v6924_v45  ;;  %v1248_v45 = vld [vmem:[%s8654_s20 + $0x1db8] sm:$0xff]  ;;  %v1294_v22 = vld [vmem:[%s8654_s20 + $0x1f28] sm:$0xff]  ;;  %v1293_v34 = vld [vmem:[%s8654_s20 + $0x1f20] sm:$0xff] }
 0x3c4   : > { %v5280_v3 = vcombine.low %v5272_v26, %v5279_v33  ;;  %7501 = vmatpush1.bf16.msra.mxu1 %v7500_v48  ;;  %6927 = vmatprep.subr.bf16.mxu0 %v6926_v49  ;;  %v6940_v48 = vpack.c.bf16 %v1237_v39, %v1229_v37  ;;  %v7516_v49 = vpack.c.bf16 %v1239_v56, %v1231_v42  ;;  %v1247_v26 = vld [vmem:[%s8654_s20 + $0x1db0] sm:$0xff]  ;;  %v1264_v33 = vld [vmem:[%s8654_s20 + $0x1e38] sm:$0xff]  ;;  %v1302_v23 = vld [vmem:[%s8654_s20 + $0x1f68] sm:$0xff] }
 0x3c5   : > { %7503 = vmatprep.subr.bf16.mxu1 %v7502_v30  ;;  %v7518_v30 = vpack.c.bf16 %v1256_v46, %v1248_v45  ;;  %v7522_v40 = vpack.c.bf16 %v1272_v61, %v1264_v33  ;;  %v1304_v27 = vld [vmem:[%s8654_s20 + $0x1f78] sm:$0xff]  ;;  %v6954_v32 = vpack.c.bf16 %v1302_v23, %v1294_v22  ;;  %v1303_v37 = vld [vmem:[%s8654_s20 + $0x1f70] sm:$0xff]  ;;  %v1310_v39 = vld [vmem:[%s8654_s20 + $0x1fa8] sm:$0xff] }
 0x3c6   : > { %v5300_v13 = vadd.f32 %v5280_v3, %v290_v1  ;;  %v7520_v1 = vpack.c.bf16 %v1255_v58, %v1247_v26  ;;  %v1261_v3 = vld [vmem:[%s8654_s20 + $0x1e20] sm:$0xff]  ;;  %v1318_v42 = vld [vmem:[%s8654_s20 + $0x1fe8] sm:$0xff]  ;;  %v1320_v56 = vld [vmem:[%s8654_s20 + $0x1ff8] sm:$0xff] }
 0x3c7   : > { %6929 = vmatpush1.bf16.msra.mxu0 %v6928_v2  ;;  %v6946_v2 = vpack.c.bf16 %v1270_v60, %v1262_v59  ;;  %v6958_v45 = vpack.c.bf16 %v1318_v42, %v1310_v39  ;;  %v1309_v46 = vld [vmem:[%s8654_s20 + $0x1fa0] sm:$0xff]  ;;  %v1334_v26 = vld [vmem:[%s8654_s20 + $0x2068] sm:$0xff]  ;;  %v1336_v58 = vld [vmem:[%s8654_s20 + $0x2078] sm:$0xff] }
 0x3c8   : > { %5302 = vst [vmem:[%s8671_s18] sm:$0xff] %v5300_v13  ;;  %7505 = vmatpush1.bf16.msra.mxu1 %v7504_v0  ;;  %6931 = vmatprep.subr.bf16.mxu0 %v6930_v4  ;;  %v1269_v0 = vld [vmem:[%s8654_s20 + $0x1e60] sm:$0xff]  ;;  %v1263_v4 = vld [vmem:[%s8654_s20 + $0x1e30] sm:$0xff]  ;;  %v6962_v33 = vpack.c.bf16 %v1334_v26, %v1326_v25 }
 0x3c9   : > { %7507 = vmatprep.subr.bf16.mxu1 %v7506_v9  ;;  %v1286_v9 = vld [vmem:[%s8654_s20 + $0x1ee8] sm:$0xff]  ;;  %v6948_v50 = vpack.c.bf16 %v1269_v0, %v1261_v3  ;;  %v7524_v13 = vpack.c.bf16 %v1271_v7, %v1263_v4  ;;  %v1325_v61 = vld [vmem:[%s8654_s20 + $0x2020] sm:$0xff]  ;;  %v1335_v3 = vld [vmem:[%s8654_s20 + $0x2070] sm:$0xff] }
 0x3ca   : > { %v6950_v14 = vpack.c.bf16 %v1286_v9, %v1278_v8  ;;  %v1342_v0 = vld [vmem:[%s8654_s20 + $0x20a8] sm:$0xff]  ;;  %v1352_v7 = vld [vmem:[%s8654_s20 + $0x20f8] sm:$0xff]  ;;  %v1389_v26 = vld [vmem:[%s8654_s20 + $0x2220] sm:$0xff] }
 0x3cb   : > { %6933 = vmatpush1.bf16.msra.mxu0 %v6932_v18  ;;  %v1285_v18 = vld [vmem:[%s8654_s20 + $0x1ee0] sm:$0xff]  ;;  %v1350_v4 = vld [vmem:[%s8654_s20 + $0x20e8] sm:$0xff] }
 0x3cc   : > { %7509 = vmatpush1.bf16.msra.mxu1 %v7508_v19  ;;  %6935 = vmatprep.subr.bf16.mxu0 %v6934_v20  ;;  %v1279_v19 = vld [vmem:[%s8654_s20 + $0x1eb0] sm:$0xff]  ;;  %v7526_v20 = vpack.c.bf16 %v1288_v11, %v1280_v10  ;;  %v6952_v28 = vpack.c.bf16 %v1285_v18, %v1277_v16  ;;  %v6966_v10 = vpack.c.bf16 %v1350_v4, %v1342_v0  ;;  %v1341_v11 = vld [vmem:[%s8654_s20 + $0x20a0] sm:$0xff]  ;;  %v1358_v18 = vld [vmem:[%s8654_s20 + $0x2128] sm:$0xff] }
 0x3cd   : > { %7511 = vmatprep.subr.bf16.mxu1 %v7510_v24  ;;  %v1296_v24 = vld [vmem:[%s8654_s20 + $0x1f38] sm:$0xff]  ;;  %v7528_v29 = vpack.c.bf16 %v1287_v21, %v1279_v19  ;;  %v1351_v16 = vld [vmem:[%s8654_s20 + $0x20f0] sm:$0xff]  ;;  %v1366_v19 = vld [vmem:[%s8654_s20 + $0x2168] sm:$0xff] }
 0x3ce   : > { %v1368_v21 = vld [vmem:[%s8654_s20 + $0x2178] sm:$0xff]  ;;  %v1405_v4 = vld [vmem:[%s8654_s20 + $0x22a0] sm:$0xff] }
 0x3cf   : > { %6937 = vmatpush1.bf16.msra.mxu0 %v6936_v17  ;;  %v1301_v17 = vld [vmem:[%s8654_s20 + $0x1f60] sm:$0xff] }
 0x3d0   : > { %7513 = vmatpush1.bf16.msra.mxu1 %v7512_v35  ;;  %6939 = vmatprep.subr.bf16.mxu0 %v6938_v41  ;;  %v1295_v35 = vld [vmem:[%s8654_s20 + $0x1f30] sm:$0xff]  ;;  %v7530_v41 = vpack.c.bf16 %v1304_v27, %v1296_v24  ;;  %v6956_v52 = vpack.c.bf16 %v1301_v17, %v1293_v34  ;;  %v6970_v24 = vpack.c.bf16 %v1366_v19, %v1358_v18  ;;  %v1357_v27 = vld [vmem:[%s8654_s20 + $0x2120] sm:$0xff]  ;;  %v1374_v17 = vld [vmem:[%s8654_s20 + $0x21a8] sm:$0xff] }
 0x3d1   : > { %7515 = vmatprep.subr.bf16.mxu1 %v7514_v43  ;;  %v1312_v43 = vld [vmem:[%s8654_s20 + $0x1fb8] sm:$0xff]  ;;  %v7532_v44 = vpack.c.bf16 %v1303_v37, %v1295_v35  ;;  %v1367_v34 = vld [vmem:[%s8654_s20 + $0x2170] sm:$0xff]  ;;  %v1382_v35 = vld [vmem:[%s8654_s20 + $0x21e8] sm:$0xff] }
 0x3d2   : > { %v6974_v42 = vpack.c.bf16 %v1382_v35, %v1374_v17  ;;  %v1421_v19 = vld [vmem:[%s8654_s20 + $0x2320] sm:$0xff] }
 0x3d3   : > { %6941 = vmatpush1.bf16.msra.mxu0 %v6940_v48  ;;  %v1317_v48 = vld [vmem:[%s8654_s20 + $0x1fe0] sm:$0xff] }
 0x3d4   : > { %7517 = vmatpush1.bf16.msra.mxu1 %v7516_v49  ;;  %6943 = vmatprep.subr.bf16.mxu0 %v6942_v51  ;;  %v1311_v49 = vld [vmem:[%s8654_s20 + $0x1fb0] sm:$0xff]  ;;  %v7534_v51 = vpack.c.bf16 %v1320_v56, %v1312_v43  ;;  %v6960_v59 = vpack.c.bf16 %v1317_v48, %v1309_v46  ;;  %v1373_v43 = vld [vmem:[%s8654_s20 + $0x21a0] sm:$0xff]  ;;  %v1390_v46 = vld [vmem:[%s8654_s20 + $0x2228] sm:$0xff] }
 0x3d5   : > { %7519 = vmatprep.subr.bf16.mxu1 %v7518_v30  ;;  %v1328_v30 = vld [vmem:[%s8654_s20 + $0x2038] sm:$0xff]  ;;  %v7536_v60 = vpack.c.bf16 %v1319_v54, %v1311_v49  ;;  %v1381_v56 = vld [vmem:[%s8654_s20 + $0x21e0] sm:$0xff] }
 0x3d6   : > { %v1392_v48 = vld [vmem:[%s8654_s20 + $0x2238] sm:$0xff]  ;;  %v1437_v35 = vld [vmem:[%s8654_s20 + $0x23a0] sm:$0xff] }
 0x3d7   : > { %6945 = vmatpush1.bf16.msra.mxu0 %v6944_v62  ;;  %v1333_v62 = vld [vmem:[%s8654_s20 + $0x2060] sm:$0xff]  ;;  %v1400_v49 = vld [vmem:[%s8654_s20 + $0x2278] sm:$0xff] }
 0x3d8   : > { %7521 = vmatpush1.bf16.msra.mxu1 %v7520_v1  ;;  %6947 = vmatprep.subr.bf16.mxu0 %v6946_v2  ;;  %v1327_v1 = vld [vmem:[%s8654_s20 + $0x2030] sm:$0xff]  ;;  %v7538_v2 = vpack.c.bf16 %v1336_v58, %v1328_v30  ;;  %v6964_v8 = vpack.c.bf16 %v1333_v62, %v1325_v61  ;;  %v1397_v30 = vld [vmem:[%s8654_s20 + $0x2260] sm:$0xff]  ;;  %v1414_v61 = vld [vmem:[%s8654_s20 + $0x22e8] sm:$0xff] }
 0x3d9   : > { %7523 = vmatprep.subr.bf16.mxu1 %v7522_v40  ;;  %v1344_v40 = vld [vmem:[%s8654_s20 + $0x20b8] sm:$0xff]  ;;  %v7540_v9 = vpack.c.bf16 %v1335_v3, %v1327_v1  ;;  %v1391_v58 = vld [vmem:[%s8654_s20 + $0x2230] sm:$0xff] }
 0x3da   : > { %v1408_v62 = vld [vmem:[%s8654_s20 + $0x22b8] sm:$0xff] }
 0x3db   : > { %6949 = vmatpush1.bf16.msra.mxu0 %v6948_v50  ;;  %v1349_v50 = vld [vmem:[%s8654_s20 + $0x20e0] sm:$0xff]  ;;  %v1416_v1 = vld [vmem:[%s8654_s20 + $0x22f8] sm:$0xff] }
 0x3dc   : > { %7525 = vmatpush1.bf16.msra.mxu1 %v7524_v13  ;;  %6951 = vmatprep.subr.bf16.mxu0 %v6950_v14  ;;  %v1343_v13 = vld [vmem:[%s8654_s20 + $0x20b0] sm:$0xff]  ;;  %v7542_v14 = vpack.c.bf16 %v1352_v7, %v1344_v40  ;;  %v6968_v22 = vpack.c.bf16 %v1349_v50, %v1341_v11  ;;  %v1413_v40 = vld [vmem:[%s8654_s20 + $0x22e0] sm:$0xff]  ;;  %v1430_v11 = vld [vmem:[%s8654_s20 + $0x2368] sm:$0xff] }
 0x3dd   : > { %7527 = vmatprep.subr.bf16.mxu1 %v7526_v20  ;;  %v1360_v20 = vld [vmem:[%s8654_s20 + $0x2138] sm:$0xff]  ;;  %v7544_v23 = vpack.c.bf16 %v1351_v16, %v1343_v13  ;;  %v1407_v7 = vld [vmem:[%s8654_s20 + $0x22b0] sm:$0xff] }
 0x3de   : > { %v1424_v50 = vld [vmem:[%s8654_s20 + $0x2338] sm:$0xff] }
 0x3df   : > { %6953 = vmatpush1.bf16.msra.mxu0 %v6952_v28  ;;  %v1365_v28 = vld [vmem:[%s8654_s20 + $0x2160] sm:$0xff]  ;;  %v1432_v13 = vld [vmem:[%s8654_s20 + $0x2378] sm:$0xff] }
 0x3e0   : > { %7529 = vmatpush1.bf16.msra.mxu1 %v7528_v29  ;;  %6955 = vmatprep.subr.bf16.mxu0 %v6954_v32  ;;  %v1359_v29 = vld [vmem:[%s8654_s20 + $0x2130] sm:$0xff]  ;;  %v7546_v32 = vpack.c.bf16 %v1368_v21, %v1360_v20  ;;  %v6972_v37 = vpack.c.bf16 %v1365_v28, %v1357_v27  ;;  %v1429_v20 = vld [vmem:[%s8654_s20 + $0x2360] sm:$0xff]  ;;  %v1446_v27 = vld [vmem:[%s8654_s20 + $0x23e8] sm:$0xff] }
 0x3e1   : > { %7531 = vmatprep.subr.bf16.mxu1 %v7530_v41  ;;  %v1384_v41 = vld [vmem:[%s8654_s20 + $0x21f8] sm:$0xff]  ;;  %v7548_v39 = vpack.c.bf16 %v1367_v34, %v1359_v29  ;;  %v1423_v21 = vld [vmem:[%s8654_s20 + $0x2330] sm:$0xff] }
 0x3e2   : > { %v1440_v28 = vld [vmem:[%s8654_s20 + $0x23b8] sm:$0xff] }
 0x3e3   : > { %6957 = vmatpush1.bf16.msra.mxu0 %v6956_v52  ;;  %v1375_v52 = vld [vmem:[%s8654_s20 + $0x21b0] sm:$0xff]  ;;  %v1448_v29 = vld [vmem:[%s8654_s20 + $0x23f8] sm:$0xff] }
 0x3e4   : > { %7533 = vmatpush1.bf16.msra.mxu1 %v7532_v44  ;;  %6959 = vmatprep.subr.bf16.mxu0 %v6958_v45  ;;  %v1383_v45 = vld [vmem:[%s8654_s20 + $0x21f0] sm:$0xff] }
 0x3e5   : > { %7535 = vmatprep.subr.bf16.mxu1 %v7534_v51  ;;  %v6976_v51 = vpack.c.bf16 %v1381_v56, %v1373_v43  ;;  %v7552_v54 = vpack.c.bf16 %v1383_v45, %v1375_v52  ;;  %v1462_v43 = vld [vmem:[%s8654_s20 + $0x2468] sm:$0xff]  ;;  %v1456_v56 = vld [vmem:[%s8654_s20 + $0x2438] sm:$0xff] }
 0x3e6   : > { %v1464_v52 = vld [vmem:[%s8654_s20 + $0x2478] sm:$0xff] }
 0x3e7   : > { %6961 = vmatpush1.bf16.msra.mxu0 %v6960_v59  ;;  %v7554_v59 = vpack.c.bf16 %v1400_v49, %v1392_v48  ;;  %v1461_v48 = vld [vmem:[%s8654_s20 + $0x2460] sm:$0xff]  ;;  %v1455_v49 = vld [vmem:[%s8654_s20 + $0x2430] sm:$0xff] }
 0x3e8   : > { %7537 = vmatpush1.bf16.msra.mxu1 %v7536_v60  ;;  %6963 = vmatprep.subr.bf16.mxu0 %v6962_v33  ;;  %v1399_v60 = vld [vmem:[%s8654_s20 + $0x2270] sm:$0xff]  ;;  %v1406_v33 = vld [vmem:[%s8654_s20 + $0x22a8] sm:$0xff] }
 0x3e9   : > { %7539 = vmatprep.subr.bf16.mxu1 %v7538_v2  ;;  %v6980_v2 = vpack.c.bf16 %v1397_v30, %v1389_v26  ;;  %v7556_v3 = vpack.c.bf16 %v1399_v60, %v1391_v58  ;;  %v6982_v0 = vpack.c.bf16 %v1414_v61, %v1406_v33  ;;  %v1478_v26 = vld [vmem:[%s8654_s20 + $0x24e8] sm:$0xff]  ;;  %v1472_v30 = vld [vmem:[%s8654_s20 + $0x24b8] sm:$0xff]  ;;  %v1469_v61 = vld [vmem:[%s8654_s20 + $0x24a0] sm:$0xff] }
 0x3ea   : > { %4256 = vmatmul.mubr.f32.vlgmr.msra.gmra.mrb[2].mxu0 %v9119_v15  ;;  %v1480_v58 = vld [vmem:[%s8654_s20 + $0x24f8] sm:$0xff] }
 0x3eb   : > { %6965 = vmatpush1.bf16.msra.mxu0 %v6964_v8  ;;  %4895 = vmatmul.mubr.f32.vlgmr.msra.gmra.mrb[2].mxu1 %v9119_v15  ;;  %v1376_v15 = vld [vmem:[%s8654_s20 + $0x21b8] sm:$0xff]  ;;  %v7558_v8 = vpack.c.bf16 %v1416_v1, %v1408_v62  ;;  %v1477_v62 = vld [vmem:[%s8654_s20 + $0x24e0] sm:$0xff]  ;;  %v1471_v1 = vld [vmem:[%s8654_s20 + $0x24b0] sm:$0xff] }
 0x3ec   : > { %7541 = vmatpush1.bf16.msra.mxu1 %v7540_v9  ;;  %6967 = vmatprep.subr.bf16.mxu0 %v6966_v10  ;;  %v7550_v44 = vpack.c.bf16 %v1384_v41, %v1376_v15  ;;  %v1415_v9 = vld [vmem:[%s8654_s20 + $0x22f0] sm:$0xff]  ;;  %v1422_v10 = vld [vmem:[%s8654_s20 + $0x2328] sm:$0xff]  ;;  %v1445_v15 = vld [vmem:[%s8654_s20 + $0x23e0] sm:$0xff] }
 0x3ed   : > { %7543 = vmatprep.subr.bf16.mxu1 %v7542_v14  ;;  %4326 = vmatprep.mubr.f32.mxu0 %v9274_v5  ;;  %v6984_v14 = vpack.c.bf16 %v1413_v40, %v1405_v4  ;;  %v7560_v16 = vpack.c.bf16 %v1415_v9, %v1407_v7  ;;  %v6986_v18 = vpack.c.bf16 %v1430_v11, %v1422_v10  ;;  %v1439_v41 = vld [vmem:[%s8654_s20 + $0x23b0] sm:$0xff]  ;;  %v1494_v4 = vld [vmem:[%s8654_s20 + $0x2568] sm:$0xff]  ;;  %v1488_v40 = vld [vmem:[%s8654_s20 + $0x2538] sm:$0xff] }
 0x3ee   : > { %4965 = vmatprep.mubr.f32.mxu1 %v9274_v5  ;;  %v1398_v5 = vld [vmem:[%s8654_s20 + $0x2268] sm:$0xff]  ;;  %v1496_v7 = vld [vmem:[%s8654_s20 + $0x2578] sm:$0xff]  ;;  %v1485_v11 = vld [vmem:[%s8654_s20 + $0x2520] sm:$0xff] }
 0x3ef   : > { %6969 = vmatpush1.bf16.msra.mxu0 %v6968_v22  ;;  %v6978_v25 = vpack.c.bf16 %v1398_v5, %v1390_v46  ;;  %v7562_v22 = vpack.c.bf16 %v1432_v13, %v1424_v50  ;;  %v1453_v5 = vld [vmem:[%s8654_s20 + $0x2420] sm:$0xff]  ;;  %v1487_v13 = vld [vmem:[%s8654_s20 + $0x2530] sm:$0xff] }
 0x3f0   : > { %7545 = vmatpush1.bf16.msra.mxu1 %v7544_v23  ;;  %6971 = vmatprep.subr.bf16.mxu0 %v6970_v24  ;;  %v1431_v23 = vld [vmem:[%s8654_s20 + $0x2370] sm:$0xff]  ;;  %v1438_v24 = vld [vmem:[%s8654_s20 + $0x23a8] sm:$0xff]  ;;  %v1493_v50 = vld [vmem:[%s8654_s20 + $0x2560] sm:$0xff] }
 0x3f1   : > { %7547 = vmatprep.subr.bf16.mxu1 %v7546_v32  ;;  %v6988_v32 = vpack.c.bf16 %v1429_v20, %v1421_v19  ;;  %v7564_v34 = vpack.c.bf16 %v1431_v23, %v1423_v21  ;;  %v6990_v17 = vpack.c.bf16 %v1446_v27, %v1438_v24  ;;  %v1510_v19 = vld [vmem:[%s8654_s20 + $0x25e8] sm:$0xff]  ;;  %v1504_v20 = vld [vmem:[%s8654_s20 + $0x25b8] sm:$0xff]  ;;  %v1501_v27 = vld [vmem:[%s8654_s20 + $0x25a0] sm:$0xff] }
 0x3f2   : > { %v1512_v21 = vld [vmem:[%s8654_s20 + $0x25f8] sm:$0xff] }
 0x3f3   : > { %6973 = vmatpush1.bf16.msra.mxu0 %v6972_v37  ;;  %v7566_v37 = vpack.c.bf16 %v1448_v29, %v1440_v28  ;;  %v1509_v28 = vld [vmem:[%s8654_s20 + $0x25e0] sm:$0xff]  ;;  %v1503_v29 = vld [vmem:[%s8654_s20 + $0x25b0] sm:$0xff] }
 0x3f4   : > { %7549 = vmatpush1.bf16.msra.mxu1 %v7548_v39  ;;  %6975 = vmatprep.subr.bf16.mxu0 %v6974_v42  ;;  %v1447_v39 = vld [vmem:[%s8654_s20 + $0x23f0] sm:$0xff]  ;;  %v1454_v42 = vld [vmem:[%s8654_s20 + $0x2428] sm:$0xff] }
 0x3f5   : > { %7551 = vmatprep.subr.bf16.mxu1 %v7550_v44  ;;  %v6992_v44 = vpack.c.bf16 %v1445_v15, %v1437_v35  ;;  %v7568_v45 = vpack.c.bf16 %v1447_v39, %v1439_v41  ;;  %v6994_v46 = vpack.c.bf16 %v1462_v43, %v1454_v42  ;;  %v1526_v35 = vld [vmem:[%s8654_s20 + $0x2668] sm:$0xff]  ;;  %v1520_v15 = vld [vmem:[%s8654_s20 + $0x2638] sm:$0xff]  ;;  %v1517_v43 = vld [vmem:[%s8654_s20 + $0x2620] sm:$0xff] }
 0x3f6   : > { %v1528_v41 = vld [vmem:[%s8654_s20 + $0x2678] sm:$0xff] }
 0x3f7   : > { %6977 = vmatpush1.bf16.msra.mxu0 %v6976_v51  ;;  %v7570_v51 = vpack.c.bf16 %v1464_v52, %v1456_v56  ;;  %v1525_v56 = vld [vmem:[%s8654_s20 + $0x2660] sm:$0xff]  ;;  %v1519_v52 = vld [vmem:[%s8654_s20 + $0x2630] sm:$0xff] }
 0x3f8   : > { %7553 = vmatpush1.bf16.msra.mxu1 %v7552_v54  ;;  %6979 = vmatprep.subr.bf16.mxu0 %v6978_v25  ;;  %v1463_v54 = vld [vmem:[%s8654_s20 + $0x2470] sm:$0xff]  ;;  %v1470_v25 = vld [vmem:[%s8654_s20 + $0x24a8] sm:$0xff] }
 0x3f9   : > { %7555 = vmatprep.subr.bf16.mxu1 %v7554_v59  ;;  %v6996_v59 = vpack.c.bf16 %v1461_v48, %v1453_v5  ;;  %v7572_v60 = vpack.c.bf16 %v1463_v54, %v1455_v49  ;;  %v6998_v33 = vpack.c.bf16 %v1478_v26, %v1470_v25  ;;  %v1542_v5 = vld [vmem:[%s8654_s20 + $0x26e8] sm:$0xff]  ;;  %v1536_v48 = vld [vmem:[%s8654_s20 + $0x26b8] sm:$0xff]  ;;  %v1533_v26 = vld [vmem:[%s8654_s20 + $0x26a0] sm:$0xff] }
 0x3fa   : > { %v1544_v49 = vld [vmem:[%s8654_s20 + $0x26f8] sm:$0xff] }
 0x3fb   : > { %6981 = vmatpush1.bf16.msra.mxu0 %v6980_v2  ;;  %v7574_v2 = vpack.c.bf16 %v1480_v58, %v1472_v30  ;;  %v1541_v30 = vld [vmem:[%s8654_s20 + $0x26e0] sm:$0xff]  ;;  %v1535_v58 = vld [vmem:[%s8654_s20 + $0x26b0] sm:$0xff] }
 0x3fc   : > { %7557 = vmatpush1.bf16.msra.mxu1 %v7556_v3  ;;  %6983 = vmatprep.subr.bf16.mxu0 %v6982_v0  ;;  %v1479_v3 = vld [vmem:[%s8654_s20 + $0x24f0] sm:$0xff]  ;;  %v1486_v0 = vld [vmem:[%s8654_s20 + $0x2528] sm:$0xff] }
 0x3fd   : > { %7559 = vmatprep.subr.bf16.mxu1 %v7558_v8  ;;  %v7000_v8 = vpack.c.bf16 %v1477_v62, %v1469_v61  ;;  %v7576_v9 = vpack.c.bf16 %v1479_v3, %v1471_v1  ;;  %v7002_v10 = vpack.c.bf16 %v1494_v4, %v1486_v0  ;;  %v1558_v61 = vld [vmem:[%s8654_s20 + $0x2768] sm:$0xff]  ;;  %v1552_v62 = vld [vmem:[%s8654_s20 + $0x2738] sm:$0xff]  ;;  %v1549_v4 = vld [vmem:[%s8654_s20 + $0x2720] sm:$0xff] }
 0x3fe   : > { %v1560_v1 = vld [vmem:[%s8654_s20 + $0x2778] sm:$0xff] }
 0x3ff   : > { %6985 = vmatpush1.bf16.msra.mxu0 %v6984_v14  ;;  %v7578_v14 = vpack.c.bf16 %v1496_v7, %v1488_v40  ;;  %v1557_v40 = vld [vmem:[%s8654_s20 + $0x2760] sm:$0xff]  ;;  %v1551_v7 = vld [vmem:[%s8654_s20 + $0x2730] sm:$0xff] }
 0x400   : > { %7561 = vmatpush1.bf16.msra.mxu1 %v7560_v16  ;;  %6987 = vmatprep.subr.bf16.mxu0 %v6986_v18  ;;  %v1495_v16 = vld [vmem:[%s8654_s20 + $0x2570] sm:$0xff]  ;;  %v1502_v18 = vld [vmem:[%s8654_s20 + $0x25a8] sm:$0xff] }
 0x401   : > { %7563 = vmatprep.subr.bf16.mxu1 %v7562_v22  ;;  %v7004_v22 = vpack.c.bf16 %v1493_v50, %v1485_v11  ;;  %v7580_v23 = vpack.c.bf16 %v1495_v16, %v1487_v13  ;;  %v7006_v24 = vpack.c.bf16 %v1510_v19, %v1502_v18  ;;  %v1574_v11 = vld [vmem:[%s8654_s20 + $0x27e8] sm:$0xff]  ;;  %v1568_v50 = vld [vmem:[%s8654_s20 + $0x27b8] sm:$0xff]  ;;  %v1565_v19 = vld [vmem:[%s8654_s20 + $0x27a0] sm:$0xff] }
 0x402   : > { %v1576_v13 = vld [vmem:[%s8654_s20 + $0x27f8] sm:$0xff] }
 0x403   : > { %6989 = vmatpush1.bf16.msra.mxu0 %v6988_v32  ;;  %v7582_v32 = vpack.c.bf16 %v1512_v21, %v1504_v20  ;;  %v1573_v20 = vld [vmem:[%s8654_s20 + $0x27e0] sm:$0xff]  ;;  %v1567_v21 = vld [vmem:[%s8654_s20 + $0x27b0] sm:$0xff] }
 0x404   : > { %7565 = vmatpush1.bf16.msra.mxu1 %v7564_v34  ;;  %6991 = vmatprep.subr.bf16.mxu0 %v6990_v17  ;;  %v1511_v34 = vld [vmem:[%s8654_s20 + $0x25f0] sm:$0xff]  ;;  %v1518_v17 = vld [vmem:[%s8654_s20 + $0x2628] sm:$0xff] }
 0x405   : > { %7567 = vmatprep.subr.bf16.mxu1 %v7566_v37  ;;  %v7008_v37 = vpack.c.bf16 %v1509_v28, %v1501_v27  ;;  %v7584_v39 = vpack.c.bf16 %v1511_v34, %v1503_v29  ;;  %v7010_v42 = vpack.c.bf16 %v1526_v35, %v1518_v17  ;;  %v1590_v27 = vld [vmem:[%s8654_s20 + $0x2868] sm:$0xff]  ;;  %v1584_v28 = vld [vmem:[%s8654_s20 + $0x2838] sm:$0xff]  ;;  %v1581_v35 = vld [vmem:[%s8654_s20 + $0x2820] sm:$0xff] }
 0x406   : > { %v1592_v29 = vld [vmem:[%s8654_s20 + $0x2878] sm:$0xff] }
 0x407   : > { %6993 = vmatpush1.bf16.msra.mxu0 %v6992_v44  ;;  %v7586_v44 = vpack.c.bf16 %v1528_v41, %v1520_v15  ;;  %v1589_v15 = vld [vmem:[%s8654_s20 + $0x2860] sm:$0xff]  ;;  %v1583_v41 = vld [vmem:[%s8654_s20 + $0x2830] sm:$0xff] }
 0x408   : > { %7569 = vmatpush1.bf16.msra.mxu1 %v7568_v45  ;;  %6995 = vmatprep.subr.bf16.mxu0 %v6994_v46  ;;  %v1527_v45 = vld [vmem:[%s8654_s20 + $0x2670] sm:$0xff]  ;;  %v1534_v46 = vld [vmem:[%s8654_s20 + $0x26a8] sm:$0xff] }
 0x409   : > { %7571 = vmatprep.subr.bf16.mxu1 %v7570_v51  ;;  %v7012_v51 = vpack.c.bf16 %v1525_v56, %v1517_v43  ;;  %v7588_v54 = vpack.c.bf16 %v1527_v45, %v1519_v52  ;;  %v7014_v25 = vpack.c.bf16 %v1542_v5, %v1534_v46  ;;  %v1606_v43 = vld [vmem:[%s8654_s20 + $0x28e8] sm:$0xff]  ;;  %v1600_v56 = vld [vmem:[%s8654_s20 + $0x28b8] sm:$0xff]  ;;  %v1597_v5 = vld [vmem:[%s8654_s20 + $0x28a0] sm:$0xff] }
 0x40a   : > { %v1608_v52 = vld [vmem:[%s8654_s20 + $0x28f8] sm:$0xff] }
 0x40b   : > { %6997 = vmatpush1.bf16.msra.mxu0 %v6996_v59  ;;  %v7590_v59 = vpack.c.bf16 %v1544_v49, %v1536_v48  ;;  %v1605_v48 = vld [vmem:[%s8654_s20 + $0x28e0] sm:$0xff]  ;;  %v1599_v49 = vld [vmem:[%s8654_s20 + $0x28b0] sm:$0xff] }
 0x40c   : > { %7573 = vmatpush1.bf16.msra.mxu1 %v7572_v60  ;;  %6999 = vmatprep.subr.bf16.mxu0 %v6998_v33  ;;  %v1543_v60 = vld [vmem:[%s8654_s20 + $0x26f0] sm:$0xff]  ;;  %v1550_v33 = vld [vmem:[%s8654_s20 + $0x2728] sm:$0xff] }
 0x40d   : > { %7575 = vmatprep.subr.bf16.mxu1 %v7574_v2  ;;  %v7016_v2 = vpack.c.bf16 %v1541_v30, %v1533_v26  ;;  %v7592_v3 = vpack.c.bf16 %v1543_v60, %v1535_v58  ;;  %v7018_v0 = vpack.c.bf16 %v1558_v61, %v1550_v33  ;;  %v1622_v26 = vld [vmem:[%s8654_s20 + $0x2968] sm:$0xff]  ;;  %v1616_v30 = vld [vmem:[%s8654_s20 + $0x2938] sm:$0xff]  ;;  %v1613_v61 = vld [vmem:[%s8654_s20 + $0x2920] sm:$0xff] }
 0x40e   : > { %v1624_v58 = vld [vmem:[%s8654_s20 + $0x2978] sm:$0xff] }
 0x40f   : > { %7001 = vmatpush1.bf16.msra.mxu0 %v7000_v8  ;;  %v7594_v8 = vpack.c.bf16 %v1560_v1, %v1552_v62  ;;  %v1621_v62 = vld [vmem:[%s8654_s20 + $0x2960] sm:$0xff]  ;;  %v1615_v1 = vld [vmem:[%s8654_s20 + $0x2930] sm:$0xff] }
 0x410   : > { %7577 = vmatpush1.bf16.msra.mxu1 %v7576_v9  ;;  %7003 = vmatprep.subr.bf16.mxu0 %v7002_v10  ;;  %v1559_v9 = vld [vmem:[%s8654_s20 + $0x2770] sm:$0xff]  ;;  %v1566_v10 = vld [vmem:[%s8654_s20 + $0x27a8] sm:$0xff] }
 0x411   : > { %7579 = vmatprep.subr.bf16.mxu1 %v7578_v14  ;;  %v7020_v14 = vpack.c.bf16 %v1557_v40, %v1549_v4  ;;  %v7596_v16 = vpack.c.bf16 %v1559_v9, %v1551_v7  ;;  %v7022_v18 = vpack.c.bf16 %v1574_v11, %v1566_v10  ;;  %v1638_v4 = vld [vmem:[%s8654_s20 + $0x29e8] sm:$0xff]  ;;  %v1640_v40 = vld [vmem:[%s8654_s20 + $0x29f8] sm:$0xff]  ;;  %v7036_v7 = vpack.c.bf16 %v1621_v62, %v1613_v61  ;;  %v1629_v10 = vld [vmem:[%s8654_s20 + $0x29a0] sm:$0xff] }
 0x412   : > { %v1637_v11 = vld [vmem:[%s8654_s20 + $0x29e0] sm:$0xff]  ;;  %v1704_v61 = vld [vmem:[%s8654_s20 + $0x2bf8] sm:$0xff] }
 0x413   : > { %7005 = vmatpush1.bf16.msra.mxu0 %v7004_v22  ;;  %v7598_v22 = vpack.c.bf16 %v1576_v13, %v1568_v50  ;;  %v1631_v50 = vld [vmem:[%s8654_s20 + $0x29b0] sm:$0xff] }
 0x414   : > { %7581 = vmatpush1.bf16.msra.mxu1 %v7580_v23  ;;  %7007 = vmatprep.subr.bf16.mxu0 %v7006_v24  ;;  %v1575_v23 = vld [vmem:[%s8654_s20 + $0x27f0] sm:$0xff]  ;;  %v1582_v24 = vld [vmem:[%s8654_s20 + $0x2828] sm:$0xff] }
 0x415   : > { %7583 = vmatprep.subr.bf16.mxu1 %v7582_v32  ;;  %v7024_v32 = vpack.c.bf16 %v1573_v20, %v1565_v19  ;;  %v7600_v34 = vpack.c.bf16 %v1575_v23, %v1567_v21  ;;  %v7026_v17 = vpack.c.bf16 %v1590_v27, %v1582_v24  ;;  %v1656_v19 = vld [vmem:[%s8654_s20 + $0x2a78] sm:$0xff]  ;;  %v7040_v20 = vpack.c.bf16 %v1637_v11, %v1629_v10  ;;  %v1645_v23 = vld [vmem:[%s8654_s20 + $0x2a20] sm:$0xff]  ;;  %v1647_v27 = vld [vmem:[%s8654_s20 + $0x2a30] sm:$0xff] }
 0x416   : > { %v1653_v24 = vld [vmem:[%s8654_s20 + $0x2a60] sm:$0xff]  ;;  %v1720_v10 = vld [vmem:[%s8654_s20 + $0x2c78] sm:$0xff] }
 0x417   : > { %7009 = vmatpush1.bf16.msra.mxu0 %v7008_v37  ;;  %v7602_v37 = vpack.c.bf16 %v1592_v29, %v1584_v28  ;;  %v1655_v29 = vld [vmem:[%s8654_s20 + $0x2a70] sm:$0xff] }
 0x418   : > { %7585 = vmatpush1.bf16.msra.mxu1 %v7584_v39  ;;  %7011 = vmatprep.subr.bf16.mxu0 %v7010_v42  ;;  %v1591_v39 = vld [vmem:[%s8654_s20 + $0x2870] sm:$0xff]  ;;  %v1598_v42 = vld [vmem:[%s8654_s20 + $0x28a8] sm:$0xff] }
 0x419   : > { %7587 = vmatprep.subr.bf16.mxu1 %v7586_v44  ;;  %v7028_v44 = vpack.c.bf16 %v1589_v15, %v1581_v35  ;;  %v7604_v45 = vpack.c.bf16 %v1591_v39, %v1583_v41  ;;  %v7030_v46 = vpack.c.bf16 %v1606_v43, %v1598_v42  ;;  %v1672_v35 = vld [vmem:[%s8654_s20 + $0x2af8] sm:$0xff]  ;;  %v7044_v15 = vpack.c.bf16 %v1653_v24, %v1645_v23  ;;  %v1661_v39 = vld [vmem:[%s8654_s20 + $0x2aa0] sm:$0xff]  ;;  %v1663_v43 = vld [vmem:[%s8654_s20 + $0x2ab0] sm:$0xff] }
 0x41a   : > { %v7620_v41 = vpack.c.bf16 %v1655_v29, %v1647_v27  ;;  %v1669_v42 = vld [vmem:[%s8654_s20 + $0x2ae0] sm:$0xff]  ;;  %v1736_v23 = vld [vmem:[%s8654_s20 + $0x2cf8] sm:$0xff] }
 0x41b   : > { %7013 = vmatpush1.bf16.msra.mxu0 %v7012_v51  ;;  %v7606_v51 = vpack.c.bf16 %v1608_v52, %v1600_v56  ;;  %v1671_v52 = vld [vmem:[%s8654_s20 + $0x2af0] sm:$0xff]  ;;  %v1725_v29 = vld [vmem:[%s8654_s20 + $0x2ca0] sm:$0xff] }
 0x41c   : > { %7589 = vmatpush1.bf16.msra.mxu1 %v7588_v54  ;;  %7015 = vmatprep.subr.bf16.mxu0 %v7014_v25  ;;  %v1607_v54 = vld [vmem:[%s8654_s20 + $0x28f0] sm:$0xff]  ;;  %v1614_v25 = vld [vmem:[%s8654_s20 + $0x2928] sm:$0xff] }
 0x41d   : > { %7591 = vmatprep.subr.bf16.mxu1 %v7590_v59  ;;  %v7032_v59 = vpack.c.bf16 %v1605_v48, %v1597_v5  ;;  %v7608_v60 = vpack.c.bf16 %v1607_v54, %v1599_v49  ;;  %v7034_v33 = vpack.c.bf16 %v1622_v26, %v1614_v25  ;;  %v1688_v5 = vld [vmem:[%s8654_s20 + $0x2b78] sm:$0xff]  ;;  %v7048_v48 = vpack.c.bf16 %v1669_v42, %v1661_v39  ;;  %v1677_v54 = vld [vmem:[%s8654_s20 + $0x2b20] sm:$0xff]  ;;  %v1679_v26 = vld [vmem:[%s8654_s20 + $0x2b30] sm:$0xff] }
 0x41e   : > { %v7624_v49 = vpack.c.bf16 %v1671_v52, %v1663_v43  ;;  %v1685_v25 = vld [vmem:[%s8654_s20 + $0x2b60] sm:$0xff]  ;;  %v1752_v39 = vld [vmem:[%s8654_s20 + $0x2d78] sm:$0xff] }
 0x41f   : > { %7017 = vmatpush1.bf16.msra.mxu0 %v7016_v2  ;;  %v7610_v2 = vpack.c.bf16 %v1624_v58, %v1616_v30  ;;  %v1687_v58 = vld [vmem:[%s8654_s20 + $0x2b70] sm:$0xff]  ;;  %v7052_v62 = vpack.c.bf16 %v1685_v25, %v1677_v54  ;;  %v1741_v52 = vld [vmem:[%s8654_s20 + $0x2d20] sm:$0xff]  ;;  %v1768_v54 = vld [vmem:[%s8654_s20 + $0x2df8] sm:$0xff] }
 0x420   : > { %7593 = vmatpush1.bf16.msra.mxu1 %v7592_v3  ;;  %7019 = vmatprep.subr.bf16.mxu0 %v7018_v0  ;;  %v1623_v3 = vld [vmem:[%s8654_s20 + $0x2970] sm:$0xff]  ;;  %v1630_v0 = vld [vmem:[%s8654_s20 + $0x29a8] sm:$0xff] }
 0x421   : > { %7595 = vmatprep.subr.bf16.mxu1 %v7594_v8  ;;  %v7612_v8 = vpack.c.bf16 %v1623_v3, %v1615_v1  ;;  %v7038_v9 = vpack.c.bf16 %v1638_v4, %v1630_v0  ;;  %v7628_v1 = vpack.c.bf16 %v1687_v58, %v1679_v26  ;;  %v1693_v3 = vld [vmem:[%s8654_s20 + $0x2ba0] sm:$0xff]  ;;  %v1695_v4 = vld [vmem:[%s8654_s20 + $0x2bb0] sm:$0xff] }
 0x422   : > { %v1701_v0 = vld [vmem:[%s8654_s20 + $0x2be0] sm:$0xff] }
 0x423   : > { %7021 = vmatpush1.bf16.msra.mxu0 %v7020_v14  ;;  %v1639_v14 = vld [vmem:[%s8654_s20 + $0x29f0] sm:$0xff]  ;;  %v7056_v11 = vpack.c.bf16 %v1701_v0, %v1693_v3  ;;  %v1757_v58 = vld [vmem:[%s8654_s20 + $0x2da0] sm:$0xff]  ;;  %v1784_v3 = vld [vmem:[%s8654_s20 + $0x2e78] sm:$0xff] }
 0x424   : > { %7597 = vmatpush1.bf16.msra.mxu1 %v7596_v16  ;;  %7023 = vmatprep.subr.bf16.mxu0 %v7022_v18  ;;  %v1646_v16 = vld [vmem:[%s8654_s20 + $0x2a28] sm:$0xff]  ;;  %v1648_v18 = vld [vmem:[%s8654_s20 + $0x2a38] sm:$0xff]  ;;  %v7616_v21 = vpack.c.bf16 %v1639_v14, %v1631_v50  ;;  %v1709_v14 = vld [vmem:[%s8654_s20 + $0x2c20] sm:$0xff] }
 0x425   : > { %7599 = vmatprep.subr.bf16.mxu1 %v7598_v22  ;;  %v7618_v28 = vpack.c.bf16 %v1656_v19, %v1648_v18  ;;  %v1719_v19 = vld [vmem:[%s8654_s20 + $0x2c70] sm:$0xff] }
 0x427   : > { %7025 = vmatpush1.bf16.msra.mxu0 %v7024_v32  ;;  %v1662_v32 = vld [vmem:[%s8654_s20 + $0x2aa8] sm:$0xff] }
 0x428   : > { %7601 = vmatpush1.bf16.msra.mxu1 %v7600_v34  ;;  %7027 = vmatprep.subr.bf16.mxu0 %v7026_v17  ;;  %v1670_v34 = vld [vmem:[%s8654_s20 + $0x2ae8] sm:$0xff]  ;;  %v1664_v17 = vld [vmem:[%s8654_s20 + $0x2ab8] sm:$0xff] }
 0x429   : > { %7603 = vmatprep.subr.bf16.mxu1 %v7602_v37  ;;  %v7046_v37 = vpack.c.bf16 %v1670_v34, %v1662_v32  ;;  %v7622_v56 = vpack.c.bf16 %v1672_v35, %v1664_v17  ;;  %v1733_v32 = vld [vmem:[%s8654_s20 + $0x2ce0] sm:$0xff]  ;;  %v1727_v34 = vld [vmem:[%s8654_s20 + $0x2cb0] sm:$0xff] }
 0x42a   : > { %4327 = vmatmul.mubr.f32.vlgmr.msra.gmra.mrb[2].mxu0 %v9262_v53  ;;  %v1735_v35 = vld [vmem:[%s8654_s20 + $0x2cf0] sm:$0xff]  ;;  %v7064_v42 = vpack.c.bf16 %v1733_v32, %v1725_v29  ;;  %v1816_v29 = vld [vmem:[%s8654_s20 + $0x2f78] sm:$0xff] }
 0x42b   : > { %7029 = vmatpush1.bf16.msra.mxu0 %v7028_v44  ;;  %4966 = vmatmul.mubr.f32.vlgmr.msra.gmra.mrb[2].mxu1 %v9262_v53  ;;  %v1632_v53 = vld [vmem:[%s8654_s20 + $0x29b8] sm:$0xff]  ;;  %v1678_v44 = vld [vmem:[%s8654_s20 + $0x2b28] sm:$0xff]  ;;  %v7640_v43 = vpack.c.bf16 %v1735_v35, %v1727_v34  ;;  %v1805_v35 = vld [vmem:[%s8654_s20 + $0x2f20] sm:$0xff] }
 0x42c   : > { %7605 = vmatpush1.bf16.msra.mxu1 %v7604_v45  ;;  %7031 = vmatprep.subr.bf16.mxu0 %v7030_v46  ;;  %v7614_v13 = vpack.c.bf16 %v1640_v40, %v1632_v53  ;;  %v1686_v45 = vld [vmem:[%s8654_s20 + $0x2b68] sm:$0xff]  ;;  %v1680_v46 = vld [vmem:[%s8654_s20 + $0x2b38] sm:$0xff]  ;;  %v1703_v40 = vld [vmem:[%s8654_s20 + $0x2bf0] sm:$0xff] }
 0x42d   : > { %7607 = vmatprep.subr.bf16.mxu1 %v7606_v51  ;;  %4397 = vmatprep.mubr.f32.mxu0 %v9415_v55  ;;  %v7050_v51 = vpack.c.bf16 %v1686_v45, %v1678_v44  ;;  %v7626_v30 = vpack.c.bf16 %v1688_v5, %v1680_v46  ;;  %v7632_v50 = vpack.c.bf16 %v1703_v40, %v1695_v4  ;;  %v1749_v44 = vld [vmem:[%s8654_s20 + $0x2d60] sm:$0xff]  ;;  %v1743_v45 = vld [vmem:[%s8654_s20 + $0x2d30] sm:$0xff] }
 0x42e   : > { %5036 = vmatprep.mubr.f32.mxu1 %v9415_v55  ;;  %v1654_v55 = vld [vmem:[%s8654_s20 + $0x2a68] sm:$0xff]  ;;  %v1751_v5 = vld [vmem:[%s8654_s20 + $0x2d70] sm:$0xff]  ;;  %v7068_v25 = vpack.c.bf16 %v1749_v44, %v1741_v52  ;;  %v1773_v40 = vld [vmem:[%s8654_s20 + $0x2e20] sm:$0xff] }
 0x42f   : > { %7033 = vmatpush1.bf16.msra.mxu0 %v7032_v59  ;;  %v7042_v22 = vpack.c.bf16 %v1654_v55, %v1646_v16  ;;  %v1694_v59 = vld [vmem:[%s8654_s20 + $0x2ba8] sm:$0xff]  ;;  %v1717_v16 = vld [vmem:[%s8654_s20 + $0x2c60] sm:$0xff]  ;;  %v1711_v55 = vld [vmem:[%s8654_s20 + $0x2c30] sm:$0xff]  ;;  %v7644_v26 = vpack.c.bf16 %v1751_v5, %v1743_v45 }
 0x430   : > { %7609 = vmatpush1.bf16.msra.mxu1 %v7608_v60  ;;  %7035 = vmatprep.subr.bf16.mxu0 %v7034_v33  ;;  %v1702_v60 = vld [vmem:[%s8654_s20 + $0x2be8] sm:$0xff]  ;;  %v1696_v33 = vld [vmem:[%s8654_s20 + $0x2bb8] sm:$0xff]  ;;  %v7060_v24 = vpack.c.bf16 %v1717_v16, %v1709_v14  ;;  %v7636_v27 = vpack.c.bf16 %v1719_v19, %v1711_v55  ;;  %v1789_v19 = vld [vmem:[%s8654_s20 + $0x2ea0] sm:$0xff] }
 0x431   : > { %7611 = vmatprep.subr.bf16.mxu1 %v7610_v2  ;;  %v7054_v2 = vpack.c.bf16 %v1702_v60, %v1694_v59  ;;  %v7630_v53 = vpack.c.bf16 %v1704_v61, %v1696_v33  ;;  %v1765_v59 = vld [vmem:[%s8654_s20 + $0x2de0] sm:$0xff]  ;;  %v1759_v60 = vld [vmem:[%s8654_s20 + $0x2db0] sm:$0xff]  ;;  %v1800_v14 = vld [vmem:[%s8654_s20 + $0x2ef8] sm:$0xff] }
 0x432   : > { %v1767_v61 = vld [vmem:[%s8654_s20 + $0x2df0] sm:$0xff]  ;;  %v7072_v0 = vpack.c.bf16 %v1765_v59, %v1757_v58  ;;  %v1832_v52 = vld [vmem:[%s8654_s20 + $0x2ff8] sm:$0xff]  ;;  %v1821_v5 = vld [vmem:[%s8654_s20 + $0x2fa0] sm:$0xff] }
 0x433   : > { %7037 = vmatpush1.bf16.msra.mxu0 %v7036_v7  ;;  %v1710_v7 = vld [vmem:[%s8654_s20 + $0x2c28] sm:$0xff]  ;;  %v7648_v4 = vpack.c.bf16 %v1767_v61, %v1759_v60  ;;  %v1848_v58 = vld [vmem:[%s8654_s20 + $0x3078] sm:$0xff]  ;;  %v1837_v61 = vld [vmem:[%s8654_s20 + $0x3020] sm:$0xff] }
 0x434   : > { %7613 = vmatpush1.bf16.msra.mxu1 %v7612_v8  ;;  %7039 = vmatprep.subr.bf16.mxu0 %v7038_v9  ;;  %v1718_v8 = vld [vmem:[%s8654_s20 + $0x2c68] sm:$0xff]  ;;  %v1712_v9 = vld [vmem:[%s8654_s20 + $0x2c38] sm:$0xff] }
 0x435   : > { %7615 = vmatprep.subr.bf16.mxu1 %v7614_v13  ;;  %v7058_v13 = vpack.c.bf16 %v1718_v8, %v1710_v7  ;;  %v7634_v18 = vpack.c.bf16 %v1720_v10, %v1712_v9  ;;  %v1781_v7 = vld [vmem:[%s8654_s20 + $0x2e60] sm:$0xff]  ;;  %v1775_v8 = vld [vmem:[%s8654_s20 + $0x2e30] sm:$0xff] }
 0x436   : > { %v1783_v10 = vld [vmem:[%s8654_s20 + $0x2e70] sm:$0xff]  ;;  %v7076_v16 = vpack.c.bf16 %v1781_v7, %v1773_v40  ;;  %v1864_v40 = vld [vmem:[%s8654_s20 + $0x30f8] sm:$0xff] }
 0x437   : > { %7041 = vmatpush1.bf16.msra.mxu0 %v7040_v20  ;;  %v1726_v20 = vld [vmem:[%s8654_s20 + $0x2ca8] sm:$0xff]  ;;  %v7652_v55 = vpack.c.bf16 %v1783_v10, %v1775_v8  ;;  %v1853_v10 = vld [vmem:[%s8654_s20 + $0x30a0] sm:$0xff] }
 0x438   : > { %7617 = vmatpush1.bf16.msra.mxu1 %v7616_v21  ;;  %7043 = vmatprep.subr.bf16.mxu0 %v7042_v22  ;;  %v1734_v21 = vld [vmem:[%s8654_s20 + $0x2ce8] sm:$0xff]  ;;  %v1728_v22 = vld [vmem:[%s8654_s20 + $0x2cb8] sm:$0xff] }
 0x439   : > { %7619 = vmatprep.subr.bf16.mxu1 %v7618_v28  ;;  %v7062_v28 = vpack.c.bf16 %v1734_v21, %v1726_v20  ;;  %v7638_v17 = vpack.c.bf16 %v1736_v23, %v1728_v22  ;;  %v1797_v20 = vld [vmem:[%s8654_s20 + $0x2ee0] sm:$0xff]  ;;  %v1791_v21 = vld [vmem:[%s8654_s20 + $0x2eb0] sm:$0xff] }
 0x43a   : > { %v1799_v23 = vld [vmem:[%s8654_s20 + $0x2ef0] sm:$0xff]  ;;  %v7080_v32 = vpack.c.bf16 %v1797_v20, %v1789_v19  ;;  %v1880_v19 = vld [vmem:[%s8654_s20 + $0x3178] sm:$0xff] }
 0x43b   : > { %7045 = vmatpush1.bf16.msra.mxu0 %v7044_v15  ;;  %v1742_v15 = vld [vmem:[%s8654_s20 + $0x2d28] sm:$0xff]  ;;  %v7656_v34 = vpack.c.bf16 %v1799_v23, %v1791_v21  ;;  %v1869_v23 = vld [vmem:[%s8654_s20 + $0x3120] sm:$0xff] }
 0x43c   : > { %7621 = vmatpush1.bf16.msra.mxu1 %v7620_v41  ;;  %7047 = vmatprep.subr.bf16.mxu0 %v7046_v37  ;;  %v1750_v41 = vld [vmem:[%s8654_s20 + $0x2d68] sm:$0xff]  ;;  %v1744_v37 = vld [vmem:[%s8654_s20 + $0x2d38] sm:$0xff] }
 0x43d   : > { %7623 = vmatprep.subr.bf16.mxu1 %v7622_v56  ;;  %v7066_v56 = vpack.c.bf16 %v1750_v41, %v1742_v15  ;;  %v7642_v46 = vpack.c.bf16 %v1752_v39, %v1744_v37  ;;  %v1813_v15 = vld [vmem:[%s8654_s20 + $0x2f60] sm:$0xff]  ;;  %v1807_v41 = vld [vmem:[%s8654_s20 + $0x2f30] sm:$0xff] }
 0x43e   : > { %v1815_v39 = vld [vmem:[%s8654_s20 + $0x2f70] sm:$0xff]  ;;  %v7084_v44 = vpack.c.bf16 %v1813_v15, %v1805_v35 }
 0x43f   : > { %7049 = vmatpush1.bf16.msra.mxu0 %v7048_v48  ;;  %v1758_v48 = vld [vmem:[%s8654_s20 + $0x2da8] sm:$0xff]  ;;  %v7660_v45 = vpack.c.bf16 %v1815_v39, %v1807_v41  ;;  %v1893_v39 = vld [vmem:[%s8654_s20 + $0x31e0] sm:$0xff] }
 0x440   : > { %7625 = vmatpush1.bf16.msra.mxu1 %v7624_v49  ;;  %7051 = vmatprep.subr.bf16.mxu0 %v7050_v51  ;;  %v1766_v49 = vld [vmem:[%s8654_s20 + $0x2de8] sm:$0xff]  ;;  %v1760_v51 = vld [vmem:[%s8654_s20 + $0x2db8] sm:$0xff] }
 0x441   : > { %7627 = vmatprep.subr.bf16.mxu1 %v7626_v30  ;;  %v7070_v30 = vpack.c.bf16 %v1766_v49, %v1758_v48  ;;  %v7646_v33 = vpack.c.bf16 %v1768_v54, %v1760_v51  ;;  %v1829_v48 = vld [vmem:[%s8654_s20 + $0x2fe0] sm:$0xff]  ;;  %v1823_v49 = vld [vmem:[%s8654_s20 + $0x2fb0] sm:$0xff] }
 0x442   : > { %v1831_v54 = vld [vmem:[%s8654_s20 + $0x2ff0] sm:$0xff]  ;;  %v7088_v59 = vpack.c.bf16 %v1829_v48, %v1821_v5 }
 0x443   : > { %7053 = vmatpush1.bf16.msra.mxu0 %v7052_v62  ;;  %v1774_v62 = vld [vmem:[%s8654_s20 + $0x2e28] sm:$0xff]  ;;  %v7664_v60 = vpack.c.bf16 %v1831_v54, %v1823_v49  ;;  %v1901_v49 = vld [vmem:[%s8654_s20 + $0x3220] sm:$0xff]  ;;  %v1903_v54 = vld [vmem:[%s8654_s20 + $0x3230] sm:$0xff] }
 0x444   : > { %7629 = vmatpush1.bf16.msra.mxu1 %v7628_v1  ;;  %7055 = vmatprep.subr.bf16.mxu0 %v7054_v2  ;;  %v1782_v1 = vld [vmem:[%s8654_s20 + $0x2e68] sm:$0xff]  ;;  %v1776_v2 = vld [vmem:[%s8654_s20 + $0x2e38] sm:$0xff] }
 0x445   : > { %7631 = vmatprep.subr.bf16.mxu1 %v7630_v53  ;;  %v7074_v53 = vpack.c.bf16 %v1782_v1, %v1774_v62  ;;  %v7650_v9 = vpack.c.bf16 %v1784_v3, %v1776_v2  ;;  %v1845_v62 = vld [vmem:[%s8654_s20 + $0x3060] sm:$0xff]  ;;  %v1839_v1 = vld [vmem:[%s8654_s20 + $0x3030] sm:$0xff] }
 0x446   : > { %v1847_v3 = vld [vmem:[%s8654_s20 + $0x3070] sm:$0xff]  ;;  %v7092_v7 = vpack.c.bf16 %v1845_v62, %v1837_v61 }
 0x447   : > { %7057 = vmatpush1.bf16.msra.mxu0 %v7056_v11  ;;  %v1790_v11 = vld [vmem:[%s8654_s20 + $0x2ea8] sm:$0xff]  ;;  %v7668_v8 = vpack.c.bf16 %v1847_v3, %v1839_v1  ;;  %v1917_v1 = vld [vmem:[%s8654_s20 + $0x32a0] sm:$0xff]  ;;  %v1919_v3 = vld [vmem:[%s8654_s20 + $0x32b0] sm:$0xff] }
 0x448   : > { %7633 = vmatpush1.bf16.msra.mxu1 %v7632_v50  ;;  %7059 = vmatprep.subr.bf16.mxu0 %v7058_v13  ;;  %v1798_v50 = vld [vmem:[%s8654_s20 + $0x2ee8] sm:$0xff]  ;;  %v1792_v13 = vld [vmem:[%s8654_s20 + $0x2eb8] sm:$0xff] }
 0x449   : > { %7635 = vmatprep.subr.bf16.mxu1 %v7634_v18  ;;  %v7078_v18 = vpack.c.bf16 %v1798_v50, %v1790_v11  ;;  %v7654_v22 = vpack.c.bf16 %v1800_v14, %v1792_v13  ;;  %v1861_v11 = vld [vmem:[%s8654_s20 + $0x30e0] sm:$0xff]  ;;  %v1855_v50 = vld [vmem:[%s8654_s20 + $0x30b0] sm:$0xff] }
 0x44a   : > { %v1863_v14 = vld [vmem:[%s8654_s20 + $0x30f0] sm:$0xff]  ;;  %v7096_v20 = vpack.c.bf16 %v1861_v11, %v1853_v10 }
 0x44b   : > { %7061 = vmatpush1.bf16.msra.mxu0 %v7060_v24  ;;  %v1806_v24 = vld [vmem:[%s8654_s20 + $0x2f28] sm:$0xff]  ;;  %v7672_v21 = vpack.c.bf16 %v1863_v14, %v1855_v50  ;;  %v1933_v50 = vld [vmem:[%s8654_s20 + $0x3320] sm:$0xff]  ;;  %v1935_v14 = vld [vmem:[%s8654_s20 + $0x3330] sm:$0xff] }
 0x44c   : > { %7637 = vmatpush1.bf16.msra.mxu1 %v7636_v27  ;;  %7063 = vmatprep.subr.bf16.mxu0 %v7062_v28  ;;  %v1814_v27 = vld [vmem:[%s8654_s20 + $0x2f68] sm:$0xff]  ;;  %v1808_v28 = vld [vmem:[%s8654_s20 + $0x2f38] sm:$0xff] }
 0x44d   : > { %7639 = vmatprep.subr.bf16.mxu1 %v7638_v17  ;;  %v7082_v17 = vpack.c.bf16 %v1814_v27, %v1806_v24  ;;  %v7658_v37 = vpack.c.bf16 %v1816_v29, %v1808_v28  ;;  %v1877_v24 = vld [vmem:[%s8654_s20 + $0x3160] sm:$0xff]  ;;  %v1871_v27 = vld [vmem:[%s8654_s20 + $0x3130] sm:$0xff] }
 0x44e   : > { %v1879_v29 = vld [vmem:[%s8654_s20 + $0x3170] sm:$0xff]  ;;  %v7100_v35 = vpack.c.bf16 %v1877_v24, %v1869_v23 }
 0x44f   : > { %7065 = vmatpush1.bf16.msra.mxu0 %v7064_v42  ;;  %v1822_v42 = vld [vmem:[%s8654_s20 + $0x2fa8] sm:$0xff]  ;;  %v7676_v15 = vpack.c.bf16 %v1879_v29, %v1871_v27  ;;  %v1949_v27 = vld [vmem:[%s8654_s20 + $0x33a0] sm:$0xff]  ;;  %v1951_v29 = vld [vmem:[%s8654_s20 + $0x33b0] sm:$0xff] }
 0x450   : > { %7641 = vmatpush1.bf16.msra.mxu1 %v7640_v43  ;;  %7067 = vmatprep.subr.bf16.mxu0 %v7066_v56  ;;  %v1830_v43 = vld [vmem:[%s8654_s20 + $0x2fe8] sm:$0xff]  ;;  %v1824_v56 = vld [vmem:[%s8654_s20 + $0x2fb8] sm:$0xff] }
 0x451   : > { %7643 = vmatprep.subr.bf16.mxu1 %v7642_v46  ;;  %v7086_v46 = vpack.c.bf16 %v1830_v43, %v1822_v42  ;;  %v7662_v51 = vpack.c.bf16 %v1832_v52, %v1824_v56  ;;  %v1887_v42 = vld [vmem:[%s8654_s20 + $0x31b0] sm:$0xff]  ;;  %v1902_v52 = vld [vmem:[%s8654_s20 + $0x3228] sm:$0xff] }
 0x452   : > { %v1895_v56 = vld [vmem:[%s8654_s20 + $0x31f0] sm:$0xff] }
 0x453   : > { %7069 = vmatpush1.bf16.msra.mxu0 %v7068_v25  ;;  %v1838_v25 = vld [vmem:[%s8654_s20 + $0x3028] sm:$0xff]  ;;  %v7680_v5 = vpack.c.bf16 %v1895_v56, %v1887_v42  ;;  %v1965_v42 = vld [vmem:[%s8654_s20 + $0x3420] sm:$0xff]  ;;  %v1967_v56 = vld [vmem:[%s8654_s20 + $0x3430] sm:$0xff] }
 0x454   : > { %7645 = vmatpush1.bf16.msra.mxu1 %v7644_v26  ;;  %7071 = vmatprep.subr.bf16.mxu0 %v7070_v30  ;;  %v1846_v26 = vld [vmem:[%s8654_s20 + $0x3068] sm:$0xff]  ;;  %v1840_v30 = vld [vmem:[%s8654_s20 + $0x3038] sm:$0xff] }
 0x455   : > { %7647 = vmatprep.subr.bf16.mxu1 %v7646_v33  ;;  %v7090_v33 = vpack.c.bf16 %v1846_v26, %v1838_v25  ;;  %v7666_v2 = vpack.c.bf16 %v1848_v58, %v1840_v30  ;;  %v1911_v26 = vld [vmem:[%s8654_s20 + $0x3270] sm:$0xff]  ;;  %v1918_v30 = vld [vmem:[%s8654_s20 + $0x32a8] sm:$0xff] }
 0x456   : > { %v1926_v58 = vld [vmem:[%s8654_s20 + $0x32e8] sm:$0xff]  ;;  %v7684_v61 = vpack.c.bf16 %v1911_v26, %v1903_v54  ;;  %v1981_v54 = vld [vmem:[%s8654_s20 + $0x34a0] sm:$0xff]  ;;  %v1983_v26 = vld [vmem:[%s8654_s20 + $0x34b0] sm:$0xff] }
 0x457   : > { %7073 = vmatpush1.bf16.msra.mxu0 %v7072_v0  ;;  %v1854_v0 = vld [vmem:[%s8654_s20 + $0x30a8] sm:$0xff]  ;;  %v7110_v62 = vpack.c.bf16 %v1926_v58, %v1918_v30  ;;  %v1991_v58 = vld [vmem:[%s8654_s20 + $0x34f0] sm:$0xff] }
 0x458   : > { %7649 = vmatpush1.bf16.msra.mxu1 %v7648_v4  ;;  %7075 = vmatprep.subr.bf16.mxu0 %v7074_v53  ;;  %v1862_v4 = vld [vmem:[%s8654_s20 + $0x30e8] sm:$0xff]  ;;  %v1856_v53 = vld [vmem:[%s8654_s20 + $0x30b8] sm:$0xff] }
 0x459   : > { %7651 = vmatprep.subr.bf16.mxu1 %v7650_v9  ;;  %v7094_v9 = vpack.c.bf16 %v1862_v4, %v1854_v0  ;;  %v7670_v13 = vpack.c.bf16 %v1864_v40, %v1856_v53  ;;  %v1927_v4 = vld [vmem:[%s8654_s20 + $0x32f0] sm:$0xff]  ;;  %v1934_v53 = vld [vmem:[%s8654_s20 + $0x3328] sm:$0xff] }
 0x45a   : > { %v1942_v40 = vld [vmem:[%s8654_s20 + $0x3368] sm:$0xff]  ;;  %v7688_v10 = vpack.c.bf16 %v1927_v4, %v1919_v3  ;;  %v1997_v3 = vld [vmem:[%s8654_s20 + $0x3520] sm:$0xff]  ;;  %v1999_v4 = vld [vmem:[%s8654_s20 + $0x3530] sm:$0xff] }
 0x45b   : > { %7077 = vmatpush1.bf16.msra.mxu0 %v7076_v16  ;;  %v1870_v16 = vld [vmem:[%s8654_s20 + $0x3128] sm:$0xff]  ;;  %v7114_v11 = vpack.c.bf16 %v1942_v40, %v1934_v53  ;;  %v2007_v40 = vld [vmem:[%s8654_s20 + $0x3570] sm:$0xff] }
 0x45c   : > { %7653 = vmatpush1.bf16.msra.mxu1 %v7652_v55  ;;  %7079 = vmatprep.subr.bf16.mxu0 %v7078_v18  ;;  %v1878_v55 = vld [vmem:[%s8654_s20 + $0x3168] sm:$0xff]  ;;  %v1872_v18 = vld [vmem:[%s8654_s20 + $0x3138] sm:$0xff] }
 0x45d   : > { %7655 = vmatprep.subr.bf16.mxu1 %v7654_v22  ;;  %v7098_v22 = vpack.c.bf16 %v1878_v55, %v1870_v16  ;;  %v7674_v28 = vpack.c.bf16 %v1880_v19, %v1872_v18  ;;  %v1943_v55 = vld [vmem:[%s8654_s20 + $0x3370] sm:$0xff]  ;;  %v1950_v18 = vld [vmem:[%s8654_s20 + $0x33a8] sm:$0xff] }
 0x45e   : > { %v1958_v19 = vld [vmem:[%s8654_s20 + $0x33e8] sm:$0xff]  ;;  %v7692_v23 = vpack.c.bf16 %v1943_v55, %v1935_v14  ;;  %v2013_v14 = vld [vmem:[%s8654_s20 + $0x35a0] sm:$0xff]  ;;  %v2015_v55 = vld [vmem:[%s8654_s20 + $0x35b0] sm:$0xff] }
 0x45f   : > { %7081 = vmatpush1.bf16.msra.mxu0 %v7080_v32  ;;  %v1886_v32 = vld [vmem:[%s8654_s20 + $0x31a8] sm:$0xff]  ;;  %v7118_v24 = vpack.c.bf16 %v1958_v19, %v1950_v18  ;;  %v2023_v19 = vld [vmem:[%s8654_s20 + $0x35f0] sm:$0xff] }
 0x460   : > { %7657 = vmatpush1.bf16.msra.mxu1 %v7656_v34  ;;  %7083 = vmatprep.subr.bf16.mxu0 %v7082_v17  ;;  %v1894_v34 = vld [vmem:[%s8654_s20 + $0x31e8] sm:$0xff]  ;;  %v1896_v17 = vld [vmem:[%s8654_s20 + $0x31f8] sm:$0xff] }
 0x461   : > { %7659 = vmatprep.subr.bf16.mxu1 %v7658_v37  ;;  %v7102_v41 = vpack.c.bf16 %v1894_v34, %v1886_v32  ;;  %v1885_v37 = vld [vmem:[%s8654_s20 + $0x31a0] sm:$0xff]  ;;  %v1959_v34 = vld [vmem:[%s8654_s20 + $0x33f0] sm:$0xff] }
 0x463   : > { %7085 = vmatpush1.bf16.msra.mxu0 %v7084_v44  ;;  %v1904_v44 = vld [vmem:[%s8654_s20 + $0x3238] sm:$0xff] }
 0x464   : > { %7661 = vmatpush1.bf16.msra.mxu1 %v7660_v45  ;;  %7087 = vmatprep.subr.bf16.mxu0 %v7086_v46  ;;  %v1912_v45 = vld [vmem:[%s8654_s20 + $0x3278] sm:$0xff]  ;;  %v7104_v46 = vpack.c.bf16 %v1893_v39, %v1885_v37  ;;  %v7696_v37 = vpack.c.bf16 %v1959_v34, %v1951_v29  ;;  %v2029_v29 = vld [vmem:[%s8654_s20 + $0x3620] sm:$0xff]  ;;  %v2031_v34 = vld [vmem:[%s8654_s20 + $0x3630] sm:$0xff] }
 0x465   : > { %7663 = vmatprep.subr.bf16.mxu1 %v7662_v51  ;;  %v1909_v51 = vld [vmem:[%s8654_s20 + $0x3260] sm:$0xff]  ;;  %v7682_v25 = vpack.c.bf16 %v1912_v45, %v1904_v44  ;;  %v1982_v44 = vld [vmem:[%s8654_s20 + $0x34a8] sm:$0xff] }
 0x466   : > { %v1990_v45 = vld [vmem:[%s8654_s20 + $0x34e8] sm:$0xff] }
 0x467   : > { %7089 = vmatpush1.bf16.msra.mxu0 %v7088_v59  ;;  %v1920_v59 = vld [vmem:[%s8654_s20 + $0x32b8] sm:$0xff] }
 0x468   : > { %7665 = vmatpush1.bf16.msra.mxu1 %v7664_v60  ;;  %7091 = vmatprep.subr.bf16.mxu0 %v7090_v33  ;;  %v1928_v60 = vld [vmem:[%s8654_s20 + $0x32f8] sm:$0xff]  ;;  %v7108_v33 = vpack.c.bf16 %v1909_v51, %v1901_v49  ;;  %v7126_v51 = vpack.c.bf16 %v1990_v45, %v1982_v44  ;;  %v2055_v45 = vld [vmem:[%s8654_s20 + $0x36f0] sm:$0xff] }
 0x469   : > { %7667 = vmatprep.subr.bf16.mxu1 %v7666_v2  ;;  %v1925_v2 = vld [vmem:[%s8654_s20 + $0x32e0] sm:$0xff]  ;;  %v7686_v0 = vpack.c.bf16 %v1928_v60, %v1920_v59  ;;  %v1998_v59 = vld [vmem:[%s8654_s20 + $0x3528] sm:$0xff] }
 0x46a   : > { %4398 = vmatmul.mubr.f32.vlgmr.msra.gmra.mrb[2].mxu0 %v9403_v38  ;;  %v2006_v60 = vld [vmem:[%s8654_s20 + $0x3568] sm:$0xff] }
 0x46b   : > { %7093 = vmatpush1.bf16.msra.mxu0 %v7092_v7  ;;  %5037 = vmatmul.mubr.f32.vlgmr.msra.gmra.mrb[2].mxu1 %v9403_v38  ;;  %v1888_v38 = vld [vmem:[%s8654_s20 + $0x31b8] sm:$0xff] }
 0x46c   : > { %7669 = vmatpush1.bf16.msra.mxu1 %v7668_v8  ;;  %7095 = vmatprep.subr.bf16.mxu0 %v7094_v9  ;;  %v7678_v43 = vpack.c.bf16 %v1896_v17, %v1888_v38  ;;  %v1936_v7 = vld [vmem:[%s8654_s20 + $0x3338] sm:$0xff]  ;;  %v7112_v9 = vpack.c.bf16 %v1925_v2, %v1917_v1  ;;  %v1966_v38 = vld [vmem:[%s8654_s20 + $0x3428] sm:$0xff]  ;;  %v7704_v1 = vpack.c.bf16 %v1991_v58, %v1983_v26  ;;  %v2061_v26 = vld [vmem:[%s8654_s20 + $0x3720] sm:$0xff] }
 0x46d   : > { %7671 = vmatprep.subr.bf16.mxu1 %v7670_v13  ;;  %4468 = vmatprep.mubr.f32.mxu0 %v9558_v47  ;;  %v1944_v8 = vld [vmem:[%s8654_s20 + $0x3378] sm:$0xff]  ;;  %v1941_v13 = vld [vmem:[%s8654_s20 + $0x3360] sm:$0xff]  ;;  %v1974_v17 = vld [vmem:[%s8654_s20 + $0x3468] sm:$0xff]  ;;  %v7130_v2 = vpack.c.bf16 %v2006_v60, %v1998_v59 }
 0x46e   : > { %5107 = vmatprep.mubr.f32.mxu1 %v9558_v47  ;;  %v1910_v47 = vld [vmem:[%s8654_s20 + $0x3268] sm:$0xff]  ;;  %v7690_v16 = vpack.c.bf16 %v1944_v8, %v1936_v7  ;;  %v7122_v39 = vpack.c.bf16 %v1974_v17, %v1966_v38  ;;  %v2039_v17 = vld [vmem:[%s8654_s20 + $0x3670] sm:$0xff] }
 0x46f   : > { %7097 = vmatpush1.bf16.msra.mxu0 %v7096_v20  ;;  %v7106_v48 = vpack.c.bf16 %v1910_v47, %v1902_v52  ;;  %v1952_v20 = vld [vmem:[%s8654_s20 + $0x33b8] sm:$0xff]  ;;  %v1975_v47 = vld [vmem:[%s8654_s20 + $0x3470] sm:$0xff]  ;;  %v2014_v7 = vld [vmem:[%s8654_s20 + $0x35a8] sm:$0xff] }
 0x470   : > { %7673 = vmatpush1.bf16.msra.mxu1 %v7672_v21  ;;  %7099 = vmatprep.subr.bf16.mxu0 %v7098_v22  ;;  %v1960_v21 = vld [vmem:[%s8654_s20 + $0x33f8] sm:$0xff]  ;;  %v7116_v22 = vpack.c.bf16 %v1941_v13, %v1933_v50  ;;  %v7700_v49 = vpack.c.bf16 %v1975_v47, %v1967_v56  ;;  %v2022_v8 = vld [vmem:[%s8654_s20 + $0x35e8] sm:$0xff]  ;;  %v7708_v50 = vpack.c.bf16 %v2007_v40, %v1999_v4  ;;  %v2045_v56 = vld [vmem:[%s8654_s20 + $0x36a0] sm:$0xff] }
 0x471   : > { %7675 = vmatprep.subr.bf16.mxu1 %v7674_v28  ;;  %v1957_v28 = vld [vmem:[%s8654_s20 + $0x33e0] sm:$0xff]  ;;  %v7694_v32 = vpack.c.bf16 %v1960_v21, %v1952_v20  ;;  %v7134_v13 = vpack.c.bf16 %v2022_v8, %v2014_v7  ;;  %v2030_v20 = vld [vmem:[%s8654_s20 + $0x3628] sm:$0xff]  ;;  %v2047_v47 = vld [vmem:[%s8654_s20 + $0x36b0] sm:$0xff] }
 0x472   : > { %v2038_v21 = vld [vmem:[%s8654_s20 + $0x3668] sm:$0xff]  ;;  %v2063_v58 = vld [vmem:[%s8654_s20 + $0x3730] sm:$0xff]  ;;  %v2077_v4 = vld [vmem:[%s8654_s20 + $0x37a0] sm:$0xff] }
 0x473   : > { %7101 = vmatpush1.bf16.msra.mxu0 %v7100_v35  ;;  %v1968_v35 = vld [vmem:[%s8654_s20 + $0x3438] sm:$0xff]  ;;  %v2071_v60 = vld [vmem:[%s8654_s20 + $0x3770] sm:$0xff] }
 0x474   : > { %7677 = vmatpush1.bf16.msra.mxu1 %v7676_v15  ;;  %7103 = vmatprep.subr.bf16.mxu0 %v7102_v41  ;;  %v1976_v15 = vld [vmem:[%s8654_s20 + $0x3478] sm:$0xff]  ;;  %v7120_v41 = vpack.c.bf16 %v1957_v28, %v1949_v27  ;;  %v7712_v27 = vpack.c.bf16 %v2023_v19, %v2015_v55  ;;  %v7138_v28 = vpack.c.bf16 %v2038_v21, %v2030_v20  ;;  %v2079_v40 = vld [vmem:[%s8654_s20 + $0x37b0] sm:$0xff]  ;;  %v2093_v55 = vld [vmem:[%s8654_s20 + $0x3820] sm:$0xff] }
 0x475   : > { %7679 = vmatprep.subr.bf16.mxu1 %v7678_v43  ;;  %v1973_v43 = vld [vmem:[%s8654_s20 + $0x3460] sm:$0xff]  ;;  %v7698_v52 = vpack.c.bf16 %v1976_v15, %v1968_v35  ;;  %v2046_v35 = vld [vmem:[%s8654_s20 + $0x36a8] sm:$0xff]  ;;  %v2087_v8 = vld [vmem:[%s8654_s20 + $0x37f0] sm:$0xff] }
 0x476   : > { %v2054_v15 = vld [vmem:[%s8654_s20 + $0x36e8] sm:$0xff]  ;;  %v2095_v19 = vld [vmem:[%s8654_s20 + $0x3830] sm:$0xff] }
 0x477   : > { %7105 = vmatpush1.bf16.msra.mxu0 %v7104_v46  ;;  %v1984_v46 = vld [vmem:[%s8654_s20 + $0x34b8] sm:$0xff]  ;;  %v2103_v21 = vld [vmem:[%s8654_s20 + $0x3870] sm:$0xff] }
 0x478   : > { %7681 = vmatpush1.bf16.msra.mxu1 %v7680_v5  ;;  %7107 = vmatprep.subr.bf16.mxu0 %v7106_v48  ;;  %v1992_v5 = vld [vmem:[%s8654_s20 + $0x34f8] sm:$0xff]  ;;  %v7124_v48 = vpack.c.bf16 %v1973_v43, %v1965_v42  ;;  %v7716_v42 = vpack.c.bf16 %v2039_v17, %v2031_v34  ;;  %v7142_v43 = vpack.c.bf16 %v2054_v15, %v2046_v35  ;;  %v2109_v34 = vld [vmem:[%s8654_s20 + $0x38a0] sm:$0xff]  ;;  %v2111_v17 = vld [vmem:[%s8654_s20 + $0x38b0] sm:$0xff] }
 0x479   : > { %7683 = vmatprep.subr.bf16.mxu1 %v7682_v25  ;;  %v1989_v25 = vld [vmem:[%s8654_s20 + $0x34e0] sm:$0xff]  ;;  %v7702_v30 = vpack.c.bf16 %v1992_v5, %v1984_v46  ;;  %v2062_v46 = vld [vmem:[%s8654_s20 + $0x3728] sm:$0xff]  ;;  %v2119_v15 = vld [vmem:[%s8654_s20 + $0x38f0] sm:$0xff] }
 0x47a   : > { %v2070_v5 = vld [vmem:[%s8654_s20 + $0x3768] sm:$0xff] }
 0x47b   : > { %7109 = vmatpush1.bf16.msra.mxu0 %v7108_v33  ;;  %v2000_v33 = vld [vmem:[%s8654_s20 + $0x3538] sm:$0xff] }
 0x47c   : > { %7685 = vmatpush1.bf16.msra.mxu1 %v7684_v61  ;;  %7111 = vmatprep.subr.bf16.mxu0 %v7110_v62  ;;  %v2008_v61 = vld [vmem:[%s8654_s20 + $0x3578] sm:$0xff]  ;;  %v7128_v62 = vpack.c.bf16 %v1989_v25, %v1981_v54  ;;  %v7720_v54 = vpack.c.bf16 %v2055_v45, %v2047_v47  ;;  %v7146_v25 = vpack.c.bf16 %v2070_v5, %v2062_v46  ;;  %v2125_v47 = vld [vmem:[%s8654_s20 + $0x3920] sm:$0xff]  ;;  %v2127_v45 = vld [vmem:[%s8654_s20 + $0x3930] sm:$0xff] }
 0x47d   : > { %7687 = vmatprep.subr.bf16.mxu1 %v7686_v0  ;;  %v2005_v0 = vld [vmem:[%s8654_s20 + $0x3560] sm:$0xff]  ;;  %v7706_v53 = vpack.c.bf16 %v2008_v61, %v2000_v33  ;;  %v2078_v33 = vld [vmem:[%s8654_s20 + $0x37a8] sm:$0xff]  ;;  %v2135_v5 = vld [vmem:[%s8654_s20 + $0x3970] sm:$0xff] }
 0x47e   : > { %v2086_v61 = vld [vmem:[%s8654_s20 + $0x37e8] sm:$0xff] }
 0x47f   : > { %7113 = vmatpush1.bf16.msra.mxu0 %v7112_v9  ;;  %v2016_v9 = vld [vmem:[%s8654_s20 + $0x35b8] sm:$0xff] }
 0x480   : > { %7689 = vmatpush1.bf16.msra.mxu1 %v7688_v10  ;;  %7115 = vmatprep.subr.bf16.mxu0 %v7114_v11  ;;  %v2024_v10 = vld [vmem:[%s8654_s20 + $0x35f8] sm:$0xff]  ;;  %v7132_v11 = vpack.c.bf16 %v2005_v0, %v1997_v3  ;;  %v7724_v3 = vpack.c.bf16 %v2071_v60, %v2063_v58  ;;  %v7150_v0 = vpack.c.bf16 %v2086_v61, %v2078_v33  ;;  %v2149_v58 = vld [vmem:[%s8654_s20 + $0x39e0] sm:$0xff]  ;;  %v2151_v33 = vld [vmem:[%s8654_s20 + $0x39f0] sm:$0xff] }
 0x481   : > { %7691 = vmatprep.subr.bf16.mxu1 %v7690_v16  ;;  %v2021_v16 = vld [vmem:[%s8654_s20 + $0x35e0] sm:$0xff]  ;;  %v7710_v18 = vpack.c.bf16 %v2024_v10, %v2016_v9  ;;  %v2094_v9 = vld [vmem:[%s8654_s20 + $0x3828] sm:$0xff] }
 0x482   : > { %v2102_v10 = vld [vmem:[%s8654_s20 + $0x3868] sm:$0xff] }
 0x483   : > { %7117 = vmatpush1.bf16.msra.mxu0 %v7116_v22  ;;  %v2032_v22 = vld [vmem:[%s8654_s20 + $0x3638] sm:$0xff]  ;;  %v2158_v61 = vld [vmem:[%s8654_s20 + $0x3a28] sm:$0xff] }
 0x484   : > { %7693 = vmatpush1.bf16.msra.mxu1 %v7692_v23  ;;  %7119 = vmatprep.subr.bf16.mxu0 %v7118_v24  ;;  %v2040_v23 = vld [vmem:[%s8654_s20 + $0x3678] sm:$0xff]  ;;  %v7136_v24 = vpack.c.bf16 %v2021_v16, %v2013_v14  ;;  %v7728_v14 = vpack.c.bf16 %v2087_v8, %v2079_v40  ;;  %v7154_v16 = vpack.c.bf16 %v2102_v10, %v2094_v9  ;;  %v2159_v40 = vld [vmem:[%s8654_s20 + $0x3a30] sm:$0xff]  ;;  %v2174_v9 = vld [vmem:[%s8654_s20 + $0x3aa8] sm:$0xff] }
 0x485   : > { %7695 = vmatprep.subr.bf16.mxu1 %v7694_v32  ;;  %v2037_v32 = vld [vmem:[%s8654_s20 + $0x3660] sm:$0xff]  ;;  %v7714_v38 = vpack.c.bf16 %v2040_v23, %v2032_v22  ;;  %v2110_v22 = vld [vmem:[%s8654_s20 + $0x38a8] sm:$0xff]  ;;  %v2167_v8 = vld [vmem:[%s8654_s20 + $0x3a70] sm:$0xff] }
 0x486   : > { %v2118_v23 = vld [vmem:[%s8654_s20 + $0x38e8] sm:$0xff] }
 0x487   : > { %7121 = vmatpush1.bf16.msra.mxu0 %v7120_v41  ;;  %v2048_v41 = vld [vmem:[%s8654_s20 + $0x36b8] sm:$0xff]  ;;  %v2182_v10 = vld [vmem:[%s8654_s20 + $0x3ae8] sm:$0xff] }
 0x488   : > { %7697 = vmatpush1.bf16.msra.mxu1 %v7696_v37  ;;  %7123 = vmatprep.subr.bf16.mxu0 %v7122_v39  ;;  %v2056_v37 = vld [vmem:[%s8654_s20 + $0x36f8] sm:$0xff]  ;;  %v7140_v39 = vpack.c.bf16 %v2037_v32, %v2029_v29  ;;  %v7732_v29 = vpack.c.bf16 %v2103_v21, %v2095_v19  ;;  %v7158_v32 = vpack.c.bf16 %v2118_v23, %v2110_v22  ;;  %v2175_v19 = vld [vmem:[%s8654_s20 + $0x3ab0] sm:$0xff]  ;;  %v2190_v22 = vld [vmem:[%s8654_s20 + $0x3b28] sm:$0xff] }
 0x489   : > { %7699 = vmatprep.subr.bf16.mxu1 %v7698_v52  ;;  %v2053_v52 = vld [vmem:[%s8654_s20 + $0x36e0] sm:$0xff]  ;;  %v7718_v44 = vpack.c.bf16 %v2056_v37, %v2048_v41  ;;  %v2126_v41 = vld [vmem:[%s8654_s20 + $0x3928] sm:$0xff]  ;;  %v2183_v21 = vld [vmem:[%s8654_s20 + $0x3af0] sm:$0xff] }
 0x48a   : > { %v2134_v37 = vld [vmem:[%s8654_s20 + $0x3968] sm:$0xff] }
 0x48b   : > { %7125 = vmatpush1.bf16.msra.mxu0 %v7124_v48  ;;  %v2064_v48 = vld [vmem:[%s8654_s20 + $0x3738] sm:$0xff]  ;;  %v2198_v23 = vld [vmem:[%s8654_s20 + $0x3b68] sm:$0xff] }
 0x48c   : > { %7701 = vmatpush1.bf16.msra.mxu1 %v7700_v49  ;;  %7127 = vmatprep.subr.bf16.mxu0 %v7126_v51  ;;  %v2072_v49 = vld [vmem:[%s8654_s20 + $0x3778] sm:$0xff]  ;;  %v7144_v51 = vpack.c.bf16 %v2053_v52, %v2045_v56  ;;  %v7736_v56 = vpack.c.bf16 %v2119_v15, %v2111_v17  ;;  %v7162_v52 = vpack.c.bf16 %v2134_v37, %v2126_v41  ;;  %v2191_v17 = vld [vmem:[%s8654_s20 + $0x3b30] sm:$0xff]  ;;  %v2206_v41 = vld [vmem:[%s8654_s20 + $0x3ba8] sm:$0xff] }
 0x48d   : > { %7703 = vmatprep.subr.bf16.mxu1 %v7702_v30  ;;  %v2069_v30 = vld [vmem:[%s8654_s20 + $0x3760] sm:$0xff]  ;;  %v7722_v59 = vpack.c.bf16 %v2072_v49, %v2064_v48  ;;  %v2142_v48 = vld [vmem:[%s8654_s20 + $0x39a8] sm:$0xff]  ;;  %v2199_v15 = vld [vmem:[%s8654_s20 + $0x3b70] sm:$0xff] }
 0x48e   : > { %v2150_v49 = vld [vmem:[%s8654_s20 + $0x39e8] sm:$0xff] }
 0x48f   : > { %7129 = vmatpush1.bf16.msra.mxu0 %v7128_v62  ;;  %v2080_v62 = vld [vmem:[%s8654_s20 + $0x37b8] sm:$0xff]  ;;  %v2214_v37 = vld [vmem:[%s8654_s20 + $0x3be8] sm:$0xff] }
 0x490   : > { %7705 = vmatpush1.bf16.msra.mxu1 %v7704_v1  ;;  %7131 = vmatprep.subr.bf16.mxu0 %v7130_v2  ;;  %v2088_v1 = vld [vmem:[%s8654_s20 + $0x37f8] sm:$0xff]  ;;  %v7148_v2 = vpack.c.bf16 %v2069_v30, %v2061_v26  ;;  %v7166_v26 = vpack.c.bf16 %v2150_v49, %v2142_v48  ;;  %v2141_v30 = vld [vmem:[%s8654_s20 + $0x39a0] sm:$0xff]  ;;  %v2222_v48 = vld [vmem:[%s8654_s20 + $0x3c28] sm:$0xff] }
 0x491   : > { %7707 = vmatprep.subr.bf16.mxu1 %v7706_v53  ;;  %v2085_v53 = vld [vmem:[%s8654_s20 + $0x37e0] sm:$0xff]  ;;  %v7726_v7 = vpack.c.bf16 %v2088_v1, %v2080_v62  ;;  %v2160_v62 = vld [vmem:[%s8654_s20 + $0x3a38] sm:$0xff]  ;;  %v2230_v49 = vld [vmem:[%s8654_s20 + $0x3c68] sm:$0xff] }
 0x492   : > { %v2168_v1 = vld [vmem:[%s8654_s20 + $0x3a78] sm:$0xff] }
 0x493   : > { %7133 = vmatpush1.bf16.msra.mxu0 %v7132_v11  ;;  %v2096_v11 = vld [vmem:[%s8654_s20 + $0x3838] sm:$0xff] }
 0x494   : > { %7709 = vmatpush1.bf16.msra.mxu1 %v7708_v50  ;;  %7135 = vmatprep.subr.bf16.mxu0 %v7134_v13  ;;  %v2104_v50 = vld [vmem:[%s8654_s20 + $0x3878] sm:$0xff]  ;;  %v7152_v13 = vpack.c.bf16 %v2085_v53, %v2077_v4  ;;  %v2157_v4 = vld [vmem:[%s8654_s20 + $0x3a20] sm:$0xff] }
 0x495   : > { %7711 = vmatprep.subr.bf16.mxu1 %v7710_v18  ;;  %v2101_v18 = vld [vmem:[%s8654_s20 + $0x3860] sm:$0xff]  ;;  %v7730_v20 = vpack.c.bf16 %v2104_v50, %v2096_v11  ;;  %v2176_v11 = vld [vmem:[%s8654_s20 + $0x3ab8] sm:$0xff] }
 0x496   : > { %v2165_v53 = vld [vmem:[%s8654_s20 + $0x3a60] sm:$0xff]  ;;  %v2184_v50 = vld [vmem:[%s8654_s20 + $0x3af8] sm:$0xff] }
 0x497   : > { %7137 = vmatpush1.bf16.msra.mxu0 %v7136_v24  ;;  %v2112_v24 = vld [vmem:[%s8654_s20 + $0x38b8] sm:$0xff] }
 0x498   : > { %7713 = vmatpush1.bf16.msra.mxu1 %v7712_v27  ;;  %7139 = vmatprep.subr.bf16.mxu0 %v7138_v28  ;;  %v2120_v27 = vld [vmem:[%s8654_s20 + $0x38f8] sm:$0xff]  ;;  %v7156_v28 = vpack.c.bf16 %v2101_v18, %v2093_v55  ;;  %v2173_v55 = vld [vmem:[%s8654_s20 + $0x3aa0] sm:$0xff] }
 0x499   : > { %7715 = vmatprep.subr.bf16.mxu1 %v7714_v38  ;;  %v2117_v38 = vld [vmem:[%s8654_s20 + $0x38e0] sm:$0xff]  ;;  %v7734_v35 = vpack.c.bf16 %v2120_v27, %v2112_v24  ;;  %v2192_v24 = vld [vmem:[%s8654_s20 + $0x3b38] sm:$0xff] }
 0x49a   : > { %v2181_v18 = vld [vmem:[%s8654_s20 + $0x3ae0] sm:$0xff]  ;;  %v2200_v27 = vld [vmem:[%s8654_s20 + $0x3b78] sm:$0xff] }
 0x49b   : > { %7141 = vmatpush1.bf16.msra.mxu0 %v7140_v39  ;;  %v2128_v39 = vld [vmem:[%s8654_s20 + $0x3938] sm:$0xff] }
 0x49c   : > { %7717 = vmatpush1.bf16.msra.mxu1 %v7716_v42  ;;  %7143 = vmatprep.subr.bf16.mxu0 %v7142_v43  ;;  %v2136_v42 = vld [vmem:[%s8654_s20 + $0x3978] sm:$0xff]  ;;  %v7160_v43 = vpack.c.bf16 %v2117_v38, %v2109_v34  ;;  %v2189_v34 = vld [vmem:[%s8654_s20 + $0x3b20] sm:$0xff] }
 0x49d   : > { %7719 = vmatprep.subr.bf16.mxu1 %v7718_v44  ;;  %v2133_v44 = vld [vmem:[%s8654_s20 + $0x3960] sm:$0xff]  ;;  %v7738_v46 = vpack.c.bf16 %v2136_v42, %v2128_v39  ;;  %v2208_v39 = vld [vmem:[%s8654_s20 + $0x3bb8] sm:$0xff] }
 0x49e   : > { %v2197_v38 = vld [vmem:[%s8654_s20 + $0x3b60] sm:$0xff]  ;;  %v2216_v42 = vld [vmem:[%s8654_s20 + $0x3bf8] sm:$0xff] }
 0x49f   : > { %7145 = vmatpush1.bf16.msra.mxu0 %v7144_v51  ;;  %v2152_v51 = vld [vmem:[%s8654_s20 + $0x39f8] sm:$0xff] }
 0x4a0   : > { %7721 = vmatpush1.bf16.msra.mxu1 %v7720_v54  ;;  %7147 = vmatprep.subr.bf16.mxu0 %v7146_v25  ;;  %v7164_v54 = vpack.c.bf16 %v2133_v44, %v2125_v47  ;;  %v7740_v25 = vpack.c.bf16 %v2135_v5, %v2127_v45  ;;  %v2205_v47 = vld [vmem:[%s8654_s20 + $0x3ba0] sm:$0xff]  ;;  %v2207_v45 = vld [vmem:[%s8654_s20 + $0x3bb0] sm:$0xff] }
 0x4a1   : > { %7723 = vmatprep.subr.bf16.mxu1 %v7722_v59  ;;  %v2143_v59 = vld [vmem:[%s8654_s20 + $0x39b0] sm:$0xff]  ;;  %v2213_v44 = vld [vmem:[%s8654_s20 + $0x3be0] sm:$0xff] }
 0x4a2   : > { %v2215_v5 = vld [vmem:[%s8654_s20 + $0x3bf0] sm:$0xff] }
 0x4a3   : > { %7149 = vmatpush1.bf16.msra.mxu0 %v7148_v2  ;;  %v7168_v2 = vpack.c.bf16 %v2149_v58, %v2141_v30  ;;  %v2221_v30 = vld [vmem:[%s8654_s20 + $0x3c20] sm:$0xff] }
 0x4a4   : > { %7725 = vmatpush1.bf16.msra.mxu1 %v7724_v3  ;;  %7151 = vmatprep.subr.bf16.mxu0 %v7150_v0  ;;  %v7744_v3 = vpack.c.bf16 %v2151_v33, %v2143_v59  ;;  %v2229_v58 = vld [vmem:[%s8654_s20 + $0x3c60] sm:$0xff]  ;;  %v2223_v59 = vld [vmem:[%s8654_s20 + $0x3c30] sm:$0xff] }
 0x4a5   : > { %7727 = vmatprep.subr.bf16.mxu1 %v7726_v7  ;;  %v7746_v7 = vpack.c.bf16 %v2168_v1, %v2160_v62  ;;  %v2231_v33 = vld [vmem:[%s8654_s20 + $0x3c70] sm:$0xff]  ;;  %v2240_v62 = vld [vmem:[%s8654_s20 + $0x3cb8] sm:$0xff] }
 0x4a6   : > { %v2248_v1 = vld [vmem:[%s8654_s20 + $0x3cf8] sm:$0xff] }
 0x4a7   : > { %7153 = vmatpush1.bf16.msra.mxu0 %v7152_v13  ;;  %v7172_v13 = vpack.c.bf16 %v2165_v53, %v2157_v4  ;;  %v2237_v4 = vld [vmem:[%s8654_s20 + $0x3ca0] sm:$0xff] }
 0x4a8   : > { %7729 = vmatpush1.bf16.msra.mxu1 %v7728_v14  ;;  %7155 = vmatprep.subr.bf16.mxu0 %v7154_v16  ;;  %v7748_v14 = vpack.c.bf16 %v2167_v8, %v2159_v40  ;;  %v7174_v16 = vpack.c.bf16 %v2182_v10, %v2174_v9  ;;  %v2245_v53 = vld [vmem:[%s8654_s20 + $0x3ce0] sm:$0xff]  ;;  %v2239_v40 = vld [vmem:[%s8654_s20 + $0x3cb0] sm:$0xff]  ;;  %v2254_v9 = vld [vmem:[%s8654_s20 + $0x3d28] sm:$0xff] }
 0x4a9   : > { %7731 = vmatprep.subr.bf16.mxu1 %v7730_v20  ;;  %v7750_v20 = vpack.c.bf16 %v2184_v50, %v2176_v11  ;;  %v2247_v8 = vld [vmem:[%s8654_s20 + $0x3cf0] sm:$0xff]  ;;  %v2262_v10 = vld [vmem:[%s8654_s20 + $0x3d68] sm:$0xff]  ;;  %v2256_v11 = vld [vmem:[%s8654_s20 + $0x3d38] sm:$0xff] }
 0x4aa   : > { %4469 = vmatmul.mubr.f32.vlgmr.msra.gmra.mrb[2].mxu0 %v9546_v31  ;;  %v2264_v50 = vld [vmem:[%s8654_s20 + $0x3d78] sm:$0xff] }
 0x4ab   : > { %7157 = vmatpush1.bf16.msra.mxu0 %v7156_v28  ;;  %5108 = vmatmul.mubr.f32.vlgmr.msra.gmra.mrb[2].mxu1 %v9546_v31  ;;  %v2144_v31 = vld [vmem:[%s8654_s20 + $0x39b8] sm:$0xff]  ;;  %v7176_v28 = vpack.c.bf16 %v2181_v18, %v2173_v55  ;;  %v2253_v55 = vld [vmem:[%s8654_s20 + $0x3d20] sm:$0xff] }
 0x4ac   : > { %7733 = vmatpush1.bf16.msra.mxu1 %v7732_v29  ;;  %7159 = vmatprep.subr.bf16.mxu0 %v7158_v32  ;;  %v7742_v60 = vpack.c.bf16 %v2152_v51, %v2144_v31  ;;  %v7752_v29 = vpack.c.bf16 %v2183_v21, %v2175_v19  ;;  %v7178_v32 = vpack.c.bf16 %v2198_v23, %v2190_v22  ;;  %v2224_v31 = vld [vmem:[%s8654_s20 + $0x3c38] sm:$0xff]  ;;  %v2261_v18 = vld [vmem:[%s8654_s20 + $0x3d60] sm:$0xff]  ;;  %v2255_v19 = vld [vmem:[%s8654_s20 + $0x3d30] sm:$0xff] }
 0x4ad   : > { %7735 = vmatprep.subr.bf16.mxu1 %v7734_v35  ;;  %4539 = vmatprep.mubr.f32.mxu0 %v9699_v57  ;;  %v7754_v35 = vpack.c.bf16 %v2200_v27, %v2192_v24  ;;  %v2232_v51 = vld [vmem:[%s8654_s20 + $0x3c78] sm:$0xff]  ;;  %v2263_v21 = vld [vmem:[%s8654_s20 + $0x3d70] sm:$0xff]  ;;  %v2270_v22 = vld [vmem:[%s8654_s20 + $0x3da8] sm:$0xff] }
 0x4ae   : > { %5178 = vmatprep.mubr.f32.mxu1 %v9699_v57  ;;  %v2166_v57 = vld [vmem:[%s8654_s20 + $0x3a68] sm:$0xff]  ;;  %v2272_v24 = vld [vmem:[%s8654_s20 + $0x3db8] sm:$0xff] }
 0x4af   : > { %7161 = vmatpush1.bf16.msra.mxu0 %v7160_v43  ;;  %v7170_v0 = vpack.c.bf16 %v2166_v57, %v2158_v61  ;;  %v7180_v43 = vpack.c.bf16 %v2197_v38, %v2189_v34  ;;  %v2238_v61 = vld [vmem:[%s8654_s20 + $0x3ca8] sm:$0xff]  ;;  %v2280_v27 = vld [vmem:[%s8654_s20 + $0x3df8] sm:$0xff]  ;;  %v2269_v34 = vld [vmem:[%s8654_s20 + $0x3da0] sm:$0xff] }
 0x4b0   : > { %7737 = vmatpush1.bf16.msra.mxu1 %v7736_v56  ;;  %7163 = vmatprep.subr.bf16.mxu0 %v7162_v52  ;;  %v7756_v56 = vpack.c.bf16 %v2199_v15, %v2191_v17  ;;  %v7182_v52 = vpack.c.bf16 %v2214_v37, %v2206_v41  ;;  %v2246_v57 = vld [vmem:[%s8654_s20 + $0x3ce8] sm:$0xff]  ;;  %v2277_v38 = vld [vmem:[%s8654_s20 + $0x3de0] sm:$0xff]  ;;  %v2271_v17 = vld [vmem:[%s8654_s20 + $0x3db0] sm:$0xff] }
 0x4b1   : > { %7739 = vmatprep.subr.bf16.mxu1 %v7738_v46  ;;  %v7758_v46 = vpack.c.bf16 %v2216_v42, %v2208_v39  ;;  %v2278_v23 = vld [vmem:[%s8654_s20 + $0x3de8] sm:$0xff]  ;;  %v2279_v15 = vld [vmem:[%s8654_s20 + $0x3df0] sm:$0xff]  ;;  %v2288_v39 = vld [vmem:[%s8654_s20 + $0x3e38] sm:$0xff] }
 0x4b2   : > { %v2286_v41 = vld [vmem:[%s8654_s20 + $0x3e28] sm:$0xff]  ;;  %v2296_v42 = vld [vmem:[%s8654_s20 + $0x3e78] sm:$0xff] }
 0x4b3   : > { %7165 = vmatpush1.bf16.msra.mxu0 %v7164_v54  ;;  %v7184_v54 = vpack.c.bf16 %v2213_v44, %v2205_v47  ;;  %v2294_v37 = vld [vmem:[%s8654_s20 + $0x3e68] sm:$0xff]  ;;  %v2285_v47 = vld [vmem:[%s8654_s20 + $0x3e20] sm:$0xff] }
 0x4b4   : > { %7741 = vmatpush1.bf16.msra.mxu1 %v7740_v25  ;;  %7167 = vmatprep.subr.bf16.mxu0 %v7166_v26  ;;  %v7760_v25 = vpack.c.bf16 %v2215_v5, %v2207_v45  ;;  %v7186_v26 = vpack.c.bf16 %v2230_v49, %v2222_v48  ;;  %v2293_v44 = vld [vmem:[%s8654_s20 + $0x3e60] sm:$0xff]  ;;  %v2287_v45 = vld [vmem:[%s8654_s20 + $0x3e30] sm:$0xff]  ;;  %v2302_v48 = vld [vmem:[%s8654_s20 + $0x3ea8] sm:$0xff] }
 0x4b5   : > { %7743 = vmatprep.subr.bf16.mxu1 %v7742_v60  ;;  %v7762_v60 = vpack.c.bf16 %v2232_v51, %v2224_v31  ;;  %v2295_v5 = vld [vmem:[%s8654_s20 + $0x3e70] sm:$0xff]  ;;  %v2310_v49 = vld [vmem:[%s8654_s20 + $0x3ee8] sm:$0xff]  ;;  %v2304_v31 = vld [vmem:[%s8654_s20 + $0x3eb8] sm:$0xff] }
 0x4b6   : > { %v2312_v51 = vld [vmem:[%s8654_s20 + $0x3ef8] sm:$0xff] }
 0x4b7   : > { %7169 = vmatpush1.bf16.msra.mxu0 %v7168_v2  ;;  %v7188_v2 = vpack.c.bf16 %v2229_v58, %v2221_v30  ;;  %v2301_v30 = vld [vmem:[%s8654_s20 + $0x3ea0] sm:$0xff] }
 0x4b8   : > { %7745 = vmatpush1.bf16.msra.mxu1 %v7744_v3  ;;  %7171 = vmatprep.subr.bf16.mxu0 %v7170_v0  ;;  %v7764_v3 = vpack.c.bf16 %v2231_v33, %v2223_v59  ;;  %v7190_v0 = vpack.c.bf16 %v2246_v57, %v2238_v61  ;;  %v2309_v58 = vld [vmem:[%s8654_s20 + $0x3ee0] sm:$0xff]  ;;  %v2303_v59 = vld [vmem:[%s8654_s20 + $0x3eb0] sm:$0xff]  ;;  %v2318_v61 = vld [vmem:[%s8654_s20 + $0x3f28] sm:$0xff] }
 0x4b9   : > { %7747 = vmatprep.subr.bf16.mxu1 %v7746_v7  ;;  %v7766_v7 = vpack.c.bf16 %v2248_v1, %v2240_v62  ;;  %v2311_v33 = vld [vmem:[%s8654_s20 + $0x3ef0] sm:$0xff]  ;;  %v2326_v57 = vld [vmem:[%s8654_s20 + $0x3f68] sm:$0xff]  ;;  %v2320_v62 = vld [vmem:[%s8654_s20 + $0x3f38] sm:$0xff] }
 0x4ba   : > { %v2328_v1 = vld [vmem:[%s8654_s20 + $0x3f78] sm:$0xff] }
 0x4bb   : > { %7173 = vmatpush1.bf16.msra.mxu0 %v7172_v13  ;;  %v7192_v13 = vpack.c.bf16 %v2245_v53, %v2237_v4  ;;  %v2317_v4 = vld [vmem:[%s8654_s20 + $0x3f20] sm:$0xff] }
 0x4bc   : > { %7749 = vmatpush1.bf16.msra.mxu1 %v7748_v14  ;;  %7175 = vmatprep.subr.bf16.mxu0 %v7174_v16  ;;  %v7768_v14 = vpack.c.bf16 %v2247_v8, %v2239_v40  ;;  %v7194_v16 = vpack.c.bf16 %v2262_v10, %v2254_v9  ;;  %v2325_v53 = vld [vmem:[%s8654_s20 + $0x3f60] sm:$0xff]  ;;  %v2319_v40 = vld [vmem:[%s8654_s20 + $0x3f30] sm:$0xff]  ;;  %v2334_v9 = vld [vmem:[%s8654_s20 + $0x3fa8] sm:$0xff] }
 0x4bd   : > { %7751 = vmatprep.subr.bf16.mxu1 %v7750_v20  ;;  %v7770_v20 = vpack.c.bf16 %v2264_v50, %v2256_v11  ;;  %v2327_v8 = vld [vmem:[%s8654_s20 + $0x3f70] sm:$0xff]  ;;  %v2342_v10 = vld [vmem:[%s8654_s20 + $0x3fe8] sm:$0xff]  ;;  %v2336_v11 = vld [vmem:[%s8654_s20 + $0x3fb8] sm:$0xff] }
 0x4be   : > { %v2344_v50 = vld [vmem:[%s8654_s20 + $0x3ff8] sm:$0xff] }
 0x4bf   : > { %7177 = vmatpush1.bf16.msra.mxu0 %v7176_v28  ;;  %v7196_v28 = vpack.c.bf16 %v2261_v18, %v2253_v55  ;;  %v2333_v55 = vld [vmem:[%s8654_s20 + $0x3fa0] sm:$0xff] }
 0x4c0   : > { %7753 = vmatpush1.bf16.msra.mxu1 %v7752_v29  ;;  %7179 = vmatprep.subr.bf16.mxu0 %v7178_v32  ;;  %v7772_v29 = vpack.c.bf16 %v2263_v21, %v2255_v19  ;;  %v7198_v32 = vpack.c.bf16 %v2278_v23, %v2270_v22  ;;  %v2341_v18 = vld [vmem:[%s8654_s20 + $0x3fe0] sm:$0xff]  ;;  %v2335_v19 = vld [vmem:[%s8654_s20 + $0x3fb0] sm:$0xff]  ;;  %v2350_v22 = vld [vmem:[%s8654_s20 + $0x4028] sm:$0xff] }
 0x4c1   : > { %7755 = vmatprep.subr.bf16.mxu1 %v7754_v35  ;;  %v7774_v35 = vpack.c.bf16 %v2280_v27, %v2272_v24  ;;  %v2343_v21 = vld [vmem:[%s8654_s20 + $0x3ff0] sm:$0xff]  ;;  %v2358_v23 = vld [vmem:[%s8654_s20 + $0x4068] sm:$0xff]  ;;  %v2352_v24 = vld [vmem:[%s8654_s20 + $0x4038] sm:$0xff] }
 0x4c2   : > { %v2360_v27 = vld [vmem:[%s8654_s20 + $0x4078] sm:$0xff] }
 0x4c3   : > { %7181 = vmatpush1.bf16.msra.mxu0 %v7180_v43  ;;  %v7200_v43 = vpack.c.bf16 %v2277_v38, %v2269_v34  ;;  %v2349_v34 = vld [vmem:[%s8654_s20 + $0x4020] sm:$0xff] }
 0x4c4   : > { %7757 = vmatpush1.bf16.msra.mxu1 %v7756_v56  ;;  %7183 = vmatprep.subr.bf16.mxu0 %v7182_v52  ;;  %v7776_v56 = vpack.c.bf16 %v2279_v15, %v2271_v17  ;;  %v7202_v52 = vpack.c.bf16 %v2294_v37, %v2286_v41  ;;  %v2357_v38 = vld [vmem:[%s8654_s20 + $0x4060] sm:$0xff]  ;;  %v2351_v17 = vld [vmem:[%s8654_s20 + $0x4030] sm:$0xff]  ;;  %v2366_v41 = vld [vmem:[%s8654_s20 + $0x40a8] sm:$0xff] }
 0x4c5   : > { %7759 = vmatprep.subr.bf16.mxu1 %v7758_v46  ;;  %v7778_v46 = vpack.c.bf16 %v2296_v42, %v2288_v39  ;;  %v2359_v15 = vld [vmem:[%s8654_s20 + $0x4070] sm:$0xff]  ;;  %v2374_v37 = vld [vmem:[%s8654_s20 + $0x40e8] sm:$0xff]  ;;  %v2368_v39 = vld [vmem:[%s8654_s20 + $0x40b8] sm:$0xff] }
 0x4c6   : > { %v2376_v42 = vld [vmem:[%s8654_s20 + $0x40f8] sm:$0xff] }
 0x4c7   : > { %7185 = vmatpush1.bf16.msra.mxu0 %v7184_v54  ;;  %v7204_v54 = vpack.c.bf16 %v2293_v44, %v2285_v47  ;;  %v2365_v47 = vld [vmem:[%s8654_s20 + $0x40a0] sm:$0xff] }
 0x4c8   : > { %7761 = vmatpush1.bf16.msra.mxu1 %v7760_v25  ;;  %7187 = vmatprep.subr.bf16.mxu0 %v7186_v26  ;;  %v7780_v25 = vpack.c.bf16 %v2295_v5, %v2287_v45  ;;  %v7206_v26 = vpack.c.bf16 %v2310_v49, %v2302_v48  ;;  %v2373_v44 = vld [vmem:[%s8654_s20 + $0x40e0] sm:$0xff]  ;;  %v2367_v45 = vld [vmem:[%s8654_s20 + $0x40b0] sm:$0xff]  ;;  %v2382_v48 = vld [vmem:[%s8654_s20 + $0x4128] sm:$0xff] }
 0x4c9   : > { %7763 = vmatprep.subr.bf16.mxu1 %v7762_v60  ;;  %v7782_v60 = vpack.c.bf16 %v2312_v51, %v2304_v31  ;;  %v2375_v5 = vld [vmem:[%s8654_s20 + $0x40f0] sm:$0xff]  ;;  %v2390_v49 = vld [vmem:[%s8654_s20 + $0x4168] sm:$0xff]  ;;  %v2384_v31 = vld [vmem:[%s8654_s20 + $0x4138] sm:$0xff] }
 0x4ca   : > { %v2392_v51 = vld [vmem:[%s8654_s20 + $0x4178] sm:$0xff] }
 0x4cb   : > { %7189 = vmatpush1.bf16.msra.mxu0 %v7188_v2  ;;  %v7208_v2 = vpack.c.bf16 %v2309_v58, %v2301_v30  ;;  %v2381_v30 = vld [vmem:[%s8654_s20 + $0x4120] sm:$0xff] }
 0x4cc   : > { %7765 = vmatpush1.bf16.msra.mxu1 %v7764_v3  ;;  %7191 = vmatprep.subr.bf16.mxu0 %v7190_v0  ;;  %v7784_v3 = vpack.c.bf16 %v2311_v33, %v2303_v59  ;;  %v7210_v0 = vpack.c.bf16 %v2326_v57, %v2318_v61  ;;  %v2389_v58 = vld [vmem:[%s8654_s20 + $0x4160] sm:$0xff]  ;;  %v2383_v59 = vld [vmem:[%s8654_s20 + $0x4130] sm:$0xff]  ;;  %v2398_v61 = vld [vmem:[%s8654_s20 + $0x41a8] sm:$0xff] }
 0x4cd   : > { %7767 = vmatprep.subr.bf16.mxu1 %v7766_v7  ;;  %v7786_v7 = vpack.c.bf16 %v2328_v1, %v2320_v62  ;;  %v2391_v33 = vld [vmem:[%s8654_s20 + $0x4170] sm:$0xff]  ;;  %v2406_v57 = vld [vmem:[%s8654_s20 + $0x41e8] sm:$0xff]  ;;  %v2408_v62 = vld [vmem:[%s8654_s20 + $0x41f8] sm:$0xff]  ;;  %v7228_v1 = vpack.c.bf16 %v2389_v58, %v2381_v30 }
 0x4ce   : > { %v2463_v30 = vld [vmem:[%s8654_s20 + $0x43b0] sm:$0xff] }
 0x4cf   : > { %7193 = vmatpush1.bf16.msra.mxu0 %v7192_v13  ;;  %v7212_v13 = vpack.c.bf16 %v2325_v53, %v2317_v4  ;;  %v2405_v4 = vld [vmem:[%s8654_s20 + $0x41e0] sm:$0xff]  ;;  %v2399_v53 = vld [vmem:[%s8654_s20 + $0x41b0] sm:$0xff] }
 0x4d0   : > { %7769 = vmatpush1.bf16.msra.mxu1 %v7768_v14  ;;  %7195 = vmatprep.subr.bf16.mxu0 %v7194_v16  ;;  %v7788_v14 = vpack.c.bf16 %v2327_v8, %v2319_v40  ;;  %v7214_v16 = vpack.c.bf16 %v2342_v10, %v2334_v9  ;;  %v2414_v8 = vld [vmem:[%s8654_s20 + $0x4228] sm:$0xff]  ;;  %v2416_v9 = vld [vmem:[%s8654_s20 + $0x4238] sm:$0xff] }
 0x4d1   : > { %7771 = vmatprep.subr.bf16.mxu1 %v7770_v20  ;;  %v7790_v20 = vpack.c.bf16 %v2344_v50, %v2336_v11  ;;  %v2424_v10 = vld [vmem:[%s8654_s20 + $0x4278] sm:$0xff] }
 0x4d3   : > { %7197 = vmatpush1.bf16.msra.mxu0 %v7196_v28  ;;  %v7216_v28 = vpack.c.bf16 %v2341_v18, %v2333_v55  ;;  %v2415_v55 = vld [vmem:[%s8654_s20 + $0x4230] sm:$0xff]  ;;  %v7810_v18 = vpack.c.bf16 %v2424_v10, %v2416_v9 }
 0x4d4   : > { %7773 = vmatpush1.bf16.msra.mxu1 %v7772_v29  ;;  %7199 = vmatprep.subr.bf16.mxu0 %v7198_v32  ;;  %v7792_v29 = vpack.c.bf16 %v2343_v21, %v2335_v19  ;;  %v7218_v32 = vpack.c.bf16 %v2358_v23, %v2350_v22  ;;  %v2423_v19 = vld [vmem:[%s8654_s20 + $0x4270] sm:$0xff]  ;;  %v2438_v21 = vld [vmem:[%s8654_s20 + $0x42e8] sm:$0xff]  ;;  %v2432_v22 = vld [vmem:[%s8654_s20 + $0x42b8] sm:$0xff] }
 0x4d5   : > { %7775 = vmatprep.subr.bf16.mxu1 %v7774_v35  ;;  %v7794_v35 = vpack.c.bf16 %v2360_v27, %v2352_v24  ;;  %v2440_v23 = vld [vmem:[%s8654_s20 + $0x42f8] sm:$0xff]  ;;  %v7812_v27 = vpack.c.bf16 %v2423_v19, %v2415_v55  ;;  %v2503_v55 = vld [vmem:[%s8654_s20 + $0x44f0] sm:$0xff]  ;;  %v2518_v19 = vld [vmem:[%s8654_s20 + $0x4568] sm:$0xff] }
 0x4d7   : > { %7201 = vmatpush1.bf16.msra.mxu0 %v7200_v43  ;;  %v7220_v43 = vpack.c.bf16 %v2357_v38, %v2349_v34  ;;  %v2431_v34 = vld [vmem:[%s8654_s20 + $0x42b0] sm:$0xff]  ;;  %v7814_v38 = vpack.c.bf16 %v2440_v23, %v2432_v22 }
 0x4d8   : > { %7777 = vmatpush1.bf16.msra.mxu1 %v7776_v56  ;;  %7203 = vmatprep.subr.bf16.mxu0 %v7202_v52  ;;  %v7796_v56 = vpack.c.bf16 %v2359_v15, %v2351_v17  ;;  %v7222_v52 = vpack.c.bf16 %v2374_v37, %v2366_v41  ;;  %v2439_v17 = vld [vmem:[%s8654_s20 + $0x42f0] sm:$0xff]  ;;  %v2454_v15 = vld [vmem:[%s8654_s20 + $0x4368] sm:$0xff]  ;;  %v2448_v41 = vld [vmem:[%s8654_s20 + $0x4338] sm:$0xff] }
 0x4d9   : > { %7779 = vmatprep.subr.bf16.mxu1 %v7778_v46  ;;  %v7798_v46 = vpack.c.bf16 %v2376_v42, %v2368_v39  ;;  %v2456_v37 = vld [vmem:[%s8654_s20 + $0x4378] sm:$0xff]  ;;  %v7816_v42 = vpack.c.bf16 %v2439_v17, %v2431_v34  ;;  %v2519_v34 = vld [vmem:[%s8654_s20 + $0x4570] sm:$0xff]  ;;  %v2534_v17 = vld [vmem:[%s8654_s20 + $0x45e8] sm:$0xff] }
 0x4db   : > { %7205 = vmatpush1.bf16.msra.mxu0 %v7204_v54  ;;  %v7224_v54 = vpack.c.bf16 %v2373_v44, %v2365_v47  ;;  %v2447_v47 = vld [vmem:[%s8654_s20 + $0x4330] sm:$0xff]  ;;  %v7818_v44 = vpack.c.bf16 %v2456_v37, %v2448_v41 }
 0x4dc   : > { %7781 = vmatpush1.bf16.msra.mxu1 %v7780_v25  ;;  %7207 = vmatprep.subr.bf16.mxu0 %v7206_v26  ;;  %v7800_v25 = vpack.c.bf16 %v2375_v5, %v2367_v45  ;;  %v7226_v26 = vpack.c.bf16 %v2390_v49, %v2382_v48  ;;  %v2455_v45 = vld [vmem:[%s8654_s20 + $0x4370] sm:$0xff]  ;;  %v2470_v5 = vld [vmem:[%s8654_s20 + $0x43e8] sm:$0xff]  ;;  %v2464_v48 = vld [vmem:[%s8654_s20 + $0x43b8] sm:$0xff] }
 0x4dd   : > { %7783 = vmatprep.subr.bf16.mxu1 %v7782_v60  ;;  %v7802_v60 = vpack.c.bf16 %v2392_v51, %v2384_v31  ;;  %v2472_v49 = vld [vmem:[%s8654_s20 + $0x43f8] sm:$0xff]  ;;  %v7820_v51 = vpack.c.bf16 %v2455_v45, %v2447_v47  ;;  %v2535_v47 = vld [vmem:[%s8654_s20 + $0x45f0] sm:$0xff]  ;;  %v2550_v45 = vld [vmem:[%s8654_s20 + $0x4668] sm:$0xff] }
 0x4de   : > { %v7822_v58 = vpack.c.bf16 %v2472_v49, %v2464_v48 }
 0x4df   : > { %7209 = vmatpush1.bf16.msra.mxu0 %v7208_v2  ;;  %v7804_v2 = vpack.c.bf16 %v2391_v33, %v2383_v59  ;;  %v2471_v59 = vld [vmem:[%s8654_s20 + $0x43f0] sm:$0xff]  ;;  %v2486_v33 = vld [vmem:[%s8654_s20 + $0x4468] sm:$0xff] }
 0x4e0   : > { %7785 = vmatpush1.bf16.msra.mxu1 %v7784_v3  ;;  %7211 = vmatprep.subr.bf16.mxu0 %v7210_v0  ;;  %v7230_v3 = vpack.c.bf16 %v2406_v57, %v2398_v61  ;;  %v2397_v0 = vld [vmem:[%s8654_s20 + $0x41a0] sm:$0xff]  ;;  %v2480_v61 = vld [vmem:[%s8654_s20 + $0x4438] sm:$0xff] }
 0x4e1   : > { %7787 = vmatprep.subr.bf16.mxu1 %v7786_v7  ;;  %v2407_v7 = vld [vmem:[%s8654_s20 + $0x41f0] sm:$0xff]  ;;  %v7232_v11 = vpack.c.bf16 %v2405_v4, %v2397_v0  ;;  %v2488_v57 = vld [vmem:[%s8654_s20 + $0x4478] sm:$0xff] }
 0x4e2   : > { %v7808_v50 = vpack.c.bf16 %v2407_v7, %v2399_v53  ;;  %v2479_v0 = vld [vmem:[%s8654_s20 + $0x4430] sm:$0xff]  ;;  %v7826_v4 = vpack.c.bf16 %v2488_v57, %v2480_v61  ;;  %v2502_v7 = vld [vmem:[%s8654_s20 + $0x44e8] sm:$0xff] }
 0x4e3   : > { %7213 = vmatpush1.bf16.msra.mxu0 %v7212_v13  ;;  %v2487_v53 = vld [vmem:[%s8654_s20 + $0x4470] sm:$0xff] }
 0x4e4   : > { %7789 = vmatpush1.bf16.msra.mxu1 %v7788_v14  ;;  %7215 = vmatprep.subr.bf16.mxu0 %v7214_v16  ;;  %v2413_v14 = vld [vmem:[%s8654_s20 + $0x4220] sm:$0xff]  ;;  %v7828_v10 = vpack.c.bf16 %v2487_v53, %v2479_v0  ;;  %v2567_v0 = vld [vmem:[%s8654_s20 + $0x46f0] sm:$0xff]  ;;  %v2582_v53 = vld [vmem:[%s8654_s20 + $0x4768] sm:$0xff] }
 0x4e5   : > { %7791 = vmatprep.subr.bf16.mxu1 %v7790_v20  ;;  %v2421_v16 = vld [vmem:[%s8654_s20 + $0x4260] sm:$0xff]  ;;  %v2430_v20 = vld [vmem:[%s8654_s20 + $0x42a8] sm:$0xff] }
 0x4e6   : > { %v7236_v24 = vpack.c.bf16 %v2421_v16, %v2413_v14  ;;  %v2495_v14 = vld [vmem:[%s8654_s20 + $0x44b0] sm:$0xff] }
 0x4e7   : > { %7217 = vmatpush1.bf16.msra.mxu0 %v7216_v28  ;;  %v7238_v28 = vpack.c.bf16 %v2438_v21, %v2430_v20  ;;  %v2512_v20 = vld [vmem:[%s8654_s20 + $0x4538] sm:$0xff]  ;;  %v7832_v23 = vpack.c.bf16 %v2503_v55, %v2495_v14  ;;  %v2583_v14 = vld [vmem:[%s8654_s20 + $0x4770] sm:$0xff]  ;;  %v2598_v55 = vld [vmem:[%s8654_s20 + $0x47e8] sm:$0xff] }
 0x4e8   : > { %7793 = vmatpush1.bf16.msra.mxu1 %v7792_v29  ;;  %7219 = vmatprep.subr.bf16.mxu0 %v7218_v32  ;;  %v2429_v29 = vld [vmem:[%s8654_s20 + $0x42a0] sm:$0xff]  ;;  %v2520_v21 = vld [vmem:[%s8654_s20 + $0x4578] sm:$0xff] }
 0x4e9   : > { %7795 = vmatprep.subr.bf16.mxu1 %v7794_v35  ;;  %v2437_v32 = vld [vmem:[%s8654_s20 + $0x42e0] sm:$0xff]  ;;  %v2446_v35 = vld [vmem:[%s8654_s20 + $0x4328] sm:$0xff] }
 0x4ea   : > { %4540 = vmatmul.mubr.f32.vlgmr.msra.gmra.mrb[2].mxu0 %v9687_v36  ;;  %v7240_v39 = vpack.c.bf16 %v2437_v32, %v2429_v29  ;;  %v2511_v29 = vld [vmem:[%s8654_s20 + $0x4530] sm:$0xff]  ;;  %v7834_v32 = vpack.c.bf16 %v2520_v21, %v2512_v20 }
 0x4eb   : > { %7221 = vmatpush1.bf16.msra.mxu0 %v7220_v43  ;;  %5179 = vmatmul.mubr.f32.vlgmr.msra.gmra.mrb[2].mxu1 %v9687_v36  ;;  %v2400_v36 = vld [vmem:[%s8654_s20 + $0x41b8] sm:$0xff]  ;;  %v7242_v43 = vpack.c.bf16 %v2454_v15, %v2446_v35  ;;  %v7836_v37 = vpack.c.bf16 %v2519_v34, %v2511_v29  ;;  %v2599_v29 = vld [vmem:[%s8654_s20 + $0x47f0] sm:$0xff] }
 0x4ec   : > { %7797 = vmatpush1.bf16.msra.mxu1 %v7796_v56  ;;  %7223 = vmatprep.subr.bf16.mxu0 %v7222_v52  ;;  %v7806_v40 = vpack.c.bf16 %v2408_v62, %v2400_v36  ;;  %v2445_v56 = vld [vmem:[%s8654_s20 + $0x4320] sm:$0xff]  ;;  %v7824_v62 = vpack.c.bf16 %v2471_v59, %v2463_v30  ;;  %v2528_v35 = vld [vmem:[%s8654_s20 + $0x45b8] sm:$0xff]  ;;  %v2551_v30 = vld [vmem:[%s8654_s20 + $0x4670] sm:$0xff] }
 0x4ed   : > { %7799 = vmatprep.subr.bf16.mxu1 %v7798_v46  ;;  %4610 = vmatprep.mubr.f32.mxu0 %v9838_v6  ;;  %v2453_v52 = vld [vmem:[%s8654_s20 + $0x4360] sm:$0xff]  ;;  %v2462_v46 = vld [vmem:[%s8654_s20 + $0x43a8] sm:$0xff]  ;;  %v2536_v15 = vld [vmem:[%s8654_s20 + $0x45f8] sm:$0xff] }
 0x4ee   : > { %5249 = vmatprep.mubr.f32.mxu1 %v9838_v6  ;;  %v2422_v6 = vld [vmem:[%s8654_s20 + $0x4268] sm:$0xff]  ;;  %v7244_v31 = vpack.c.bf16 %v2453_v52, %v2445_v56  ;;  %v2527_v56 = vld [vmem:[%s8654_s20 + $0x45b0] sm:$0xff]  ;;  %v7838_v52 = vpack.c.bf16 %v2536_v15, %v2528_v35 }
 0x4ef   : > { %7225 = vmatpush1.bf16.msra.mxu0 %v7224_v54  ;;  %v7234_v13 = vpack.c.bf16 %v2422_v6, %v2414_v8  ;;  %v7246_v54 = vpack.c.bf16 %v2470_v5, %v2462_v46  ;;  %v2496_v8 = vld [vmem:[%s8654_s20 + $0x44b8] sm:$0xff]  ;;  %v7840_v49 = vpack.c.bf16 %v2535_v47, %v2527_v56  ;;  %v2566_v59 = vld [vmem:[%s8654_s20 + $0x46e8] sm:$0xff] }
 0x4f0   : > { %7801 = vmatpush1.bf16.msra.mxu1 %v7800_v25  ;;  %7227 = vmatprep.subr.bf16.mxu0 %v7226_v26  ;;  %v2461_v25 = vld [vmem:[%s8654_s20 + $0x43a0] sm:$0xff]  ;;  %v2504_v6 = vld [vmem:[%s8654_s20 + $0x44f8] sm:$0xff] }
 0x4f1   : > { %7803 = vmatprep.subr.bf16.mxu1 %v7802_v60  ;;  %v2469_v26 = vld [vmem:[%s8654_s20 + $0x43e0] sm:$0xff]  ;;  %v2478_v60 = vld [vmem:[%s8654_s20 + $0x4428] sm:$0xff]  ;;  %v7830_v16 = vpack.c.bf16 %v2504_v6, %v2496_v8  ;;  %v2544_v46 = vld [vmem:[%s8654_s20 + $0x4638] sm:$0xff] }
 0x4f2   : > { %v7248_v36 = vpack.c.bf16 %v2469_v26, %v2461_v25  ;;  %v2552_v5 = vld [vmem:[%s8654_s20 + $0x4678] sm:$0xff]  ;;  %v2543_v25 = vld [vmem:[%s8654_s20 + $0x4630] sm:$0xff] }
 0x4f3   : > { %7229 = vmatpush1.bf16.msra.mxu0 %v7228_v1  ;;  %v7250_v1 = vpack.c.bf16 %v2486_v33, %v2478_v60  ;;  %v7842_v26 = vpack.c.bf16 %v2552_v5, %v2544_v46  ;;  %v2560_v60 = vld [vmem:[%s8654_s20 + $0x46b8] sm:$0xff]  ;;  %v7844_v57 = vpack.c.bf16 %v2551_v30, %v2543_v25  ;;  %v5318_v46 = vsub.s32 (!%p5544_p9), 1, %v8760_v63 }
 0x4f4   : > { %7805 = vmatpush1.bf16.msra.mxu1 %v7804_v2  ;;  %7231 = vmatprep.subr.bf16.mxu0 %v7230_v3  ;;  %v2477_v2 = vld [vmem:[%s8654_s20 + $0x4420] sm:$0xff]  ;;  %v2568_v33 = vld [vmem:[%s8654_s20 + $0x46f8] sm:$0xff]  ;;  %v5322_v5 = vsub.s32 (!%p5544_p9), 2, %v8760_v63 }
 0x4f5   : > { %7807 = vmatprep.subr.bf16.mxu1 %v7806_v40  ;;  %v2485_v3 = vld [vmem:[%s8654_s20 + $0x4460] sm:$0xff]  ;;  %v2494_v40 = vld [vmem:[%s8654_s20 + $0x44a8] sm:$0xff] }
 0x4f6   : > { %v7252_v9 = vpack.c.bf16 %v2485_v3, %v2477_v2  ;;  %v2559_v2 = vld [vmem:[%s8654_s20 + $0x46b0] sm:$0xff]  ;;  %v7846_v3 = vpack.c.bf16 %v2568_v33, %v2560_v60  ;;  %v291_v56 = vld [vmem:[%s8671_s18 + $0x8] sm:$0xff] }
 0x4f7   : > { %7233 = vmatpush1.bf16.msra.mxu0 %v7232_v11  ;;  %v7254_v11 = vpack.c.bf16 %v2502_v7, %v2494_v40  ;;  %v2576_v40 = vld [vmem:[%s8654_s20 + $0x4738] sm:$0xff]  ;;  %v7848_v6 = vpack.c.bf16 %v2567_v0, %v2559_v2 }
 0x4f8   : > { %7809 = vmatpush1.bf16.msra.mxu1 %v7808_v50  ;;  %7235 = vmatprep.subr.bf16.mxu0 %v7234_v13  ;;  %v2493_v50 = vld [vmem:[%s8654_s20 + $0x44a0] sm:$0xff]  ;;  %v2584_v7 = vld [vmem:[%s8654_s20 + $0x4778] sm:$0xff] }
 0x4f9   : > { %7811 = vmatprep.subr.bf16.mxu1 %v7810_v18  ;;  %v2501_v13 = vld [vmem:[%s8654_s20 + $0x44e0] sm:$0xff]  ;;  %v2510_v18 = vld [vmem:[%s8654_s20 + $0x4528] sm:$0xff] }
 0x4fa   : > { %v7256_v22 = vpack.c.bf16 %v2501_v13, %v2493_v50  ;;  %v2575_v50 = vld [vmem:[%s8654_s20 + $0x4730] sm:$0xff]  ;;  %v7850_v13 = vpack.c.bf16 %v2584_v7, %v2576_v40 }
 0x4fb   : > { %7237 = vmatpush1.bf16.msra.mxu0 %v7236_v24  ;;  %v7258_v24 = vpack.c.bf16 %v2518_v19, %v2510_v18  ;;  %v2592_v18 = vld [vmem:[%s8654_s20 + $0x47b8] sm:$0xff]  ;;  %v7852_v21 = vpack.c.bf16 %v2583_v14, %v2575_v50 }
 0x4fc   : > { %7813 = vmatpush1.bf16.msra.mxu1 %v7812_v27  ;;  %7239 = vmatprep.subr.bf16.mxu0 %v7238_v28  ;;  %v2509_v27 = vld [vmem:[%s8654_s20 + $0x4520] sm:$0xff]  ;;  %v2600_v19 = vld [vmem:[%s8654_s20 + $0x47f8] sm:$0xff] }
 0x4fd   : > { %7815 = vmatprep.subr.bf16.mxu1 %v7814_v38  ;;  %v2517_v28 = vld [vmem:[%s8654_s20 + $0x4560] sm:$0xff]  ;;  %v2526_v38 = vld [vmem:[%s8654_s20 + $0x45a8] sm:$0xff] }
 0x4fe   : > { %v7260_v41 = vpack.c.bf16 %v2517_v28, %v2509_v27  ;;  %v7854_v27 = vpack.c.bf16 %v2600_v19, %v2592_v18  ;;  %v2591_v28 = vld [vmem:[%s8654_s20 + $0x47b0] sm:$0xff] }
 0x4ff   : > { %7241 = vmatpush1.bf16.msra.mxu0 %v7240_v39  ;;  %v7262_v39 = vpack.c.bf16 %v2534_v17, %v2526_v38  ;;  %v7856_v34 = vpack.c.bf16 %v2599_v29, %v2591_v28  ;;  %v8071_v38 = vld.sshfl [vmem:[%s8646_s6 + $0x20] sm:$0x33 pattern:$0x76325410] }
 0x500   : > { %7817 = vmatpush1.bf16.msra.mxu1 %v7816_v42  ;;  %7243 = vmatprep.subr.bf16.mxu0 %v7242_v43  ;;  %v2525_v42 = vld [vmem:[%s8654_s20 + $0x45a0] sm:$0xff] }
 0x501   : > { %7819 = vmatprep.subr.bf16.mxu1 %v7818_v44  ;;  %v2533_v43 = vld [vmem:[%s8654_s20 + $0x45e0] sm:$0xff]  ;;  %v2542_v44 = vld [vmem:[%s8654_s20 + $0x4628] sm:$0xff] }
 0x502   : > { %v7264_v48 = vpack.c.bf16 %v2533_v43, %v2525_v42 }
 0x503   : > { %7245 = vmatpush1.bf16.msra.mxu0 %v7244_v31  ;;  %v7266_v31 = vpack.c.bf16 %v2550_v45, %v2542_v44  ;;  %v5310_v44 = vld [vmem:[%s8664_s3] sm:$0xff] (!%p5544_p9)  ;;  %v5314_v45 = vsub.s32 (!%p5544_p9), 0, %v8760_v63 }
 0x504   : > { %7821 = vmatpush1.bf16.msra.mxu1 %v7820_v51  ;;  %7247 = vmatprep.subr.bf16.mxu0 %v7246_v54  ;;  %v2541_v51 = vld [vmem:[%s8654_s20 + $0x4620] sm:$0xff]  ;;  %v5323_v30 = vrot.slane (!%p5544_p9), %v5310_v44, %v5322_v5 }
 0x505   : > { %7823 = vmatprep.subr.bf16.mxu1 %v7822_v58  ;;  %v2549_v54 = vld [vmem:[%s8654_s20 + $0x4660] sm:$0xff]  ;;  %v2558_v58 = vld [vmem:[%s8654_s20 + $0x46a8] sm:$0xff]  ;;  %v5315_v25 = vrot.slane (!%p5544_p9), %v5310_v44, %v5314_v45 }
 0x506   : > { %v7268_v61 = vpack.c.bf16 %v2549_v54, %v2541_v51  ;;  %v5338_v51 = vsub.s32 (!%p5544_p9), 6, %v8760_v63  ;;  %v5342_v54 = vsub.s32 (!%p5544_p9), 7, %v8760_v63 }
 0x507   : > { %7249 = vmatpush1.bf16.msra.mxu0 %v7248_v36  ;;  %v7270_v36 = vpack.c.bf16 %v2566_v59, %v2558_v58 }
 0x508   : > { %7825 = vmatpush1.bf16.msra.mxu1 %v7824_v62  ;;  %7251 = vmatprep.subr.bf16.mxu0 %v7250_v1  ;;  %v2557_v62 = vld [vmem:[%s8654_s20 + $0x46a0] sm:$0xff]  ;;  %v5339_v33 = vrot.slane (!%p5544_p9), %v5310_v44, %v5338_v51 }
 0x509   : > { %7827 = vmatprep.subr.bf16.mxu1 %v7826_v4  ;;  %v2565_v1 = vld [vmem:[%s8654_s20 + $0x46e0] sm:$0xff]  ;;  %v2574_v4 = vld [vmem:[%s8654_s20 + $0x4728] sm:$0xff] }
 0x50a   : > { %v7272_v8 = vpack.c.bf16 %v2565_v1, %v2557_v62 }
 0x50b   : > { %7253 = vmatpush1.bf16.msra.mxu0 %v7252_v9  ;;  %v7274_v9 = vpack.c.bf16 %v2582_v53, %v2574_v4 }
 0x50c   : > { %7829 = vmatpush1.bf16.msra.mxu1 %v7828_v10  ;;  %7255 = vmatprep.subr.bf16.mxu0 %v7254_v11  ;;  %v2573_v10 = vld [vmem:[%s8654_s20 + $0x4720] sm:$0xff] }
 0x50d   : > { %7831 = vmatprep.subr.bf16.mxu1 %v7830_v16  ;;  %v2581_v11 = vld [vmem:[%s8654_s20 + $0x4760] sm:$0xff]  ;;  %v2590_v16 = vld [vmem:[%s8654_s20 + $0x47a8] sm:$0xff] }
 0x50e   : > { %v7276_v20 = vpack.c.bf16 %v2581_v11, %v2573_v10 }
 0x50f   : > { %7257 = vmatpush1.bf16.msra.mxu0 %v7256_v22  ;;  %v7278_v22 = vpack.c.bf16 %v2598_v55, %v2590_v16 }
 0x510   : > { %7833 = vmatpush1.bf16.msra.mxu1 %v7832_v23  ;;  %7259 = vmatprep.subr.bf16.mxu0 %v7258_v24  ;;  %v2589_v23 = vld [vmem:[%s8654_s20 + $0x47a0] sm:$0xff] }
 0x511   : > { %7835 = vmatprep.subr.bf16.mxu1 %v7834_v32  ;;  %v2597_v24 = vld [vmem:[%s8654_s20 + $0x47e0] sm:$0xff] }
 0x512   : > { %v7280_v32 = vpack.c.bf16 %v2597_v24, %v2589_v23 }
 0x513   : > { %7261 = vmatpush1.bf16.msra.mxu0 %v7260_v41 }
 0x514   : > { %7837 = vmatpush1.bf16.msra.mxu1 %v7836_v37  ;;  %7263 = vmatprep.subr.bf16.mxu0 %v7262_v39 }
 0x515   : > { %7839 = vmatprep.subr.bf16.mxu1 %v7838_v52 }
 0x517   : > { %7265 = vmatpush1.bf16.msra.mxu0 %v7264_v48  ;;  %v5326_v48 = vsub.s32 (!%p5544_p9), 3, %v8760_v63 }
 0x518   : > { %7841 = vmatpush1.bf16.msra.mxu1 %v7840_v49  ;;  %7267 = vmatprep.subr.bf16.mxu0 %v7266_v31  ;;  %v5330_v49 = vsub.s32 (!%p5544_p9), 4, %v8760_v63  ;;  %v5334_v31 = vsub.s32 (!%p5544_p9), 5, %v8760_v63  ;;  %v5308_v63 = vld [vmem:[%s8671_s18] sm:$0xff] (!%p5544_p9) }
 0x519   : > { %7843 = vmatprep.subr.bf16.mxu1 %v7842_v26  ;;  %v5319_v26 = vrot.slane (!%p5544_p9), %v5310_v44, %v5318_v46  ;;  %v5327_v58 = vrot.slane (!%p5544_p9), %v5310_v44, %v5326_v48 }
 0x51a   : > { %v5331_v59 = vrot.slane (!%p5544_p9), %v5310_v44, %v5330_v49  ;;  %v5335_v60 = vrot.slane (!%p5544_p9), %v5310_v44, %v5334_v31 }
 0x51b   : > { %7269 = vmatpush1.bf16.msra.mxu0 %v7268_v61  ;;  %v5343_v61 = vrot.slane (!%p5544_p9), %v5310_v44, %v5342_v54 }
 0x51c   : > { %7845 = vmatpush1.bf16.msra.mxu1 %v7844_v57  ;;  %7271 = vmatprep.subr.bf16.mxu0 %v7270_v36  ;;  %v5344_v57 = vcombine.low (!%p5544_p9), %v5315_v25, %v5319_v26  ;;  %v5345_v36 = vcombine.low (!%p5544_p9), %v5323_v30, %v5327_v58  ;;  %v5361_v62 = vcombine.low (!%p5544_p9), %v5331_v59, %v5335_v60 }
 0x51d   : > { %7847 = vmatprep.subr.bf16.mxu1 %v7846_v3  ;;  %v5362_v1 = vcombine.low (!%p5544_p9), %v5339_v33, %v5343_v61 }
 0x51e   : > { %v5352_v2 = vrot.slane (!%p5544_p9), %v5344_v57, %v8771_v12  ;;  %v5359_v3 = vrot.slane (!%p5544_p9), %v5345_v36, %v8771_v12  ;;  %v5369_v0 = vrot.slane (!%p5544_p9), %v5361_v62, %v8771_v12 }
 0x51f   : > { %7273 = vmatpush1.bf16.msra.mxu0 %v7272_v8  ;;  %v5376_v4 = vrot.slane (!%p5544_p9), %v5362_v1, %v8771_v12 }
 0x520   : > { %7849 = vmatpush1.bf16.msra.mxu1 %v7848_v6  ;;  %7275 = vmatprep.subr.bf16.mxu0 %v7274_v9  ;;  %v5360_v53 = vcombine.low (!%p5544_p9), %v5352_v2, %v5359_v3 }
 0x521   : > { %7851 = vmatprep.subr.bf16.mxu1 %v7850_v13  ;;  %v5377_v7 = vcombine.low (!%p5544_p9), %v5369_v0, %v5376_v4 }
 0x522   : > { %v5380_v8 = vadd.f32 (!%p5544_p9), %v5360_v53, %v5308_v63 }
 0x523   : > { %7277 = vmatpush1.bf16.msra.mxu0 %v7276_v20 }
 0x524   : > { %7853 = vmatpush1.bf16.msra.mxu1 %v7852_v21  ;;  %7279 = vmatprep.subr.bf16.mxu0 %v7278_v22  ;;  %v5382_v9 = vmax.f32 (!%p5544_p9), %v5380_v8, 0.0 }
 0x525   : > { %7855 = vmatprep.subr.bf16.mxu1 %v7854_v27 }
 0x526   : > { %5384 = vst [vmem:[%s8671_s18] sm:$0xff] (!%p5544_p9), %v5382_v9 }
 0x527   : > { %7281 = vmatpush1.bf16.msra.mxu0 %v7280_v32 }
 0x528   : > { %7857 = vmatpush1.bf16.msra.mxu1 %v7856_v34 }
 0x52a   : > { %4611 = vmatmul.mubr.f32.vlgmr.msra.gmra.mrb[2].mxu0 %v8071_v38 }
 0x52b   : > { %5250 = vmatmul.mubr.f32.vlgmr.msra.gmra.mrb[2].mxu1 %v8071_v38 }
 0x5fd   : > { %v4612_v17 = vpop.f32.mrb[2].mxu0 }
 0x5fe   : > { %v5251_v35 = vpop.f32.mrb[2].mxu1  ;;  %v4614_v15 = vpop.f32.mrb[3].mxu0 }
 0x5ff   : > { %v5281_v41 = vcombine.low %v4612_v17, %v4614_v15  ;;  %v5253_v37 = vpop.f32.mrb[3].mxu1 }
 0x600   : > { %v5282_v39 = vcombine.low %v5251_v35, %v5253_v37 }
 0x601   : > { %v5289_v42 = vrot.slane %v5281_v41, %v8771_v12 }
 0x602   : > { %v5296_v43 = vrot.slane %v5282_v39, %v8771_v12  ;;  %5307 = sbr.rel (%p5544_p9) target bundleno = 1557 (0x615), region = 52 }
 0x604   : > { %v5297_v52 = vcombine.low %v5289_v42, %v5296_v43 }
 0x606   : > { %v5301_v47 = vadd.f32 %v5297_v52, %v291_v56 }
 0x608   : > { %5303 = vst [vmem:[%s8671_s18 + $0x8] sm:$0xff] %v5301_v47 }
 0x60f   : > { %v5309_v40 = vld [vmem:[%s8671_s18 + $0x8] sm:$0xff] }
 0x610   : > { %v5381_v6 = vadd.f32 %v5377_v7, %v5309_v40 }
 0x612   : > { %v5383_v10 = vmax.f32 %v5381_v6, 0.0 }
 0x614   : > { %5385 = vst [vmem:[%s8671_s18 + $0x8] sm:$0xff] %v5383_v10 }
 0x615 PF: > { %s11296_s21 = sld [smem:[#allocation14_spill]]  ;;  %s11297_s22 = sld [smem:[#allocation21_spill]] }
 0x616   : > { %s5401_s6 = sshll.u32 %s8671_s18, 4  ;;  %s5387_s0 = scalar_lea.sflag [#allocation4], %s8661_s1  ;;  %s5402_s6 = int_to_ptr.vmem [resolvable:$true] %s5401_s6 }
 0x617   : > { %s8162_s29 = scalar_lea.vmem %s5402_s6, 256  ;;  %p11299_p0 = scmp.ne.s32.totalorder %s11288_s11, 0 }
 0x618   : > { %p8163_p10 = scmp.ne.s32.totalorder %s5402_s6, %s8162_s29  ;;  %s8326_s7 = smov [#allocation8]  }
 0x619   : > { %s8166_s27 = sshll.u32 %s8326_s7, 4  ;;  %s8167_s27 = int_to_ptr.vmem [resolvable:$false] %s8166_s27 }
 0x61a   : > { %p8164_p5 = pnand %p8163_p10, %p11299_p0  ;;  %s8168_s20 = scalar_lea.vmem %s8167_s27, 512 }
 0x61b   : > { %s5553_s30 = sshll.u32 %s11296_s21, 8  ;;  %s11298_s8 = smov %s11297_s22 }
 0x61c   : > { %s11173_s24 = scalar_lea.hbm %s11297_s22, %s5553_s30  ;;  %p8165_p3 = pneg %p8164_p5 }
 0x61d   : > { %p8169_p7 = scmp.lt.s32.totalorder %s5402_s6, %s8167_s27  ;;  %p8170_p12 = scmp.lt.s32.totalorder %s8168_s20, %s8162_s29 }
 0x61f   : > { %p8171_p8 = por %p8170_p12, %p8169_p7 }
 0x621   : > { %p8172_p13 = pnand %p8171_p8, %p8165_p3 }
 0x623   : > { %8175 = shalt.err (!%p8172_p13)
}
 0x624   : > { %s8176_s1 = scalar_lea.hbm %s11173_s24, 256  ;;  %s8180_s5 = scalar_lea.hbm %s11298_s8, 1024 }
 0x625   : > { %p8177_p1 = scmp.ne.s32.totalorder %s11173_s24, %s8176_s1  ;;  %p8181_p6 = scmp.lt.u32.totalorder %s11173_s24, %s11298_s8 }
 0x626   : > { %p8182_p11 = scmp.lt.u32.totalorder %s8180_s5, %s8176_s1  ;;  %p8184_p10 = scmp.lt.u32.totalorder %s8176_s1, %s11173_s24 }
 0x627   : > { %p8178_p4 = pnand %p8177_p1, %p11299_p0 }
 0x628   : > { %p8183_p9 = por %p8182_p11, %p8181_p6 }
 0x629   : > { %p8179_p2 = pneg %p8178_p4 }
 0x62a   : > { %p8185_p5 = por %p8184_p10, %p8183_p9 }
 0x62c   : > { %p8186_p3 = pnand %p8185_p5, %p8179_p2 }
 0x62e   : > { %8189 = shalt.err (!%p8186_p3)
}
 0x62f   : > { %7932 = dma.vmem_to_hbm [thread:$0]  (%p11299_p0), %s5402_s6, 256, %s11173_s24, %s5387_s0  }
 0x630 PF: > { %p7949_p7 = scmp.ge.s32.totalorder %s8316_s25, 2  ;;  %s5413_s30 = sand.u32 1, %s8264_s12  }
 0x631   : > { %p11300_p12 = scmp.ne.s32.totalorder %s11289_s15, 0  ;;  %s5414_s4 = scalar_lea.sflag [#allocation4], %s5413_s30 }
 0x633   : > { %p7945_p8 = pnand %p7949_p7, %p11300_p12 }
 0x635   : > { %8259 = dma.done.wait (!%p7945_p8), %s5414_s4, 256  }
 0x636   : > { %8261 = vsyncadd (!%p7945_p8), %s5414_s4, 4294967040  ;;  %s22_s25 = sadd.s32 1, %s8316_s25   ;;  %s11302_s11 = sld [smem:[#allocation13_spill]] }
 0x637   : > { %p11199_p13 = scmp.ge.s32.totalorder %s22_s25, 18   ;;  %s11303_s20 = sld [smem:[#allocation18_spill]] }
 0x638   : > { %s11304_s22 = sld [smem:[#allocation15_spill]]  ;;  %s11305_s24 = sld [smem:[#allocation16_spill]] }
 0x639   : > { %s11306_s6 = sld [smem:[#allocation17_spill]]  ;;  %s11307_s12 = smov %s8268_s13 }
 0x63a   : > { %s11308_s13 = smov %s8272_s14  ;;  %s11309_s14 = smov %s8581_s28 }
 0x63b   : > { %s11310_s15 = smov %s8280_s16  ;;  %s11311_s16 = smov %s8284_s17 }
 0x63c   : > { %s11312_s17 = smov %s8540_s26  ;;  %s11313_s18 = smov %s8292_s19 }
 0x63d   : > { %s11314_s19 = smov %s11302_s11  ;;  %s11315_s21 = smov %s8308_s23 }
 0x63e   : > { %s11316_s23 = smov %s11305_s24  ;;  %21 = sbr.rel (!%p11199_p13) target bundleno = 16 (0x10), region = 109 }
 0x63f   : > { %s11317_s24 = smov %s11306_s6 }
 0x645   :  { %5419 = vsyncpa [#allocation3], 1 }
 0x646   :  { %5421 = vsyncpa [#allocation3 + $0x1], 1 }
 0x647   :  { %5422 = vsyncpa [#allocation6], 1 }
 0x648   :  { %5424 = vsyncpa [#allocation6 + $0x1], 1 }
 0x649   :  { %5425 = vsyncpa [#allocation4], 1 }
 0x64a   :  { %5427 = vsyncpa [#allocation4 + $0x1], 1 }

</bundles_post_ra>
